<compile_context>
chip_gen: v5e
topology: v5e:2x2
jax: 0.10.0
libtpu: 0.0.40
codegen_flags: <defaults>
</compile_context>

<pallas_src>
import jax
import jax.numpy as jnp
from jax import lax
from jax.experimental import pallas as pl
from jax.experimental.pallas import tpu as pltpu

SPATIAL = 13 * 13        # 169 pooled positions per channel
SPATIAL_PAD = 176        # 169 -> 176 (multiple of 8 sublanes); pad rows are zero
CHUNK = 16               # spatial rows per inner-loop step (176 = 11 * 16)
KROWS = 8 * SPATIAL_PAD  # 1408 rows of the merged FC contraction


def fused_cnn_kernel(pats_ref, cw_ref, cb_ref, fcw_ref, fcb_ref, out_ref, pool_ref):
    # pats_ref: (16, 176, B) VMEM  -- pats[u*4+v, pi*13+pj, n] = x[n, 2*pi+u, 2*pj+v]
    # cw_ref  : (72,)  SMEM        -- conv weight, index c*9 + ki*3 + kj
    # cb_ref  : (8,)   SMEM        -- conv bias
    # fcw_ref : (128, 1408) VMEM   -- fc weight [out (10->128 pad), c*176 + p], pads are zero
    # fcb_ref : (128, 1) VMEM      -- fc bias (padded)
    # out_ref : (128, B) VMEM      -- logits, batch on lanes
    # pool_ref: (1408, B) VMEM     -- pooled activations [c*176 + p, n] (scratch)
    num_chunks = SPATIAL_PAD // CHUNK

    def conv_chunk(s, carry):
        r0 = pl.multiple_of(s * CHUNK, CHUNK)
        for c in range(8):                    # output channels (unrolled at trace time)
            offs = []
            for a in range(2):                # pooling-window row offset
                for b in range(2):            # pooling-window col offset
                    acc = None
                    for ki in range(3):
                        for kj in range(3):
                            tap = pats_ref[(a + ki) * 4 + (b + kj), pl.ds(r0, CHUNK), :]
                            term = cw_ref[c * 9 + ki * 3 + kj] * tap
                            acc = term if acc is None else acc + term
                    offs.append(acc)
            mx = jnp.maximum(jnp.maximum(offs[0], offs[1]),
                             jnp.maximum(offs[2], offs[3]))
            # bias add + ReLU hoisted out of the 2x2 offset loop (monotonicity)
            pooled = jnp.maximum(mx + cb_ref[c], 0.0)
            pool_ref[pl.ds(c * SPATIAL_PAD + r0, CHUNK), :] = pooled
        return carry

    lax.fori_loop(0, num_chunks, conv_chunk, 0)

    # merged FC: one MXU dot over all 8 channels' pooled activations
    out_ref[...] = (
        jnp.dot(fcw_ref[...], pool_ref[...], preferred_element_type=jnp.float32)
        + fcb_ref[...]
    )


def simple_cnn_forward(x, conv_w, conv_b, fc_w, fc_b, block_n=256):
    # x: (N, 1, 28, 28) float32 NCHW (PyTorch convention)
    N = x.shape[0]
    x2 = x.reshape(N, 28, 28).astype(jnp.float32)

    # 16 stride-2 phase/tap patches, batch on the minor (lane) axis:
    #   pats[u*4+v, pi*13+pj, n] = x[n, 2*pi+u, 2*pj+v],  u,v in 0..3, pi,pj in 0..12
    pats = jnp.stack(
        [jnp.transpose(x2[:, u:u + 25:2, v:v + 25:2], (1, 2, 0)).reshape(SPATIAL, N)
         for u in range(4) for v in range(4)],
        axis=0,
    )  # (16, 169, N)

    # batch block on lanes: multiple of 128 (review: never a non-multiple of 8/128)
    block_n = max(128, (int(block_n) // 128) * 128)
    B = min(block_n, ((N + 127) // 128) * 128)
    Npad = ((N + B - 1) // B) * B
    pats = jnp.pad(pats, ((0, 0), (0, SPATIAL_PAD - SPATIAL), (0, Npad - N)))  # (16,176,Npad)

    # FC weights reshaped to [out(10->128 pad), c, p(169->176 pad)] -> (128, 1408)
    # (PyTorch NCHW flatten order c*169 + pi*13 + pj); padded rows/cols are zero.
    fcw = jnp.zeros((128, 8, SPATIAL_PAD), jnp.float32)
    fcw = fcw.at[:10, :, :SPATIAL].set(fc_w.reshape(10, 8, SPATIAL).astype(jnp.float32))
    fcw = fcw.reshape(128, KROWS)
    fcb = jnp.zeros((128, 1), jnp.float32).at[:10, 0].set(fc_b.astype(jnp.float32))

    out = pl.pallas_call(
        fused_cnn_kernel,
        out_shape=jax.ShapeDtypeStruct((128, Npad), jnp.float32),
        grid_spec=pltpu.PrefetchScalarGridSpec(
            num_scalar_prefetch=0,
            grid=(Npad // B,),
            in_specs=[
                pl.BlockSpec((16, SPATIAL_PAD, B), lambda g: (0, 0, g)),
                pl.BlockSpec(memory_space=pltpu.MemorySpace.SMEM),
                pl.BlockSpec(memory_space=pltpu.MemorySpace.SMEM),
                pl.BlockSpec((128, KROWS), lambda g: (0, 0)),
                pl.BlockSpec((128, 1), lambda g: (0, 0)),
            ],
            out_specs=pl.BlockSpec((128, B), lambda g: (0, g)),
            scratch_shapes=[pltpu.VMEM((KROWS, B), jnp.float32)],
        ),
        compiler_params=pltpu.CompilerParams(
            dimension_semantics=("parallel",),
            vmem_limit_bytes=40 * 1024 * 1024,
        ),
    )(pats,
      conv_w.reshape(72).astype(jnp.float32),
      conv_b.astype(jnp.float32),
      fcw, fcb)

    # logits live as (128 padded outputs, Npad batch lanes); slice + transpose back
    return out[:10, :N].T


def reference_forward(x, conv_w, conv_b, fc_w, fc_b):
    # pure-JAX reference mirroring the PyTorch module semantics
    y = lax.conv_general_dilated(x, conv_w, window_strides=(1, 1), padding="VALID",
                                 dimension_numbers=("NCHW", "OIHW", "NCHW"),
                                 precision=lax.Precision.HIGHEST)
    y = jnp.maximum(y + conv_b.reshape(1, 8, 1, 1), 0.0)
    y = lax.reduce_window(y, -jnp.inf, lax.max, (1, 1, 2, 2), (1, 1, 2, 2), "VALID")
    flat = y.reshape(x.shape[0], -1)
    return jnp.dot(flat, fc_w.T, precision=lax.Precision.HIGHEST) + fc_b


if __name__ == "__main__":
    key = jax.random.PRNGKey(0)
    k1, k2, k3, k4, k5 = jax.random.split(key, 5)

    N = 2
    # 28x28 input is implied by the module: conv3x3 -> 26x26, pool2 -> 13x13 = 8*13*13
    x = jax.random.normal(k1, (N, 1, 28, 28), dtype=jnp.float32)
    conv_w = jax.random.normal(k2, (8, 1, 3, 3), dtype=jnp.float32) * 0.1
    conv_b = jax.random.normal(k3, (8,), dtype=jnp.float32) * 0.1
    fc_w = jax.random.normal(k4, (10, 8 * 13 * 13), dtype=jnp.float32) * 0.02
    fc_b = jax.random.normal(k5, (10,), dtype=jnp.float32) * 0.02

    out = jax.jit(simple_cnn_forward)(x, conv_w, conv_b, fc_w, fc_b)
    out = jax.block_until_ready(out)

    ref = reference_forward(x, conv_w, conv_b, fc_w, fc_b)
    assert out.shape == (N, 10) and out.dtype == jnp.float32
    assert jnp.allclose(out, ref, rtol=2e-3, atol=2e-3), float(jnp.abs(out - ref).max())
    print("KERNEL_OK")
</pallas_src>

<mosaic_0001>
module attributes {stable_mosaic.version = 11 : i64} {
  func.func @fused_cnn_kernel(%arg0: i32, %arg1: memref<16x176x128xf32, #tpu.memory_space<vmem>>, %arg2: memref<72xf32, #tpu.memory_space<smem>>, %arg3: memref<8xf32, #tpu.memory_space<smem>>, %arg4: memref<128x1408xf32, #tpu.memory_space<vmem>>, %arg5: memref<128x1xf32, #tpu.memory_space<vmem>>, %arg6: memref<128x128xf32, #tpu.memory_space<vmem>>, %arg7: memref<1408x128xf32, #tpu.memory_space<vmem>>) attributes {dimension_semantics = [#tpu.dimension_semantics<parallel>], iteration_bounds = array<i64: 1>, scalar_prefetch = 0 : i64, scratch_operands = 1 : i64, tpu.core_type = #tpu.core_type<tc>, window_params = [{transform_indices = @transform_0, window_bounds = array<i64: 16, 176, 128>}, {transform_indices = @transform_1, window_bounds = array<i64: 72>}, {transform_indices = @transform_2, window_bounds = array<i64: 8>}, {pipeline_mode = #tpu.pipeline_mode<synchronous>, transform_indices = @transform_3, window_bounds = array<i64: 128, 1408>}, {pipeline_mode = #tpu.pipeline_mode<synchronous>, transform_indices = @transform_4, window_bounds = array<i64: 128, 1>}, {transform_indices = @transform_5, window_bounds = array<i64: 128, 128>}]} {
    %c0_i32 = arith.constant 0 : i32
    %c11_i32 = arith.constant 11 : i32
    %0 = arith.addi %c0_i32, %c11_i32 : i32
    %c1_i32 = arith.constant 1 : i32
    scf.for %arg8 = %c0_i32 to %0 step %c1_i32  : i32 {
      %c16_i32 = arith.constant 16 : i32
      %8 = arith.muli %arg8, %c16_i32 : i32
      %9 = tpu.assume_multiple %8, 16 : i32
      %c0_8 = arith.constant 0 : index
      %10 = arith.index_cast %9 : i32 to index
      %c0_9 = arith.constant 0 : index
      %11 = vector.load %arg1[%c0_8, %10, %c0_9] : memref<16x176x128xf32, #tpu.memory_space<vmem>>, vector<1x16x128xf32>
      %12 = vector.shape_cast %11 : vector<1x16x128xf32> to vector<16x128xf32>
      %c0_10 = arith.constant 0 : index
      %13 = memref.load %arg2[%c0_10] : memref<72xf32, #tpu.memory_space<smem>>
      %14 = vector.broadcast %13 : f32 to vector<16x128xf32>
      %15 = arith.mulf %14, %12 : vector<16x128xf32>
      %c1 = arith.constant 1 : index
      %16 = arith.index_cast %9 : i32 to index
      %c0_11 = arith.constant 0 : index
      %17 = vector.load %arg1[%c1, %16, %c0_11] : memref<16x176x128xf32, #tpu.memory_space<vmem>>, vector<1x16x128xf32>
      %18 = vector.shape_cast %17 : vector<1x16x128xf32> to vector<16x128xf32>
      %c1_12 = arith.constant 1 : index
      %19 = memref.load %arg2[%c1_12] : memref<72xf32, #tpu.memory_space<smem>>
      %20 = vector.broadcast %19 : f32 to vector<16x128xf32>
      %21 = arith.mulf %20, %18 : vector<16x128xf32>
      %22 = arith.addf %15, %21 : vector<16x128xf32>
      %c2 = arith.constant 2 : index
      %23 = arith.index_cast %9 : i32 to index
      %c0_13 = arith.constant 0 : index
      %24 = vector.load %arg1[%c2, %23, %c0_13] : memref<16x176x128xf32, #tpu.memory_space<vmem>>, vector<1x16x128xf32>
      %25 = vector.shape_cast %24 : vector<1x16x128xf32> to vector<16x128xf32>
      %c2_14 = arith.constant 2 : index
      %26 = memref.load %arg2[%c2_14] : memref<72xf32, #tpu.memory_space<smem>>
      %27 = vector.broadcast %26 : f32 to vector<16x128xf32>
      %28 = arith.mulf %27, %25 : vector<16x128xf32>
      %29 = arith.addf %22, %28 : vector<16x128xf32>
      %c4 = arith.constant 4 : index
      %30 = arith.index_cast %9 : i32 to index
      %c0_15 = arith.constant 0 : index
      %31 = vector.load %arg1[%c4, %30, %c0_15] : memref<16x176x128xf32, #tpu.memory_space<vmem>>, vector<1x16x128xf32>
      %32 = vector.shape_cast %31 : vector<1x16x128xf32> to vector<16x128xf32>
      %c3 = arith.constant 3 : index
      %33 = memref.load %arg2[%c3] : memref<72xf32, #tpu.memory_space<smem>>
      %34 = vector.broadcast %33 : f32 to vector<16x128xf32>
      %35 = arith.mulf %34, %32 : vector<16x128xf32>
      %36 = arith.addf %29, %35 : vector<16x128xf32>
      %c5 = arith.constant 5 : index
      %37 = arith.index_cast %9 : i32 to index
      %c0_16 = arith.constant 0 : index
      %38 = vector.load %arg1[%c5, %37, %c0_16] : memref<16x176x128xf32, #tpu.memory_space<vmem>>, vector<1x16x128xf32>
      %39 = vector.shape_cast %38 : vector<1x16x128xf32> to vector<16x128xf32>
      %c4_17 = arith.constant 4 : index
      %40 = memref.load %arg2[%c4_17] : memref<72xf32, #tpu.memory_space<smem>>
      %41 = vector.broadcast %40 : f32 to vector<16x128xf32>
      %42 = arith.mulf %41, %39 : vector<16x128xf32>
      %43 = arith.addf %36, %42 : vector<16x128xf32>
      %c6 = arith.constant 6 : index
      %44 = arith.index_cast %9 : i32 to index
      %c0_18 = arith.constant 0 : index
      %45 = vector.load %arg1[%c6, %44, %c0_18] : memref<16x176x128xf32, #tpu.memory_space<vmem>>, vector<1x16x128xf32>
      %46 = vector.shape_cast %45 : vector<1x16x128xf32> to vector<16x128xf32>
      %c5_19 = arith.constant 5 : index
      %47 = memref.load %arg2[%c5_19] : memref<72xf32, #tpu.memory_space<smem>>
      %48 = vector.broadcast %47 : f32 to vector<16x128xf32>
      %49 = arith.mulf %48, %46 : vector<16x128xf32>
      %50 = arith.addf %43, %49 : vector<16x128xf32>
      %c8 = arith.constant 8 : index
      %51 = arith.index_cast %9 : i32 to index
      %c0_20 = arith.constant 0 : index
      %52 = vector.load %arg1[%c8, %51, %c0_20] : memref<16x176x128xf32, #tpu.memory_space<vmem>>, vector<1x16x128xf32>
      %53 = vector.shape_cast %52 : vector<1x16x128xf32> to vector<16x128xf32>
      %c6_21 = arith.constant 6 : index
      %54 = memref.load %arg2[%c6_21] : memref<72xf32, #tpu.memory_space<smem>>
      %55 = vector.broadcast %54 : f32 to vector<16x128xf32>
      %56 = arith.mulf %55, %53 : vector<16x128xf32>
      %57 = arith.addf %50, %56 : vector<16x128xf32>
      %c9 = arith.constant 9 : index
      %58 = arith.index_cast %9 : i32 to index
      %c0_22 = arith.constant 0 : index
      %59 = vector.load %arg1[%c9, %58, %c0_22] : memref<16x176x128xf32, #tpu.memory_space<vmem>>, vector<1x16x128xf32>
      %60 = vector.shape_cast %59 : vector<1x16x128xf32> to vector<16x128xf32>
      %c7 = arith.constant 7 : index
      %61 = memref.load %arg2[%c7] : memref<72xf32, #tpu.memory_space<smem>>
      %62 = vector.broadcast %61 : f32 to vector<16x128xf32>
      %63 = arith.mulf %62, %60 : vector<16x128xf32>
      %64 = arith.addf %57, %63 : vector<16x128xf32>
      %c10 = arith.constant 10 : index
      %65 = arith.index_cast %9 : i32 to index
      %c0_23 = arith.constant 0 : index
      %66 = vector.load %arg1[%c10, %65, %c0_23] : memref<16x176x128xf32, #tpu.memory_space<vmem>>, vector<1x16x128xf32>
      %67 = vector.shape_cast %66 : vector<1x16x128xf32> to vector<16x128xf32>
      %c8_24 = arith.constant 8 : index
      %68 = memref.load %arg2[%c8_24] : memref<72xf32, #tpu.memory_space<smem>>
      %69 = vector.broadcast %68 : f32 to vector<16x128xf32>
      %70 = arith.mulf %69, %67 : vector<16x128xf32>
      %71 = arith.addf %64, %70 : vector<16x128xf32>
      %c1_25 = arith.constant 1 : index
      %72 = arith.index_cast %9 : i32 to index
      %c0_26 = arith.constant 0 : index
      %73 = vector.load %arg1[%c1_25, %72, %c0_26] : memref<16x176x128xf32, #tpu.memory_space<vmem>>, vector<1x16x128xf32>
      %74 = vector.shape_cast %73 : vector<1x16x128xf32> to vector<16x128xf32>
      %c0_27 = arith.constant 0 : index
      %75 = memref.load %arg2[%c0_27] : memref<72xf32, #tpu.memory_space<smem>>
      %76 = vector.broadcast %75 : f32 to vector<16x128xf32>
      %77 = arith.mulf %76, %74 : vector<16x128xf32>
      %c2_28 = arith.constant 2 : index
      %78 = arith.index_cast %9 : i32 to index
      %c0_29 = arith.constant 0 : index
      %79 = vector.load %arg1[%c2_28, %78, %c0_29] : memref<16x176x128xf32, #tpu.memory_space<vmem>>, vector<1x16x128xf32>
      %80 = vector.shape_cast %79 : vector<1x16x128xf32> to vector<16x128xf32>
      %c1_30 = arith.constant 1 : index
      %81 = memref.load %arg2[%c1_30] : memref<72xf32, #tpu.memory_space<smem>>
      %82 = vector.broadcast %81 : f32 to vector<16x128xf32>
      %83 = arith.mulf %82, %80 : vector<16x128xf32>
      %84 = arith.addf %77, %83 : vector<16x128xf32>
      %c3_31 = arith.constant 3 : index
      %85 = arith.index_cast %9 : i32 to index
      %c0_32 = arith.constant 0 : index
      %86 = vector.load %arg1[%c3_31, %85, %c0_32] : memref<16x176x128xf32, #tpu.memory_space<vmem>>, vector<1x16x128xf32>
      %87 = vector.shape_cast %86 : vector<1x16x128xf32> to vector<16x128xf32>
      %c2_33 = arith.constant 2 : index
      %88 = memref.load %arg2[%c2_33] : memref<72xf32, #tpu.memory_space<smem>>
      %89 = vector.broadcast %88 : f32 to vector<16x128xf32>
      %90 = arith.mulf %89, %87 : vector<16x128xf32>
      %91 = arith.addf %84, %90 : vector<16x128xf32>
      %c5_34 = arith.constant 5 : index
      %92 = arith.index_cast %9 : i32 to index
      %c0_35 = arith.constant 0 : index
      %93 = vector.load %arg1[%c5_34, %92, %c0_35] : memref<16x176x128xf32, #tpu.memory_space<vmem>>, vector<1x16x128xf32>
      %94 = vector.shape_cast %93 : vector<1x16x128xf32> to vector<16x128xf32>
      %c3_36 = arith.constant 3 : index
      %95 = memref.load %arg2[%c3_36] : memref<72xf32, #tpu.memory_space<smem>>
      %96 = vector.broadcast %95 : f32 to vector<16x128xf32>
      %97 = arith.mulf %96, %94 : vector<16x128xf32>
      %98 = arith.addf %91, %97 : vector<16x128xf32>
      %c6_37 = arith.constant 6 : index
      %99 = arith.index_cast %9 : i32 to index
      %c0_38 = arith.constant 0 : index
      %100 = vector.load %arg1[%c6_37, %99, %c0_38] : memref<16x176x128xf32, #tpu.memory_space<vmem>>, vector<1x16x128xf32>
      %101 = vector.shape_cast %100 : vector<1x16x128xf32> to vector<16x128xf32>
      %c4_39 = arith.constant 4 : index
      %102 = memref.load %arg2[%c4_39] : memref<72xf32, #tpu.memory_space<smem>>
      %103 = vector.broadcast %102 : f32 to vector<16x128xf32>
      %104 = arith.mulf %103, %101 : vector<16x128xf32>
      %105 = arith.addf %98, %104 : vector<16x128xf32>
      %c7_40 = arith.constant 7 : index
      %106 = arith.index_cast %9 : i32 to index
      %c0_41 = arith.constant 0 : index
      %107 = vector.load %arg1[%c7_40, %106, %c0_41] : memref<16x176x128xf32, #tpu.memory_space<vmem>>, vector<1x16x128xf32>
      %108 = vector.shape_cast %107 : vector<1x16x128xf32> to vector<16x128xf32>
      %c5_42 = arith.constant 5 : index
      %109 = memref.load %arg2[%c5_42] : memref<72xf32, #tpu.memory_space<smem>>
      %110 = vector.broadcast %109 : f32 to vector<16x128xf32>
      %111 = arith.mulf %110, %108 : vector<16x128xf32>
      %112 = arith.addf %105, %111 : vector<16x128xf32>
      %c9_43 = arith.constant 9 : index
      %113 = arith.index_cast %9 : i32 to index
      %c0_44 = arith.constant 0 : index
      %114 = vector.load %arg1[%c9_43, %113, %c0_44] : memref<16x176x128xf32, #tpu.memory_space<vmem>>, vector<1x16x128xf32>
      %115 = vector.shape_cast %114 : vector<1x16x128xf32> to vector<16x128xf32>
      %c6_45 = arith.constant 6 : index
      %116 = memref.load %arg2[%c6_45] : memref<72xf32, #tpu.memory_space<smem>>
      %117 = vector.broadcast %116 : f32 to vector<16x128xf32>
      %118 = arith.mulf %117, %115 : vector<16x128xf32>
      %119 = arith.addf %112, %118 : vector<16x128xf32>
      %c10_46 = arith.constant 10 : index
      %120 = arith.index_cast %9 : i32 to index
      %c0_47 = arith.constant 0 : index
      %121 = vector.load %arg1[%c10_46, %120, %c0_47] : memref<16x176x128xf32, #tpu.memory_space<vmem>>, vector<1x16x128xf32>
      %122 = vector.shape_cast %121 : vector<1x16x128xf32> to vector<16x128xf32>
      %c7_48 = arith.constant 7 : index
      %123 = memref.load %arg2[%c7_48] : memref<72xf32, #tpu.memory_space<smem>>
      %124 = vector.broadcast %123 : f32 to vector<16x128xf32>
      %125 = arith.mulf %124, %122 : vector<16x128xf32>
      %126 = arith.addf %119, %125 : vector<16x128xf32>
      %c11 = arith.constant 11 : index
      %127 = arith.index_cast %9 : i32 to index
      %c0_49 = arith.constant 0 : index
      %128 = vector.load %arg1[%c11, %127, %c0_49] : memref<16x176x128xf32, #tpu.memory_space<vmem>>, vector<1x16x128xf32>
      %129 = vector.shape_cast %128 : vector<1x16x128xf32> to vector<16x128xf32>
      %c8_50 = arith.constant 8 : index
      %130 = memref.load %arg2[%c8_50] : memref<72xf32, #tpu.memory_space<smem>>
      %131 = vector.broadcast %130 : f32 to vector<16x128xf32>
      %132 = arith.mulf %131, %129 : vector<16x128xf32>
      %133 = arith.addf %126, %132 : vector<16x128xf32>
      %c4_51 = arith.constant 4 : index
      %134 = arith.index_cast %9 : i32 to index
      %c0_52 = arith.constant 0 : index
      %135 = vector.load %arg1[%c4_51, %134, %c0_52] : memref<16x176x128xf32, #tpu.memory_space<vmem>>, vector<1x16x128xf32>
      %136 = vector.shape_cast %135 : vector<1x16x128xf32> to vector<16x128xf32>
      %c0_53 = arith.constant 0 : index
      %137 = memref.load %arg2[%c0_53] : memref<72xf32, #tpu.memory_space<smem>>
      %138 = vector.broadcast %137 : f32 to vector<16x128xf32>
      %139 = arith.mulf %138, %136 : vector<16x128xf32>
      %c5_54 = arith.constant 5 : index
      %140 = arith.index_cast %9 : i32 to index
      %c0_55 = arith.constant 0 : index
      %141 = vector.load %arg1[%c5_54, %140, %c0_55] : memref<16x176x128xf32, #tpu.memory_space<vmem>>, vector<1x16x128xf32>
      %142 = vector.shape_cast %141 : vector<1x16x128xf32> to vector<16x128xf32>
      %c1_56 = arith.constant 1 : index
      %143 = memref.load %arg2[%c1_56] : memref<72xf32, #tpu.memory_space<smem>>
      %144 = vector.broadcast %143 : f32 to vector<16x128xf32>
      %145 = arith.mulf %144, %142 : vector<16x128xf32>
      %146 = arith.addf %139, %145 : vector<16x128xf32>
      %c6_57 = arith.constant 6 : index
      %147 = arith.index_cast %9 : i32 to index
      %c0_58 = arith.constant 0 : index
      %148 = vector.load %arg1[%c6_57, %147, %c0_58] : memref<16x176x128xf32, #tpu.memory_space<vmem>>, vector<1x16x128xf32>
      %149 = vector.shape_cast %148 : vector<1x16x128xf32> to vector<16x128xf32>
      %c2_59 = arith.constant 2 : index
      %150 = memref.load %arg2[%c2_59] : memref<72xf32, #tpu.memory_space<smem>>
      %151 = vector.broadcast %150 : f32 to vector<16x128xf32>
      %152 = arith.mulf %151, %149 : vector<16x128xf32>
      %153 = arith.addf %146, %152 : vector<16x128xf32>
      %c8_60 = arith.constant 8 : index
      %154 = arith.index_cast %9 : i32 to index
      %c0_61 = arith.constant 0 : index
      %155 = vector.load %arg1[%c8_60, %154, %c0_61] : memref<16x176x128xf32, #tpu.memory_space<vmem>>, vector<1x16x128xf32>
      %156 = vector.shape_cast %155 : vector<1x16x128xf32> to vector<16x128xf32>
      %c3_62 = arith.constant 3 : index
      %157 = memref.load %arg2[%c3_62] : memref<72xf32, #tpu.memory_space<smem>>
      %158 = vector.broadcast %157 : f32 to vector<16x128xf32>
      %159 = arith.mulf %158, %156 : vector<16x128xf32>
      %160 = arith.addf %153, %159 : vector<16x128xf32>
      %c9_63 = arith.constant 9 : index
      %161 = arith.index_cast %9 : i32 to index
      %c0_64 = arith.constant 0 : index
      %162 = vector.load %arg1[%c9_63, %161, %c0_64] : memref<16x176x128xf32, #tpu.memory_space<vmem>>, vector<1x16x128xf32>
      %163 = vector.shape_cast %162 : vector<1x16x128xf32> to vector<16x128xf32>
      %c4_65 = arith.constant 4 : index
      %164 = memref.load %arg2[%c4_65] : memref<72xf32, #tpu.memory_space<smem>>
      %165 = vector.broadcast %164 : f32 to vector<16x128xf32>
      %166 = arith.mulf %165, %163 : vector<16x128xf32>
      %167 = arith.addf %160, %166 : vector<16x128xf32>
      %c10_66 = arith.constant 10 : index
      %168 = arith.index_cast %9 : i32 to index
      %c0_67 = arith.constant 0 : index
      %169 = vector.load %arg1[%c10_66, %168, %c0_67] : memref<16x176x128xf32, #tpu.memory_space<vmem>>, vector<1x16x128xf32>
      %170 = vector.shape_cast %169 : vector<1x16x128xf32> to vector<16x128xf32>
      %c5_68 = arith.constant 5 : index
      %171 = memref.load %arg2[%c5_68] : memref<72xf32, #tpu.memory_space<smem>>
      %172 = vector.broadcast %171 : f32 to vector<16x128xf32>
      %173 = arith.mulf %172, %170 : vector<16x128xf32>
      %174 = arith.addf %167, %173 : vector<16x128xf32>
      %c12 = arith.constant 12 : index
      %175 = arith.index_cast %9 : i32 to index
      %c0_69 = arith.constant 0 : index
      %176 = vector.load %arg1[%c12, %175, %c0_69] : memref<16x176x128xf32, #tpu.memory_space<vmem>>, vector<1x16x128xf32>
      %177 = vector.shape_cast %176 : vector<1x16x128xf32> to vector<16x128xf32>
      %c6_70 = arith.constant 6 : index
      %178 = memref.load %arg2[%c6_70] : memref<72xf32, #tpu.memory_space<smem>>
      %179 = vector.broadcast %178 : f32 to vector<16x128xf32>
      %180 = arith.mulf %179, %177 : vector<16x128xf32>
      %181 = arith.addf %174, %180 : vector<16x128xf32>
      %c13 = arith.constant 13 : index
      %182 = arith.index_cast %9 : i32 to index
      %c0_71 = arith.constant 0 : index
      %183 = vector.load %arg1[%c13, %182, %c0_71] : memref<16x176x128xf32, #tpu.memory_space<vmem>>, vector<1x16x128xf32>
      %184 = vector.shape_cast %183 : vector<1x16x128xf32> to vector<16x128xf32>
      %c7_72 = arith.constant 7 : index
      %185 = memref.load %arg2[%c7_72] : memref<72xf32, #tpu.memory_space<smem>>
      %186 = vector.broadcast %185 : f32 to vector<16x128xf32>
      %187 = arith.mulf %186, %184 : vector<16x128xf32>
      %188 = arith.addf %181, %187 : vector<16x128xf32>
      %c14 = arith.constant 14 : index
      %189 = arith.index_cast %9 : i32 to index
      %c0_73 = arith.constant 0 : index
      %190 = vector.load %arg1[%c14, %189, %c0_73] : memref<16x176x128xf32, #tpu.memory_space<vmem>>, vector<1x16x128xf32>
      %191 = vector.shape_cast %190 : vector<1x16x128xf32> to vector<16x128xf32>
      %c8_74 = arith.constant 8 : index
      %192 = memref.load %arg2[%c8_74] : memref<72xf32, #tpu.memory_space<smem>>
      %193 = vector.broadcast %192 : f32 to vector<16x128xf32>
      %194 = arith.mulf %193, %191 : vector<16x128xf32>
      %195 = arith.addf %188, %194 : vector<16x128xf32>
      %c5_75 = arith.constant 5 : index
      %196 = arith.index_cast %9 : i32 to index
      %c0_76 = arith.constant 0 : index
      %197 = vector.load %arg1[%c5_75, %196, %c0_76] : memref<16x176x128xf32, #tpu.memory_space<vmem>>, vector<1x16x128xf32>
      %198 = vector.shape_cast %197 : vector<1x16x128xf32> to vector<16x128xf32>
      %c0_77 = arith.constant 0 : index
      %199 = memref.load %arg2[%c0_77] : memref<72xf32, #tpu.memory_space<smem>>
      %200 = vector.broadcast %199 : f32 to vector<16x128xf32>
      %201 = arith.mulf %200, %198 : vector<16x128xf32>
      %c6_78 = arith.constant 6 : index
      %202 = arith.index_cast %9 : i32 to index
      %c0_79 = arith.constant 0 : index
      %203 = vector.load %arg1[%c6_78, %202, %c0_79] : memref<16x176x128xf32, #tpu.memory_space<vmem>>, vector<1x16x128xf32>
      %204 = vector.shape_cast %203 : vector<1x16x128xf32> to vector<16x128xf32>
      %c1_80 = arith.constant 1 : index
      %205 = memref.load %arg2[%c1_80] : memref<72xf32, #tpu.memory_space<smem>>
      %206 = vector.broadcast %205 : f32 to vector<16x128xf32>
      %207 = arith.mulf %206, %204 : vector<16x128xf32>
      %208 = arith.addf %201, %207 : vector<16x128xf32>
      %c7_81 = arith.constant 7 : index
      %209 = arith.index_cast %9 : i32 to index
      %c0_82 = arith.constant 0 : index
      %210 = vector.load %arg1[%c7_81, %209, %c0_82] : memref<16x176x128xf32, #tpu.memory_space<vmem>>, vector<1x16x128xf32>
      %211 = vector.shape_cast %210 : vector<1x16x128xf32> to vector<16x128xf32>
      %c2_83 = arith.constant 2 : index
      %212 = memref.load %arg2[%c2_83] : memref<72xf32, #tpu.memory_space<smem>>
      %213 = vector.broadcast %212 : f32 to vector<16x128xf32>
      %214 = arith.mulf %213, %211 : vector<16x128xf32>
      %215 = arith.addf %208, %214 : vector<16x128xf32>
      %c9_84 = arith.constant 9 : index
      %216 = arith.index_cast %9 : i32 to index
      %c0_85 = arith.constant 0 : index
      %217 = vector.load %arg1[%c9_84, %216, %c0_85] : memref<16x176x128xf32, #tpu.memory_space<vmem>>, vector<1x16x128xf32>
      %218 = vector.shape_cast %217 : vector<1x16x128xf32> to vector<16x128xf32>
      %c3_86 = arith.constant 3 : index
      %219 = memref.load %arg2[%c3_86] : memref<72xf32, #tpu.memory_space<smem>>
      %220 = vector.broadcast %219 : f32 to vector<16x128xf32>
      %221 = arith.mulf %220, %218 : vector<16x128xf32>
      %222 = arith.addf %215, %221 : vector<16x128xf32>
      %c10_87 = arith.constant 10 : index
      %223 = arith.index_cast %9 : i32 to index
      %c0_88 = arith.constant 0 : index
      %224 = vector.load %arg1[%c10_87, %223, %c0_88] : memref<16x176x128xf32, #tpu.memory_space<vmem>>, vector<1x16x128xf32>
      %225 = vector.shape_cast %224 : vector<1x16x128xf32> to vector<16x128xf32>
      %c4_89 = arith.constant 4 : index
      %226 = memref.load %arg2[%c4_89] : memref<72xf32, #tpu.memory_space<smem>>
      %227 = vector.broadcast %226 : f32 to vector<16x128xf32>
      %228 = arith.mulf %227, %225 : vector<16x128xf32>
      %229 = arith.addf %222, %228 : vector<16x128xf32>
      %c11_90 = arith.constant 11 : index
      %230 = arith.index_cast %9 : i32 to index
      %c0_91 = arith.constant 0 : index
      %231 = vector.load %arg1[%c11_90, %230, %c0_91] : memref<16x176x128xf32, #tpu.memory_space<vmem>>, vector<1x16x128xf32>
      %232 = vector.shape_cast %231 : vector<1x16x128xf32> to vector<16x128xf32>
      %c5_92 = arith.constant 5 : index
      %233 = memref.load %arg2[%c5_92] : memref<72xf32, #tpu.memory_space<smem>>
      %234 = vector.broadcast %233 : f32 to vector<16x128xf32>
      %235 = arith.mulf %234, %232 : vector<16x128xf32>
      %236 = arith.addf %229, %235 : vector<16x128xf32>
      %c13_93 = arith.constant 13 : index
      %237 = arith.index_cast %9 : i32 to index
      %c0_94 = arith.constant 0 : index
      %238 = vector.load %arg1[%c13_93, %237, %c0_94] : memref<16x176x128xf32, #tpu.memory_space<vmem>>, vector<1x16x128xf32>
      %239 = vector.shape_cast %238 : vector<1x16x128xf32> to vector<16x128xf32>
      %c6_95 = arith.constant 6 : index
      %240 = memref.load %arg2[%c6_95] : memref<72xf32, #tpu.memory_space<smem>>
      %241 = vector.broadcast %240 : f32 to vector<16x128xf32>
      %242 = arith.mulf %241, %239 : vector<16x128xf32>
      %243 = arith.addf %236, %242 : vector<16x128xf32>
      %c14_96 = arith.constant 14 : index
      %244 = arith.index_cast %9 : i32 to index
      %c0_97 = arith.constant 0 : index
      %245 = vector.load %arg1[%c14_96, %244, %c0_97] : memref<16x176x128xf32, #tpu.memory_space<vmem>>, vector<1x16x128xf32>
      %246 = vector.shape_cast %245 : vector<1x16x128xf32> to vector<16x128xf32>
      %c7_98 = arith.constant 7 : index
      %247 = memref.load %arg2[%c7_98] : memref<72xf32, #tpu.memory_space<smem>>
      %248 = vector.broadcast %247 : f32 to vector<16x128xf32>
      %249 = arith.mulf %248, %246 : vector<16x128xf32>
      %250 = arith.addf %243, %249 : vector<16x128xf32>
      %c15 = arith.constant 15 : index
      %251 = arith.index_cast %9 : i32 to index
      %c0_99 = arith.constant 0 : index
      %252 = vector.load %arg1[%c15, %251, %c0_99] : memref<16x176x128xf32, #tpu.memory_space<vmem>>, vector<1x16x128xf32>
      %253 = vector.shape_cast %252 : vector<1x16x128xf32> to vector<16x128xf32>
      %c8_100 = arith.constant 8 : index
      %254 = memref.load %arg2[%c8_100] : memref<72xf32, #tpu.memory_space<smem>>
      %255 = vector.broadcast %254 : f32 to vector<16x128xf32>
      %256 = arith.mulf %255, %253 : vector<16x128xf32>
      %257 = arith.addf %250, %256 : vector<16x128xf32>
      %258 = arith.maximumf %71, %133 : vector<16x128xf32>
      %259 = arith.maximumf %195, %257 : vector<16x128xf32>
      %260 = arith.maximumf %258, %259 : vector<16x128xf32>
      %c0_101 = arith.constant 0 : index
      %261 = memref.load %arg3[%c0_101] : memref<8xf32, #tpu.memory_space<smem>>
      %262 = vector.broadcast %261 : f32 to vector<16x128xf32>
      %263 = arith.addf %260, %262 : vector<16x128xf32>
      %cst_102 = arith.constant 0.000000e+00 : f32
      %264 = vector.broadcast %cst_102 : f32 to vector<16x128xf32>
      %265 = arith.maximumf %263, %264 : vector<16x128xf32>
      %c0_i32_103 = arith.constant 0 : i32
      %266 = arith.addi %c0_i32_103, %9 : i32
      %267 = arith.index_cast %266 : i32 to index
      %c0_104 = arith.constant 0 : index
      %268 = vector.load %arg7[%267, %c0_104] : memref<1408x128xf32, #tpu.memory_space<vmem>>, vector<16x128xf32>
      tpu.vector_store %arg7[%267, %c0_104], %265 {strides = array<i32>} : memref<1408x128xf32, #tpu.memory_space<vmem>>, vector<16x128xf32>,
      %c0_105 = arith.constant 0 : index
      %269 = arith.index_cast %9 : i32 to index
      %c0_106 = arith.constant 0 : index
      %270 = vector.load %arg1[%c0_105, %269, %c0_106] : memref<16x176x128xf32, #tpu.memory_space<vmem>>, vector<1x16x128xf32>
      %271 = vector.shape_cast %270 : vector<1x16x128xf32> to vector<16x128xf32>
      %c9_107 = arith.constant 9 : index
      %272 = memref.load %arg2[%c9_107] : memref<72xf32, #tpu.memory_space<smem>>
      %273 = vector.broadcast %272 : f32 to vector<16x128xf32>
      %274 = arith.mulf %273, %271 : vector<16x128xf32>
      %c1_108 = arith.constant 1 : index
      %275 = arith.index_cast %9 : i32 to index
      %c0_109 = arith.constant 0 : index
      %276 = vector.load %arg1[%c1_108, %275, %c0_109] : memref<16x176x128xf32, #tpu.memory_space<vmem>>, vector<1x16x128xf32>
      %277 = vector.shape_cast %276 : vector<1x16x128xf32> to vector<16x128xf32>
      %c10_110 = arith.constant 10 : index
      %278 = memref.load %arg2[%c10_110] : memref<72xf32, #tpu.memory_space<smem>>
      %279 = vector.broadcast %278 : f32 to vector<16x128xf32>
      %280 = arith.mulf %279, %277 : vector<16x128xf32>
      %281 = arith.addf %274, %280 : vector<16x128xf32>
      %c2_111 = arith.constant 2 : index
      %282 = arith.index_cast %9 : i32 to index
      %c0_112 = arith.constant 0 : index
      %283 = vector.load %arg1[%c2_111, %282, %c0_112] : memref<16x176x128xf32, #tpu.memory_space<vmem>>, vector<1x16x128xf32>
      %284 = vector.shape_cast %283 : vector<1x16x128xf32> to vector<16x128xf32>
      %c11_113 = arith.constant 11 : index
      %285 = memref.load %arg2[%c11_113] : memref<72xf32, #tpu.memory_space<smem>>
      %286 = vector.broadcast %285 : f32 to vector<16x128xf32>
      %287 = arith.mulf %286, %284 : vector<16x128xf32>
      %288 = arith.addf %281, %287 : vector<16x128xf32>
      %c4_114 = arith.constant 4 : index
      %289 = arith.index_cast %9 : i32 to index
      %c0_115 = arith.constant 0 : index
      %290 = vector.load %arg1[%c4_114, %289, %c0_115] : memref<16x176x128xf32, #tpu.memory_space<vmem>>, vector<1x16x128xf32>
      %291 = vector.shape_cast %290 : vector<1x16x128xf32> to vector<16x128xf32>
      %c12_116 = arith.constant 12 : index
      %292 = memref.load %arg2[%c12_116] : memref<72xf32, #tpu.memory_space<smem>>
      %293 = vector.broadcast %292 : f32 to vector<16x128xf32>
      %294 = arith.mulf %293, %291 : vector<16x128xf32>
      %295 = arith.addf %288, %294 : vector<16x128xf32>
      %c5_117 = arith.constant 5 : index
      %296 = arith.index_cast %9 : i32 to index
      %c0_118 = arith.constant 0 : index
      %297 = vector.load %arg1[%c5_117, %296, %c0_118] : memref<16x176x128xf32, #tpu.memory_space<vmem>>, vector<1x16x128xf32>
      %298 = vector.shape_cast %297 : vector<1x16x128xf32> to vector<16x128xf32>
      %c13_119 = arith.constant 13 : index
      %299 = memref.load %arg2[%c13_119] : memref<72xf32, #tpu.memory_space<smem>>
      %300 = vector.broadcast %299 : f32 to vector<16x128xf32>
      %301 = arith.mulf %300, %298 : vector<16x128xf32>
      %302 = arith.addf %295, %301 : vector<16x128xf32>
      %c6_120 = arith.constant 6 : index
      %303 = arith.index_cast %9 : i32 to index
      %c0_121 = arith.constant 0 : index
      %304 = vector.load %arg1[%c6_120, %303, %c0_121] : memref<16x176x128xf32, #tpu.memory_space<vmem>>, vector<1x16x128xf32>
      %305 = vector.shape_cast %304 : vector<1x16x128xf32> to vector<16x128xf32>
      %c14_122 = arith.constant 14 : index
      %306 = memref.load %arg2[%c14_122] : memref<72xf32, #tpu.memory_space<smem>>
      %307 = vector.broadcast %306 : f32 to vector<16x128xf32>
      %308 = arith.mulf %307, %305 : vector<16x128xf32>
      %309 = arith.addf %302, %308 : vector<16x128xf32>
      %c8_123 = arith.constant 8 : index
      %310 = arith.index_cast %9 : i32 to index
      %c0_124 = arith.constant 0 : index
      %311 = vector.load %arg1[%c8_123, %310, %c0_124] : memref<16x176x128xf32, #tpu.memory_space<vmem>>, vector<1x16x128xf32>
      %312 = vector.shape_cast %311 : vector<1x16x128xf32> to vector<16x128xf32>
      %c15_125 = arith.constant 15 : index
      %313 = memref.load %arg2[%c15_125] : memref<72xf32, #tpu.memory_space<smem>>
      %314 = vector.broadcast %313 : f32 to vector<16x128xf32>
      %315 = arith.mulf %314, %312 : vector<16x128xf32>
      %316 = arith.addf %309, %315 : vector<16x128xf32>
      %c9_126 = arith.constant 9 : index
      %317 = arith.index_cast %9 : i32 to index
      %c0_127 = arith.constant 0 : index
      %318 = vector.load %arg1[%c9_126, %317, %c0_127] : memref<16x176x128xf32, #tpu.memory_space<vmem>>, vector<1x16x128xf32>
      %319 = vector.shape_cast %318 : vector<1x16x128xf32> to vector<16x128xf32>
      %c16 = arith.constant 16 : index
      %320 = memref.load %arg2[%c16] : memref<72xf32, #tpu.memory_space<smem>>
      %321 = vector.broadcast %320 : f32 to vector<16x128xf32>
      %322 = arith.mulf %321, %319 : vector<16x128xf32>
      %323 = arith.addf %316, %322 : vector<16x128xf32>
      %c10_128 = arith.constant 10 : index
      %324 = arith.index_cast %9 : i32 to index
      %c0_129 = arith.constant 0 : index
      %325 = vector.load %arg1[%c10_128, %324, %c0_129] : memref<16x176x128xf32, #tpu.memory_space<vmem>>, vector<1x16x128xf32>
      %326 = vector.shape_cast %325 : vector<1x16x128xf32> to vector<16x128xf32>
      %c17 = arith.constant 17 : index
      %327 = memref.load %arg2[%c17] : memref<72xf32, #tpu.memory_space<smem>>
      %328 = vector.broadcast %327 : f32 to vector<16x128xf32>
      %329 = arith.mulf %328, %326 : vector<16x128xf32>
      %330 = arith.addf %323, %329 : vector<16x128xf32>
      %c1_130 = arith.constant 1 : index
      %331 = arith.index_cast %9 : i32 to index
      %c0_131 = arith.constant 0 : index
      %332 = vector.load %arg1[%c1_130, %331, %c0_131] : memref<16x176x128xf32, #tpu.memory_space<vmem>>, vector<1x16x128xf32>
      %333 = vector.shape_cast %332 : vector<1x16x128xf32> to vector<16x128xf32>
      %c9_132 = arith.constant 9 : index
      %334 = memref.load %arg2[%c9_132] : memref<72xf32, #tpu.memory_space<smem>>
      %335 = vector.broadcast %334 : f32 to vector<16x128xf32>
      %336 = arith.mulf %335, %333 : vector<16x128xf32>
      %c2_133 = arith.constant 2 : index
      %337 = arith.index_cast %9 : i32 to index
      %c0_134 = arith.constant 0 : index
      %338 = vector.load %arg1[%c2_133, %337, %c0_134] : memref<16x176x128xf32, #tpu.memory_space<vmem>>, vector<1x16x128xf32>
      %339 = vector.shape_cast %338 : vector<1x16x128xf32> to vector<16x128xf32>
      %c10_135 = arith.constant 10 : index
      %340 = memref.load %arg2[%c10_135] : memref<72xf32, #tpu.memory_space<smem>>
      %341 = vector.broadcast %340 : f32 to vector<16x128xf32>
      %342 = arith.mulf %341, %339 : vector<16x128xf32>
      %343 = arith.addf %336, %342 : vector<16x128xf32>
      %c3_136 = arith.constant 3 : index
      %344 = arith.index_cast %9 : i32 to index
      %c0_137 = arith.constant 0 : index
      %345 = vector.load %arg1[%c3_136, %344, %c0_137] : memref<16x176x128xf32, #tpu.memory_space<vmem>>, vector<1x16x128xf32>
      %346 = vector.shape_cast %345 : vector<1x16x128xf32> to vector<16x128xf32>
      %c11_138 = arith.constant 11 : index
      %347 = memref.load %arg2[%c11_138] : memref<72xf32, #tpu.memory_space<smem>>
      %348 = vector.broadcast %347 : f32 to vector<16x128xf32>
      %349 = arith.mulf %348, %346 : vector<16x128xf32>
      %350 = arith.addf %343, %349 : vector<16x128xf32>
      %c5_139 = arith.constant 5 : index
      %351 = arith.index_cast %9 : i32 to index
      %c0_140 = arith.constant 0 : index
      %352 = vector.load %arg1[%c5_139, %351, %c0_140] : memref<16x176x128xf32, #tpu.memory_space<vmem>>, vector<1x16x128xf32>
      %353 = vector.shape_cast %352 : vector<1x16x128xf32> to vector<16x128xf32>
      %c12_141 = arith.constant 12 : index
      %354 = memref.load %arg2[%c12_141] : memref<72xf32, #tpu.memory_space<smem>>
      %355 = vector.broadcast %354 : f32 to vector<16x128xf32>
      %356 = arith.mulf %355, %353 : vector<16x128xf32>
      %357 = arith.addf %350, %356 : vector<16x128xf32>
      %c6_142 = arith.constant 6 : index
      %358 = arith.index_cast %9 : i32 to index
      %c0_143 = arith.constant 0 : index
      %359 = vector.load %arg1[%c6_142, %358, %c0_143] : memref<16x176x128xf32, #tpu.memory_space<vmem>>, vector<1x16x128xf32>
      %360 = vector.shape_cast %359 : vector<1x16x128xf32> to vector<16x128xf32>
      %c13_144 = arith.constant 13 : index
      %361 = memref.load %arg2[%c13_144] : memref<72xf32, #tpu.memory_space<smem>>
      %362 = vector.broadcast %361 : f32 to vector<16x128xf32>
      %363 = arith.mulf %362, %360 : vector<16x128xf32>
      %364 = arith.addf %357, %363 : vector<16x128xf32>
      %c7_145 = arith.constant 7 : index
      %365 = arith.index_cast %9 : i32 to index
      %c0_146 = arith.constant 0 : index
      %366 = vector.load %arg1[%c7_145, %365, %c0_146] : memref<16x176x128xf32, #tpu.memory_space<vmem>>, vector<1x16x128xf32>
      %367 = vector.shape_cast %366 : vector<1x16x128xf32> to vector<16x128xf32>
      %c14_147 = arith.constant 14 : index
      %368 = memref.load %arg2[%c14_147] : memref<72xf32, #tpu.memory_space<smem>>
      %369 = vector.broadcast %368 : f32 to vector<16x128xf32>
      %370 = arith.mulf %369, %367 : vector<16x128xf32>
      %371 = arith.addf %364, %370 : vector<16x128xf32>
      %c9_148 = arith.constant 9 : index
      %372 = arith.index_cast %9 : i32 to index
      %c0_149 = arith.constant 0 : index
      %373 = vector.load %arg1[%c9_148, %372, %c0_149] : memref<16x176x128xf32, #tpu.memory_space<vmem>>, vector<1x16x128xf32>
      %374 = vector.shape_cast %373 : vector<1x16x128xf32> to vector<16x128xf32>
      %c15_150 = arith.constant 15 : index
      %375 = memref.load %arg2[%c15_150] : memref<72xf32, #tpu.memory_space<smem>>
      %376 = vector.broadcast %375 : f32 to vector<16x128xf32>
      %377 = arith.mulf %376, %374 : vector<16x128xf32>
      %378 = arith.addf %371, %377 : vector<16x128xf32>
      %c10_151 = arith.constant 10 : index
      %379 = arith.index_cast %9 : i32 to index
      %c0_152 = arith.constant 0 : index
      %380 = vector.load %arg1[%c10_151, %379, %c0_152] : memref<16x176x128xf32, #tpu.memory_space<vmem>>, vector<1x16x128xf32>
      %381 = vector.shape_cast %380 : vector<1x16x128xf32> to vector<16x128xf32>
      %c16_153 = arith.constant 16 : index
      %382 = memref.load %arg2[%c16_153] : memref<72xf32, #tpu.memory_space<smem>>
      %383 = vector.broadcast %382 : f32 to vector<16x128xf32>
      %384 = arith.mulf %383, %381 : vector<16x128xf32>
      %385 = arith.addf %378, %384 : vector<16x128xf32>
      %c11_154 = arith.constant 11 : index
      %386 = arith.index_cast %9 : i32 to index
      %c0_155 = arith.constant 0 : index
      %387 = vector.load %arg1[%c11_154, %386, %c0_155] : memref<16x176x128xf32, #tpu.memory_space<vmem>>, vector<1x16x128xf32>
      %388 = vector.shape_cast %387 : vector<1x16x128xf32> to vector<16x128xf32>
      %c17_156 = arith.constant 17 : index
      %389 = memref.load %arg2[%c17_156] : memref<72xf32, #tpu.memory_space<smem>>
      %390 = vector.broadcast %389 : f32 to vector<16x128xf32>
      %391 = arith.mulf %390, %388 : vector<16x128xf32>
      %392 = arith.addf %385, %391 : vector<16x128xf32>
      %c4_157 = arith.constant 4 : index
      %393 = arith.index_cast %9 : i32 to index
      %c0_158 = arith.constant 0 : index
      %394 = vector.load %arg1[%c4_157, %393, %c0_158] : memref<16x176x128xf32, #tpu.memory_space<vmem>>, vector<1x16x128xf32>
      %395 = vector.shape_cast %394 : vector<1x16x128xf32> to vector<16x128xf32>
      %c9_159 = arith.constant 9 : index
      %396 = memref.load %arg2[%c9_159] : memref<72xf32, #tpu.memory_space<smem>>
      %397 = vector.broadcast %396 : f32 to vector<16x128xf32>
      %398 = arith.mulf %397, %395 : vector<16x128xf32>
      %c5_160 = arith.constant 5 : index
      %399 = arith.index_cast %9 : i32 to index
      %c0_161 = arith.constant 0 : index
      %400 = vector.load %arg1[%c5_160, %399, %c0_161] : memref<16x176x128xf32, #tpu.memory_space<vmem>>, vector<1x16x128xf32>
      %401 = vector.shape_cast %400 : vector<1x16x128xf32> to vector<16x128xf32>
      %c10_162 = arith.constant 10 : index
      %402 = memref.load %arg2[%c10_162] : memref<72xf32, #tpu.memory_space<smem>>
      %403 = vector.broadcast %402 : f32 to vector<16x128xf32>
      %404 = arith.mulf %403, %401 : vector<16x128xf32>
      %405 = arith.addf %398, %404 : vector<16x128xf32>
      %c6_163 = arith.constant 6 : index
      %406 = arith.index_cast %9 : i32 to index
      %c0_164 = arith.constant 0 : index
      %407 = vector.load %arg1[%c6_163, %406, %c0_164] : memref<16x176x128xf32, #tpu.memory_space<vmem>>, vector<1x16x128xf32>
      %408 = vector.shape_cast %407 : vector<1x16x128xf32> to vector<16x128xf32>
      %c11_165 = arith.constant 11 : index
      %409 = memref.load %arg2[%c11_165] : memref<72xf32, #tpu.memory_space<smem>>
      %410 = vector.broadcast %409 : f32 to vector<16x128xf32>
      %411 = arith.mulf %410, %408 : vector<16x128xf32>
      %412 = arith.addf %405, %411 : vector<16x128xf32>
      %c8_166 = arith.constant 8 : index
      %413 = arith.index_cast %9 : i32 to index
      %c0_167 = arith.constant 0 : index
      %414 = vector.load %arg1[%c8_166, %413, %c0_167] : memref<16x176x128xf32, #tpu.memory_space<vmem>>, vector<1x16x128xf32>
      %415 = vector.shape_cast %414 : vector<1x16x128xf32> to vector<16x128xf32>
      %c12_168 = arith.constant 12 : index
      %416 = memref.load %arg2[%c12_168] : memref<72xf32, #tpu.memory_space<smem>>
      %417 = vector.broadcast %416 : f32 to vector<16x128xf32>
      %418 = arith.mulf %417, %415 : vector<16x128xf32>
      %419 = arith.addf %412, %418 : vector<16x128xf32>
      %c9_169 = arith.constant 9 : index
      %420 = arith.index_cast %9 : i32 to index
      %c0_170 = arith.constant 0 : index
      %421 = vector.load %arg1[%c9_169, %420, %c0_170] : memref<16x176x128xf32, #tpu.memory_space<vmem>>, vector<1x16x128xf32>
      %422 = vector.shape_cast %421 : vector<1x16x128xf32> to vector<16x128xf32>
      %c13_171 = arith.constant 13 : index
      %423 = memref.load %arg2[%c13_171] : memref<72xf32, #tpu.memory_space<smem>>
      %424 = vector.broadcast %423 : f32 to vector<16x128xf32>
      %425 = arith.mulf %424, %422 : vector<16x128xf32>
      %426 = arith.addf %419, %425 : vector<16x128xf32>
      %c10_172 = arith.constant 10 : index
      %427 = arith.index_cast %9 : i32 to index
      %c0_173 = arith.constant 0 : index
      %428 = vector.load %arg1[%c10_172, %427, %c0_173] : memref<16x176x128xf32, #tpu.memory_space<vmem>>, vector<1x16x128xf32>
      %429 = vector.shape_cast %428 : vector<1x16x128xf32> to vector<16x128xf32>
      %c14_174 = arith.constant 14 : index
      %430 = memref.load %arg2[%c14_174] : memref<72xf32, #tpu.memory_space<smem>>
      %431 = vector.broadcast %430 : f32 to vector<16x128xf32>
      %432 = arith.mulf %431, %429 : vector<16x128xf32>
      %433 = arith.addf %426, %432 : vector<16x128xf32>
      %c12_175 = arith.constant 12 : index
      %434 = arith.index_cast %9 : i32 to index
      %c0_176 = arith.constant 0 : index
      %435 = vector.load %arg1[%c12_175, %434, %c0_176] : memref<16x176x128xf32, #tpu.memory_space<vmem>>, vector<1x16x128xf32>
      %436 = vector.shape_cast %435 : vector<1x16x128xf32> to vector<16x128xf32>
      %c15_177 = arith.constant 15 : index
      %437 = memref.load %arg2[%c15_177] : memref<72xf32, #tpu.memory_space<smem>>
      %438 = vector.broadcast %437 : f32 to vector<16x128xf32>
      %439 = arith.mulf %438, %436 : vector<16x128xf32>
      %440 = arith.addf %433, %439 : vector<16x128xf32>
      %c13_178 = arith.constant 13 : index
      %441 = arith.index_cast %9 : i32 to index
      %c0_179 = arith.constant 0 : index
      %442 = vector.load %arg1[%c13_178, %441, %c0_179] : memref<16x176x128xf32, #tpu.memory_space<vmem>>, vector<1x16x128xf32>
      %443 = vector.shape_cast %442 : vector<1x16x128xf32> to vector<16x128xf32>
      %c16_180 = arith.constant 16 : index
      %444 = memref.load %arg2[%c16_180] : memref<72xf32, #tpu.memory_space<smem>>
      %445 = vector.broadcast %444 : f32 to vector<16x128xf32>
      %446 = arith.mulf %445, %443 : vector<16x128xf32>
      %447 = arith.addf %440, %446 : vector<16x128xf32>
      %c14_181 = arith.constant 14 : index
      %448 = arith.index_cast %9 : i32 to index
      %c0_182 = arith.constant 0 : index
      %449 = vector.load %arg1[%c14_181, %448, %c0_182] : memref<16x176x128xf32, #tpu.memory_space<vmem>>, vector<1x16x128xf32>
      %450 = vector.shape_cast %449 : vector<1x16x128xf32> to vector<16x128xf32>
      %c17_183 = arith.constant 17 : index
      %451 = memref.load %arg2[%c17_183] : memref<72xf32, #tpu.memory_space<smem>>
      %452 = vector.broadcast %451 : f32 to vector<16x128xf32>
      %453 = arith.mulf %452, %450 : vector<16x128xf32>
      %454 = arith.addf %447, %453 : vector<16x128xf32>
      %c5_184 = arith.constant 5 : index
      %455 = arith.index_cast %9 : i32 to index
      %c0_185 = arith.constant 0 : index
      %456 = vector.load %arg1[%c5_184, %455, %c0_185] : memref<16x176x128xf32, #tpu.memory_space<vmem>>, vector<1x16x128xf32>
      %457 = vector.shape_cast %456 : vector<1x16x128xf32> to vector<16x128xf32>
      %c9_186 = arith.constant 9 : index
      %458 = memref.load %arg2[%c9_186] : memref<72xf32, #tpu.memory_space<smem>>
      %459 = vector.broadcast %458 : f32 to vector<16x128xf32>
      %460 = arith.mulf %459, %457 : vector<16x128xf32>
      %c6_187 = arith.constant 6 : index
      %461 = arith.index_cast %9 : i32 to index
      %c0_188 = arith.constant 0 : index
      %462 = vector.load %arg1[%c6_187, %461, %c0_188] : memref<16x176x128xf32, #tpu.memory_space<vmem>>, vector<1x16x128xf32>
      %463 = vector.shape_cast %462 : vector<1x16x128xf32> to vector<16x128xf32>
      %c10_189 = arith.constant 10 : index
      %464 = memref.load %arg2[%c10_189] : memref<72xf32, #tpu.memory_space<smem>>
      %465 = vector.broadcast %464 : f32 to vector<16x128xf32>
      %466 = arith.mulf %465, %463 : vector<16x128xf32>
      %467 = arith.addf %460, %466 : vector<16x128xf32>
      %c7_190 = arith.constant 7 : index
      %468 = arith.index_cast %9 : i32 to index
      %c0_191 = arith.constant 0 : index
      %469 = vector.load %arg1[%c7_190, %468, %c0_191] : memref<16x176x128xf32, #tpu.memory_space<vmem>>, vector<1x16x128xf32>
      %470 = vector.shape_cast %469 : vector<1x16x128xf32> to vector<16x128xf32>
      %c11_192 = arith.constant 11 : index
      %471 = memref.load %arg2[%c11_192] : memref<72xf32, #tpu.memory_space<smem>>
      %472 = vector.broadcast %471 : f32 to vector<16x128xf32>
      %473 = arith.mulf %472, %470 : vector<16x128xf32>
      %474 = arith.addf %467, %473 : vector<16x128xf32>
      %c9_193 = arith.constant 9 : index
      %475 = arith.index_cast %9 : i32 to index
      %c0_194 = arith.constant 0 : index
      %476 = vector.load %arg1[%c9_193, %475, %c0_194] : memref<16x176x128xf32, #tpu.memory_space<vmem>>, vector<1x16x128xf32>
      %477 = vector.shape_cast %476 : vector<1x16x128xf32> to vector<16x128xf32>
      %c12_195 = arith.constant 12 : index
      %478 = memref.load %arg2[%c12_195] : memref<72xf32, #tpu.memory_space<smem>>
      %479 = vector.broadcast %478 : f32 to vector<16x128xf32>
      %480 = arith.mulf %479, %477 : vector<16x128xf32>
      %481 = arith.addf %474, %480 : vector<16x128xf32>
      %c10_196 = arith.constant 10 : index
      %482 = arith.index_cast %9 : i32 to index
      %c0_197 = arith.constant 0 : index
      %483 = vector.load %arg1[%c10_196, %482, %c0_197] : memref<16x176x128xf32, #tpu.memory_space<vmem>>, vector<1x16x128xf32>
      %484 = vector.shape_cast %483 : vector<1x16x128xf32> to vector<16x128xf32>
      %c13_198 = arith.constant 13 : index
      %485 = memref.load %arg2[%c13_198] : memref<72xf32, #tpu.memory_space<smem>>
      %486 = vector.broadcast %485 : f32 to vector<16x128xf32>
      %487 = arith.mulf %486, %484 : vector<16x128xf32>
      %488 = arith.addf %481, %487 : vector<16x128xf32>
      %c11_199 = arith.constant 11 : index
      %489 = arith.index_cast %9 : i32 to index
      %c0_200 = arith.constant 0 : index
      %490 = vector.load %arg1[%c11_199, %489, %c0_200] : memref<16x176x128xf32, #tpu.memory_space<vmem>>, vector<1x16x128xf32>
      %491 = vector.shape_cast %490 : vector<1x16x128xf32> to vector<16x128xf32>
      %c14_201 = arith.constant 14 : index
      %492 = memref.load %arg2[%c14_201] : memref<72xf32, #tpu.memory_space<smem>>
      %493 = vector.broadcast %492 : f32 to vector<16x128xf32>
      %494 = arith.mulf %493, %491 : vector<16x128xf32>
      %495 = arith.addf %488, %494 : vector<16x128xf32>
      %c13_202 = arith.constant 13 : index
      %496 = arith.index_cast %9 : i32 to index
      %c0_203 = arith.constant 0 : index
      %497 = vector.load %arg1[%c13_202, %496, %c0_203] : memref<16x176x128xf32, #tpu.memory_space<vmem>>, vector<1x16x128xf32>
      %498 = vector.shape_cast %497 : vector<1x16x128xf32> to vector<16x128xf32>
      %c15_204 = arith.constant 15 : index
      %499 = memref.load %arg2[%c15_204] : memref<72xf32, #tpu.memory_space<smem>>
      %500 = vector.broadcast %499 : f32 to vector<16x128xf32>
      %501 = arith.mulf %500, %498 : vector<16x128xf32>
      %502 = arith.addf %495, %501 : vector<16x128xf32>
      %c14_205 = arith.constant 14 : index
      %503 = arith.index_cast %9 : i32 to index
      %c0_206 = arith.constant 0 : index
      %504 = vector.load %arg1[%c14_205, %503, %c0_206] : memref<16x176x128xf32, #tpu.memory_space<vmem>>, vector<1x16x128xf32>
      %505 = vector.shape_cast %504 : vector<1x16x128xf32> to vector<16x128xf32>
      %c16_207 = arith.constant 16 : index
      %506 = memref.load %arg2[%c16_207] : memref<72xf32, #tpu.memory_space<smem>>
      %507 = vector.broadcast %506 : f32 to vector<16x128xf32>
      %508 = arith.mulf %507, %505 : vector<16x128xf32>
      %509 = arith.addf %502, %508 : vector<16x128xf32>
      %c15_208 = arith.constant 15 : index
      %510 = arith.index_cast %9 : i32 to index
      %c0_209 = arith.constant 0 : index
      %511 = vector.load %arg1[%c15_208, %510, %c0_209] : memref<16x176x128xf32, #tpu.memory_space<vmem>>, vector<1x16x128xf32>
      %512 = vector.shape_cast %511 : vector<1x16x128xf32> to vector<16x128xf32>
      %c17_210 = arith.constant 17 : index
      %513 = memref.load %arg2[%c17_210] : memref<72xf32, #tpu.memory_space<smem>>
      %514 = vector.broadcast %513 : f32 to vector<16x128xf32>
      %515 = arith.mulf %514, %512 : vector<16x128xf32>
      %516 = arith.addf %509, %515 : vector<16x128xf32>
      %517 = arith.maximumf %330, %392 : vector<16x128xf32>
      %518 = arith.maximumf %454, %516 : vector<16x128xf32>
      %519 = arith.maximumf %517, %518 : vector<16x128xf32>
      %c1_211 = arith.constant 1 : index
      %520 = memref.load %arg3[%c1_211] : memref<8xf32, #tpu.memory_space<smem>>
      %521 = vector.broadcast %520 : f32 to vector<16x128xf32>
      %522 = arith.addf %519, %521 : vector<16x128xf32>
      %cst_212 = arith.constant 0.000000e+00 : f32
      %523 = vector.broadcast %cst_212 : f32 to vector<16x128xf32>
      %524 = arith.maximumf %522, %523 : vector<16x128xf32>
      %c176_i32 = arith.constant 176 : i32
      %525 = arith.addi %c176_i32, %9 : i32
      %526 = arith.index_cast %525 : i32 to index
      %c0_213 = arith.constant 0 : index
      %527 = vector.load %arg7[%526, %c0_213] : memref<1408x128xf32, #tpu.memory_space<vmem>>, vector<16x128xf32>
      tpu.vector_store %arg7[%526, %c0_213], %524 {strides = array<i32>} : memref<1408x128xf32, #tpu.memory_space<vmem>>, vector<16x128xf32>,
      %c0_214 = arith.constant 0 : index
      %528 = arith.index_cast %9 : i32 to index
      %c0_215 = arith.constant 0 : index
      %529 = vector.load %arg1[%c0_214, %528, %c0_215] : memref<16x176x128xf32, #tpu.memory_space<vmem>>, vector<1x16x128xf32>
      %530 = vector.shape_cast %529 : vector<1x16x128xf32> to vector<16x128xf32>
      %c18 = arith.constant 18 : index
      %531 = memref.load %arg2[%c18] : memref<72xf32, #tpu.memory_space<smem>>
      %532 = vector.broadcast %531 : f32 to vector<16x128xf32>
      %533 = arith.mulf %532, %530 : vector<16x128xf32>
      %c1_216 = arith.constant 1 : index
      %534 = arith.index_cast %9 : i32 to index
      %c0_217 = arith.constant 0 : index
      %535 = vector.load %arg1[%c1_216, %534, %c0_217] : memref<16x176x128xf32, #tpu.memory_space<vmem>>, vector<1x16x128xf32>
      %536 = vector.shape_cast %535 : vector<1x16x128xf32> to vector<16x128xf32>
      %c19 = arith.constant 19 : index
      %537 = memref.load %arg2[%c19] : memref<72xf32, #tpu.memory_space<smem>>
      %538 = vector.broadcast %537 : f32 to vector<16x128xf32>
      %539 = arith.mulf %538, %536 : vector<16x128xf32>
      %540 = arith.addf %533, %539 : vector<16x128xf32>
      %c2_218 = arith.constant 2 : index
      %541 = arith.index_cast %9 : i32 to index
      %c0_219 = arith.constant 0 : index
      %542 = vector.load %arg1[%c2_218, %541, %c0_219] : memref<16x176x128xf32, #tpu.memory_space<vmem>>, vector<1x16x128xf32>
      %543 = vector.shape_cast %542 : vector<1x16x128xf32> to vector<16x128xf32>
      %c20 = arith.constant 20 : index
      %544 = memref.load %arg2[%c20] : memref<72xf32, #tpu.memory_space<smem>>
      %545 = vector.broadcast %544 : f32 to vector<16x128xf32>
      %546 = arith.mulf %545, %543 : vector<16x128xf32>
      %547 = arith.addf %540, %546 : vector<16x128xf32>
      %c4_220 = arith.constant 4 : index
      %548 = arith.index_cast %9 : i32 to index
      %c0_221 = arith.constant 0 : index
      %549 = vector.load %arg1[%c4_220, %548, %c0_221] : memref<16x176x128xf32, #tpu.memory_space<vmem>>, vector<1x16x128xf32>
      %550 = vector.shape_cast %549 : vector<1x16x128xf32> to vector<16x128xf32>
      %c21 = arith.constant 21 : index
      %551 = memref.load %arg2[%c21] : memref<72xf32, #tpu.memory_space<smem>>
      %552 = vector.broadcast %551 : f32 to vector<16x128xf32>
      %553 = arith.mulf %552, %550 : vector<16x128xf32>
      %554 = arith.addf %547, %553 : vector<16x128xf32>
      %c5_222 = arith.constant 5 : index
      %555 = arith.index_cast %9 : i32 to index
      %c0_223 = arith.constant 0 : index
      %556 = vector.load %arg1[%c5_222, %555, %c0_223] : memref<16x176x128xf32, #tpu.memory_space<vmem>>, vector<1x16x128xf32>
      %557 = vector.shape_cast %556 : vector<1x16x128xf32> to vector<16x128xf32>
      %c22 = arith.constant 22 : index
      %558 = memref.load %arg2[%c22] : memref<72xf32, #tpu.memory_space<smem>>
      %559 = vector.broadcast %558 : f32 to vector<16x128xf32>
      %560 = arith.mulf %559, %557 : vector<16x128xf32>
      %561 = arith.addf %554, %560 : vector<16x128xf32>
      %c6_224 = arith.constant 6 : index
      %562 = arith.index_cast %9 : i32 to index
      %c0_225 = arith.constant 0 : index
      %563 = vector.load %arg1[%c6_224, %562, %c0_225] : memref<16x176x128xf32, #tpu.memory_space<vmem>>, vector<1x16x128xf32>
      %564 = vector.shape_cast %563 : vector<1x16x128xf32> to vector<16x128xf32>
      %c23 = arith.constant 23 : index
      %565 = memref.load %arg2[%c23] : memref<72xf32, #tpu.memory_space<smem>>
      %566 = vector.broadcast %565 : f32 to vector<16x128xf32>
      %567 = arith.mulf %566, %564 : vector<16x128xf32>
      %568 = arith.addf %561, %567 : vector<16x128xf32>
      %c8_226 = arith.constant 8 : index
      %569 = arith.index_cast %9 : i32 to index
      %c0_227 = arith.constant 0 : index
      %570 = vector.load %arg1[%c8_226, %569, %c0_227] : memref<16x176x128xf32, #tpu.memory_space<vmem>>, vector<1x16x128xf32>
      %571 = vector.shape_cast %570 : vector<1x16x128xf32> to vector<16x128xf32>
      %c24 = arith.constant 24 : index
      %572 = memref.load %arg2[%c24] : memref<72xf32, #tpu.memory_space<smem>>
      %573 = vector.broadcast %572 : f32 to vector<16x128xf32>
      %574 = arith.mulf %573, %571 : vector<16x128xf32>
      %575 = arith.addf %568, %574 : vector<16x128xf32>
      %c9_228 = arith.constant 9 : index
      %576 = arith.index_cast %9 : i32 to index
      %c0_229 = arith.constant 0 : index
      %577 = vector.load %arg1[%c9_228, %576, %c0_229] : memref<16x176x128xf32, #tpu.memory_space<vmem>>, vector<1x16x128xf32>
      %578 = vector.shape_cast %577 : vector<1x16x128xf32> to vector<16x128xf32>
      %c25 = arith.constant 25 : index
      %579 = memref.load %arg2[%c25] : memref<72xf32, #tpu.memory_space<smem>>
      %580 = vector.broadcast %579 : f32 to vector<16x128xf32>
      %581 = arith.mulf %580, %578 : vector<16x128xf32>
      %582 = arith.addf %575, %581 : vector<16x128xf32>
      %c10_230 = arith.constant 10 : index
      %583 = arith.index_cast %9 : i32 to index
      %c0_231 = arith.constant 0 : index
      %584 = vector.load %arg1[%c10_230, %583, %c0_231] : memref<16x176x128xf32, #tpu.memory_space<vmem>>, vector<1x16x128xf32>
      %585 = vector.shape_cast %584 : vector<1x16x128xf32> to vector<16x128xf32>
      %c26 = arith.constant 26 : index
      %586 = memref.load %arg2[%c26] : memref<72xf32, #tpu.memory_space<smem>>
      %587 = vector.broadcast %586 : f32 to vector<16x128xf32>
      %588 = arith.mulf %587, %585 : vector<16x128xf32>
      %589 = arith.addf %582, %588 : vector<16x128xf32>
      %c1_232 = arith.constant 1 : index
      %590 = arith.index_cast %9 : i32 to index
      %c0_233 = arith.constant 0 : index
      %591 = vector.load %arg1[%c1_232, %590, %c0_233] : memref<16x176x128xf32, #tpu.memory_space<vmem>>, vector<1x16x128xf32>
      %592 = vector.shape_cast %591 : vector<1x16x128xf32> to vector<16x128xf32>
      %c18_234 = arith.constant 18 : index
      %593 = memref.load %arg2[%c18_234] : memref<72xf32, #tpu.memory_space<smem>>
      %594 = vector.broadcast %593 : f32 to vector<16x128xf32>
      %595 = arith.mulf %594, %592 : vector<16x128xf32>
      %c2_235 = arith.constant 2 : index
      %596 = arith.index_cast %9 : i32 to index
      %c0_236 = arith.constant 0 : index
      %597 = vector.load %arg1[%c2_235, %596, %c0_236] : memref<16x176x128xf32, #tpu.memory_space<vmem>>, vector<1x16x128xf32>
      %598 = vector.shape_cast %597 : vector<1x16x128xf32> to vector<16x128xf32>
      %c19_237 = arith.constant 19 : index
      %599 = memref.load %arg2[%c19_237] : memref<72xf32, #tpu.memory_space<smem>>
      %600 = vector.broadcast %599 : f32 to vector<16x128xf32>
      %601 = arith.mulf %600, %598 : vector<16x128xf32>
      %602 = arith.addf %595, %601 : vector<16x128xf32>
      %c3_238 = arith.constant 3 : index
      %603 = arith.index_cast %9 : i32 to index
      %c0_239 = arith.constant 0 : index
      %604 = vector.load %arg1[%c3_238, %603, %c0_239] : memref<16x176x128xf32, #tpu.memory_space<vmem>>, vector<1x16x128xf32>
      %605 = vector.shape_cast %604 : vector<1x16x128xf32> to vector<16x128xf32>
      %c20_240 = arith.constant 20 : index
      %606 = memref.load %arg2[%c20_240] : memref<72xf32, #tpu.memory_space<smem>>
      %607 = vector.broadcast %606 : f32 to vector<16x128xf32>
      %608 = arith.mulf %607, %605 : vector<16x128xf32>
      %609 = arith.addf %602, %608 : vector<16x128xf32>
      %c5_241 = arith.constant 5 : index
      %610 = arith.index_cast %9 : i32 to index
      %c0_242 = arith.constant 0 : index
      %611 = vector.load %arg1[%c5_241, %610, %c0_242] : memref<16x176x128xf32, #tpu.memory_space<vmem>>, vector<1x16x128xf32>
      %612 = vector.shape_cast %611 : vector<1x16x128xf32> to vector<16x128xf32>
      %c21_243 = arith.constant 21 : index
      %613 = memref.load %arg2[%c21_243] : memref<72xf32, #tpu.memory_space<smem>>
      %614 = vector.broadcast %613 : f32 to vector<16x128xf32>
      %615 = arith.mulf %614, %612 : vector<16x128xf32>
      %616 = arith.addf %609, %615 : vector<16x128xf32>
      %c6_244 = arith.constant 6 : index
      %617 = arith.index_cast %9 : i32 to index
      %c0_245 = arith.constant 0 : index
      %618 = vector.load %arg1[%c6_244, %617, %c0_245] : memref<16x176x128xf32, #tpu.memory_space<vmem>>, vector<1x16x128xf32>
      %619 = vector.shape_cast %618 : vector<1x16x128xf32> to vector<16x128xf32>
      %c22_246 = arith.constant 22 : index
      %620 = memref.load %arg2[%c22_246] : memref<72xf32, #tpu.memory_space<smem>>
      %621 = vector.broadcast %620 : f32 to vector<16x128xf32>
      %622 = arith.mulf %621, %619 : vector<16x128xf32>
      %623 = arith.addf %616, %622 : vector<16x128xf32>
      %c7_247 = arith.constant 7 : index
      %624 = arith.index_cast %9 : i32 to index
      %c0_248 = arith.constant 0 : index
      %625 = vector.load %arg1[%c7_247, %624, %c0_248] : memref<16x176x128xf32, #tpu.memory_space<vmem>>, vector<1x16x128xf32>
      %626 = vector.shape_cast %625 : vector<1x16x128xf32> to vector<16x128xf32>
      %c23_249 = arith.constant 23 : index
      %627 = memref.load %arg2[%c23_249] : memref<72xf32, #tpu.memory_space<smem>>
      %628 = vector.broadcast %627 : f32 to vector<16x128xf32>
      %629 = arith.mulf %628, %626 : vector<16x128xf32>
      %630 = arith.addf %623, %629 : vector<16x128xf32>
      %c9_250 = arith.constant 9 : index
      %631 = arith.index_cast %9 : i32 to index
      %c0_251 = arith.constant 0 : index
      %632 = vector.load %arg1[%c9_250, %631, %c0_251] : memref<16x176x128xf32, #tpu.memory_space<vmem>>, vector<1x16x128xf32>
      %633 = vector.shape_cast %632 : vector<1x16x128xf32> to vector<16x128xf32>
      %c24_252 = arith.constant 24 : index
      %634 = memref.load %arg2[%c24_252] : memref<72xf32, #tpu.memory_space<smem>>
      %635 = vector.broadcast %634 : f32 to vector<16x128xf32>
      %636 = arith.mulf %635, %633 : vector<16x128xf32>
      %637 = arith.addf %630, %636 : vector<16x128xf32>
      %c10_253 = arith.constant 10 : index
      %638 = arith.index_cast %9 : i32 to index
      %c0_254 = arith.constant 0 : index
      %639 = vector.load %arg1[%c10_253, %638, %c0_254] : memref<16x176x128xf32, #tpu.memory_space<vmem>>, vector<1x16x128xf32>
      %640 = vector.shape_cast %639 : vector<1x16x128xf32> to vector<16x128xf32>
      %c25_255 = arith.constant 25 : index
      %641 = memref.load %arg2[%c25_255] : memref<72xf32, #tpu.memory_space<smem>>
      %642 = vector.broadcast %641 : f32 to vector<16x128xf32>
      %643 = arith.mulf %642, %640 : vector<16x128xf32>
      %644 = arith.addf %637, %643 : vector<16x128xf32>
      %c11_256 = arith.constant 11 : index
      %645 = arith.index_cast %9 : i32 to index
      %c0_257 = arith.constant 0 : index
      %646 = vector.load %arg1[%c11_256, %645, %c0_257] : memref<16x176x128xf32, #tpu.memory_space<vmem>>, vector<1x16x128xf32>
      %647 = vector.shape_cast %646 : vector<1x16x128xf32> to vector<16x128xf32>
      %c26_258 = arith.constant 26 : index
      %648 = memref.load %arg2[%c26_258] : memref<72xf32, #tpu.memory_space<smem>>
      %649 = vector.broadcast %648 : f32 to vector<16x128xf32>
      %650 = arith.mulf %649, %647 : vector<16x128xf32>
      %651 = arith.addf %644, %650 : vector<16x128xf32>
      %c4_259 = arith.constant 4 : index
      %652 = arith.index_cast %9 : i32 to index
      %c0_260 = arith.constant 0 : index
      %653 = vector.load %arg1[%c4_259, %652, %c0_260] : memref<16x176x128xf32, #tpu.memory_space<vmem>>, vector<1x16x128xf32>
      %654 = vector.shape_cast %653 : vector<1x16x128xf32> to vector<16x128xf32>
      %c18_261 = arith.constant 18 : index
      %655 = memref.load %arg2[%c18_261] : memref<72xf32, #tpu.memory_space<smem>>
      %656 = vector.broadcast %655 : f32 to vector<16x128xf32>
      %657 = arith.mulf %656, %654 : vector<16x128xf32>
      %c5_262 = arith.constant 5 : index
      %658 = arith.index_cast %9 : i32 to index
      %c0_263 = arith.constant 0 : index
      %659 = vector.load %arg1[%c5_262, %658, %c0_263] : memref<16x176x128xf32, #tpu.memory_space<vmem>>, vector<1x16x128xf32>
      %660 = vector.shape_cast %659 : vector<1x16x128xf32> to vector<16x128xf32>
      %c19_264 = arith.constant 19 : index
      %661 = memref.load %arg2[%c19_264] : memref<72xf32, #tpu.memory_space<smem>>
      %662 = vector.broadcast %661 : f32 to vector<16x128xf32>
      %663 = arith.mulf %662, %660 : vector<16x128xf32>
      %664 = arith.addf %657, %663 : vector<16x128xf32>
      %c6_265 = arith.constant 6 : index
      %665 = arith.index_cast %9 : i32 to index
      %c0_266 = arith.constant 0 : index
      %666 = vector.load %arg1[%c6_265, %665, %c0_266] : memref<16x176x128xf32, #tpu.memory_space<vmem>>, vector<1x16x128xf32>
      %667 = vector.shape_cast %666 : vector<1x16x128xf32> to vector<16x128xf32>
      %c20_267 = arith.constant 20 : index
      %668 = memref.load %arg2[%c20_267] : memref<72xf32, #tpu.memory_space<smem>>
      %669 = vector.broadcast %668 : f32 to vector<16x128xf32>
      %670 = arith.mulf %669, %667 : vector<16x128xf32>
      %671 = arith.addf %664, %670 : vector<16x128xf32>
      %c8_268 = arith.constant 8 : index
      %672 = arith.index_cast %9 : i32 to index
      %c0_269 = arith.constant 0 : index
      %673 = vector.load %arg1[%c8_268, %672, %c0_269] : memref<16x176x128xf32, #tpu.memory_space<vmem>>, vector<1x16x128xf32>
      %674 = vector.shape_cast %673 : vector<1x16x128xf32> to vector<16x128xf32>
      %c21_270 = arith.constant 21 : index
      %675 = memref.load %arg2[%c21_270] : memref<72xf32, #tpu.memory_space<smem>>
      %676 = vector.broadcast %675 : f32 to vector<16x128xf32>
      %677 = arith.mulf %676, %674 : vector<16x128xf32>
      %678 = arith.addf %671, %677 : vector<16x128xf32>
      %c9_271 = arith.constant 9 : index
      %679 = arith.index_cast %9 : i32 to index
      %c0_272 = arith.constant 0 : index
      %680 = vector.load %arg1[%c9_271, %679, %c0_272] : memref<16x176x128xf32, #tpu.memory_space<vmem>>, vector<1x16x128xf32>
      %681 = vector.shape_cast %680 : vector<1x16x128xf32> to vector<16x128xf32>
      %c22_273 = arith.constant 22 : index
      %682 = memref.load %arg2[%c22_273] : memref<72xf32, #tpu.memory_space<smem>>
      %683 = vector.broadcast %682 : f32 to vector<16x128xf32>
      %684 = arith.mulf %683, %681 : vector<16x128xf32>
      %685 = arith.addf %678, %684 : vector<16x128xf32>
      %c10_274 = arith.constant 10 : index
      %686 = arith.index_cast %9 : i32 to index
      %c0_275 = arith.constant 0 : index
      %687 = vector.load %arg1[%c10_274, %686, %c0_275] : memref<16x176x128xf32, #tpu.memory_space<vmem>>, vector<1x16x128xf32>
      %688 = vector.shape_cast %687 : vector<1x16x128xf32> to vector<16x128xf32>
      %c23_276 = arith.constant 23 : index
      %689 = memref.load %arg2[%c23_276] : memref<72xf32, #tpu.memory_space<smem>>
      %690 = vector.broadcast %689 : f32 to vector<16x128xf32>
      %691 = arith.mulf %690, %688 : vector<16x128xf32>
      %692 = arith.addf %685, %691 : vector<16x128xf32>
      %c12_277 = arith.constant 12 : index
      %693 = arith.index_cast %9 : i32 to index
      %c0_278 = arith.constant 0 : index
      %694 = vector.load %arg1[%c12_277, %693, %c0_278] : memref<16x176x128xf32, #tpu.memory_space<vmem>>, vector<1x16x128xf32>
      %695 = vector.shape_cast %694 : vector<1x16x128xf32> to vector<16x128xf32>
      %c24_279 = arith.constant 24 : index
      %696 = memref.load %arg2[%c24_279] : memref<72xf32, #tpu.memory_space<smem>>
      %697 = vector.broadcast %696 : f32 to vector<16x128xf32>
      %698 = arith.mulf %697, %695 : vector<16x128xf32>
      %699 = arith.addf %692, %698 : vector<16x128xf32>
      %c13_280 = arith.constant 13 : index
      %700 = arith.index_cast %9 : i32 to index
      %c0_281 = arith.constant 0 : index
      %701 = vector.load %arg1[%c13_280, %700, %c0_281] : memref<16x176x128xf32, #tpu.memory_space<vmem>>, vector<1x16x128xf32>
      %702 = vector.shape_cast %701 : vector<1x16x128xf32> to vector<16x128xf32>
      %c25_282 = arith.constant 25 : index
      %703 = memref.load %arg2[%c25_282] : memref<72xf32, #tpu.memory_space<smem>>
      %704 = vector.broadcast %703 : f32 to vector<16x128xf32>
      %705 = arith.mulf %704, %702 : vector<16x128xf32>
      %706 = arith.addf %699, %705 : vector<16x128xf32>
      %c14_283 = arith.constant 14 : index
      %707 = arith.index_cast %9 : i32 to index
      %c0_284 = arith.constant 0 : index
      %708 = vector.load %arg1[%c14_283, %707, %c0_284] : memref<16x176x128xf32, #tpu.memory_space<vmem>>, vector<1x16x128xf32>
      %709 = vector.shape_cast %708 : vector<1x16x128xf32> to vector<16x128xf32>
      %c26_285 = arith.constant 26 : index
      %710 = memref.load %arg2[%c26_285] : memref<72xf32, #tpu.memory_space<smem>>
      %711 = vector.broadcast %710 : f32 to vector<16x128xf32>
      %712 = arith.mulf %711, %709 : vector<16x128xf32>
      %713 = arith.addf %706, %712 : vector<16x128xf32>
      %c5_286 = arith.constant 5 : index
      %714 = arith.index_cast %9 : i32 to index
      %c0_287 = arith.constant 0 : index
      %715 = vector.load %arg1[%c5_286, %714, %c0_287] : memref<16x176x128xf32, #tpu.memory_space<vmem>>, vector<1x16x128xf32>
      %716 = vector.shape_cast %715 : vector<1x16x128xf32> to vector<16x128xf32>
      %c18_288 = arith.constant 18 : index
      %717 = memref.load %arg2[%c18_288] : memref<72xf32, #tpu.memory_space<smem>>
      %718 = vector.broadcast %717 : f32 to vector<16x128xf32>
      %719 = arith.mulf %718, %716 : vector<16x128xf32>
      %c6_289 = arith.constant 6 : index
      %720 = arith.index_cast %9 : i32 to index
      %c0_290 = arith.constant 0 : index
      %721 = vector.load %arg1[%c6_289, %720, %c0_290] : memref<16x176x128xf32, #tpu.memory_space<vmem>>, vector<1x16x128xf32>
      %722 = vector.shape_cast %721 : vector<1x16x128xf32> to vector<16x128xf32>
      %c19_291 = arith.constant 19 : index
      %723 = memref.load %arg2[%c19_291] : memref<72xf32, #tpu.memory_space<smem>>
      %724 = vector.broadcast %723 : f32 to vector<16x128xf32>
      %725 = arith.mulf %724, %722 : vector<16x128xf32>
      %726 = arith.addf %719, %725 : vector<16x128xf32>
      %c7_292 = arith.constant 7 : index
      %727 = arith.index_cast %9 : i32 to index
      %c0_293 = arith.constant 0 : index
      %728 = vector.load %arg1[%c7_292, %727, %c0_293] : memref<16x176x128xf32, #tpu.memory_space<vmem>>, vector<1x16x128xf32>
      %729 = vector.shape_cast %728 : vector<1x16x128xf32> to vector<16x128xf32>
      %c20_294 = arith.constant 20 : index
      %730 = memref.load %arg2[%c20_294] : memref<72xf32, #tpu.memory_space<smem>>
      %731 = vector.broadcast %730 : f32 to vector<16x128xf32>
      %732 = arith.mulf %731, %729 : vector<16x128xf32>
      %733 = arith.addf %726, %732 : vector<16x128xf32>
      %c9_295 = arith.constant 9 : index
      %734 = arith.index_cast %9 : i32 to index
      %c0_296 = arith.constant 0 : index
      %735 = vector.load %arg1[%c9_295, %734, %c0_296] : memref<16x176x128xf32, #tpu.memory_space<vmem>>, vector<1x16x128xf32>
      %736 = vector.shape_cast %735 : vector<1x16x128xf32> to vector<16x128xf32>
      %c21_297 = arith.constant 21 : index
      %737 = memref.load %arg2[%c21_297] : memref<72xf32, #tpu.memory_space<smem>>
      %738 = vector.broadcast %737 : f32 to vector<16x128xf32>
      %739 = arith.mulf %738, %736 : vector<16x128xf32>
      %740 = arith.addf %733, %739 : vector<16x128xf32>
      %c10_298 = arith.constant 10 : index
      %741 = arith.index_cast %9 : i32 to index
      %c0_299 = arith.constant 0 : index
      %742 = vector.load %arg1[%c10_298, %741, %c0_299] : memref<16x176x128xf32, #tpu.memory_space<vmem>>, vector<1x16x128xf32>
      %743 = vector.shape_cast %742 : vector<1x16x128xf32> to vector<16x128xf32>
      %c22_300 = arith.constant 22 : index
      %744 = memref.load %arg2[%c22_300] : memref<72xf32, #tpu.memory_space<smem>>
      %745 = vector.broadcast %744 : f32 to vector<16x128xf32>
      %746 = arith.mulf %745, %743 : vector<16x128xf32>
      %747 = arith.addf %740, %746 : vector<16x128xf32>
      %c11_301 = arith.constant 11 : index
      %748 = arith.index_cast %9 : i32 to index
      %c0_302 = arith.constant 0 : index
      %749 = vector.load %arg1[%c11_301, %748, %c0_302] : memref<16x176x128xf32, #tpu.memory_space<vmem>>, vector<1x16x128xf32>
      %750 = vector.shape_cast %749 : vector<1x16x128xf32> to vector<16x128xf32>
      %c23_303 = arith.constant 23 : index
      %751 = memref.load %arg2[%c23_303] : memref<72xf32, #tpu.memory_space<smem>>
      %752 = vector.broadcast %751 : f32 to vector<16x128xf32>
      %753 = arith.mulf %752, %750 : vector<16x128xf32>
      %754 = arith.addf %747, %753 : vector<16x128xf32>
      %c13_304 = arith.constant 13 : index
      %755 = arith.index_cast %9 : i32 to index
      %c0_305 = arith.constant 0 : index
      %756 = vector.load %arg1[%c13_304, %755, %c0_305] : memref<16x176x128xf32, #tpu.memory_space<vmem>>, vector<1x16x128xf32>
      %757 = vector.shape_cast %756 : vector<1x16x128xf32> to vector<16x128xf32>
      %c24_306 = arith.constant 24 : index
      %758 = memref.load %arg2[%c24_306] : memref<72xf32, #tpu.memory_space<smem>>
      %759 = vector.broadcast %758 : f32 to vector<16x128xf32>
      %760 = arith.mulf %759, %757 : vector<16x128xf32>
      %761 = arith.addf %754, %760 : vector<16x128xf32>
      %c14_307 = arith.constant 14 : index
      %762 = arith.index_cast %9 : i32 to index
      %c0_308 = arith.constant 0 : index
      %763 = vector.load %arg1[%c14_307, %762, %c0_308] : memref<16x176x128xf32, #tpu.memory_space<vmem>>, vector<1x16x128xf32>
      %764 = vector.shape_cast %763 : vector<1x16x128xf32> to vector<16x128xf32>
      %c25_309 = arith.constant 25 : index
      %765 = memref.load %arg2[%c25_309] : memref<72xf32, #tpu.memory_space<smem>>
      %766 = vector.broadcast %765 : f32 to vector<16x128xf32>
      %767 = arith.mulf %766, %764 : vector<16x128xf32>
      %768 = arith.addf %761, %767 : vector<16x128xf32>
      %c15_310 = arith.constant 15 : index
      %769 = arith.index_cast %9 : i32 to index
      %c0_311 = arith.constant 0 : index
      %770 = vector.load %arg1[%c15_310, %769, %c0_311] : memref<16x176x128xf32, #tpu.memory_space<vmem>>, vector<1x16x128xf32>
      %771 = vector.shape_cast %770 : vector<1x16x128xf32> to vector<16x128xf32>
      %c26_312 = arith.constant 26 : index
      %772 = memref.load %arg2[%c26_312] : memref<72xf32, #tpu.memory_space<smem>>
      %773 = vector.broadcast %772 : f32 to vector<16x128xf32>
      %774 = arith.mulf %773, %771 : vector<16x128xf32>
      %775 = arith.addf %768, %774 : vector<16x128xf32>
      %776 = arith.maximumf %589, %651 : vector<16x128xf32>
      %777 = arith.maximumf %713, %775 : vector<16x128xf32>
      %778 = arith.maximumf %776, %777 : vector<16x128xf32>
      %c2_313 = arith.constant 2 : index
      %779 = memref.load %arg3[%c2_313] : memref<8xf32, #tpu.memory_space<smem>>
      %780 = vector.broadcast %779 : f32 to vector<16x128xf32>
      %781 = arith.addf %778, %780 : vector<16x128xf32>
      %cst_314 = arith.constant 0.000000e+00 : f32
      %782 = vector.broadcast %cst_314 : f32 to vector<16x128xf32>
      %783 = arith.maximumf %781, %782 : vector<16x128xf32>
      %c352_i32 = arith.constant 352 : i32
      %784 = arith.addi %c352_i32, %9 : i32
      %785 = arith.index_cast %784 : i32 to index
      %c0_315 = arith.constant 0 : index
      %786 = vector.load %arg7[%785, %c0_315] : memref<1408x128xf32, #tpu.memory_space<vmem>>, vector<16x128xf32>
      tpu.vector_store %arg7[%785, %c0_315], %783 {strides = array<i32>} : memref<1408x128xf32, #tpu.memory_space<vmem>>, vector<16x128xf32>,
      %c0_316 = arith.constant 0 : index
      %787 = arith.index_cast %9 : i32 to index
      %c0_317 = arith.constant 0 : index
      %788 = vector.load %arg1[%c0_316, %787, %c0_317] : memref<16x176x128xf32, #tpu.memory_space<vmem>>, vector<1x16x128xf32>
      %789 = vector.shape_cast %788 : vector<1x16x128xf32> to vector<16x128xf32>
      %c27 = arith.constant 27 : index
      %790 = memref.load %arg2[%c27] : memref<72xf32, #tpu.memory_space<smem>>
      %791 = vector.broadcast %790 : f32 to vector<16x128xf32>
      %792 = arith.mulf %791, %789 : vector<16x128xf32>
      %c1_318 = arith.constant 1 : index
      %793 = arith.index_cast %9 : i32 to index
      %c0_319 = arith.constant 0 : index
      %794 = vector.load %arg1[%c1_318, %793, %c0_319] : memref<16x176x128xf32, #tpu.memory_space<vmem>>, vector<1x16x128xf32>
      %795 = vector.shape_cast %794 : vector<1x16x128xf32> to vector<16x128xf32>
      %c28 = arith.constant 28 : index
      %796 = memref.load %arg2[%c28] : memref<72xf32, #tpu.memory_space<smem>>
      %797 = vector.broadcast %796 : f32 to vector<16x128xf32>
      %798 = arith.mulf %797, %795 : vector<16x128xf32>
      %799 = arith.addf %792, %798 : vector<16x128xf32>
      %c2_320 = arith.constant 2 : index
      %800 = arith.index_cast %9 : i32 to index
      %c0_321 = arith.constant 0 : index
      %801 = vector.load %arg1[%c2_320, %800, %c0_321] : memref<16x176x128xf32, #tpu.memory_space<vmem>>, vector<1x16x128xf32>
      %802 = vector.shape_cast %801 : vector<1x16x128xf32> to vector<16x128xf32>
      %c29 = arith.constant 29 : index
      %803 = memref.load %arg2[%c29] : memref<72xf32, #tpu.memory_space<smem>>
      %804 = vector.broadcast %803 : f32 to vector<16x128xf32>
      %805 = arith.mulf %804, %802 : vector<16x128xf32>
      %806 = arith.addf %799, %805 : vector<16x128xf32>
      %c4_322 = arith.constant 4 : index
      %807 = arith.index_cast %9 : i32 to index
      %c0_323 = arith.constant 0 : index
      %808 = vector.load %arg1[%c4_322, %807, %c0_323] : memref<16x176x128xf32, #tpu.memory_space<vmem>>, vector<1x16x128xf32>
      %809 = vector.shape_cast %808 : vector<1x16x128xf32> to vector<16x128xf32>
      %c30 = arith.constant 30 : index
      %810 = memref.load %arg2[%c30] : memref<72xf32, #tpu.memory_space<smem>>
      %811 = vector.broadcast %810 : f32 to vector<16x128xf32>
      %812 = arith.mulf %811, %809 : vector<16x128xf32>
      %813 = arith.addf %806, %812 : vector<16x128xf32>
      %c5_324 = arith.constant 5 : index
      %814 = arith.index_cast %9 : i32 to index
      %c0_325 = arith.constant 0 : index
      %815 = vector.load %arg1[%c5_324, %814, %c0_325] : memref<16x176x128xf32, #tpu.memory_space<vmem>>, vector<1x16x128xf32>
      %816 = vector.shape_cast %815 : vector<1x16x128xf32> to vector<16x128xf32>
      %c31 = arith.constant 31 : index
      %817 = memref.load %arg2[%c31] : memref<72xf32, #tpu.memory_space<smem>>
      %818 = vector.broadcast %817 : f32 to vector<16x128xf32>
      %819 = arith.mulf %818, %816 : vector<16x128xf32>
      %820 = arith.addf %813, %819 : vector<16x128xf32>
      %c6_326 = arith.constant 6 : index
      %821 = arith.index_cast %9 : i32 to index
      %c0_327 = arith.constant 0 : index
      %822 = vector.load %arg1[%c6_326, %821, %c0_327] : memref<16x176x128xf32, #tpu.memory_space<vmem>>, vector<1x16x128xf32>
      %823 = vector.shape_cast %822 : vector<1x16x128xf32> to vector<16x128xf32>
      %c32 = arith.constant 32 : index
      %824 = memref.load %arg2[%c32] : memref<72xf32, #tpu.memory_space<smem>>
      %825 = vector.broadcast %824 : f32 to vector<16x128xf32>
      %826 = arith.mulf %825, %823 : vector<16x128xf32>
      %827 = arith.addf %820, %826 : vector<16x128xf32>
      %c8_328 = arith.constant 8 : index
      %828 = arith.index_cast %9 : i32 to index
      %c0_329 = arith.constant 0 : index
      %829 = vector.load %arg1[%c8_328, %828, %c0_329] : memref<16x176x128xf32, #tpu.memory_space<vmem>>, vector<1x16x128xf32>
      %830 = vector.shape_cast %829 : vector<1x16x128xf32> to vector<16x128xf32>
      %c33 = arith.constant 33 : index
      %831 = memref.load %arg2[%c33] : memref<72xf32, #tpu.memory_space<smem>>
      %832 = vector.broadcast %831 : f32 to vector<16x128xf32>
      %833 = arith.mulf %832, %830 : vector<16x128xf32>
      %834 = arith.addf %827, %833 : vector<16x128xf32>
      %c9_330 = arith.constant 9 : index
      %835 = arith.index_cast %9 : i32 to index
      %c0_331 = arith.constant 0 : index
      %836 = vector.load %arg1[%c9_330, %835, %c0_331] : memref<16x176x128xf32, #tpu.memory_space<vmem>>, vector<1x16x128xf32>
      %837 = vector.shape_cast %836 : vector<1x16x128xf32> to vector<16x128xf32>
      %c34 = arith.constant 34 : index
      %838 = memref.load %arg2[%c34] : memref<72xf32, #tpu.memory_space<smem>>
      %839 = vector.broadcast %838 : f32 to vector<16x128xf32>
      %840 = arith.mulf %839, %837 : vector<16x128xf32>
      %841 = arith.addf %834, %840 : vector<16x128xf32>
      %c10_332 = arith.constant 10 : index
      %842 = arith.index_cast %9 : i32 to index
      %c0_333 = arith.constant 0 : index
      %843 = vector.load %arg1[%c10_332, %842, %c0_333] : memref<16x176x128xf32, #tpu.memory_space<vmem>>, vector<1x16x128xf32>
      %844 = vector.shape_cast %843 : vector<1x16x128xf32> to vector<16x128xf32>
      %c35 = arith.constant 35 : index
      %845 = memref.load %arg2[%c35] : memref<72xf32, #tpu.memory_space<smem>>
      %846 = vector.broadcast %845 : f32 to vector<16x128xf32>
      %847 = arith.mulf %846, %844 : vector<16x128xf32>
      %848 = arith.addf %841, %847 : vector<16x128xf32>
      %c1_334 = arith.constant 1 : index
      %849 = arith.index_cast %9 : i32 to index
      %c0_335 = arith.constant 0 : index
      %850 = vector.load %arg1[%c1_334, %849, %c0_335] : memref<16x176x128xf32, #tpu.memory_space<vmem>>, vector<1x16x128xf32>
      %851 = vector.shape_cast %850 : vector<1x16x128xf32> to vector<16x128xf32>
      %c27_336 = arith.constant 27 : index
      %852 = memref.load %arg2[%c27_336] : memref<72xf32, #tpu.memory_space<smem>>
      %853 = vector.broadcast %852 : f32 to vector<16x128xf32>
      %854 = arith.mulf %853, %851 : vector<16x128xf32>
      %c2_337 = arith.constant 2 : index
      %855 = arith.index_cast %9 : i32 to index
      %c0_338 = arith.constant 0 : index
      %856 = vector.load %arg1[%c2_337, %855, %c0_338] : memref<16x176x128xf32, #tpu.memory_space<vmem>>, vector<1x16x128xf32>
      %857 = vector.shape_cast %856 : vector<1x16x128xf32> to vector<16x128xf32>
      %c28_339 = arith.constant 28 : index
      %858 = memref.load %arg2[%c28_339] : memref<72xf32, #tpu.memory_space<smem>>
      %859 = vector.broadcast %858 : f32 to vector<16x128xf32>
      %860 = arith.mulf %859, %857 : vector<16x128xf32>
      %861 = arith.addf %854, %860 : vector<16x128xf32>
      %c3_340 = arith.constant 3 : index
      %862 = arith.index_cast %9 : i32 to index
      %c0_341 = arith.constant 0 : index
      %863 = vector.load %arg1[%c3_340, %862, %c0_341] : memref<16x176x128xf32, #tpu.memory_space<vmem>>, vector<1x16x128xf32>
      %864 = vector.shape_cast %863 : vector<1x16x128xf32> to vector<16x128xf32>
      %c29_342 = arith.constant 29 : index
      %865 = memref.load %arg2[%c29_342] : memref<72xf32, #tpu.memory_space<smem>>
      %866 = vector.broadcast %865 : f32 to vector<16x128xf32>
      %867 = arith.mulf %866, %864 : vector<16x128xf32>
      %868 = arith.addf %861, %867 : vector<16x128xf32>
      %c5_343 = arith.constant 5 : index
      %869 = arith.index_cast %9 : i32 to index
      %c0_344 = arith.constant 0 : index
      %870 = vector.load %arg1[%c5_343, %869, %c0_344] : memref<16x176x128xf32, #tpu.memory_space<vmem>>, vector<1x16x128xf32>
      %871 = vector.shape_cast %870 : vector<1x16x128xf32> to vector<16x128xf32>
      %c30_345 = arith.constant 30 : index
      %872 = memref.load %arg2[%c30_345] : memref<72xf32, #tpu.memory_space<smem>>
      %873 = vector.broadcast %872 : f32 to vector<16x128xf32>
      %874 = arith.mulf %873, %871 : vector<16x128xf32>
      %875 = arith.addf %868, %874 : vector<16x128xf32>
      %c6_346 = arith.constant 6 : index
      %876 = arith.index_cast %9 : i32 to index
      %c0_347 = arith.constant 0 : index
      %877 = vector.load %arg1[%c6_346, %876, %c0_347] : memref<16x176x128xf32, #tpu.memory_space<vmem>>, vector<1x16x128xf32>
      %878 = vector.shape_cast %877 : vector<1x16x128xf32> to vector<16x128xf32>
      %c31_348 = arith.constant 31 : index
      %879 = memref.load %arg2[%c31_348] : memref<72xf32, #tpu.memory_space<smem>>
      %880 = vector.broadcast %879 : f32 to vector<16x128xf32>
      %881 = arith.mulf %880, %878 : vector<16x128xf32>
      %882 = arith.addf %875, %881 : vector<16x128xf32>
      %c7_349 = arith.constant 7 : index
      %883 = arith.index_cast %9 : i32 to index
      %c0_350 = arith.constant 0 : index
      %884 = vector.load %arg1[%c7_349, %883, %c0_350] : memref<16x176x128xf32, #tpu.memory_space<vmem>>, vector<1x16x128xf32>
      %885 = vector.shape_cast %884 : vector<1x16x128xf32> to vector<16x128xf32>
      %c32_351 = arith.constant 32 : index
      %886 = memref.load %arg2[%c32_351] : memref<72xf32, #tpu.memory_space<smem>>
      %887 = vector.broadcast %886 : f32 to vector<16x128xf32>
      %888 = arith.mulf %887, %885 : vector<16x128xf32>
      %889 = arith.addf %882, %888 : vector<16x128xf32>
      %c9_352 = arith.constant 9 : index
      %890 = arith.index_cast %9 : i32 to index
      %c0_353 = arith.constant 0 : index
      %891 = vector.load %arg1[%c9_352, %890, %c0_353] : memref<16x176x128xf32, #tpu.memory_space<vmem>>, vector<1x16x128xf32>
      %892 = vector.shape_cast %891 : vector<1x16x128xf32> to vector<16x128xf32>
      %c33_354 = arith.constant 33 : index
      %893 = memref.load %arg2[%c33_354] : memref<72xf32, #tpu.memory_space<smem>>
      %894 = vector.broadcast %893 : f32 to vector<16x128xf32>
      %895 = arith.mulf %894, %892 : vector<16x128xf32>
      %896 = arith.addf %889, %895 : vector<16x128xf32>
      %c10_355 = arith.constant 10 : index
      %897 = arith.index_cast %9 : i32 to index
      %c0_356 = arith.constant 0 : index
      %898 = vector.load %arg1[%c10_355, %897, %c0_356] : memref<16x176x128xf32, #tpu.memory_space<vmem>>, vector<1x16x128xf32>
      %899 = vector.shape_cast %898 : vector<1x16x128xf32> to vector<16x128xf32>
      %c34_357 = arith.constant 34 : index
      %900 = memref.load %arg2[%c34_357] : memref<72xf32, #tpu.memory_space<smem>>
      %901 = vector.broadcast %900 : f32 to vector<16x128xf32>
      %902 = arith.mulf %901, %899 : vector<16x128xf32>
      %903 = arith.addf %896, %902 : vector<16x128xf32>
      %c11_358 = arith.constant 11 : index
      %904 = arith.index_cast %9 : i32 to index
      %c0_359 = arith.constant 0 : index
      %905 = vector.load %arg1[%c11_358, %904, %c0_359] : memref<16x176x128xf32, #tpu.memory_space<vmem>>, vector<1x16x128xf32>
      %906 = vector.shape_cast %905 : vector<1x16x128xf32> to vector<16x128xf32>
      %c35_360 = arith.constant 35 : index
      %907 = memref.load %arg2[%c35_360] : memref<72xf32, #tpu.memory_space<smem>>
      %908 = vector.broadcast %907 : f32 to vector<16x128xf32>
      %909 = arith.mulf %908, %906 : vector<16x128xf32>
      %910 = arith.addf %903, %909 : vector<16x128xf32>
      %c4_361 = arith.constant 4 : index
      %911 = arith.index_cast %9 : i32 to index
      %c0_362 = arith.constant 0 : index
      %912 = vector.load %arg1[%c4_361, %911, %c0_362] : memref<16x176x128xf32, #tpu.memory_space<vmem>>, vector<1x16x128xf32>
      %913 = vector.shape_cast %912 : vector<1x16x128xf32> to vector<16x128xf32>
      %c27_363 = arith.constant 27 : index
      %914 = memref.load %arg2[%c27_363] : memref<72xf32, #tpu.memory_space<smem>>
      %915 = vector.broadcast %914 : f32 to vector<16x128xf32>
      %916 = arith.mulf %915, %913 : vector<16x128xf32>
      %c5_364 = arith.constant 5 : index
      %917 = arith.index_cast %9 : i32 to index
      %c0_365 = arith.constant 0 : index
      %918 = vector.load %arg1[%c5_364, %917, %c0_365] : memref<16x176x128xf32, #tpu.memory_space<vmem>>, vector<1x16x128xf32>
      %919 = vector.shape_cast %918 : vector<1x16x128xf32> to vector<16x128xf32>
      %c28_366 = arith.constant 28 : index
      %920 = memref.load %arg2[%c28_366] : memref<72xf32, #tpu.memory_space<smem>>
      %921 = vector.broadcast %920 : f32 to vector<16x128xf32>
      %922 = arith.mulf %921, %919 : vector<16x128xf32>
      %923 = arith.addf %916, %922 : vector<16x128xf32>
      %c6_367 = arith.constant 6 : index
      %924 = arith.index_cast %9 : i32 to index
      %c0_368 = arith.constant 0 : index
      %925 = vector.load %arg1[%c6_367, %924, %c0_368] : memref<16x176x128xf32, #tpu.memory_space<vmem>>, vector<1x16x128xf32>
      %926 = vector.shape_cast %925 : vector<1x16x128xf32> to vector<16x128xf32>
      %c29_369 = arith.constant 29 : index
      %927 = memref.load %arg2[%c29_369] : memref<72xf32, #tpu.memory_space<smem>>
      %928 = vector.broadcast %927 : f32 to vector<16x128xf32>
      %929 = arith.mulf %928, %926 : vector<16x128xf32>
      %930 = arith.addf %923, %929 : vector<16x128xf32>
      %c8_370 = arith.constant 8 : index
      %931 = arith.index_cast %9 : i32 to index
      %c0_371 = arith.constant 0 : index
      %932 = vector.load %arg1[%c8_370, %931, %c0_371] : memref<16x176x128xf32, #tpu.memory_space<vmem>>, vector<1x16x128xf32>
      %933 = vector.shape_cast %932 : vector<1x16x128xf32> to vector<16x128xf32>
      %c30_372 = arith.constant 30 : index
      %934 = memref.load %arg2[%c30_372] : memref<72xf32, #tpu.memory_space<smem>>
      %935 = vector.broadcast %934 : f32 to vector<16x128xf32>
      %936 = arith.mulf %935, %933 : vector<16x128xf32>
      %937 = arith.addf %930, %936 : vector<16x128xf32>
      %c9_373 = arith.constant 9 : index
      %938 = arith.index_cast %9 : i32 to index
      %c0_374 = arith.constant 0 : index
      %939 = vector.load %arg1[%c9_373, %938, %c0_374] : memref<16x176x128xf32, #tpu.memory_space<vmem>>, vector<1x16x128xf32>
      %940 = vector.shape_cast %939 : vector<1x16x128xf32> to vector<16x128xf32>
      %c31_375 = arith.constant 31 : index
      %941 = memref.load %arg2[%c31_375] : memref<72xf32, #tpu.memory_space<smem>>
      %942 = vector.broadcast %941 : f32 to vector<16x128xf32>
      %943 = arith.mulf %942, %940 : vector<16x128xf32>
      %944 = arith.addf %937, %943 : vector<16x128xf32>
      %c10_376 = arith.constant 10 : index
      %945 = arith.index_cast %9 : i32 to index
      %c0_377 = arith.constant 0 : index
      %946 = vector.load %arg1[%c10_376, %945, %c0_377] : memref<16x176x128xf32, #tpu.memory_space<vmem>>, vector<1x16x128xf32>
      %947 = vector.shape_cast %946 : vector<1x16x128xf32> to vector<16x128xf32>
      %c32_378 = arith.constant 32 : index
      %948 = memref.load %arg2[%c32_378] : memref<72xf32, #tpu.memory_space<smem>>
      %949 = vector.broadcast %948 : f32 to vector<16x128xf32>
      %950 = arith.mulf %949, %947 : vector<16x128xf32>
      %951 = arith.addf %944, %950 : vector<16x128xf32>
      %c12_379 = arith.constant 12 : index
      %952 = arith.index_cast %9 : i32 to index
      %c0_380 = arith.constant 0 : index
      %953 = vector.load %arg1[%c12_379, %952, %c0_380] : memref<16x176x128xf32, #tpu.memory_space<vmem>>, vector<1x16x128xf32>
      %954 = vector.shape_cast %953 : vector<1x16x128xf32> to vector<16x128xf32>
      %c33_381 = arith.constant 33 : index
      %955 = memref.load %arg2[%c33_381] : memref<72xf32, #tpu.memory_space<smem>>
      %956 = vector.broadcast %955 : f32 to vector<16x128xf32>
      %957 = arith.mulf %956, %954 : vector<16x128xf32>
      %958 = arith.addf %951, %957 : vector<16x128xf32>
      %c13_382 = arith.constant 13 : index
      %959 = arith.index_cast %9 : i32 to index
      %c0_383 = arith.constant 0 : index
      %960 = vector.load %arg1[%c13_382, %959, %c0_383] : memref<16x176x128xf32, #tpu.memory_space<vmem>>, vector<1x16x128xf32>
      %961 = vector.shape_cast %960 : vector<1x16x128xf32> to vector<16x128xf32>
      %c34_384 = arith.constant 34 : index
      %962 = memref.load %arg2[%c34_384] : memref<72xf32, #tpu.memory_space<smem>>
      %963 = vector.broadcast %962 : f32 to vector<16x128xf32>
      %964 = arith.mulf %963, %961 : vector<16x128xf32>
      %965 = arith.addf %958, %964 : vector<16x128xf32>
      %c14_385 = arith.constant 14 : index
      %966 = arith.index_cast %9 : i32 to index
      %c0_386 = arith.constant 0 : index
      %967 = vector.load %arg1[%c14_385, %966, %c0_386] : memref<16x176x128xf32, #tpu.memory_space<vmem>>, vector<1x16x128xf32>
      %968 = vector.shape_cast %967 : vector<1x16x128xf32> to vector<16x128xf32>
      %c35_387 = arith.constant 35 : index
      %969 = memref.load %arg2[%c35_387] : memref<72xf32, #tpu.memory_space<smem>>
      %970 = vector.broadcast %969 : f32 to vector<16x128xf32>
      %971 = arith.mulf %970, %968 : vector<16x128xf32>
      %972 = arith.addf %965, %971 : vector<16x128xf32>
      %c5_388 = arith.constant 5 : index
      %973 = arith.index_cast %9 : i32 to index
      %c0_389 = arith.constant 0 : index
      %974 = vector.load %arg1[%c5_388, %973, %c0_389] : memref<16x176x128xf32, #tpu.memory_space<vmem>>, vector<1x16x128xf32>
      %975 = vector.shape_cast %974 : vector<1x16x128xf32> to vector<16x128xf32>
      %c27_390 = arith.constant 27 : index
      %976 = memref.load %arg2[%c27_390] : memref<72xf32, #tpu.memory_space<smem>>
      %977 = vector.broadcast %976 : f32 to vector<16x128xf32>
      %978 = arith.mulf %977, %975 : vector<16x128xf32>
      %c6_391 = arith.constant 6 : index
      %979 = arith.index_cast %9 : i32 to index
      %c0_392 = arith.constant 0 : index
      %980 = vector.load %arg1[%c6_391, %979, %c0_392] : memref<16x176x128xf32, #tpu.memory_space<vmem>>, vector<1x16x128xf32>
      %981 = vector.shape_cast %980 : vector<1x16x128xf32> to vector<16x128xf32>
      %c28_393 = arith.constant 28 : index
      %982 = memref.load %arg2[%c28_393] : memref<72xf32, #tpu.memory_space<smem>>
      %983 = vector.broadcast %982 : f32 to vector<16x128xf32>
      %984 = arith.mulf %983, %981 : vector<16x128xf32>
      %985 = arith.addf %978, %984 : vector<16x128xf32>
      %c7_394 = arith.constant 7 : index
      %986 = arith.index_cast %9 : i32 to index
      %c0_395 = arith.constant 0 : index
      %987 = vector.load %arg1[%c7_394, %986, %c0_395] : memref<16x176x128xf32, #tpu.memory_space<vmem>>, vector<1x16x128xf32>
      %988 = vector.shape_cast %987 : vector<1x16x128xf32> to vector<16x128xf32>
      %c29_396 = arith.constant 29 : index
      %989 = memref.load %arg2[%c29_396] : memref<72xf32, #tpu.memory_space<smem>>
      %990 = vector.broadcast %989 : f32 to vector<16x128xf32>
      %991 = arith.mulf %990, %988 : vector<16x128xf32>
      %992 = arith.addf %985, %991 : vector<16x128xf32>
      %c9_397 = arith.constant 9 : index
      %993 = arith.index_cast %9 : i32 to index
      %c0_398 = arith.constant 0 : index
      %994 = vector.load %arg1[%c9_397, %993, %c0_398] : memref<16x176x128xf32, #tpu.memory_space<vmem>>, vector<1x16x128xf32>
      %995 = vector.shape_cast %994 : vector<1x16x128xf32> to vector<16x128xf32>
      %c30_399 = arith.constant 30 : index
      %996 = memref.load %arg2[%c30_399] : memref<72xf32, #tpu.memory_space<smem>>
      %997 = vector.broadcast %996 : f32 to vector<16x128xf32>
      %998 = arith.mulf %997, %995 : vector<16x128xf32>
      %999 = arith.addf %992, %998 : vector<16x128xf32>
      %c10_400 = arith.constant 10 : index
      %1000 = arith.index_cast %9 : i32 to index
      %c0_401 = arith.constant 0 : index
      %1001 = vector.load %arg1[%c10_400, %1000, %c0_401] : memref<16x176x128xf32, #tpu.memory_space<vmem>>, vector<1x16x128xf32>
      %1002 = vector.shape_cast %1001 : vector<1x16x128xf32> to vector<16x128xf32>
      %c31_402 = arith.constant 31 : index
      %1003 = memref.load %arg2[%c31_402] : memref<72xf32, #tpu.memory_space<smem>>
      %1004 = vector.broadcast %1003 : f32 to vector<16x128xf32>
      %1005 = arith.mulf %1004, %1002 : vector<16x128xf32>
      %1006 = arith.addf %999, %1005 : vector<16x128xf32>
      %c11_403 = arith.constant 11 : index
      %1007 = arith.index_cast %9 : i32 to index
      %c0_404 = arith.constant 0 : index
      %1008 = vector.load %arg1[%c11_403, %1007, %c0_404] : memref<16x176x128xf32, #tpu.memory_space<vmem>>, vector<1x16x128xf32>
      %1009 = vector.shape_cast %1008 : vector<1x16x128xf32> to vector<16x128xf32>
      %c32_405 = arith.constant 32 : index
      %1010 = memref.load %arg2[%c32_405] : memref<72xf32, #tpu.memory_space<smem>>
      %1011 = vector.broadcast %1010 : f32 to vector<16x128xf32>
      %1012 = arith.mulf %1011, %1009 : vector<16x128xf32>
      %1013 = arith.addf %1006, %1012 : vector<16x128xf32>
      %c13_406 = arith.constant 13 : index
      %1014 = arith.index_cast %9 : i32 to index
      %c0_407 = arith.constant 0 : index
      %1015 = vector.load %arg1[%c13_406, %1014, %c0_407] : memref<16x176x128xf32, #tpu.memory_space<vmem>>, vector<1x16x128xf32>
      %1016 = vector.shape_cast %1015 : vector<1x16x128xf32> to vector<16x128xf32>
      %c33_408 = arith.constant 33 : index
      %1017 = memref.load %arg2[%c33_408] : memref<72xf32, #tpu.memory_space<smem>>
      %1018 = vector.broadcast %1017 : f32 to vector<16x128xf32>
      %1019 = arith.mulf %1018, %1016 : vector<16x128xf32>
      %1020 = arith.addf %1013, %1019 : vector<16x128xf32>
      %c14_409 = arith.constant 14 : index
      %1021 = arith.index_cast %9 : i32 to index
      %c0_410 = arith.constant 0 : index
      %1022 = vector.load %arg1[%c14_409, %1021, %c0_410] : memref<16x176x128xf32, #tpu.memory_space<vmem>>, vector<1x16x128xf32>
      %1023 = vector.shape_cast %1022 : vector<1x16x128xf32> to vector<16x128xf32>
      %c34_411 = arith.constant 34 : index
      %1024 = memref.load %arg2[%c34_411] : memref<72xf32, #tpu.memory_space<smem>>
      %1025 = vector.broadcast %1024 : f32 to vector<16x128xf32>
      %1026 = arith.mulf %1025, %1023 : vector<16x128xf32>
      %1027 = arith.addf %1020, %1026 : vector<16x128xf32>
      %c15_412 = arith.constant 15 : index
      %1028 = arith.index_cast %9 : i32 to index
      %c0_413 = arith.constant 0 : index
      %1029 = vector.load %arg1[%c15_412, %1028, %c0_413] : memref<16x176x128xf32, #tpu.memory_space<vmem>>, vector<1x16x128xf32>
      %1030 = vector.shape_cast %1029 : vector<1x16x128xf32> to vector<16x128xf32>
      %c35_414 = arith.constant 35 : index
      %1031 = memref.load %arg2[%c35_414] : memref<72xf32, #tpu.memory_space<smem>>
      %1032 = vector.broadcast %1031 : f32 to vector<16x128xf32>
      %1033 = arith.mulf %1032, %1030 : vector<16x128xf32>
      %1034 = arith.addf %1027, %1033 : vector<16x128xf32>
      %1035 = arith.maximumf %848, %910 : vector<16x128xf32>
      %1036 = arith.maximumf %972, %1034 : vector<16x128xf32>
      %1037 = arith.maximumf %1035, %1036 : vector<16x128xf32>
      %c3_415 = arith.constant 3 : index
      %1038 = memref.load %arg3[%c3_415] : memref<8xf32, #tpu.memory_space<smem>>
      %1039 = vector.broadcast %1038 : f32 to vector<16x128xf32>
      %1040 = arith.addf %1037, %1039 : vector<16x128xf32>
      %cst_416 = arith.constant 0.000000e+00 : f32
      %1041 = vector.broadcast %cst_416 : f32 to vector<16x128xf32>
      %1042 = arith.maximumf %1040, %1041 : vector<16x128xf32>
      %c528_i32 = arith.constant 528 : i32
      %1043 = arith.addi %c528_i32, %9 : i32
      %1044 = arith.index_cast %1043 : i32 to index
      %c0_417 = arith.constant 0 : index
      %1045 = vector.load %arg7[%1044, %c0_417] : memref<1408x128xf32, #tpu.memory_space<vmem>>, vector<16x128xf32>
      tpu.vector_store %arg7[%1044, %c0_417], %1042 {strides = array<i32>} : memref<1408x128xf32, #tpu.memory_space<vmem>>, vector<16x128xf32>,
      %c0_418 = arith.constant 0 : index
      %1046 = arith.index_cast %9 : i32 to index
      %c0_419 = arith.constant 0 : index
      %1047 = vector.load %arg1[%c0_418, %1046, %c0_419] : memref<16x176x128xf32, #tpu.memory_space<vmem>>, vector<1x16x128xf32>
      %1048 = vector.shape_cast %1047 : vector<1x16x128xf32> to vector<16x128xf32>
      %c36 = arith.constant 36 : index
      %1049 = memref.load %arg2[%c36] : memref<72xf32, #tpu.memory_space<smem>>
      %1050 = vector.broadcast %1049 : f32 to vector<16x128xf32>
      %1051 = arith.mulf %1050, %1048 : vector<16x128xf32>
      %c1_420 = arith.constant 1 : index
      %1052 = arith.index_cast %9 : i32 to index
      %c0_421 = arith.constant 0 : index
      %1053 = vector.load %arg1[%c1_420, %1052, %c0_421] : memref<16x176x128xf32, #tpu.memory_space<vmem>>, vector<1x16x128xf32>
      %1054 = vector.shape_cast %1053 : vector<1x16x128xf32> to vector<16x128xf32>
      %c37 = arith.constant 37 : index
      %1055 = memref.load %arg2[%c37] : memref<72xf32, #tpu.memory_space<smem>>
      %1056 = vector.broadcast %1055 : f32 to vector<16x128xf32>
      %1057 = arith.mulf %1056, %1054 : vector<16x128xf32>
      %1058 = arith.addf %1051, %1057 : vector<16x128xf32>
      %c2_422 = arith.constant 2 : index
      %1059 = arith.index_cast %9 : i32 to index
      %c0_423 = arith.constant 0 : index
      %1060 = vector.load %arg1[%c2_422, %1059, %c0_423] : memref<16x176x128xf32, #tpu.memory_space<vmem>>, vector<1x16x128xf32>
      %1061 = vector.shape_cast %1060 : vector<1x16x128xf32> to vector<16x128xf32>
      %c38 = arith.constant 38 : index
      %1062 = memref.load %arg2[%c38] : memref<72xf32, #tpu.memory_space<smem>>
      %1063 = vector.broadcast %1062 : f32 to vector<16x128xf32>
      %1064 = arith.mulf %1063, %1061 : vector<16x128xf32>
      %1065 = arith.addf %1058, %1064 : vector<16x128xf32>
      %c4_424 = arith.constant 4 : index
      %1066 = arith.index_cast %9 : i32 to index
      %c0_425 = arith.constant 0 : index
      %1067 = vector.load %arg1[%c4_424, %1066, %c0_425] : memref<16x176x128xf32, #tpu.memory_space<vmem>>, vector<1x16x128xf32>
      %1068 = vector.shape_cast %1067 : vector<1x16x128xf32> to vector<16x128xf32>
      %c39 = arith.constant 39 : index
      %1069 = memref.load %arg2[%c39] : memref<72xf32, #tpu.memory_space<smem>>
      %1070 = vector.broadcast %1069 : f32 to vector<16x128xf32>
      %1071 = arith.mulf %1070, %1068 : vector<16x128xf32>
      %1072 = arith.addf %1065, %1071 : vector<16x128xf32>
      %c5_426 = arith.constant 5 : index
      %1073 = arith.index_cast %9 : i32 to index
      %c0_427 = arith.constant 0 : index
      %1074 = vector.load %arg1[%c5_426, %1073, %c0_427] : memref<16x176x128xf32, #tpu.memory_space<vmem>>, vector<1x16x128xf32>
      %1075 = vector.shape_cast %1074 : vector<1x16x128xf32> to vector<16x128xf32>
      %c40 = arith.constant 40 : index
      %1076 = memref.load %arg2[%c40] : memref<72xf32, #tpu.memory_space<smem>>
      %1077 = vector.broadcast %1076 : f32 to vector<16x128xf32>
      %1078 = arith.mulf %1077, %1075 : vector<16x128xf32>
      %1079 = arith.addf %1072, %1078 : vector<16x128xf32>
      %c6_428 = arith.constant 6 : index
      %1080 = arith.index_cast %9 : i32 to index
      %c0_429 = arith.constant 0 : index
      %1081 = vector.load %arg1[%c6_428, %1080, %c0_429] : memref<16x176x128xf32, #tpu.memory_space<vmem>>, vector<1x16x128xf32>
      %1082 = vector.shape_cast %1081 : vector<1x16x128xf32> to vector<16x128xf32>
      %c41 = arith.constant 41 : index
      %1083 = memref.load %arg2[%c41] : memref<72xf32, #tpu.memory_space<smem>>
      %1084 = vector.broadcast %1083 : f32 to vector<16x128xf32>
      %1085 = arith.mulf %1084, %1082 : vector<16x128xf32>
      %1086 = arith.addf %1079, %1085 : vector<16x128xf32>
      %c8_430 = arith.constant 8 : index
      %1087 = arith.index_cast %9 : i32 to index
      %c0_431 = arith.constant 0 : index
      %1088 = vector.load %arg1[%c8_430, %1087, %c0_431] : memref<16x176x128xf32, #tpu.memory_space<vmem>>, vector<1x16x128xf32>
      %1089 = vector.shape_cast %1088 : vector<1x16x128xf32> to vector<16x128xf32>
      %c42 = arith.constant 42 : index
      %1090 = memref.load %arg2[%c42] : memref<72xf32, #tpu.memory_space<smem>>
      %1091 = vector.broadcast %1090 : f32 to vector<16x128xf32>
      %1092 = arith.mulf %1091, %1089 : vector<16x128xf32>
      %1093 = arith.addf %1086, %1092 : vector<16x128xf32>
      %c9_432 = arith.constant 9 : index
      %1094 = arith.index_cast %9 : i32 to index
      %c0_433 = arith.constant 0 : index
      %1095 = vector.load %arg1[%c9_432, %1094, %c0_433] : memref<16x176x128xf32, #tpu.memory_space<vmem>>, vector<1x16x128xf32>
      %1096 = vector.shape_cast %1095 : vector<1x16x128xf32> to vector<16x128xf32>
      %c43 = arith.constant 43 : index
      %1097 = memref.load %arg2[%c43] : memref<72xf32, #tpu.memory_space<smem>>
      %1098 = vector.broadcast %1097 : f32 to vector<16x128xf32>
      %1099 = arith.mulf %1098, %1096 : vector<16x128xf32>
      %1100 = arith.addf %1093, %1099 : vector<16x128xf32>
      %c10_434 = arith.constant 10 : index
      %1101 = arith.index_cast %9 : i32 to index
      %c0_435 = arith.constant 0 : index
      %1102 = vector.load %arg1[%c10_434, %1101, %c0_435] : memref<16x176x128xf32, #tpu.memory_space<vmem>>, vector<1x16x128xf32>
      %1103 = vector.shape_cast %1102 : vector<1x16x128xf32> to vector<16x128xf32>
      %c44 = arith.constant 44 : index
      %1104 = memref.load %arg2[%c44] : memref<72xf32, #tpu.memory_space<smem>>
      %1105 = vector.broadcast %1104 : f32 to vector<16x128xf32>
      %1106 = arith.mulf %1105, %1103 : vector<16x128xf32>
      %1107 = arith.addf %1100, %1106 : vector<16x128xf32>
      %c1_436 = arith.constant 1 : index
      %1108 = arith.index_cast %9 : i32 to index
      %c0_437 = arith.constant 0 : index
      %1109 = vector.load %arg1[%c1_436, %1108, %c0_437] : memref<16x176x128xf32, #tpu.memory_space<vmem>>, vector<1x16x128xf32>
      %1110 = vector.shape_cast %1109 : vector<1x16x128xf32> to vector<16x128xf32>
      %c36_438 = arith.constant 36 : index
      %1111 = memref.load %arg2[%c36_438] : memref<72xf32, #tpu.memory_space<smem>>
      %1112 = vector.broadcast %1111 : f32 to vector<16x128xf32>
      %1113 = arith.mulf %1112, %1110 : vector<16x128xf32>
      %c2_439 = arith.constant 2 : index
      %1114 = arith.index_cast %9 : i32 to index
      %c0_440 = arith.constant 0 : index
      %1115 = vector.load %arg1[%c2_439, %1114, %c0_440] : memref<16x176x128xf32, #tpu.memory_space<vmem>>, vector<1x16x128xf32>
      %1116 = vector.shape_cast %1115 : vector<1x16x128xf32> to vector<16x128xf32>
      %c37_441 = arith.constant 37 : index
      %1117 = memref.load %arg2[%c37_441] : memref<72xf32, #tpu.memory_space<smem>>
      %1118 = vector.broadcast %1117 : f32 to vector<16x128xf32>
      %1119 = arith.mulf %1118, %1116 : vector<16x128xf32>
      %1120 = arith.addf %1113, %1119 : vector<16x128xf32>
      %c3_442 = arith.constant 3 : index
      %1121 = arith.index_cast %9 : i32 to index
      %c0_443 = arith.constant 0 : index
      %1122 = vector.load %arg1[%c3_442, %1121, %c0_443] : memref<16x176x128xf32, #tpu.memory_space<vmem>>, vector<1x16x128xf32>
      %1123 = vector.shape_cast %1122 : vector<1x16x128xf32> to vector<16x128xf32>
      %c38_444 = arith.constant 38 : index
      %1124 = memref.load %arg2[%c38_444] : memref<72xf32, #tpu.memory_space<smem>>
      %1125 = vector.broadcast %1124 : f32 to vector<16x128xf32>
      %1126 = arith.mulf %1125, %1123 : vector<16x128xf32>
      %1127 = arith.addf %1120, %1126 : vector<16x128xf32>
      %c5_445 = arith.constant 5 : index
      %1128 = arith.index_cast %9 : i32 to index
      %c0_446 = arith.constant 0 : index
      %1129 = vector.load %arg1[%c5_445, %1128, %c0_446] : memref<16x176x128xf32, #tpu.memory_space<vmem>>, vector<1x16x128xf32>
      %1130 = vector.shape_cast %1129 : vector<1x16x128xf32> to vector<16x128xf32>
      %c39_447 = arith.constant 39 : index
      %1131 = memref.load %arg2[%c39_447] : memref<72xf32, #tpu.memory_space<smem>>
      %1132 = vector.broadcast %1131 : f32 to vector<16x128xf32>
      %1133 = arith.mulf %1132, %1130 : vector<16x128xf32>
      %1134 = arith.addf %1127, %1133 : vector<16x128xf32>
      %c6_448 = arith.constant 6 : index
      %1135 = arith.index_cast %9 : i32 to index
      %c0_449 = arith.constant 0 : index
      %1136 = vector.load %arg1[%c6_448, %1135, %c0_449] : memref<16x176x128xf32, #tpu.memory_space<vmem>>, vector<1x16x128xf32>
      %1137 = vector.shape_cast %1136 : vector<1x16x128xf32> to vector<16x128xf32>
      %c40_450 = arith.constant 40 : index
      %1138 = memref.load %arg2[%c40_450] : memref<72xf32, #tpu.memory_space<smem>>
      %1139 = vector.broadcast %1138 : f32 to vector<16x128xf32>
      %1140 = arith.mulf %1139, %1137 : vector<16x128xf32>
      %1141 = arith.addf %1134, %1140 : vector<16x128xf32>
      %c7_451 = arith.constant 7 : index
      %1142 = arith.index_cast %9 : i32 to index
      %c0_452 = arith.constant 0 : index
      %1143 = vector.load %arg1[%c7_451, %1142, %c0_452] : memref<16x176x128xf32, #tpu.memory_space<vmem>>, vector<1x16x128xf32>
      %1144 = vector.shape_cast %1143 : vector<1x16x128xf32> to vector<16x128xf32>
      %c41_453 = arith.constant 41 : index
      %1145 = memref.load %arg2[%c41_453] : memref<72xf32, #tpu.memory_space<smem>>
      %1146 = vector.broadcast %1145 : f32 to vector<16x128xf32>
      %1147 = arith.mulf %1146, %1144 : vector<16x128xf32>
      %1148 = arith.addf %1141, %1147 : vector<16x128xf32>
      %c9_454 = arith.constant 9 : index
      %1149 = arith.index_cast %9 : i32 to index
      %c0_455 = arith.constant 0 : index
      %1150 = vector.load %arg1[%c9_454, %1149, %c0_455] : memref<16x176x128xf32, #tpu.memory_space<vmem>>, vector<1x16x128xf32>
      %1151 = vector.shape_cast %1150 : vector<1x16x128xf32> to vector<16x128xf32>
      %c42_456 = arith.constant 42 : index
      %1152 = memref.load %arg2[%c42_456] : memref<72xf32, #tpu.memory_space<smem>>
      %1153 = vector.broadcast %1152 : f32 to vector<16x128xf32>
      %1154 = arith.mulf %1153, %1151 : vector<16x128xf32>
      %1155 = arith.addf %1148, %1154 : vector<16x128xf32>
      %c10_457 = arith.constant 10 : index
      %1156 = arith.index_cast %9 : i32 to index
      %c0_458 = arith.constant 0 : index
      %1157 = vector.load %arg1[%c10_457, %1156, %c0_458] : memref<16x176x128xf32, #tpu.memory_space<vmem>>, vector<1x16x128xf32>
      %1158 = vector.shape_cast %1157 : vector<1x16x128xf32> to vector<16x128xf32>
      %c43_459 = arith.constant 43 : index
      %1159 = memref.load %arg2[%c43_459] : memref<72xf32, #tpu.memory_space<smem>>
      %1160 = vector.broadcast %1159 : f32 to vector<16x128xf32>
      %1161 = arith.mulf %1160, %1158 : vector<16x128xf32>
      %1162 = arith.addf %1155, %1161 : vector<16x128xf32>
      %c11_460 = arith.constant 11 : index
      %1163 = arith.index_cast %9 : i32 to index
      %c0_461 = arith.constant 0 : index
      %1164 = vector.load %arg1[%c11_460, %1163, %c0_461] : memref<16x176x128xf32, #tpu.memory_space<vmem>>, vector<1x16x128xf32>
      %1165 = vector.shape_cast %1164 : vector<1x16x128xf32> to vector<16x128xf32>
      %c44_462 = arith.constant 44 : index
      %1166 = memref.load %arg2[%c44_462] : memref<72xf32, #tpu.memory_space<smem>>
      %1167 = vector.broadcast %1166 : f32 to vector<16x128xf32>
      %1168 = arith.mulf %1167, %1165 : vector<16x128xf32>
      %1169 = arith.addf %1162, %1168 : vector<16x128xf32>
      %c4_463 = arith.constant 4 : index
      %1170 = arith.index_cast %9 : i32 to index
      %c0_464 = arith.constant 0 : index
      %1171 = vector.load %arg1[%c4_463, %1170, %c0_464] : memref<16x176x128xf32, #tpu.memory_space<vmem>>, vector<1x16x128xf32>
      %1172 = vector.shape_cast %1171 : vector<1x16x128xf32> to vector<16x128xf32>
      %c36_465 = arith.constant 36 : index
      %1173 = memref.load %arg2[%c36_465] : memref<72xf32, #tpu.memory_space<smem>>
      %1174 = vector.broadcast %1173 : f32 to vector<16x128xf32>
      %1175 = arith.mulf %1174, %1172 : vector<16x128xf32>
      %c5_466 = arith.constant 5 : index
      %1176 = arith.index_cast %9 : i32 to index
      %c0_467 = arith.constant 0 : index
      %1177 = vector.load %arg1[%c5_466, %1176, %c0_467] : memref<16x176x128xf32, #tpu.memory_space<vmem>>, vector<1x16x128xf32>
      %1178 = vector.shape_cast %1177 : vector<1x16x128xf32> to vector<16x128xf32>
      %c37_468 = arith.constant 37 : index
      %1179 = memref.load %arg2[%c37_468] : memref<72xf32, #tpu.memory_space<smem>>
      %1180 = vector.broadcast %1179 : f32 to vector<16x128xf32>
      %1181 = arith.mulf %1180, %1178 : vector<16x128xf32>
      %1182 = arith.addf %1175, %1181 : vector<16x128xf32>
      %c6_469 = arith.constant 6 : index
      %1183 = arith.index_cast %9 : i32 to index
      %c0_470 = arith.constant 0 : index
      %1184 = vector.load %arg1[%c6_469, %1183, %c0_470] : memref<16x176x128xf32, #tpu.memory_space<vmem>>, vector<1x16x128xf32>
      %1185 = vector.shape_cast %1184 : vector<1x16x128xf32> to vector<16x128xf32>
      %c38_471 = arith.constant 38 : index
      %1186 = memref.load %arg2[%c38_471] : memref<72xf32, #tpu.memory_space<smem>>
      %1187 = vector.broadcast %1186 : f32 to vector<16x128xf32>
      %1188 = arith.mulf %1187, %1185 : vector<16x128xf32>
      %1189 = arith.addf %1182, %1188 : vector<16x128xf32>
      %c8_472 = arith.constant 8 : index
      %1190 = arith.index_cast %9 : i32 to index
      %c0_473 = arith.constant 0 : index
      %1191 = vector.load %arg1[%c8_472, %1190, %c0_473] : memref<16x176x128xf32, #tpu.memory_space<vmem>>, vector<1x16x128xf32>
      %1192 = vector.shape_cast %1191 : vector<1x16x128xf32> to vector<16x128xf32>
      %c39_474 = arith.constant 39 : index
      %1193 = memref.load %arg2[%c39_474] : memref<72xf32, #tpu.memory_space<smem>>
      %1194 = vector.broadcast %1193 : f32 to vector<16x128xf32>
      %1195 = arith.mulf %1194, %1192 : vector<16x128xf32>
      %1196 = arith.addf %1189, %1195 : vector<16x128xf32>
      %c9_475 = arith.constant 9 : index
      %1197 = arith.index_cast %9 : i32 to index
      %c0_476 = arith.constant 0 : index
      %1198 = vector.load %arg1[%c9_475, %1197, %c0_476] : memref<16x176x128xf32, #tpu.memory_space<vmem>>, vector<1x16x128xf32>
      %1199 = vector.shape_cast %1198 : vector<1x16x128xf32> to vector<16x128xf32>
      %c40_477 = arith.constant 40 : index
      %1200 = memref.load %arg2[%c40_477] : memref<72xf32, #tpu.memory_space<smem>>
      %1201 = vector.broadcast %1200 : f32 to vector<16x128xf32>
      %1202 = arith.mulf %1201, %1199 : vector<16x128xf32>
      %1203 = arith.addf %1196, %1202 : vector<16x128xf32>
      %c10_478 = arith.constant 10 : index
      %1204 = arith.index_cast %9 : i32 to index
      %c0_479 = arith.constant 0 : index
      %1205 = vector.load %arg1[%c10_478, %1204, %c0_479] : memref<16x176x128xf32, #tpu.memory_space<vmem>>, vector<1x16x128xf32>
      %1206 = vector.shape_cast %1205 : vector<1x16x128xf32> to vector<16x128xf32>
      %c41_480 = arith.constant 41 : index
      %1207 = memref.load %arg2[%c41_480] : memref<72xf32, #tpu.memory_space<smem>>
      %1208 = vector.broadcast %1207 : f32 to vector<16x128xf32>
      %1209 = arith.mulf %1208, %1206 : vector<16x128xf32>
      %1210 = arith.addf %1203, %1209 : vector<16x128xf32>
      %c12_481 = arith.constant 12 : index
      %1211 = arith.index_cast %9 : i32 to index
      %c0_482 = arith.constant 0 : index
      %1212 = vector.load %arg1[%c12_481, %1211, %c0_482] : memref<16x176x128xf32, #tpu.memory_space<vmem>>, vector<1x16x128xf32>
      %1213 = vector.shape_cast %1212 : vector<1x16x128xf32> to vector<16x128xf32>
      %c42_483 = arith.constant 42 : index
      %1214 = memref.load %arg2[%c42_483] : memref<72xf32, #tpu.memory_space<smem>>
      %1215 = vector.broadcast %1214 : f32 to vector<16x128xf32>
      %1216 = arith.mulf %1215, %1213 : vector<16x128xf32>
      %1217 = arith.addf %1210, %1216 : vector<16x128xf32>
      %c13_484 = arith.constant 13 : index
      %1218 = arith.index_cast %9 : i32 to index
      %c0_485 = arith.constant 0 : index
      %1219 = vector.load %arg1[%c13_484, %1218, %c0_485] : memref<16x176x128xf32, #tpu.memory_space<vmem>>, vector<1x16x128xf32>
      %1220 = vector.shape_cast %1219 : vector<1x16x128xf32> to vector<16x128xf32>
      %c43_486 = arith.constant 43 : index
      %1221 = memref.load %arg2[%c43_486] : memref<72xf32, #tpu.memory_space<smem>>
      %1222 = vector.broadcast %1221 : f32 to vector<16x128xf32>
      %1223 = arith.mulf %1222, %1220 : vector<16x128xf32>
      %1224 = arith.addf %1217, %1223 : vector<16x128xf32>
      %c14_487 = arith.constant 14 : index
      %1225 = arith.index_cast %9 : i32 to index
      %c0_488 = arith.constant 0 : index
      %1226 = vector.load %arg1[%c14_487, %1225, %c0_488] : memref<16x176x128xf32, #tpu.memory_space<vmem>>, vector<1x16x128xf32>
      %1227 = vector.shape_cast %1226 : vector<1x16x128xf32> to vector<16x128xf32>
      %c44_489 = arith.constant 44 : index
      %1228 = memref.load %arg2[%c44_489] : memref<72xf32, #tpu.memory_space<smem>>
      %1229 = vector.broadcast %1228 : f32 to vector<16x128xf32>
      %1230 = arith.mulf %1229, %1227 : vector<16x128xf32>
      %1231 = arith.addf %1224, %1230 : vector<16x128xf32>
      %c5_490 = arith.constant 5 : index
      %1232 = arith.index_cast %9 : i32 to index
      %c0_491 = arith.constant 0 : index
      %1233 = vector.load %arg1[%c5_490, %1232, %c0_491] : memref<16x176x128xf32, #tpu.memory_space<vmem>>, vector<1x16x128xf32>
      %1234 = vector.shape_cast %1233 : vector<1x16x128xf32> to vector<16x128xf32>
      %c36_492 = arith.constant 36 : index
      %1235 = memref.load %arg2[%c36_492] : memref<72xf32, #tpu.memory_space<smem>>
      %1236 = vector.broadcast %1235 : f32 to vector<16x128xf32>
      %1237 = arith.mulf %1236, %1234 : vector<16x128xf32>
      %c6_493 = arith.constant 6 : index
      %1238 = arith.index_cast %9 : i32 to index
      %c0_494 = arith.constant 0 : index
      %1239 = vector.load %arg1[%c6_493, %1238, %c0_494] : memref<16x176x128xf32, #tpu.memory_space<vmem>>, vector<1x16x128xf32>
      %1240 = vector.shape_cast %1239 : vector<1x16x128xf32> to vector<16x128xf32>
      %c37_495 = arith.constant 37 : index
      %1241 = memref.load %arg2[%c37_495] : memref<72xf32, #tpu.memory_space<smem>>
      %1242 = vector.broadcast %1241 : f32 to vector<16x128xf32>
      %1243 = arith.mulf %1242, %1240 : vector<16x128xf32>
      %1244 = arith.addf %1237, %1243 : vector<16x128xf32>
      %c7_496 = arith.constant 7 : index
      %1245 = arith.index_cast %9 : i32 to index
      %c0_497 = arith.constant 0 : index
      %1246 = vector.load %arg1[%c7_496, %1245, %c0_497] : memref<16x176x128xf32, #tpu.memory_space<vmem>>, vector<1x16x128xf32>
      %1247 = vector.shape_cast %1246 : vector<1x16x128xf32> to vector<16x128xf32>
      %c38_498 = arith.constant 38 : index
      %1248 = memref.load %arg2[%c38_498] : memref<72xf32, #tpu.memory_space<smem>>
      %1249 = vector.broadcast %1248 : f32 to vector<16x128xf32>
      %1250 = arith.mulf %1249, %1247 : vector<16x128xf32>
      %1251 = arith.addf %1244, %1250 : vector<16x128xf32>
      %c9_499 = arith.constant 9 : index
      %1252 = arith.index_cast %9 : i32 to index
      %c0_500 = arith.constant 0 : index
      %1253 = vector.load %arg1[%c9_499, %1252, %c0_500] : memref<16x176x128xf32, #tpu.memory_space<vmem>>, vector<1x16x128xf32>
      %1254 = vector.shape_cast %1253 : vector<1x16x128xf32> to vector<16x128xf32>
      %c39_501 = arith.constant 39 : index
      %1255 = memref.load %arg2[%c39_501] : memref<72xf32, #tpu.memory_space<smem>>
      %1256 = vector.broadcast %1255 : f32 to vector<16x128xf32>
      %1257 = arith.mulf %1256, %1254 : vector<16x128xf32>
      %1258 = arith.addf %1251, %1257 : vector<16x128xf32>
      %c10_502 = arith.constant 10 : index
      %1259 = arith.index_cast %9 : i32 to index
      %c0_503 = arith.constant 0 : index
      %1260 = vector.load %arg1[%c10_502, %1259, %c0_503] : memref<16x176x128xf32, #tpu.memory_space<vmem>>, vector<1x16x128xf32>
      %1261 = vector.shape_cast %1260 : vector<1x16x128xf32> to vector<16x128xf32>
      %c40_504 = arith.constant 40 : index
      %1262 = memref.load %arg2[%c40_504] : memref<72xf32, #tpu.memory_space<smem>>
      %1263 = vector.broadcast %1262 : f32 to vector<16x128xf32>
      %1264 = arith.mulf %1263, %1261 : vector<16x128xf32>
      %1265 = arith.addf %1258, %1264 : vector<16x128xf32>
      %c11_505 = arith.constant 11 : index
      %1266 = arith.index_cast %9 : i32 to index
      %c0_506 = arith.constant 0 : index
      %1267 = vector.load %arg1[%c11_505, %1266, %c0_506] : memref<16x176x128xf32, #tpu.memory_space<vmem>>, vector<1x16x128xf32>
      %1268 = vector.shape_cast %1267 : vector<1x16x128xf32> to vector<16x128xf32>
      %c41_507 = arith.constant 41 : index
      %1269 = memref.load %arg2[%c41_507] : memref<72xf32, #tpu.memory_space<smem>>
      %1270 = vector.broadcast %1269 : f32 to vector<16x128xf32>
      %1271 = arith.mulf %1270, %1268 : vector<16x128xf32>
      %1272 = arith.addf %1265, %1271 : vector<16x128xf32>
      %c13_508 = arith.constant 13 : index
      %1273 = arith.index_cast %9 : i32 to index
      %c0_509 = arith.constant 0 : index
      %1274 = vector.load %arg1[%c13_508, %1273, %c0_509] : memref<16x176x128xf32, #tpu.memory_space<vmem>>, vector<1x16x128xf32>
      %1275 = vector.shape_cast %1274 : vector<1x16x128xf32> to vector<16x128xf32>
      %c42_510 = arith.constant 42 : index
      %1276 = memref.load %arg2[%c42_510] : memref<72xf32, #tpu.memory_space<smem>>
      %1277 = vector.broadcast %1276 : f32 to vector<16x128xf32>
      %1278 = arith.mulf %1277, %1275 : vector<16x128xf32>
      %1279 = arith.addf %1272, %1278 : vector<16x128xf32>
      %c14_511 = arith.constant 14 : index
      %1280 = arith.index_cast %9 : i32 to index
      %c0_512 = arith.constant 0 : index
      %1281 = vector.load %arg1[%c14_511, %1280, %c0_512] : memref<16x176x128xf32, #tpu.memory_space<vmem>>, vector<1x16x128xf32>
      %1282 = vector.shape_cast %1281 : vector<1x16x128xf32> to vector<16x128xf32>
      %c43_513 = arith.constant 43 : index
      %1283 = memref.load %arg2[%c43_513] : memref<72xf32, #tpu.memory_space<smem>>
      %1284 = vector.broadcast %1283 : f32 to vector<16x128xf32>
      %1285 = arith.mulf %1284, %1282 : vector<16x128xf32>
      %1286 = arith.addf %1279, %1285 : vector<16x128xf32>
      %c15_514 = arith.constant 15 : index
      %1287 = arith.index_cast %9 : i32 to index
      %c0_515 = arith.constant 0 : index
      %1288 = vector.load %arg1[%c15_514, %1287, %c0_515] : memref<16x176x128xf32, #tpu.memory_space<vmem>>, vector<1x16x128xf32>
      %1289 = vector.shape_cast %1288 : vector<1x16x128xf32> to vector<16x128xf32>
      %c44_516 = arith.constant 44 : index
      %1290 = memref.load %arg2[%c44_516] : memref<72xf32, #tpu.memory_space<smem>>
      %1291 = vector.broadcast %1290 : f32 to vector<16x128xf32>
      %1292 = arith.mulf %1291, %1289 : vector<16x128xf32>
      %1293 = arith.addf %1286, %1292 : vector<16x128xf32>
      %1294 = arith.maximumf %1107, %1169 : vector<16x128xf32>
      %1295 = arith.maximumf %1231, %1293 : vector<16x128xf32>
      %1296 = arith.maximumf %1294, %1295 : vector<16x128xf32>
      %c4_517 = arith.constant 4 : index
      %1297 = memref.load %arg3[%c4_517] : memref<8xf32, #tpu.memory_space<smem>>
      %1298 = vector.broadcast %1297 : f32 to vector<16x128xf32>
      %1299 = arith.addf %1296, %1298 : vector<16x128xf32>
      %cst_518 = arith.constant 0.000000e+00 : f32
      %1300 = vector.broadcast %cst_518 : f32 to vector<16x128xf32>
      %1301 = arith.maximumf %1299, %1300 : vector<16x128xf32>
      %c704_i32 = arith.constant 704 : i32
      %1302 = arith.addi %c704_i32, %9 : i32
      %1303 = arith.index_cast %1302 : i32 to index
      %c0_519 = arith.constant 0 : index
      %1304 = vector.load %arg7[%1303, %c0_519] : memref<1408x128xf32, #tpu.memory_space<vmem>>, vector<16x128xf32>
      tpu.vector_store %arg7[%1303, %c0_519], %1301 {strides = array<i32>} : memref<1408x128xf32, #tpu.memory_space<vmem>>, vector<16x128xf32>,
      %c0_520 = arith.constant 0 : index
      %1305 = arith.index_cast %9 : i32 to index
      %c0_521 = arith.constant 0 : index
      %1306 = vector.load %arg1[%c0_520, %1305, %c0_521] : memref<16x176x128xf32, #tpu.memory_space<vmem>>, vector<1x16x128xf32>
      %1307 = vector.shape_cast %1306 : vector<1x16x128xf32> to vector<16x128xf32>
      %c45 = arith.constant 45 : index
      %1308 = memref.load %arg2[%c45] : memref<72xf32, #tpu.memory_space<smem>>
      %1309 = vector.broadcast %1308 : f32 to vector<16x128xf32>
      %1310 = arith.mulf %1309, %1307 : vector<16x128xf32>
      %c1_522 = arith.constant 1 : index
      %1311 = arith.index_cast %9 : i32 to index
      %c0_523 = arith.constant 0 : index
      %1312 = vector.load %arg1[%c1_522, %1311, %c0_523] : memref<16x176x128xf32, #tpu.memory_space<vmem>>, vector<1x16x128xf32>
      %1313 = vector.shape_cast %1312 : vector<1x16x128xf32> to vector<16x128xf32>
      %c46 = arith.constant 46 : index
      %1314 = memref.load %arg2[%c46] : memref<72xf32, #tpu.memory_space<smem>>
      %1315 = vector.broadcast %1314 : f32 to vector<16x128xf32>
      %1316 = arith.mulf %1315, %1313 : vector<16x128xf32>
      %1317 = arith.addf %1310, %1316 : vector<16x128xf32>
      %c2_524 = arith.constant 2 : index
      %1318 = arith.index_cast %9 : i32 to index
      %c0_525 = arith.constant 0 : index
      %1319 = vector.load %arg1[%c2_524, %1318, %c0_525] : memref<16x176x128xf32, #tpu.memory_space<vmem>>, vector<1x16x128xf32>
      %1320 = vector.shape_cast %1319 : vector<1x16x128xf32> to vector<16x128xf32>
      %c47 = arith.constant 47 : index
      %1321 = memref.load %arg2[%c47] : memref<72xf32, #tpu.memory_space<smem>>
      %1322 = vector.broadcast %1321 : f32 to vector<16x128xf32>
      %1323 = arith.mulf %1322, %1320 : vector<16x128xf32>
      %1324 = arith.addf %1317, %1323 : vector<16x128xf32>
      %c4_526 = arith.constant 4 : index
      %1325 = arith.index_cast %9 : i32 to index
      %c0_527 = arith.constant 0 : index
      %1326 = vector.load %arg1[%c4_526, %1325, %c0_527] : memref<16x176x128xf32, #tpu.memory_space<vmem>>, vector<1x16x128xf32>
      %1327 = vector.shape_cast %1326 : vector<1x16x128xf32> to vector<16x128xf32>
      %c48 = arith.constant 48 : index
      %1328 = memref.load %arg2[%c48] : memref<72xf32, #tpu.memory_space<smem>>
      %1329 = vector.broadcast %1328 : f32 to vector<16x128xf32>
      %1330 = arith.mulf %1329, %1327 : vector<16x128xf32>
      %1331 = arith.addf %1324, %1330 : vector<16x128xf32>
      %c5_528 = arith.constant 5 : index
      %1332 = arith.index_cast %9 : i32 to index
      %c0_529 = arith.constant 0 : index
      %1333 = vector.load %arg1[%c5_528, %1332, %c0_529] : memref<16x176x128xf32, #tpu.memory_space<vmem>>, vector<1x16x128xf32>
      %1334 = vector.shape_cast %1333 : vector<1x16x128xf32> to vector<16x128xf32>
      %c49 = arith.constant 49 : index
      %1335 = memref.load %arg2[%c49] : memref<72xf32, #tpu.memory_space<smem>>
      %1336 = vector.broadcast %1335 : f32 to vector<16x128xf32>
      %1337 = arith.mulf %1336, %1334 : vector<16x128xf32>
      %1338 = arith.addf %1331, %1337 : vector<16x128xf32>
      %c6_530 = arith.constant 6 : index
      %1339 = arith.index_cast %9 : i32 to index
      %c0_531 = arith.constant 0 : index
      %1340 = vector.load %arg1[%c6_530, %1339, %c0_531] : memref<16x176x128xf32, #tpu.memory_space<vmem>>, vector<1x16x128xf32>
      %1341 = vector.shape_cast %1340 : vector<1x16x128xf32> to vector<16x128xf32>
      %c50 = arith.constant 50 : index
      %1342 = memref.load %arg2[%c50] : memref<72xf32, #tpu.memory_space<smem>>
      %1343 = vector.broadcast %1342 : f32 to vector<16x128xf32>
      %1344 = arith.mulf %1343, %1341 : vector<16x128xf32>
      %1345 = arith.addf %1338, %1344 : vector<16x128xf32>
      %c8_532 = arith.constant 8 : index
      %1346 = arith.index_cast %9 : i32 to index
      %c0_533 = arith.constant 0 : index
      %1347 = vector.load %arg1[%c8_532, %1346, %c0_533] : memref<16x176x128xf32, #tpu.memory_space<vmem>>, vector<1x16x128xf32>
      %1348 = vector.shape_cast %1347 : vector<1x16x128xf32> to vector<16x128xf32>
      %c51 = arith.constant 51 : index
      %1349 = memref.load %arg2[%c51] : memref<72xf32, #tpu.memory_space<smem>>
      %1350 = vector.broadcast %1349 : f32 to vector<16x128xf32>
      %1351 = arith.mulf %1350, %1348 : vector<16x128xf32>
      %1352 = arith.addf %1345, %1351 : vector<16x128xf32>
      %c9_534 = arith.constant 9 : index
      %1353 = arith.index_cast %9 : i32 to index
      %c0_535 = arith.constant 0 : index
      %1354 = vector.load %arg1[%c9_534, %1353, %c0_535] : memref<16x176x128xf32, #tpu.memory_space<vmem>>, vector<1x16x128xf32>
      %1355 = vector.shape_cast %1354 : vector<1x16x128xf32> to vector<16x128xf32>
      %c52 = arith.constant 52 : index
      %1356 = memref.load %arg2[%c52] : memref<72xf32, #tpu.memory_space<smem>>
      %1357 = vector.broadcast %1356 : f32 to vector<16x128xf32>
      %1358 = arith.mulf %1357, %1355 : vector<16x128xf32>
      %1359 = arith.addf %1352, %1358 : vector<16x128xf32>
      %c10_536 = arith.constant 10 : index
      %1360 = arith.index_cast %9 : i32 to index
      %c0_537 = arith.constant 0 : index
      %1361 = vector.load %arg1[%c10_536, %1360, %c0_537] : memref<16x176x128xf32, #tpu.memory_space<vmem>>, vector<1x16x128xf32>
      %1362 = vector.shape_cast %1361 : vector<1x16x128xf32> to vector<16x128xf32>
      %c53 = arith.constant 53 : index
      %1363 = memref.load %arg2[%c53] : memref<72xf32, #tpu.memory_space<smem>>
      %1364 = vector.broadcast %1363 : f32 to vector<16x128xf32>
      %1365 = arith.mulf %1364, %1362 : vector<16x128xf32>
      %1366 = arith.addf %1359, %1365 : vector<16x128xf32>
      %c1_538 = arith.constant 1 : index
      %1367 = arith.index_cast %9 : i32 to index
      %c0_539 = arith.constant 0 : index
      %1368 = vector.load %arg1[%c1_538, %1367, %c0_539] : memref<16x176x128xf32, #tpu.memory_space<vmem>>, vector<1x16x128xf32>
      %1369 = vector.shape_cast %1368 : vector<1x16x128xf32> to vector<16x128xf32>
      %c45_540 = arith.constant 45 : index
      %1370 = memref.load %arg2[%c45_540] : memref<72xf32, #tpu.memory_space<smem>>
      %1371 = vector.broadcast %1370 : f32 to vector<16x128xf32>
      %1372 = arith.mulf %1371, %1369 : vector<16x128xf32>
      %c2_541 = arith.constant 2 : index
      %1373 = arith.index_cast %9 : i32 to index
      %c0_542 = arith.constant 0 : index
      %1374 = vector.load %arg1[%c2_541, %1373, %c0_542] : memref<16x176x128xf32, #tpu.memory_space<vmem>>, vector<1x16x128xf32>
      %1375 = vector.shape_cast %1374 : vector<1x16x128xf32> to vector<16x128xf32>
      %c46_543 = arith.constant 46 : index
      %1376 = memref.load %arg2[%c46_543] : memref<72xf32, #tpu.memory_space<smem>>
      %1377 = vector.broadcast %1376 : f32 to vector<16x128xf32>
      %1378 = arith.mulf %1377, %1375 : vector<16x128xf32>
      %1379 = arith.addf %1372, %1378 : vector<16x128xf32>
      %c3_544 = arith.constant 3 : index
      %1380 = arith.index_cast %9 : i32 to index
      %c0_545 = arith.constant 0 : index
      %1381 = vector.load %arg1[%c3_544, %1380, %c0_545] : memref<16x176x128xf32, #tpu.memory_space<vmem>>, vector<1x16x128xf32>
      %1382 = vector.shape_cast %1381 : vector<1x16x128xf32> to vector<16x128xf32>
      %c47_546 = arith.constant 47 : index
      %1383 = memref.load %arg2[%c47_546] : memref<72xf32, #tpu.memory_space<smem>>
      %1384 = vector.broadcast %1383 : f32 to vector<16x128xf32>
      %1385 = arith.mulf %1384, %1382 : vector<16x128xf32>
      %1386 = arith.addf %1379, %1385 : vector<16x128xf32>
      %c5_547 = arith.constant 5 : index
      %1387 = arith.index_cast %9 : i32 to index
      %c0_548 = arith.constant 0 : index
      %1388 = vector.load %arg1[%c5_547, %1387, %c0_548] : memref<16x176x128xf32, #tpu.memory_space<vmem>>, vector<1x16x128xf32>
      %1389 = vector.shape_cast %1388 : vector<1x16x128xf32> to vector<16x128xf32>
      %c48_549 = arith.constant 48 : index
      %1390 = memref.load %arg2[%c48_549] : memref<72xf32, #tpu.memory_space<smem>>
      %1391 = vector.broadcast %1390 : f32 to vector<16x128xf32>
      %1392 = arith.mulf %1391, %1389 : vector<16x128xf32>
      %1393 = arith.addf %1386, %1392 : vector<16x128xf32>
      %c6_550 = arith.constant 6 : index
      %1394 = arith.index_cast %9 : i32 to index
      %c0_551 = arith.constant 0 : index
      %1395 = vector.load %arg1[%c6_550, %1394, %c0_551] : memref<16x176x128xf32, #tpu.memory_space<vmem>>, vector<1x16x128xf32>
      %1396 = vector.shape_cast %1395 : vector<1x16x128xf32> to vector<16x128xf32>
      %c49_552 = arith.constant 49 : index
      %1397 = memref.load %arg2[%c49_552] : memref<72xf32, #tpu.memory_space<smem>>
      %1398 = vector.broadcast %1397 : f32 to vector<16x128xf32>
      %1399 = arith.mulf %1398, %1396 : vector<16x128xf32>
      %1400 = arith.addf %1393, %1399 : vector<16x128xf32>
      %c7_553 = arith.constant 7 : index
      %1401 = arith.index_cast %9 : i32 to index
      %c0_554 = arith.constant 0 : index
      %1402 = vector.load %arg1[%c7_553, %1401, %c0_554] : memref<16x176x128xf32, #tpu.memory_space<vmem>>, vector<1x16x128xf32>
      %1403 = vector.shape_cast %1402 : vector<1x16x128xf32> to vector<16x128xf32>
      %c50_555 = arith.constant 50 : index
      %1404 = memref.load %arg2[%c50_555] : memref<72xf32, #tpu.memory_space<smem>>
      %1405 = vector.broadcast %1404 : f32 to vector<16x128xf32>
      %1406 = arith.mulf %1405, %1403 : vector<16x128xf32>
      %1407 = arith.addf %1400, %1406 : vector<16x128xf32>
      %c9_556 = arith.constant 9 : index
      %1408 = arith.index_cast %9 : i32 to index
      %c0_557 = arith.constant 0 : index
      %1409 = vector.load %arg1[%c9_556, %1408, %c0_557] : memref<16x176x128xf32, #tpu.memory_space<vmem>>, vector<1x16x128xf32>
      %1410 = vector.shape_cast %1409 : vector<1x16x128xf32> to vector<16x128xf32>
      %c51_558 = arith.constant 51 : index
      %1411 = memref.load %arg2[%c51_558] : memref<72xf32, #tpu.memory_space<smem>>
      %1412 = vector.broadcast %1411 : f32 to vector<16x128xf32>
      %1413 = arith.mulf %1412, %1410 : vector<16x128xf32>
      %1414 = arith.addf %1407, %1413 : vector<16x128xf32>
      %c10_559 = arith.constant 10 : index
      %1415 = arith.index_cast %9 : i32 to index
      %c0_560 = arith.constant 0 : index
      %1416 = vector.load %arg1[%c10_559, %1415, %c0_560] : memref<16x176x128xf32, #tpu.memory_space<vmem>>, vector<1x16x128xf32>
      %1417 = vector.shape_cast %1416 : vector<1x16x128xf32> to vector<16x128xf32>
      %c52_561 = arith.constant 52 : index
      %1418 = memref.load %arg2[%c52_561] : memref<72xf32, #tpu.memory_space<smem>>
      %1419 = vector.broadcast %1418 : f32 to vector<16x128xf32>
      %1420 = arith.mulf %1419, %1417 : vector<16x128xf32>
      %1421 = arith.addf %1414, %1420 : vector<16x128xf32>
      %c11_562 = arith.constant 11 : index
      %1422 = arith.index_cast %9 : i32 to index
      %c0_563 = arith.constant 0 : index
      %1423 = vector.load %arg1[%c11_562, %1422, %c0_563] : memref<16x176x128xf32, #tpu.memory_space<vmem>>, vector<1x16x128xf32>
      %1424 = vector.shape_cast %1423 : vector<1x16x128xf32> to vector<16x128xf32>
      %c53_564 = arith.constant 53 : index
      %1425 = memref.load %arg2[%c53_564] : memref<72xf32, #tpu.memory_space<smem>>
      %1426 = vector.broadcast %1425 : f32 to vector<16x128xf32>
      %1427 = arith.mulf %1426, %1424 : vector<16x128xf32>
      %1428 = arith.addf %1421, %1427 : vector<16x128xf32>
      %c4_565 = arith.constant 4 : index
      %1429 = arith.index_cast %9 : i32 to index
      %c0_566 = arith.constant 0 : index
      %1430 = vector.load %arg1[%c4_565, %1429, %c0_566] : memref<16x176x128xf32, #tpu.memory_space<vmem>>, vector<1x16x128xf32>
      %1431 = vector.shape_cast %1430 : vector<1x16x128xf32> to vector<16x128xf32>
      %c45_567 = arith.constant 45 : index
      %1432 = memref.load %arg2[%c45_567] : memref<72xf32, #tpu.memory_space<smem>>
      %1433 = vector.broadcast %1432 : f32 to vector<16x128xf32>
      %1434 = arith.mulf %1433, %1431 : vector<16x128xf32>
      %c5_568 = arith.constant 5 : index
      %1435 = arith.index_cast %9 : i32 to index
      %c0_569 = arith.constant 0 : index
      %1436 = vector.load %arg1[%c5_568, %1435, %c0_569] : memref<16x176x128xf32, #tpu.memory_space<vmem>>, vector<1x16x128xf32>
      %1437 = vector.shape_cast %1436 : vector<1x16x128xf32> to vector<16x128xf32>
      %c46_570 = arith.constant 46 : index
      %1438 = memref.load %arg2[%c46_570] : memref<72xf32, #tpu.memory_space<smem>>
      %1439 = vector.broadcast %1438 : f32 to vector<16x128xf32>
      %1440 = arith.mulf %1439, %1437 : vector<16x128xf32>
      %1441 = arith.addf %1434, %1440 : vector<16x128xf32>
      %c6_571 = arith.constant 6 : index
      %1442 = arith.index_cast %9 : i32 to index
      %c0_572 = arith.constant 0 : index
      %1443 = vector.load %arg1[%c6_571, %1442, %c0_572] : memref<16x176x128xf32, #tpu.memory_space<vmem>>, vector<1x16x128xf32>
      %1444 = vector.shape_cast %1443 : vector<1x16x128xf32> to vector<16x128xf32>
      %c47_573 = arith.constant 47 : index
      %1445 = memref.load %arg2[%c47_573] : memref<72xf32, #tpu.memory_space<smem>>
      %1446 = vector.broadcast %1445 : f32 to vector<16x128xf32>
      %1447 = arith.mulf %1446, %1444 : vector<16x128xf32>
      %1448 = arith.addf %1441, %1447 : vector<16x128xf32>
      %c8_574 = arith.constant 8 : index
      %1449 = arith.index_cast %9 : i32 to index
      %c0_575 = arith.constant 0 : index
      %1450 = vector.load %arg1[%c8_574, %1449, %c0_575] : memref<16x176x128xf32, #tpu.memory_space<vmem>>, vector<1x16x128xf32>
      %1451 = vector.shape_cast %1450 : vector<1x16x128xf32> to vector<16x128xf32>
      %c48_576 = arith.constant 48 : index
      %1452 = memref.load %arg2[%c48_576] : memref<72xf32, #tpu.memory_space<smem>>
      %1453 = vector.broadcast %1452 : f32 to vector<16x128xf32>
      %1454 = arith.mulf %1453, %1451 : vector<16x128xf32>
      %1455 = arith.addf %1448, %1454 : vector<16x128xf32>
      %c9_577 = arith.constant 9 : index
      %1456 = arith.index_cast %9 : i32 to index
      %c0_578 = arith.constant 0 : index
      %1457 = vector.load %arg1[%c9_577, %1456, %c0_578] : memref<16x176x128xf32, #tpu.memory_space<vmem>>, vector<1x16x128xf32>
      %1458 = vector.shape_cast %1457 : vector<1x16x128xf32> to vector<16x128xf32>
      %c49_579 = arith.constant 49 : index
      %1459 = memref.load %arg2[%c49_579] : memref<72xf32, #tpu.memory_space<smem>>
      %1460 = vector.broadcast %1459 : f32 to vector<16x128xf32>
      %1461 = arith.mulf %1460, %1458 : vector<16x128xf32>
      %1462 = arith.addf %1455, %1461 : vector<16x128xf32>
      %c10_580 = arith.constant 10 : index
      %1463 = arith.index_cast %9 : i32 to index
      %c0_581 = arith.constant 0 : index
      %1464 = vector.load %arg1[%c10_580, %1463, %c0_581] : memref<16x176x128xf32, #tpu.memory_space<vmem>>, vector<1x16x128xf32>
      %1465 = vector.shape_cast %1464 : vector<1x16x128xf32> to vector<16x128xf32>
      %c50_582 = arith.constant 50 : index
      %1466 = memref.load %arg2[%c50_582] : memref<72xf32, #tpu.memory_space<smem>>
      %1467 = vector.broadcast %1466 : f32 to vector<16x128xf32>
      %1468 = arith.mulf %1467, %1465 : vector<16x128xf32>
      %1469 = arith.addf %1462, %1468 : vector<16x128xf32>
      %c12_583 = arith.constant 12 : index
      %1470 = arith.index_cast %9 : i32 to index
      %c0_584 = arith.constant 0 : index
      %1471 = vector.load %arg1[%c12_583, %1470, %c0_584] : memref<16x176x128xf32, #tpu.memory_space<vmem>>, vector<1x16x128xf32>
      %1472 = vector.shape_cast %1471 : vector<1x16x128xf32> to vector<16x128xf32>
      %c51_585 = arith.constant 51 : index
      %1473 = memref.load %arg2[%c51_585] : memref<72xf32, #tpu.memory_space<smem>>
      %1474 = vector.broadcast %1473 : f32 to vector<16x128xf32>
      %1475 = arith.mulf %1474, %1472 : vector<16x128xf32>
      %1476 = arith.addf %1469, %1475 : vector<16x128xf32>
      %c13_586 = arith.constant 13 : index
      %1477 = arith.index_cast %9 : i32 to index
      %c0_587 = arith.constant 0 : index
      %1478 = vector.load %arg1[%c13_586, %1477, %c0_587] : memref<16x176x128xf32, #tpu.memory_space<vmem>>, vector<1x16x128xf32>
      %1479 = vector.shape_cast %1478 : vector<1x16x128xf32> to vector<16x128xf32>
      %c52_588 = arith.constant 52 : index
      %1480 = memref.load %arg2[%c52_588] : memref<72xf32, #tpu.memory_space<smem>>
      %1481 = vector.broadcast %1480 : f32 to vector<16x128xf32>
      %1482 = arith.mulf %1481, %1479 : vector<16x128xf32>
      %1483 = arith.addf %1476, %1482 : vector<16x128xf32>
      %c14_589 = arith.constant 14 : index
      %1484 = arith.index_cast %9 : i32 to index
      %c0_590 = arith.constant 0 : index
      %1485 = vector.load %arg1[%c14_589, %1484, %c0_590] : memref<16x176x128xf32, #tpu.memory_space<vmem>>, vector<1x16x128xf32>
      %1486 = vector.shape_cast %1485 : vector<1x16x128xf32> to vector<16x128xf32>
      %c53_591 = arith.constant 53 : index
      %1487 = memref.load %arg2[%c53_591] : memref<72xf32, #tpu.memory_space<smem>>
      %1488 = vector.broadcast %1487 : f32 to vector<16x128xf32>
      %1489 = arith.mulf %1488, %1486 : vector<16x128xf32>
      %1490 = arith.addf %1483, %1489 : vector<16x128xf32>
      %c5_592 = arith.constant 5 : index
      %1491 = arith.index_cast %9 : i32 to index
      %c0_593 = arith.constant 0 : index
      %1492 = vector.load %arg1[%c5_592, %1491, %c0_593] : memref<16x176x128xf32, #tpu.memory_space<vmem>>, vector<1x16x128xf32>
      %1493 = vector.shape_cast %1492 : vector<1x16x128xf32> to vector<16x128xf32>
      %c45_594 = arith.constant 45 : index
      %1494 = memref.load %arg2[%c45_594] : memref<72xf32, #tpu.memory_space<smem>>
      %1495 = vector.broadcast %1494 : f32 to vector<16x128xf32>
      %1496 = arith.mulf %1495, %1493 : vector<16x128xf32>
      %c6_595 = arith.constant 6 : index
      %1497 = arith.index_cast %9 : i32 to index
      %c0_596 = arith.constant 0 : index
      %1498 = vector.load %arg1[%c6_595, %1497, %c0_596] : memref<16x176x128xf32, #tpu.memory_space<vmem>>, vector<1x16x128xf32>
      %1499 = vector.shape_cast %1498 : vector<1x16x128xf32> to vector<16x128xf32>
      %c46_597 = arith.constant 46 : index
      %1500 = memref.load %arg2[%c46_597] : memref<72xf32, #tpu.memory_space<smem>>
      %1501 = vector.broadcast %1500 : f32 to vector<16x128xf32>
      %1502 = arith.mulf %1501, %1499 : vector<16x128xf32>
      %1503 = arith.addf %1496, %1502 : vector<16x128xf32>
      %c7_598 = arith.constant 7 : index
      %1504 = arith.index_cast %9 : i32 to index
      %c0_599 = arith.constant 0 : index
      %1505 = vector.load %arg1[%c7_598, %1504, %c0_599] : memref<16x176x128xf32, #tpu.memory_space<vmem>>, vector<1x16x128xf32>
      %1506 = vector.shape_cast %1505 : vector<1x16x128xf32> to vector<16x128xf32>
      %c47_600 = arith.constant 47 : index
      %1507 = memref.load %arg2[%c47_600] : memref<72xf32, #tpu.memory_space<smem>>
      %1508 = vector.broadcast %1507 : f32 to vector<16x128xf32>
      %1509 = arith.mulf %1508, %1506 : vector<16x128xf32>
      %1510 = arith.addf %1503, %1509 : vector<16x128xf32>
      %c9_601 = arith.constant 9 : index
      %1511 = arith.index_cast %9 : i32 to index
      %c0_602 = arith.constant 0 : index
      %1512 = vector.load %arg1[%c9_601, %1511, %c0_602] : memref<16x176x128xf32, #tpu.memory_space<vmem>>, vector<1x16x128xf32>
      %1513 = vector.shape_cast %1512 : vector<1x16x128xf32> to vector<16x128xf32>
      %c48_603 = arith.constant 48 : index
      %1514 = memref.load %arg2[%c48_603] : memref<72xf32, #tpu.memory_space<smem>>
      %1515 = vector.broadcast %1514 : f32 to vector<16x128xf32>
      %1516 = arith.mulf %1515, %1513 : vector<16x128xf32>
      %1517 = arith.addf %1510, %1516 : vector<16x128xf32>
      %c10_604 = arith.constant 10 : index
      %1518 = arith.index_cast %9 : i32 to index
      %c0_605 = arith.constant 0 : index
      %1519 = vector.load %arg1[%c10_604, %1518, %c0_605] : memref<16x176x128xf32, #tpu.memory_space<vmem>>, vector<1x16x128xf32>
      %1520 = vector.shape_cast %1519 : vector<1x16x128xf32> to vector<16x128xf32>
      %c49_606 = arith.constant 49 : index
      %1521 = memref.load %arg2[%c49_606] : memref<72xf32, #tpu.memory_space<smem>>
      %1522 = vector.broadcast %1521 : f32 to vector<16x128xf32>
      %1523 = arith.mulf %1522, %1520 : vector<16x128xf32>
      %1524 = arith.addf %1517, %1523 : vector<16x128xf32>
      %c11_607 = arith.constant 11 : index
      %1525 = arith.index_cast %9 : i32 to index
      %c0_608 = arith.constant 0 : index
      %1526 = vector.load %arg1[%c11_607, %1525, %c0_608] : memref<16x176x128xf32, #tpu.memory_space<vmem>>, vector<1x16x128xf32>
      %1527 = vector.shape_cast %1526 : vector<1x16x128xf32> to vector<16x128xf32>
      %c50_609 = arith.constant 50 : index
      %1528 = memref.load %arg2[%c50_609] : memref<72xf32, #tpu.memory_space<smem>>
      %1529 = vector.broadcast %1528 : f32 to vector<16x128xf32>
      %1530 = arith.mulf %1529, %1527 : vector<16x128xf32>
      %1531 = arith.addf %1524, %1530 : vector<16x128xf32>
      %c13_610 = arith.constant 13 : index
      %1532 = arith.index_cast %9 : i32 to index
      %c0_611 = arith.constant 0 : index
      %1533 = vector.load %arg1[%c13_610, %1532, %c0_611] : memref<16x176x128xf32, #tpu.memory_space<vmem>>, vector<1x16x128xf32>
      %1534 = vector.shape_cast %1533 : vector<1x16x128xf32> to vector<16x128xf32>
      %c51_612 = arith.constant 51 : index
      %1535 = memref.load %arg2[%c51_612] : memref<72xf32, #tpu.memory_space<smem>>
      %1536 = vector.broadcast %1535 : f32 to vector<16x128xf32>
      %1537 = arith.mulf %1536, %1534 : vector<16x128xf32>
      %1538 = arith.addf %1531, %1537 : vector<16x128xf32>
      %c14_613 = arith.constant 14 : index
      %1539 = arith.index_cast %9 : i32 to index
      %c0_614 = arith.constant 0 : index
      %1540 = vector.load %arg1[%c14_613, %1539, %c0_614] : memref<16x176x128xf32, #tpu.memory_space<vmem>>, vector<1x16x128xf32>
      %1541 = vector.shape_cast %1540 : vector<1x16x128xf32> to vector<16x128xf32>
      %c52_615 = arith.constant 52 : index
      %1542 = memref.load %arg2[%c52_615] : memref<72xf32, #tpu.memory_space<smem>>
      %1543 = vector.broadcast %1542 : f32 to vector<16x128xf32>
      %1544 = arith.mulf %1543, %1541 : vector<16x128xf32>
      %1545 = arith.addf %1538, %1544 : vector<16x128xf32>
      %c15_616 = arith.constant 15 : index
      %1546 = arith.index_cast %9 : i32 to index
      %c0_617 = arith.constant 0 : index
      %1547 = vector.load %arg1[%c15_616, %1546, %c0_617] : memref<16x176x128xf32, #tpu.memory_space<vmem>>, vector<1x16x128xf32>
      %1548 = vector.shape_cast %1547 : vector<1x16x128xf32> to vector<16x128xf32>
      %c53_618 = arith.constant 53 : index
      %1549 = memref.load %arg2[%c53_618] : memref<72xf32, #tpu.memory_space<smem>>
      %1550 = vector.broadcast %1549 : f32 to vector<16x128xf32>
      %1551 = arith.mulf %1550, %1548 : vector<16x128xf32>
      %1552 = arith.addf %1545, %1551 : vector<16x128xf32>
      %1553 = arith.maximumf %1366, %1428 : vector<16x128xf32>
      %1554 = arith.maximumf %1490, %1552 : vector<16x128xf32>
      %1555 = arith.maximumf %1553, %1554 : vector<16x128xf32>
      %c5_619 = arith.constant 5 : index
      %1556 = memref.load %arg3[%c5_619] : memref<8xf32, #tpu.memory_space<smem>>
      %1557 = vector.broadcast %1556 : f32 to vector<16x128xf32>
      %1558 = arith.addf %1555, %1557 : vector<16x128xf32>
      %cst_620 = arith.constant 0.000000e+00 : f32
      %1559 = vector.broadcast %cst_620 : f32 to vector<16x128xf32>
      %1560 = arith.maximumf %1558, %1559 : vector<16x128xf32>
      %c880_i32 = arith.constant 880 : i32
      %1561 = arith.addi %c880_i32, %9 : i32
      %1562 = arith.index_cast %1561 : i32 to index
      %c0_621 = arith.constant 0 : index
      %1563 = vector.load %arg7[%1562, %c0_621] : memref<1408x128xf32, #tpu.memory_space<vmem>>, vector<16x128xf32>
      tpu.vector_store %arg7[%1562, %c0_621], %1560 {strides = array<i32>} : memref<1408x128xf32, #tpu.memory_space<vmem>>, vector<16x128xf32>,
      %c0_622 = arith.constant 0 : index
      %1564 = arith.index_cast %9 : i32 to index
      %c0_623 = arith.constant 0 : index
      %1565 = vector.load %arg1[%c0_622, %1564, %c0_623] : memref<16x176x128xf32, #tpu.memory_space<vmem>>, vector<1x16x128xf32>
      %1566 = vector.shape_cast %1565 : vector<1x16x128xf32> to vector<16x128xf32>
      %c54 = arith.constant 54 : index
      %1567 = memref.load %arg2[%c54] : memref<72xf32, #tpu.memory_space<smem>>
      %1568 = vector.broadcast %1567 : f32 to vector<16x128xf32>
      %1569 = arith.mulf %1568, %1566 : vector<16x128xf32>
      %c1_624 = arith.constant 1 : index
      %1570 = arith.index_cast %9 : i32 to index
      %c0_625 = arith.constant 0 : index
      %1571 = vector.load %arg1[%c1_624, %1570, %c0_625] : memref<16x176x128xf32, #tpu.memory_space<vmem>>, vector<1x16x128xf32>
      %1572 = vector.shape_cast %1571 : vector<1x16x128xf32> to vector<16x128xf32>
      %c55 = arith.constant 55 : index
      %1573 = memref.load %arg2[%c55] : memref<72xf32, #tpu.memory_space<smem>>
      %1574 = vector.broadcast %1573 : f32 to vector<16x128xf32>
      %1575 = arith.mulf %1574, %1572 : vector<16x128xf32>
      %1576 = arith.addf %1569, %1575 : vector<16x128xf32>
      %c2_626 = arith.constant 2 : index
      %1577 = arith.index_cast %9 : i32 to index
      %c0_627 = arith.constant 0 : index
      %1578 = vector.load %arg1[%c2_626, %1577, %c0_627] : memref<16x176x128xf32, #tpu.memory_space<vmem>>, vector<1x16x128xf32>
      %1579 = vector.shape_cast %1578 : vector<1x16x128xf32> to vector<16x128xf32>
      %c56 = arith.constant 56 : index
      %1580 = memref.load %arg2[%c56] : memref<72xf32, #tpu.memory_space<smem>>
      %1581 = vector.broadcast %1580 : f32 to vector<16x128xf32>
      %1582 = arith.mulf %1581, %1579 : vector<16x128xf32>
      %1583 = arith.addf %1576, %1582 : vector<16x128xf32>
      %c4_628 = arith.constant 4 : index
      %1584 = arith.index_cast %9 : i32 to index
      %c0_629 = arith.constant 0 : index
      %1585 = vector.load %arg1[%c4_628, %1584, %c0_629] : memref<16x176x128xf32, #tpu.memory_space<vmem>>, vector<1x16x128xf32>
      %1586 = vector.shape_cast %1585 : vector<1x16x128xf32> to vector<16x128xf32>
      %c57 = arith.constant 57 : index
      %1587 = memref.load %arg2[%c57] : memref<72xf32, #tpu.memory_space<smem>>
      %1588 = vector.broadcast %1587 : f32 to vector<16x128xf32>
      %1589 = arith.mulf %1588, %1586 : vector<16x128xf32>
      %1590 = arith.addf %1583, %1589 : vector<16x128xf32>
      %c5_630 = arith.constant 5 : index
      %1591 = arith.index_cast %9 : i32 to index
      %c0_631 = arith.constant 0 : index
      %1592 = vector.load %arg1[%c5_630, %1591, %c0_631] : memref<16x176x128xf32, #tpu.memory_space<vmem>>, vector<1x16x128xf32>
      %1593 = vector.shape_cast %1592 : vector<1x16x128xf32> to vector<16x128xf32>
      %c58 = arith.constant 58 : index
      %1594 = memref.load %arg2[%c58] : memref<72xf32, #tpu.memory_space<smem>>
      %1595 = vector.broadcast %1594 : f32 to vector<16x128xf32>
      %1596 = arith.mulf %1595, %1593 : vector<16x128xf32>
      %1597 = arith.addf %1590, %1596 : vector<16x128xf32>
      %c6_632 = arith.constant 6 : index
      %1598 = arith.index_cast %9 : i32 to index
      %c0_633 = arith.constant 0 : index
      %1599 = vector.load %arg1[%c6_632, %1598, %c0_633] : memref<16x176x128xf32, #tpu.memory_space<vmem>>, vector<1x16x128xf32>
      %1600 = vector.shape_cast %1599 : vector<1x16x128xf32> to vector<16x128xf32>
      %c59 = arith.constant 59 : index
      %1601 = memref.load %arg2[%c59] : memref<72xf32, #tpu.memory_space<smem>>
      %1602 = vector.broadcast %1601 : f32 to vector<16x128xf32>
      %1603 = arith.mulf %1602, %1600 : vector<16x128xf32>
      %1604 = arith.addf %1597, %1603 : vector<16x128xf32>
      %c8_634 = arith.constant 8 : index
      %1605 = arith.index_cast %9 : i32 to index
      %c0_635 = arith.constant 0 : index
      %1606 = vector.load %arg1[%c8_634, %1605, %c0_635] : memref<16x176x128xf32, #tpu.memory_space<vmem>>, vector<1x16x128xf32>
      %1607 = vector.shape_cast %1606 : vector<1x16x128xf32> to vector<16x128xf32>
      %c60 = arith.constant 60 : index
      %1608 = memref.load %arg2[%c60] : memref<72xf32, #tpu.memory_space<smem>>
      %1609 = vector.broadcast %1608 : f32 to vector<16x128xf32>
      %1610 = arith.mulf %1609, %1607 : vector<16x128xf32>
      %1611 = arith.addf %1604, %1610 : vector<16x128xf32>
      %c9_636 = arith.constant 9 : index
      %1612 = arith.index_cast %9 : i32 to index
      %c0_637 = arith.constant 0 : index
      %1613 = vector.load %arg1[%c9_636, %1612, %c0_637] : memref<16x176x128xf32, #tpu.memory_space<vmem>>, vector<1x16x128xf32>
      %1614 = vector.shape_cast %1613 : vector<1x16x128xf32> to vector<16x128xf32>
      %c61 = arith.constant 61 : index
      %1615 = memref.load %arg2[%c61] : memref<72xf32, #tpu.memory_space<smem>>
      %1616 = vector.broadcast %1615 : f32 to vector<16x128xf32>
      %1617 = arith.mulf %1616, %1614 : vector<16x128xf32>
      %1618 = arith.addf %1611, %1617 : vector<16x128xf32>
      %c10_638 = arith.constant 10 : index
      %1619 = arith.index_cast %9 : i32 to index
      %c0_639 = arith.constant 0 : index
      %1620 = vector.load %arg1[%c10_638, %1619, %c0_639] : memref<16x176x128xf32, #tpu.memory_space<vmem>>, vector<1x16x128xf32>
      %1621 = vector.shape_cast %1620 : vector<1x16x128xf32> to vector<16x128xf32>
      %c62 = arith.constant 62 : index
      %1622 = memref.load %arg2[%c62] : memref<72xf32, #tpu.memory_space<smem>>
      %1623 = vector.broadcast %1622 : f32 to vector<16x128xf32>
      %1624 = arith.mulf %1623, %1621 : vector<16x128xf32>
      %1625 = arith.addf %1618, %1624 : vector<16x128xf32>
      %c1_640 = arith.constant 1 : index
      %1626 = arith.index_cast %9 : i32 to index
      %c0_641 = arith.constant 0 : index
      %1627 = vector.load %arg1[%c1_640, %1626, %c0_641] : memref<16x176x128xf32, #tpu.memory_space<vmem>>, vector<1x16x128xf32>
      %1628 = vector.shape_cast %1627 : vector<1x16x128xf32> to vector<16x128xf32>
      %c54_642 = arith.constant 54 : index
      %1629 = memref.load %arg2[%c54_642] : memref<72xf32, #tpu.memory_space<smem>>
      %1630 = vector.broadcast %1629 : f32 to vector<16x128xf32>
      %1631 = arith.mulf %1630, %1628 : vector<16x128xf32>
      %c2_643 = arith.constant 2 : index
      %1632 = arith.index_cast %9 : i32 to index
      %c0_644 = arith.constant 0 : index
      %1633 = vector.load %arg1[%c2_643, %1632, %c0_644] : memref<16x176x128xf32, #tpu.memory_space<vmem>>, vector<1x16x128xf32>
      %1634 = vector.shape_cast %1633 : vector<1x16x128xf32> to vector<16x128xf32>
      %c55_645 = arith.constant 55 : index
      %1635 = memref.load %arg2[%c55_645] : memref<72xf32, #tpu.memory_space<smem>>
      %1636 = vector.broadcast %1635 : f32 to vector<16x128xf32>
      %1637 = arith.mulf %1636, %1634 : vector<16x128xf32>
      %1638 = arith.addf %1631, %1637 : vector<16x128xf32>
      %c3_646 = arith.constant 3 : index
      %1639 = arith.index_cast %9 : i32 to index
      %c0_647 = arith.constant 0 : index
      %1640 = vector.load %arg1[%c3_646, %1639, %c0_647] : memref<16x176x128xf32, #tpu.memory_space<vmem>>, vector<1x16x128xf32>
      %1641 = vector.shape_cast %1640 : vector<1x16x128xf32> to vector<16x128xf32>
      %c56_648 = arith.constant 56 : index
      %1642 = memref.load %arg2[%c56_648] : memref<72xf32, #tpu.memory_space<smem>>
      %1643 = vector.broadcast %1642 : f32 to vector<16x128xf32>
      %1644 = arith.mulf %1643, %1641 : vector<16x128xf32>
      %1645 = arith.addf %1638, %1644 : vector<16x128xf32>
      %c5_649 = arith.constant 5 : index
      %1646 = arith.index_cast %9 : i32 to index
      %c0_650 = arith.constant 0 : index
      %1647 = vector.load %arg1[%c5_649, %1646, %c0_650] : memref<16x176x128xf32, #tpu.memory_space<vmem>>, vector<1x16x128xf32>
      %1648 = vector.shape_cast %1647 : vector<1x16x128xf32> to vector<16x128xf32>
      %c57_651 = arith.constant 57 : index
      %1649 = memref.load %arg2[%c57_651] : memref<72xf32, #tpu.memory_space<smem>>
      %1650 = vector.broadcast %1649 : f32 to vector<16x128xf32>
      %1651 = arith.mulf %1650, %1648 : vector<16x128xf32>
      %1652 = arith.addf %1645, %1651 : vector<16x128xf32>
      %c6_652 = arith.constant 6 : index
      %1653 = arith.index_cast %9 : i32 to index
      %c0_653 = arith.constant 0 : index
      %1654 = vector.load %arg1[%c6_652, %1653, %c0_653] : memref<16x176x128xf32, #tpu.memory_space<vmem>>, vector<1x16x128xf32>
      %1655 = vector.shape_cast %1654 : vector<1x16x128xf32> to vector<16x128xf32>
      %c58_654 = arith.constant 58 : index
      %1656 = memref.load %arg2[%c58_654] : memref<72xf32, #tpu.memory_space<smem>>
      %1657 = vector.broadcast %1656 : f32 to vector<16x128xf32>
      %1658 = arith.mulf %1657, %1655 : vector<16x128xf32>
      %1659 = arith.addf %1652, %1658 : vector<16x128xf32>
      %c7_655 = arith.constant 7 : index
      %1660 = arith.index_cast %9 : i32 to index
      %c0_656 = arith.constant 0 : index
      %1661 = vector.load %arg1[%c7_655, %1660, %c0_656] : memref<16x176x128xf32, #tpu.memory_space<vmem>>, vector<1x16x128xf32>
      %1662 = vector.shape_cast %1661 : vector<1x16x128xf32> to vector<16x128xf32>
      %c59_657 = arith.constant 59 : index
      %1663 = memref.load %arg2[%c59_657] : memref<72xf32, #tpu.memory_space<smem>>
      %1664 = vector.broadcast %1663 : f32 to vector<16x128xf32>
      %1665 = arith.mulf %1664, %1662 : vector<16x128xf32>
      %1666 = arith.addf %1659, %1665 : vector<16x128xf32>
      %c9_658 = arith.constant 9 : index
      %1667 = arith.index_cast %9 : i32 to index
      %c0_659 = arith.constant 0 : index
      %1668 = vector.load %arg1[%c9_658, %1667, %c0_659] : memref<16x176x128xf32, #tpu.memory_space<vmem>>, vector<1x16x128xf32>
      %1669 = vector.shape_cast %1668 : vector<1x16x128xf32> to vector<16x128xf32>
      %c60_660 = arith.constant 60 : index
      %1670 = memref.load %arg2[%c60_660] : memref<72xf32, #tpu.memory_space<smem>>
      %1671 = vector.broadcast %1670 : f32 to vector<16x128xf32>
      %1672 = arith.mulf %1671, %1669 : vector<16x128xf32>
      %1673 = arith.addf %1666, %1672 : vector<16x128xf32>
      %c10_661 = arith.constant 10 : index
      %1674 = arith.index_cast %9 : i32 to index
      %c0_662 = arith.constant 0 : index
      %1675 = vector.load %arg1[%c10_661, %1674, %c0_662] : memref<16x176x128xf32, #tpu.memory_space<vmem>>, vector<1x16x128xf32>
      %1676 = vector.shape_cast %1675 : vector<1x16x128xf32> to vector<16x128xf32>
      %c61_663 = arith.constant 61 : index
      %1677 = memref.load %arg2[%c61_663] : memref<72xf32, #tpu.memory_space<smem>>
      %1678 = vector.broadcast %1677 : f32 to vector<16x128xf32>
      %1679 = arith.mulf %1678, %1676 : vector<16x128xf32>
      %1680 = arith.addf %1673, %1679 : vector<16x128xf32>
      %c11_664 = arith.constant 11 : index
      %1681 = arith.index_cast %9 : i32 to index
      %c0_665 = arith.constant 0 : index
      %1682 = vector.load %arg1[%c11_664, %1681, %c0_665] : memref<16x176x128xf32, #tpu.memory_space<vmem>>, vector<1x16x128xf32>
      %1683 = vector.shape_cast %1682 : vector<1x16x128xf32> to vector<16x128xf32>
      %c62_666 = arith.constant 62 : index
      %1684 = memref.load %arg2[%c62_666] : memref<72xf32, #tpu.memory_space<smem>>
      %1685 = vector.broadcast %1684 : f32 to vector<16x128xf32>
      %1686 = arith.mulf %1685, %1683 : vector<16x128xf32>
      %1687 = arith.addf %1680, %1686 : vector<16x128xf32>
      %c4_667 = arith.constant 4 : index
      %1688 = arith.index_cast %9 : i32 to index
      %c0_668 = arith.constant 0 : index
      %1689 = vector.load %arg1[%c4_667, %1688, %c0_668] : memref<16x176x128xf32, #tpu.memory_space<vmem>>, vector<1x16x128xf32>
      %1690 = vector.shape_cast %1689 : vector<1x16x128xf32> to vector<16x128xf32>
      %c54_669 = arith.constant 54 : index
      %1691 = memref.load %arg2[%c54_669] : memref<72xf32, #tpu.memory_space<smem>>
      %1692 = vector.broadcast %1691 : f32 to vector<16x128xf32>
      %1693 = arith.mulf %1692, %1690 : vector<16x128xf32>
      %c5_670 = arith.constant 5 : index
      %1694 = arith.index_cast %9 : i32 to index
      %c0_671 = arith.constant 0 : index
      %1695 = vector.load %arg1[%c5_670, %1694, %c0_671] : memref<16x176x128xf32, #tpu.memory_space<vmem>>, vector<1x16x128xf32>
      %1696 = vector.shape_cast %1695 : vector<1x16x128xf32> to vector<16x128xf32>
      %c55_672 = arith.constant 55 : index
      %1697 = memref.load %arg2[%c55_672] : memref<72xf32, #tpu.memory_space<smem>>
      %1698 = vector.broadcast %1697 : f32 to vector<16x128xf32>
      %1699 = arith.mulf %1698, %1696 : vector<16x128xf32>
      %1700 = arith.addf %1693, %1699 : vector<16x128xf32>
      %c6_673 = arith.constant 6 : index
      %1701 = arith.index_cast %9 : i32 to index
      %c0_674 = arith.constant 0 : index
      %1702 = vector.load %arg1[%c6_673, %1701, %c0_674] : memref<16x176x128xf32, #tpu.memory_space<vmem>>, vector<1x16x128xf32>
      %1703 = vector.shape_cast %1702 : vector<1x16x128xf32> to vector<16x128xf32>
      %c56_675 = arith.constant 56 : index
      %1704 = memref.load %arg2[%c56_675] : memref<72xf32, #tpu.memory_space<smem>>
      %1705 = vector.broadcast %1704 : f32 to vector<16x128xf32>
      %1706 = arith.mulf %1705, %1703 : vector<16x128xf32>
      %1707 = arith.addf %1700, %1706 : vector<16x128xf32>
      %c8_676 = arith.constant 8 : index
      %1708 = arith.index_cast %9 : i32 to index
      %c0_677 = arith.constant 0 : index
      %1709 = vector.load %arg1[%c8_676, %1708, %c0_677] : memref<16x176x128xf32, #tpu.memory_space<vmem>>, vector<1x16x128xf32>
      %1710 = vector.shape_cast %1709 : vector<1x16x128xf32> to vector<16x128xf32>
      %c57_678 = arith.constant 57 : index
      %1711 = memref.load %arg2[%c57_678] : memref<72xf32, #tpu.memory_space<smem>>
      %1712 = vector.broadcast %1711 : f32 to vector<16x128xf32>
      %1713 = arith.mulf %1712, %1710 : vector<16x128xf32>
      %1714 = arith.addf %1707, %1713 : vector<16x128xf32>
      %c9_679 = arith.constant 9 : index
      %1715 = arith.index_cast %9 : i32 to index
      %c0_680 = arith.constant 0 : index
      %1716 = vector.load %arg1[%c9_679, %1715, %c0_680] : memref<16x176x128xf32, #tpu.memory_space<vmem>>, vector<1x16x128xf32>
      %1717 = vector.shape_cast %1716 : vector<1x16x128xf32> to vector<16x128xf32>
      %c58_681 = arith.constant 58 : index
      %1718 = memref.load %arg2[%c58_681] : memref<72xf32, #tpu.memory_space<smem>>
      %1719 = vector.broadcast %1718 : f32 to vector<16x128xf32>
      %1720 = arith.mulf %1719, %1717 : vector<16x128xf32>
      %1721 = arith.addf %1714, %1720 : vector<16x128xf32>
      %c10_682 = arith.constant 10 : index
      %1722 = arith.index_cast %9 : i32 to index
      %c0_683 = arith.constant 0 : index
      %1723 = vector.load %arg1[%c10_682, %1722, %c0_683] : memref<16x176x128xf32, #tpu.memory_space<vmem>>, vector<1x16x128xf32>
      %1724 = vector.shape_cast %1723 : vector<1x16x128xf32> to vector<16x128xf32>
      %c59_684 = arith.constant 59 : index
      %1725 = memref.load %arg2[%c59_684] : memref<72xf32, #tpu.memory_space<smem>>
      %1726 = vector.broadcast %1725 : f32 to vector<16x128xf32>
      %1727 = arith.mulf %1726, %1724 : vector<16x128xf32>
      %1728 = arith.addf %1721, %1727 : vector<16x128xf32>
      %c12_685 = arith.constant 12 : index
      %1729 = arith.index_cast %9 : i32 to index
      %c0_686 = arith.constant 0 : index
      %1730 = vector.load %arg1[%c12_685, %1729, %c0_686] : memref<16x176x128xf32, #tpu.memory_space<vmem>>, vector<1x16x128xf32>
      %1731 = vector.shape_cast %1730 : vector<1x16x128xf32> to vector<16x128xf32>
      %c60_687 = arith.constant 60 : index
      %1732 = memref.load %arg2[%c60_687] : memref<72xf32, #tpu.memory_space<smem>>
      %1733 = vector.broadcast %1732 : f32 to vector<16x128xf32>
      %1734 = arith.mulf %1733, %1731 : vector<16x128xf32>
      %1735 = arith.addf %1728, %1734 : vector<16x128xf32>
      %c13_688 = arith.constant 13 : index
      %1736 = arith.index_cast %9 : i32 to index
      %c0_689 = arith.constant 0 : index
      %1737 = vector.load %arg1[%c13_688, %1736, %c0_689] : memref<16x176x128xf32, #tpu.memory_space<vmem>>, vector<1x16x128xf32>
      %1738 = vector.shape_cast %1737 : vector<1x16x128xf32> to vector<16x128xf32>
      %c61_690 = arith.constant 61 : index
      %1739 = memref.load %arg2[%c61_690] : memref<72xf32, #tpu.memory_space<smem>>
      %1740 = vector.broadcast %1739 : f32 to vector<16x128xf32>
      %1741 = arith.mulf %1740, %1738 : vector<16x128xf32>
      %1742 = arith.addf %1735, %1741 : vector<16x128xf32>
      %c14_691 = arith.constant 14 : index
      %1743 = arith.index_cast %9 : i32 to index
      %c0_692 = arith.constant 0 : index
      %1744 = vector.load %arg1[%c14_691, %1743, %c0_692] : memref<16x176x128xf32, #tpu.memory_space<vmem>>, vector<1x16x128xf32>
      %1745 = vector.shape_cast %1744 : vector<1x16x128xf32> to vector<16x128xf32>
      %c62_693 = arith.constant 62 : index
      %1746 = memref.load %arg2[%c62_693] : memref<72xf32, #tpu.memory_space<smem>>
      %1747 = vector.broadcast %1746 : f32 to vector<16x128xf32>
      %1748 = arith.mulf %1747, %1745 : vector<16x128xf32>
      %1749 = arith.addf %1742, %1748 : vector<16x128xf32>
      %c5_694 = arith.constant 5 : index
      %1750 = arith.index_cast %9 : i32 to index
      %c0_695 = arith.constant 0 : index
      %1751 = vector.load %arg1[%c5_694, %1750, %c0_695] : memref<16x176x128xf32, #tpu.memory_space<vmem>>, vector<1x16x128xf32>
      %1752 = vector.shape_cast %1751 : vector<1x16x128xf32> to vector<16x128xf32>
      %c54_696 = arith.constant 54 : index
      %1753 = memref.load %arg2[%c54_696] : memref<72xf32, #tpu.memory_space<smem>>
      %1754 = vector.broadcast %1753 : f32 to vector<16x128xf32>
      %1755 = arith.mulf %1754, %1752 : vector<16x128xf32>
      %c6_697 = arith.constant 6 : index
      %1756 = arith.index_cast %9 : i32 to index
      %c0_698 = arith.constant 0 : index
      %1757 = vector.load %arg1[%c6_697, %1756, %c0_698] : memref<16x176x128xf32, #tpu.memory_space<vmem>>, vector<1x16x128xf32>
      %1758 = vector.shape_cast %1757 : vector<1x16x128xf32> to vector<16x128xf32>
      %c55_699 = arith.constant 55 : index
      %1759 = memref.load %arg2[%c55_699] : memref<72xf32, #tpu.memory_space<smem>>
      %1760 = vector.broadcast %1759 : f32 to vector<16x128xf32>
      %1761 = arith.mulf %1760, %1758 : vector<16x128xf32>
      %1762 = arith.addf %1755, %1761 : vector<16x128xf32>
      %c7_700 = arith.constant 7 : index
      %1763 = arith.index_cast %9 : i32 to index
      %c0_701 = arith.constant 0 : index
      %1764 = vector.load %arg1[%c7_700, %1763, %c0_701] : memref<16x176x128xf32, #tpu.memory_space<vmem>>, vector<1x16x128xf32>
      %1765 = vector.shape_cast %1764 : vector<1x16x128xf32> to vector<16x128xf32>
      %c56_702 = arith.constant 56 : index
      %1766 = memref.load %arg2[%c56_702] : memref<72xf32, #tpu.memory_space<smem>>
      %1767 = vector.broadcast %1766 : f32 to vector<16x128xf32>
      %1768 = arith.mulf %1767, %1765 : vector<16x128xf32>
      %1769 = arith.addf %1762, %1768 : vector<16x128xf32>
      %c9_703 = arith.constant 9 : index
      %1770 = arith.index_cast %9 : i32 to index
      %c0_704 = arith.constant 0 : index
      %1771 = vector.load %arg1[%c9_703, %1770, %c0_704] : memref<16x176x128xf32, #tpu.memory_space<vmem>>, vector<1x16x128xf32>
      %1772 = vector.shape_cast %1771 : vector<1x16x128xf32> to vector<16x128xf32>
      %c57_705 = arith.constant 57 : index
      %1773 = memref.load %arg2[%c57_705] : memref<72xf32, #tpu.memory_space<smem>>
      %1774 = vector.broadcast %1773 : f32 to vector<16x128xf32>
      %1775 = arith.mulf %1774, %1772 : vector<16x128xf32>
      %1776 = arith.addf %1769, %1775 : vector<16x128xf32>
      %c10_706 = arith.constant 10 : index
      %1777 = arith.index_cast %9 : i32 to index
      %c0_707 = arith.constant 0 : index
      %1778 = vector.load %arg1[%c10_706, %1777, %c0_707] : memref<16x176x128xf32, #tpu.memory_space<vmem>>, vector<1x16x128xf32>
      %1779 = vector.shape_cast %1778 : vector<1x16x128xf32> to vector<16x128xf32>
      %c58_708 = arith.constant 58 : index
      %1780 = memref.load %arg2[%c58_708] : memref<72xf32, #tpu.memory_space<smem>>
      %1781 = vector.broadcast %1780 : f32 to vector<16x128xf32>
      %1782 = arith.mulf %1781, %1779 : vector<16x128xf32>
      %1783 = arith.addf %1776, %1782 : vector<16x128xf32>
      %c11_709 = arith.constant 11 : index
      %1784 = arith.index_cast %9 : i32 to index
      %c0_710 = arith.constant 0 : index
      %1785 = vector.load %arg1[%c11_709, %1784, %c0_710] : memref<16x176x128xf32, #tpu.memory_space<vmem>>, vector<1x16x128xf32>
      %1786 = vector.shape_cast %1785 : vector<1x16x128xf32> to vector<16x128xf32>
      %c59_711 = arith.constant 59 : index
      %1787 = memref.load %arg2[%c59_711] : memref<72xf32, #tpu.memory_space<smem>>
      %1788 = vector.broadcast %1787 : f32 to vector<16x128xf32>
      %1789 = arith.mulf %1788, %1786 : vector<16x128xf32>
      %1790 = arith.addf %1783, %1789 : vector<16x128xf32>
      %c13_712 = arith.constant 13 : index
      %1791 = arith.index_cast %9 : i32 to index
      %c0_713 = arith.constant 0 : index
      %1792 = vector.load %arg1[%c13_712, %1791, %c0_713] : memref<16x176x128xf32, #tpu.memory_space<vmem>>, vector<1x16x128xf32>
      %1793 = vector.shape_cast %1792 : vector<1x16x128xf32> to vector<16x128xf32>
      %c60_714 = arith.constant 60 : index
      %1794 = memref.load %arg2[%c60_714] : memref<72xf32, #tpu.memory_space<smem>>
      %1795 = vector.broadcast %1794 : f32 to vector<16x128xf32>
      %1796 = arith.mulf %1795, %1793 : vector<16x128xf32>
      %1797 = arith.addf %1790, %1796 : vector<16x128xf32>
      %c14_715 = arith.constant 14 : index
      %1798 = arith.index_cast %9 : i32 to index
      %c0_716 = arith.constant 0 : index
      %1799 = vector.load %arg1[%c14_715, %1798, %c0_716] : memref<16x176x128xf32, #tpu.memory_space<vmem>>, vector<1x16x128xf32>
      %1800 = vector.shape_cast %1799 : vector<1x16x128xf32> to vector<16x128xf32>
      %c61_717 = arith.constant 61 : index
      %1801 = memref.load %arg2[%c61_717] : memref<72xf32, #tpu.memory_space<smem>>
      %1802 = vector.broadcast %1801 : f32 to vector<16x128xf32>
      %1803 = arith.mulf %1802, %1800 : vector<16x128xf32>
      %1804 = arith.addf %1797, %1803 : vector<16x128xf32>
      %c15_718 = arith.constant 15 : index
      %1805 = arith.index_cast %9 : i32 to index
      %c0_719 = arith.constant 0 : index
      %1806 = vector.load %arg1[%c15_718, %1805, %c0_719] : memref<16x176x128xf32, #tpu.memory_space<vmem>>, vector<1x16x128xf32>
      %1807 = vector.shape_cast %1806 : vector<1x16x128xf32> to vector<16x128xf32>
      %c62_720 = arith.constant 62 : index
      %1808 = memref.load %arg2[%c62_720] : memref<72xf32, #tpu.memory_space<smem>>
      %1809 = vector.broadcast %1808 : f32 to vector<16x128xf32>
      %1810 = arith.mulf %1809, %1807 : vector<16x128xf32>
      %1811 = arith.addf %1804, %1810 : vector<16x128xf32>
      %1812 = arith.maximumf %1625, %1687 : vector<16x128xf32>
      %1813 = arith.maximumf %1749, %1811 : vector<16x128xf32>
      %1814 = arith.maximumf %1812, %1813 : vector<16x128xf32>
      %c6_721 = arith.constant 6 : index
      %1815 = memref.load %arg3[%c6_721] : memref<8xf32, #tpu.memory_space<smem>>
      %1816 = vector.broadcast %1815 : f32 to vector<16x128xf32>
      %1817 = arith.addf %1814, %1816 : vector<16x128xf32>
      %cst_722 = arith.constant 0.000000e+00 : f32
      %1818 = vector.broadcast %cst_722 : f32 to vector<16x128xf32>
      %1819 = arith.maximumf %1817, %1818 : vector<16x128xf32>
      %c1056_i32 = arith.constant 1056 : i32
      %1820 = arith.addi %c1056_i32, %9 : i32
      %1821 = arith.index_cast %1820 : i32 to index
      %c0_723 = arith.constant 0 : index
      %1822 = vector.load %arg7[%1821, %c0_723] : memref<1408x128xf32, #tpu.memory_space<vmem>>, vector<16x128xf32>
      tpu.vector_store %arg7[%1821, %c0_723], %1819 {strides = array<i32>} : memref<1408x128xf32, #tpu.memory_space<vmem>>, vector<16x128xf32>,
      %c0_724 = arith.constant 0 : index
      %1823 = arith.index_cast %9 : i32 to index
      %c0_725 = arith.constant 0 : index
      %1824 = vector.load %arg1[%c0_724, %1823, %c0_725] : memref<16x176x128xf32, #tpu.memory_space<vmem>>, vector<1x16x128xf32>
      %1825 = vector.shape_cast %1824 : vector<1x16x128xf32> to vector<16x128xf32>
      %c63 = arith.constant 63 : index
      %1826 = memref.load %arg2[%c63] : memref<72xf32, #tpu.memory_space<smem>>
      %1827 = vector.broadcast %1826 : f32 to vector<16x128xf32>
      %1828 = arith.mulf %1827, %1825 : vector<16x128xf32>
      %c1_726 = arith.constant 1 : index
      %1829 = arith.index_cast %9 : i32 to index
      %c0_727 = arith.constant 0 : index
      %1830 = vector.load %arg1[%c1_726, %1829, %c0_727] : memref<16x176x128xf32, #tpu.memory_space<vmem>>, vector<1x16x128xf32>
      %1831 = vector.shape_cast %1830 : vector<1x16x128xf32> to vector<16x128xf32>
      %c64 = arith.constant 64 : index
      %1832 = memref.load %arg2[%c64] : memref<72xf32, #tpu.memory_space<smem>>
      %1833 = vector.broadcast %1832 : f32 to vector<16x128xf32>
      %1834 = arith.mulf %1833, %1831 : vector<16x128xf32>
      %1835 = arith.addf %1828, %1834 : vector<16x128xf32>
      %c2_728 = arith.constant 2 : index
      %1836 = arith.index_cast %9 : i32 to index
      %c0_729 = arith.constant 0 : index
      %1837 = vector.load %arg1[%c2_728, %1836, %c0_729] : memref<16x176x128xf32, #tpu.memory_space<vmem>>, vector<1x16x128xf32>
      %1838 = vector.shape_cast %1837 : vector<1x16x128xf32> to vector<16x128xf32>
      %c65 = arith.constant 65 : index
      %1839 = memref.load %arg2[%c65] : memref<72xf32, #tpu.memory_space<smem>>
      %1840 = vector.broadcast %1839 : f32 to vector<16x128xf32>
      %1841 = arith.mulf %1840, %1838 : vector<16x128xf32>
      %1842 = arith.addf %1835, %1841 : vector<16x128xf32>
      %c4_730 = arith.constant 4 : index
      %1843 = arith.index_cast %9 : i32 to index
      %c0_731 = arith.constant 0 : index
      %1844 = vector.load %arg1[%c4_730, %1843, %c0_731] : memref<16x176x128xf32, #tpu.memory_space<vmem>>, vector<1x16x128xf32>
      %1845 = vector.shape_cast %1844 : vector<1x16x128xf32> to vector<16x128xf32>
      %c66 = arith.constant 66 : index
      %1846 = memref.load %arg2[%c66] : memref<72xf32, #tpu.memory_space<smem>>
      %1847 = vector.broadcast %1846 : f32 to vector<16x128xf32>
      %1848 = arith.mulf %1847, %1845 : vector<16x128xf32>
      %1849 = arith.addf %1842, %1848 : vector<16x128xf32>
      %c5_732 = arith.constant 5 : index
      %1850 = arith.index_cast %9 : i32 to index
      %c0_733 = arith.constant 0 : index
      %1851 = vector.load %arg1[%c5_732, %1850, %c0_733] : memref<16x176x128xf32, #tpu.memory_space<vmem>>, vector<1x16x128xf32>
      %1852 = vector.shape_cast %1851 : vector<1x16x128xf32> to vector<16x128xf32>
      %c67 = arith.constant 67 : index
      %1853 = memref.load %arg2[%c67] : memref<72xf32, #tpu.memory_space<smem>>
      %1854 = vector.broadcast %1853 : f32 to vector<16x128xf32>
      %1855 = arith.mulf %1854, %1852 : vector<16x128xf32>
      %1856 = arith.addf %1849, %1855 : vector<16x128xf32>
      %c6_734 = arith.constant 6 : index
      %1857 = arith.index_cast %9 : i32 to index
      %c0_735 = arith.constant 0 : index
      %1858 = vector.load %arg1[%c6_734, %1857, %c0_735] : memref<16x176x128xf32, #tpu.memory_space<vmem>>, vector<1x16x128xf32>
      %1859 = vector.shape_cast %1858 : vector<1x16x128xf32> to vector<16x128xf32>
      %c68 = arith.constant 68 : index
      %1860 = memref.load %arg2[%c68] : memref<72xf32, #tpu.memory_space<smem>>
      %1861 = vector.broadcast %1860 : f32 to vector<16x128xf32>
      %1862 = arith.mulf %1861, %1859 : vector<16x128xf32>
      %1863 = arith.addf %1856, %1862 : vector<16x128xf32>
      %c8_736 = arith.constant 8 : index
      %1864 = arith.index_cast %9 : i32 to index
      %c0_737 = arith.constant 0 : index
      %1865 = vector.load %arg1[%c8_736, %1864, %c0_737] : memref<16x176x128xf32, #tpu.memory_space<vmem>>, vector<1x16x128xf32>
      %1866 = vector.shape_cast %1865 : vector<1x16x128xf32> to vector<16x128xf32>
      %c69 = arith.constant 69 : index
      %1867 = memref.load %arg2[%c69] : memref<72xf32, #tpu.memory_space<smem>>
      %1868 = vector.broadcast %1867 : f32 to vector<16x128xf32>
      %1869 = arith.mulf %1868, %1866 : vector<16x128xf32>
      %1870 = arith.addf %1863, %1869 : vector<16x128xf32>
      %c9_738 = arith.constant 9 : index
      %1871 = arith.index_cast %9 : i32 to index
      %c0_739 = arith.constant 0 : index
      %1872 = vector.load %arg1[%c9_738, %1871, %c0_739] : memref<16x176x128xf32, #tpu.memory_space<vmem>>, vector<1x16x128xf32>
      %1873 = vector.shape_cast %1872 : vector<1x16x128xf32> to vector<16x128xf32>
      %c70 = arith.constant 70 : index
      %1874 = memref.load %arg2[%c70] : memref<72xf32, #tpu.memory_space<smem>>
      %1875 = vector.broadcast %1874 : f32 to vector<16x128xf32>
      %1876 = arith.mulf %1875, %1873 : vector<16x128xf32>
      %1877 = arith.addf %1870, %1876 : vector<16x128xf32>
      %c10_740 = arith.constant 10 : index
      %1878 = arith.index_cast %9 : i32 to index
      %c0_741 = arith.constant 0 : index
      %1879 = vector.load %arg1[%c10_740, %1878, %c0_741] : memref<16x176x128xf32, #tpu.memory_space<vmem>>, vector<1x16x128xf32>
      %1880 = vector.shape_cast %1879 : vector<1x16x128xf32> to vector<16x128xf32>
      %c71 = arith.constant 71 : index
      %1881 = memref.load %arg2[%c71] : memref<72xf32, #tpu.memory_space<smem>>
      %1882 = vector.broadcast %1881 : f32 to vector<16x128xf32>
      %1883 = arith.mulf %1882, %1880 : vector<16x128xf32>
      %1884 = arith.addf %1877, %1883 : vector<16x128xf32>
      %c1_742 = arith.constant 1 : index
      %1885 = arith.index_cast %9 : i32 to index
      %c0_743 = arith.constant 0 : index
      %1886 = vector.load %arg1[%c1_742, %1885, %c0_743] : memref<16x176x128xf32, #tpu.memory_space<vmem>>, vector<1x16x128xf32>
      %1887 = vector.shape_cast %1886 : vector<1x16x128xf32> to vector<16x128xf32>
      %c63_744 = arith.constant 63 : index
      %1888 = memref.load %arg2[%c63_744] : memref<72xf32, #tpu.memory_space<smem>>
      %1889 = vector.broadcast %1888 : f32 to vector<16x128xf32>
      %1890 = arith.mulf %1889, %1887 : vector<16x128xf32>
      %c2_745 = arith.constant 2 : index
      %1891 = arith.index_cast %9 : i32 to index
      %c0_746 = arith.constant 0 : index
      %1892 = vector.load %arg1[%c2_745, %1891, %c0_746] : memref<16x176x128xf32, #tpu.memory_space<vmem>>, vector<1x16x128xf32>
      %1893 = vector.shape_cast %1892 : vector<1x16x128xf32> to vector<16x128xf32>
      %c64_747 = arith.constant 64 : index
      %1894 = memref.load %arg2[%c64_747] : memref<72xf32, #tpu.memory_space<smem>>
      %1895 = vector.broadcast %1894 : f32 to vector<16x128xf32>
      %1896 = arith.mulf %1895, %1893 : vector<16x128xf32>
      %1897 = arith.addf %1890, %1896 : vector<16x128xf32>
      %c3_748 = arith.constant 3 : index
      %1898 = arith.index_cast %9 : i32 to index
      %c0_749 = arith.constant 0 : index
      %1899 = vector.load %arg1[%c3_748, %1898, %c0_749] : memref<16x176x128xf32, #tpu.memory_space<vmem>>, vector<1x16x128xf32>
      %1900 = vector.shape_cast %1899 : vector<1x16x128xf32> to vector<16x128xf32>
      %c65_750 = arith.constant 65 : index
      %1901 = memref.load %arg2[%c65_750] : memref<72xf32, #tpu.memory_space<smem>>
      %1902 = vector.broadcast %1901 : f32 to vector<16x128xf32>
      %1903 = arith.mulf %1902, %1900 : vector<16x128xf32>
      %1904 = arith.addf %1897, %1903 : vector<16x128xf32>
      %c5_751 = arith.constant 5 : index
      %1905 = arith.index_cast %9 : i32 to index
      %c0_752 = arith.constant 0 : index
      %1906 = vector.load %arg1[%c5_751, %1905, %c0_752] : memref<16x176x128xf32, #tpu.memory_space<vmem>>, vector<1x16x128xf32>
      %1907 = vector.shape_cast %1906 : vector<1x16x128xf32> to vector<16x128xf32>
      %c66_753 = arith.constant 66 : index
      %1908 = memref.load %arg2[%c66_753] : memref<72xf32, #tpu.memory_space<smem>>
      %1909 = vector.broadcast %1908 : f32 to vector<16x128xf32>
      %1910 = arith.mulf %1909, %1907 : vector<16x128xf32>
      %1911 = arith.addf %1904, %1910 : vector<16x128xf32>
      %c6_754 = arith.constant 6 : index
      %1912 = arith.index_cast %9 : i32 to index
      %c0_755 = arith.constant 0 : index
      %1913 = vector.load %arg1[%c6_754, %1912, %c0_755] : memref<16x176x128xf32, #tpu.memory_space<vmem>>, vector<1x16x128xf32>
      %1914 = vector.shape_cast %1913 : vector<1x16x128xf32> to vector<16x128xf32>
      %c67_756 = arith.constant 67 : index
      %1915 = memref.load %arg2[%c67_756] : memref<72xf32, #tpu.memory_space<smem>>
      %1916 = vector.broadcast %1915 : f32 to vector<16x128xf32>
      %1917 = arith.mulf %1916, %1914 : vector<16x128xf32>
      %1918 = arith.addf %1911, %1917 : vector<16x128xf32>
      %c7_757 = arith.constant 7 : index
      %1919 = arith.index_cast %9 : i32 to index
      %c0_758 = arith.constant 0 : index
      %1920 = vector.load %arg1[%c7_757, %1919, %c0_758] : memref<16x176x128xf32, #tpu.memory_space<vmem>>, vector<1x16x128xf32>
      %1921 = vector.shape_cast %1920 : vector<1x16x128xf32> to vector<16x128xf32>
      %c68_759 = arith.constant 68 : index
      %1922 = memref.load %arg2[%c68_759] : memref<72xf32, #tpu.memory_space<smem>>
      %1923 = vector.broadcast %1922 : f32 to vector<16x128xf32>
      %1924 = arith.mulf %1923, %1921 : vector<16x128xf32>
      %1925 = arith.addf %1918, %1924 : vector<16x128xf32>
      %c9_760 = arith.constant 9 : index
      %1926 = arith.index_cast %9 : i32 to index
      %c0_761 = arith.constant 0 : index
      %1927 = vector.load %arg1[%c9_760, %1926, %c0_761] : memref<16x176x128xf32, #tpu.memory_space<vmem>>, vector<1x16x128xf32>
      %1928 = vector.shape_cast %1927 : vector<1x16x128xf32> to vector<16x128xf32>
      %c69_762 = arith.constant 69 : index
      %1929 = memref.load %arg2[%c69_762] : memref<72xf32, #tpu.memory_space<smem>>
      %1930 = vector.broadcast %1929 : f32 to vector<16x128xf32>
      %1931 = arith.mulf %1930, %1928 : vector<16x128xf32>
      %1932 = arith.addf %1925, %1931 : vector<16x128xf32>
      %c10_763 = arith.constant 10 : index
      %1933 = arith.index_cast %9 : i32 to index
      %c0_764 = arith.constant 0 : index
      %1934 = vector.load %arg1[%c10_763, %1933, %c0_764] : memref<16x176x128xf32, #tpu.memory_space<vmem>>, vector<1x16x128xf32>
      %1935 = vector.shape_cast %1934 : vector<1x16x128xf32> to vector<16x128xf32>
      %c70_765 = arith.constant 70 : index
      %1936 = memref.load %arg2[%c70_765] : memref<72xf32, #tpu.memory_space<smem>>
      %1937 = vector.broadcast %1936 : f32 to vector<16x128xf32>
      %1938 = arith.mulf %1937, %1935 : vector<16x128xf32>
      %1939 = arith.addf %1932, %1938 : vector<16x128xf32>
      %c11_766 = arith.constant 11 : index
      %1940 = arith.index_cast %9 : i32 to index
      %c0_767 = arith.constant 0 : index
      %1941 = vector.load %arg1[%c11_766, %1940, %c0_767] : memref<16x176x128xf32, #tpu.memory_space<vmem>>, vector<1x16x128xf32>
      %1942 = vector.shape_cast %1941 : vector<1x16x128xf32> to vector<16x128xf32>
      %c71_768 = arith.constant 71 : index
      %1943 = memref.load %arg2[%c71_768] : memref<72xf32, #tpu.memory_space<smem>>
      %1944 = vector.broadcast %1943 : f32 to vector<16x128xf32>
      %1945 = arith.mulf %1944, %1942 : vector<16x128xf32>
      %1946 = arith.addf %1939, %1945 : vector<16x128xf32>
      %c4_769 = arith.constant 4 : index
      %1947 = arith.index_cast %9 : i32 to index
      %c0_770 = arith.constant 0 : index
      %1948 = vector.load %arg1[%c4_769, %1947, %c0_770] : memref<16x176x128xf32, #tpu.memory_space<vmem>>, vector<1x16x128xf32>
      %1949 = vector.shape_cast %1948 : vector<1x16x128xf32> to vector<16x128xf32>
      %c63_771 = arith.constant 63 : index
      %1950 = memref.load %arg2[%c63_771] : memref<72xf32, #tpu.memory_space<smem>>
      %1951 = vector.broadcast %1950 : f32 to vector<16x128xf32>
      %1952 = arith.mulf %1951, %1949 : vector<16x128xf32>
      %c5_772 = arith.constant 5 : index
      %1953 = arith.index_cast %9 : i32 to index
      %c0_773 = arith.constant 0 : index
      %1954 = vector.load %arg1[%c5_772, %1953, %c0_773] : memref<16x176x128xf32, #tpu.memory_space<vmem>>, vector<1x16x128xf32>
      %1955 = vector.shape_cast %1954 : vector<1x16x128xf32> to vector<16x128xf32>
      %c64_774 = arith.constant 64 : index
      %1956 = memref.load %arg2[%c64_774] : memref<72xf32, #tpu.memory_space<smem>>
      %1957 = vector.broadcast %1956 : f32 to vector<16x128xf32>
      %1958 = arith.mulf %1957, %1955 : vector<16x128xf32>
      %1959 = arith.addf %1952, %1958 : vector<16x128xf32>
      %c6_775 = arith.constant 6 : index
      %1960 = arith.index_cast %9 : i32 to index
      %c0_776 = arith.constant 0 : index
      %1961 = vector.load %arg1[%c6_775, %1960, %c0_776] : memref<16x176x128xf32, #tpu.memory_space<vmem>>, vector<1x16x128xf32>
      %1962 = vector.shape_cast %1961 : vector<1x16x128xf32> to vector<16x128xf32>
      %c65_777 = arith.constant 65 : index
      %1963 = memref.load %arg2[%c65_777] : memref<72xf32, #tpu.memory_space<smem>>
      %1964 = vector.broadcast %1963 : f32 to vector<16x128xf32>
      %1965 = arith.mulf %1964, %1962 : vector<16x128xf32>
      %1966 = arith.addf %1959, %1965 : vector<16x128xf32>
      %c8_778 = arith.constant 8 : index
      %1967 = arith.index_cast %9 : i32 to index
      %c0_779 = arith.constant 0 : index
      %1968 = vector.load %arg1[%c8_778, %1967, %c0_779] : memref<16x176x128xf32, #tpu.memory_space<vmem>>, vector<1x16x128xf32>
      %1969 = vector.shape_cast %1968 : vector<1x16x128xf32> to vector<16x128xf32>
      %c66_780 = arith.constant 66 : index
      %1970 = memref.load %arg2[%c66_780] : memref<72xf32, #tpu.memory_space<smem>>
      %1971 = vector.broadcast %1970 : f32 to vector<16x128xf32>
      %1972 = arith.mulf %1971, %1969 : vector<16x128xf32>
      %1973 = arith.addf %1966, %1972 : vector<16x128xf32>
      %c9_781 = arith.constant 9 : index
      %1974 = arith.index_cast %9 : i32 to index
      %c0_782 = arith.constant 0 : index
      %1975 = vector.load %arg1[%c9_781, %1974, %c0_782] : memref<16x176x128xf32, #tpu.memory_space<vmem>>, vector<1x16x128xf32>
      %1976 = vector.shape_cast %1975 : vector<1x16x128xf32> to vector<16x128xf32>
      %c67_783 = arith.constant 67 : index
      %1977 = memref.load %arg2[%c67_783] : memref<72xf32, #tpu.memory_space<smem>>
      %1978 = vector.broadcast %1977 : f32 to vector<16x128xf32>
      %1979 = arith.mulf %1978, %1976 : vector<16x128xf32>
      %1980 = arith.addf %1973, %1979 : vector<16x128xf32>
      %c10_784 = arith.constant 10 : index
      %1981 = arith.index_cast %9 : i32 to index
      %c0_785 = arith.constant 0 : index
      %1982 = vector.load %arg1[%c10_784, %1981, %c0_785] : memref<16x176x128xf32, #tpu.memory_space<vmem>>, vector<1x16x128xf32>
      %1983 = vector.shape_cast %1982 : vector<1x16x128xf32> to vector<16x128xf32>
      %c68_786 = arith.constant 68 : index
      %1984 = memref.load %arg2[%c68_786] : memref<72xf32, #tpu.memory_space<smem>>
      %1985 = vector.broadcast %1984 : f32 to vector<16x128xf32>
      %1986 = arith.mulf %1985, %1983 : vector<16x128xf32>
      %1987 = arith.addf %1980, %1986 : vector<16x128xf32>
      %c12_787 = arith.constant 12 : index
      %1988 = arith.index_cast %9 : i32 to index
      %c0_788 = arith.constant 0 : index
      %1989 = vector.load %arg1[%c12_787, %1988, %c0_788] : memref<16x176x128xf32, #tpu.memory_space<vmem>>, vector<1x16x128xf32>
      %1990 = vector.shape_cast %1989 : vector<1x16x128xf32> to vector<16x128xf32>
      %c69_789 = arith.constant 69 : index
      %1991 = memref.load %arg2[%c69_789] : memref<72xf32, #tpu.memory_space<smem>>
      %1992 = vector.broadcast %1991 : f32 to vector<16x128xf32>
      %1993 = arith.mulf %1992, %1990 : vector<16x128xf32>
      %1994 = arith.addf %1987, %1993 : vector<16x128xf32>
      %c13_790 = arith.constant 13 : index
      %1995 = arith.index_cast %9 : i32 to index
      %c0_791 = arith.constant 0 : index
      %1996 = vector.load %arg1[%c13_790, %1995, %c0_791] : memref<16x176x128xf32, #tpu.memory_space<vmem>>, vector<1x16x128xf32>
      %1997 = vector.shape_cast %1996 : vector<1x16x128xf32> to vector<16x128xf32>
      %c70_792 = arith.constant 70 : index
      %1998 = memref.load %arg2[%c70_792] : memref<72xf32, #tpu.memory_space<smem>>
      %1999 = vector.broadcast %1998 : f32 to vector<16x128xf32>
      %2000 = arith.mulf %1999, %1997 : vector<16x128xf32>
      %2001 = arith.addf %1994, %2000 : vector<16x128xf32>
      %c14_793 = arith.constant 14 : index
      %2002 = arith.index_cast %9 : i32 to index
      %c0_794 = arith.constant 0 : index
      %2003 = vector.load %arg1[%c14_793, %2002, %c0_794] : memref<16x176x128xf32, #tpu.memory_space<vmem>>, vector<1x16x128xf32>
      %2004 = vector.shape_cast %2003 : vector<1x16x128xf32> to vector<16x128xf32>
      %c71_795 = arith.constant 71 : index
      %2005 = memref.load %arg2[%c71_795] : memref<72xf32, #tpu.memory_space<smem>>
      %2006 = vector.broadcast %2005 : f32 to vector<16x128xf32>
      %2007 = arith.mulf %2006, %2004 : vector<16x128xf32>
      %2008 = arith.addf %2001, %2007 : vector<16x128xf32>
      %c5_796 = arith.constant 5 : index
      %2009 = arith.index_cast %9 : i32 to index
      %c0_797 = arith.constant 0 : index
      %2010 = vector.load %arg1[%c5_796, %2009, %c0_797] : memref<16x176x128xf32, #tpu.memory_space<vmem>>, vector<1x16x128xf32>
      %2011 = vector.shape_cast %2010 : vector<1x16x128xf32> to vector<16x128xf32>
      %c63_798 = arith.constant 63 : index
      %2012 = memref.load %arg2[%c63_798] : memref<72xf32, #tpu.memory_space<smem>>
      %2013 = vector.broadcast %2012 : f32 to vector<16x128xf32>
      %2014 = arith.mulf %2013, %2011 : vector<16x128xf32>
      %c6_799 = arith.constant 6 : index
      %2015 = arith.index_cast %9 : i32 to index
      %c0_800 = arith.constant 0 : index
      %2016 = vector.load %arg1[%c6_799, %2015, %c0_800] : memref<16x176x128xf32, #tpu.memory_space<vmem>>, vector<1x16x128xf32>
      %2017 = vector.shape_cast %2016 : vector<1x16x128xf32> to vector<16x128xf32>
      %c64_801 = arith.constant 64 : index
      %2018 = memref.load %arg2[%c64_801] : memref<72xf32, #tpu.memory_space<smem>>
      %2019 = vector.broadcast %2018 : f32 to vector<16x128xf32>
      %2020 = arith.mulf %2019, %2017 : vector<16x128xf32>
      %2021 = arith.addf %2014, %2020 : vector<16x128xf32>
      %c7_802 = arith.constant 7 : index
      %2022 = arith.index_cast %9 : i32 to index
      %c0_803 = arith.constant 0 : index
      %2023 = vector.load %arg1[%c7_802, %2022, %c0_803] : memref<16x176x128xf32, #tpu.memory_space<vmem>>, vector<1x16x128xf32>
      %2024 = vector.shape_cast %2023 : vector<1x16x128xf32> to vector<16x128xf32>
      %c65_804 = arith.constant 65 : index
      %2025 = memref.load %arg2[%c65_804] : memref<72xf32, #tpu.memory_space<smem>>
      %2026 = vector.broadcast %2025 : f32 to vector<16x128xf32>
      %2027 = arith.mulf %2026, %2024 : vector<16x128xf32>
      %2028 = arith.addf %2021, %2027 : vector<16x128xf32>
      %c9_805 = arith.constant 9 : index
      %2029 = arith.index_cast %9 : i32 to index
      %c0_806 = arith.constant 0 : index
      %2030 = vector.load %arg1[%c9_805, %2029, %c0_806] : memref<16x176x128xf32, #tpu.memory_space<vmem>>, vector<1x16x128xf32>
      %2031 = vector.shape_cast %2030 : vector<1x16x128xf32> to vector<16x128xf32>
      %c66_807 = arith.constant 66 : index
      %2032 = memref.load %arg2[%c66_807] : memref<72xf32, #tpu.memory_space<smem>>
      %2033 = vector.broadcast %2032 : f32 to vector<16x128xf32>
      %2034 = arith.mulf %2033, %2031 : vector<16x128xf32>
      %2035 = arith.addf %2028, %2034 : vector<16x128xf32>
      %c10_808 = arith.constant 10 : index
      %2036 = arith.index_cast %9 : i32 to index
      %c0_809 = arith.constant 0 : index
      %2037 = vector.load %arg1[%c10_808, %2036, %c0_809] : memref<16x176x128xf32, #tpu.memory_space<vmem>>, vector<1x16x128xf32>
      %2038 = vector.shape_cast %2037 : vector<1x16x128xf32> to vector<16x128xf32>
      %c67_810 = arith.constant 67 : index
      %2039 = memref.load %arg2[%c67_810] : memref<72xf32, #tpu.memory_space<smem>>
      %2040 = vector.broadcast %2039 : f32 to vector<16x128xf32>
      %2041 = arith.mulf %2040, %2038 : vector<16x128xf32>
      %2042 = arith.addf %2035, %2041 : vector<16x128xf32>
      %c11_811 = arith.constant 11 : index
      %2043 = arith.index_cast %9 : i32 to index
      %c0_812 = arith.constant 0 : index
      %2044 = vector.load %arg1[%c11_811, %2043, %c0_812] : memref<16x176x128xf32, #tpu.memory_space<vmem>>, vector<1x16x128xf32>
      %2045 = vector.shape_cast %2044 : vector<1x16x128xf32> to vector<16x128xf32>
      %c68_813 = arith.constant 68 : index
      %2046 = memref.load %arg2[%c68_813] : memref<72xf32, #tpu.memory_space<smem>>
      %2047 = vector.broadcast %2046 : f32 to vector<16x128xf32>
      %2048 = arith.mulf %2047, %2045 : vector<16x128xf32>
      %2049 = arith.addf %2042, %2048 : vector<16x128xf32>
      %c13_814 = arith.constant 13 : index
      %2050 = arith.index_cast %9 : i32 to index
      %c0_815 = arith.constant 0 : index
      %2051 = vector.load %arg1[%c13_814, %2050, %c0_815] : memref<16x176x128xf32, #tpu.memory_space<vmem>>, vector<1x16x128xf32>
      %2052 = vector.shape_cast %2051 : vector<1x16x128xf32> to vector<16x128xf32>
      %c69_816 = arith.constant 69 : index
      %2053 = memref.load %arg2[%c69_816] : memref<72xf32, #tpu.memory_space<smem>>
      %2054 = vector.broadcast %2053 : f32 to vector<16x128xf32>
      %2055 = arith.mulf %2054, %2052 : vector<16x128xf32>
      %2056 = arith.addf %2049, %2055 : vector<16x128xf32>
      %c14_817 = arith.constant 14 : index
      %2057 = arith.index_cast %9 : i32 to index
      %c0_818 = arith.constant 0 : index
      %2058 = vector.load %arg1[%c14_817, %2057, %c0_818] : memref<16x176x128xf32, #tpu.memory_space<vmem>>, vector<1x16x128xf32>
      %2059 = vector.shape_cast %2058 : vector<1x16x128xf32> to vector<16x128xf32>
      %c70_819 = arith.constant 70 : index
      %2060 = memref.load %arg2[%c70_819] : memref<72xf32, #tpu.memory_space<smem>>
      %2061 = vector.broadcast %2060 : f32 to vector<16x128xf32>
      %2062 = arith.mulf %2061, %2059 : vector<16x128xf32>
      %2063 = arith.addf %2056, %2062 : vector<16x128xf32>
      %c15_820 = arith.constant 15 : index
      %2064 = arith.index_cast %9 : i32 to index
      %c0_821 = arith.constant 0 : index
      %2065 = vector.load %arg1[%c15_820, %2064, %c0_821] : memref<16x176x128xf32, #tpu.memory_space<vmem>>, vector<1x16x128xf32>
      %2066 = vector.shape_cast %2065 : vector<1x16x128xf32> to vector<16x128xf32>
      %c71_822 = arith.constant 71 : index
      %2067 = memref.load %arg2[%c71_822] : memref<72xf32, #tpu.memory_space<smem>>
      %2068 = vector.broadcast %2067 : f32 to vector<16x128xf32>
      %2069 = arith.mulf %2068, %2066 : vector<16x128xf32>
      %2070 = arith.addf %2063, %2069 : vector<16x128xf32>
      %2071 = arith.maximumf %1884, %1946 : vector<16x128xf32>
      %2072 = arith.maximumf %2008, %2070 : vector<16x128xf32>
      %2073 = arith.maximumf %2071, %2072 : vector<16x128xf32>
      %c7_823 = arith.constant 7 : index
      %2074 = memref.load %arg3[%c7_823] : memref<8xf32, #tpu.memory_space<smem>>
      %2075 = vector.broadcast %2074 : f32 to vector<16x128xf32>
      %2076 = arith.addf %2073, %2075 : vector<16x128xf32>
      %cst_824 = arith.constant 0.000000e+00 : f32
      %2077 = vector.broadcast %cst_824 : f32 to vector<16x128xf32>
      %2078 = arith.maximumf %2076, %2077 : vector<16x128xf32>
      %c1232_i32 = arith.constant 1232 : i32
      %2079 = arith.addi %c1232_i32, %9 : i32
      %2080 = arith.index_cast %2079 : i32 to index
      %c0_825 = arith.constant 0 : index
      %2081 = vector.load %arg7[%2080, %c0_825] : memref<1408x128xf32, #tpu.memory_space<vmem>>, vector<16x128xf32>
      tpu.vector_store %arg7[%2080, %c0_825], %2078 {strides = array<i32>} : memref<1408x128xf32, #tpu.memory_space<vmem>>, vector<16x128xf32>,
    }
    %c11_i32_0 = arith.constant 11 : i32
    %c0 = arith.constant 0 : index
    %c0_1 = arith.constant 0 : index
    %1 = vector.load %arg4[%c0, %c0_1] : memref<128x1408xf32, #tpu.memory_space<vmem>>, vector<128x1408xf32>
    %c0_2 = arith.constant 0 : index
    %c0_3 = arith.constant 0 : index
    %2 = vector.load %arg7[%c0_2, %c0_3] : memref<1408x128xf32, #tpu.memory_space<vmem>>, vector<1408x128xf32>
    %cst = arith.constant dense<0.000000e+00> : vector<128x128xf32>
    %3 = tpu.matmul %1, %2, %cst {dimension_numbers = #tpu.dot_dimension_numbers<[1], [0], [0], [1], [0, 0, 1, 1], [], []>} : vector<128x1408xf32>, vector<1408x128xf32>, vector<128x128xf32> -> vector<128x128xf32>
    %c0_4 = arith.constant 0 : index
    %c0_5 = arith.constant 0 : index
    %4 = vector.load %arg5[%c0_4, %c0_5] : memref<128x1xf32, #tpu.memory_space<vmem>>, vector<128x1xf32>
    %5 = vector.broadcast %4 : vector<128x1xf32> to vector<128x128xf32>
    %6 = arith.addf %3, %5 : vector<128x128xf32>
    %c0_6 = arith.constant 0 : index
    %c0_7 = arith.constant 0 : index
    %7 = vector.load %arg6[%c0_6, %c0_7] : memref<128x128xf32, #tpu.memory_space<vmem>>, vector<128x128xf32>
    tpu.vector_store %arg6[%c0_6, %c0_7], %6 {strides = array<i32>} : memref<128x128xf32, #tpu.memory_space<vmem>>, vector<128x128xf32>,
    return
  }
  func.func @transform_0(%arg0: i32) -> (i32, i32, i32) {
    %c0_i32 = arith.constant 0 : i32
    %c0_i32_0 = arith.constant 0 : i32
    %c0_i32_1 = arith.constant 0 : i32
    return %c0_i32, %c0_i32_0, %arg0 : i32, i32, i32
  }
  func.func @transform_1(%arg0: i32) -> i32 {
    %c0_i32 = arith.constant 0 : i32
    %c0_i32_0 = arith.constant 0 : i32
    return %c0_i32 : i32
  }
  func.func @transform_2(%arg0: i32) -> i32 {
    %c0_i32 = arith.constant 0 : i32
    %c0_i32_0 = arith.constant 0 : i32
    return %c0_i32 : i32
  }
  func.func @transform_3(%arg0: i32) -> (i32, i32) {
    %c0_i32 = arith.constant 0 : i32
    %c0_i32_0 = arith.constant 0 : i32
    %c0_i32_1 = arith.constant 0 : i32
    return %c0_i32, %c0_i32_0 : i32, i32
  }
  func.func @transform_4(%arg0: i32) -> (i32, i32) {
    %c0_i32 = arith.constant 0 : i32
    %c0_i32_0 = arith.constant 0 : i32
    %c0_i32_1 = arith.constant 0 : i32
    return %c0_i32, %c0_i32_0 : i32, i32
  }
  func.func @transform_5(%arg0: i32) -> (i32, i32) {
    %c0_i32 = arith.constant 0 : i32
    %c0_i32_0 = arith.constant 0 : i32
    return %c0_i32, %arg0 : i32, i32
  }
}

</mosaic_0001>

<bundles_post_ra>
// kernel: simple_cnn_forward.1
= control target key start
LH: loop header
LB: loop body
LE: loop exit
PB: predicated region body
PF: predicated region fallthrough
CT: control target
= control target key end

     0   :  { %10 = vsyncpa [#allocation4], 0  ;;  %s6260_s0 = inlined_call_operand.vmem [shape: f32[16,176,128], index: 0, kind: input, shape index: {}]   ;;  %s6261_s1 = inlined_call_operand.vmem [shape: f32[72], index: 1, kind: input, shape index: {}]   ;;  %s6262_s2 = inlined_call_operand.vmem [shape: f32[8], index: 2, kind: input, shape index: {}]   ;;  %s6263_s3 = inlined_call_operand.vmem [shape: f32[128,1408], index: 3, kind: input, shape index: {}]   ;;  %s6264_s4 = inlined_call_operand.vmem [shape: f32[128,1], index: 4, kind: input, shape index: {}]   ;;  %s6265_s5 = inlined_call_operand.vmem [shape: f32[128,128], index: 5, kind: output, shape index: {}]  }
   0x1   :  { %s19_s20 = sshll.u32 %s6261_s1, 4  ;;  %s20_s20 = int_to_ptr.vmem [resolvable:$true] %s19_s20 }
   0x2   :  { %11 = vsyncpa [#allocation6], 0  ;;  %s28_s23 = sshll.u32 %s6262_s2, 4  ;;  %s3404_s24 = smov [#allocation3]   ;;  %s29_s23 = int_to_ptr.vmem [resolvable:$true] %s28_s23 }
   0x3   :  { %22 = dma.vmem_to_smem %s20_s20, 16, %s3404_s24, [#allocation4]  }
   0x4   :  { %s3405_s25 = smov [#allocation5]  }
   0x5   :  { %31 = dma.vmem_to_smem %s29_s23, 16, %s3405_s25, [#allocation6]  }
   0x6   :  { %3396 = dma.done.wait [#allocation4], 16  }
   0x7   :  { %3397 = vsyncadd [#allocation4], 4294967280 }
   0x8   :  { %3398 = dma.done.wait [#allocation6], 16  }
   0x9   :  { %3399 = vsyncadd [#allocation6], 4294967280 }
   0xa   :  { %44 = sfence }
   0xb   :  { %s3443_s26 = smov 0  }
   0xc LB: > { %s55_s1 = sld [smem:[#allocation3]]  ;;  %s2951_s27 = sshll.u32 %s3402_s26, 4  ;;  %s3402_s26 = sphi %s3443_s26, %s50_s26  }
   0xd   : > { %s2955_s2 = sld [smem:[#allocation3 + $0x1]]  ;;  %s3454_s6 = scalar_lea.vmem %s6260_s0, %s2951_s27 }
   0xe   : > { %s2959_s28 = sld [smem:[#allocation3 + $0x2]]  ;;  %v3457_v0 = vld [vmem:[%s3454_s6] sm:$0xff]  ;;  %v3460_v1 = vld [vmem:[%s3454_s6 + $0x8] sm:$0xff]  ;;  %v3463_v2 = vld [vmem:[%s3454_s6 + $0xb0] sm:$0xff]  ;;  %s3837_s23 = scalar_lea.vmem [#allocation2], %s2951_s27 }
   0xf   : > { %s2963_s7 = sld [smem:[#allocation3 + $0x3]]  ;;  %6292 = vst [vmem:[#allocation9_spill] sm:$0xff] %v3457_v0  ;;  %v3466_v3 = vld [vmem:[%s3454_s6 + $0xb8] sm:$0xff]  ;;  %v3471_v5 = vld [vmem:[%s3454_s6 + $0x160] sm:$0xff]  ;;  %v3490_v12 = vld [vmem:[%s3454_s6 + $0x168] sm:$0xff]  ;;  %s50_s26 = sadd.s32 1, %s3402_s26  }
  0x10   : > { %6293 = vst [vmem:[#allocation10_spill] sm:$0xff] %v3460_v1  ;;  %s2967_s8 = sld [smem:[#allocation3 + $0x4]]  ;;  %v3503_v17 = vld [vmem:[%s3454_s6 + $0x2c0] sm:$0xff]  ;;  %v3506_v18 = vld [vmem:[%s3454_s6 + $0x2c8] sm:$0xff]  ;;  %v3517_v25 = vld [vmem:[%s3454_s6 + $0x370] sm:$0xff]  ;;  %p47_p0 = scmp.ge.s32.totalorder %s50_s26, 11  }
  0x11   : > { %s2971_s9 = sld [smem:[#allocation3 + $0x5]]  ;;  %6294 = vst [vmem:[#allocation11_spill] sm:$0xff] %v3471_v5  ;;  %v3520_v26 = vld [vmem:[%s3454_s6 + $0x378] sm:$0xff]  ;;  %v3533_v35 = vld [vmem:[%s3454_s6 + $0x420] sm:$0xff]  ;;  %v3536_v36 = vld [vmem:[%s3454_s6 + $0x428] sm:$0xff] }
  0x12   : > { %v3468_v4 = vstv %s55_s1  ;;  %s3473_s10 = sld [smem:[#allocation3 + $0x6]]  ;;  %v3539_v37 = vld [vmem:[%s3454_s6 + $0x580] sm:$0xff]  ;;  %v3546_v40 = vld [vmem:[%s3454_s6 + $0x588] sm:$0xff]  ;;  %v3552_v42 = vld [vmem:[%s3454_s6 + $0x630] sm:$0xff] }
  0x13   : > { %v57_v6 = vmul.f32 %v3468_v4, %v3457_v0  ;;  %v58_v7 = vmul.f32 %v3468_v4, %v3460_v1  ;;  %v3479_v8 = vstv %s2955_s2  ;;  %s3481_s11 = sld [smem:[#allocation3 + $0x7]]  ;;  %v139_v9 = vmul.f32 %v3463_v2, %v3468_v4  ;;  %v3562_v48 = vld [vmem:[%s3454_s6 + $0x638] sm:$0xff]  ;;  %v3565_v49 = vld [vmem:[%s3454_s6 + $0x210] sm:$0xff]  ;;  %v3575_v53 = vld [vmem:[%s3454_s6 + $0x6e0] sm:$0xff] }
  0x14   : > { %v65_v10 = vmul.f32 %v3463_v2, %v3479_v8  ;;  %v66_v11 = vmul.f32 %v3466_v3, %v3479_v8  ;;  %v3492_v13 = vstv %s2959_s28  ;;  %s3494_s12 = sld [smem:[#allocation3 + $0x8]]  ;;  %v140_v14 = vmul.f32 %v3466_v3, %v3468_v4  ;;  %v3568_v50 = vld [vmem:[%s3454_s6 + $0x218] sm:$0xff]  ;;  %v3578_v54 = vld [vmem:[%s3454_s6 + $0x6e8] sm:$0xff] }
  0x15   : > { %v75_v15 = vmul.f32 %v3471_v5, %v3492_v13  ;;  %v76_v16 = vmul.f32 %v3490_v12, %v3492_v13  ;;  %v3508_v19 = vstv %s2963_s7  ;;  %v141_v20 = vmul.f32 %v3471_v5, %v3479_v8  ;;  %s3689_s13 = sld [smem:[#allocation5]] }
  0x16   : > { %v67_v21 = vadd.f32 %v65_v10, %v57_v6  ;;  %v68_v22 = vadd.f32 %v66_v11, %v58_v7  ;;  %v85_v23 = vmul.f32 %v3503_v17, %v3508_v19  ;;  %v86_v24 = vmul.f32 %v3506_v18, %v3508_v19  ;;  %s3695_s14 = sld [smem:[#allocation3 + $0x9]] }
  0x17   : > { %v3522_v27 = vstv %s2967_s8  ;;  %v3524_v28 = vstv %s2971_s9  ;;  %v142_v29 = vmul.f32 %v3490_v12, %v3479_v8  ;;  %v143_v30 = vadd.f32 %v141_v20, %v139_v9  ;;  %s3705_s15 = sld [smem:[#allocation3 + $0xa]] }
  0x18   : > { %v77_v31 = vadd.f32 %v75_v15, %v67_v21  ;;  %v78_v32 = vadd.f32 %v76_v16, %v68_v22  ;;  %v95_v33 = vmul.f32 %v3517_v25, %v3522_v27  ;;  %v96_v34 = vmul.f32 %v3520_v26, %v3522_v27  ;;  %v3603_v15 = vld [vmem:[%s3454_s6 + $0x4d8] sm:$0xff]  ;;  %s3711_s16 = sld [smem:[#allocation3 + $0xb]] }
  0x19   : > { %v105_v38 = vmul.f32 %v3533_v35, %v3524_v28  ;;  %v106_v39 = vmul.f32 %v3536_v36, %v3524_v28  ;;  %v3549_v41 = vstv %s3473_s10  ;;  %v3555_v43 = vstv %s3481_s11  ;;  %s3717_s17 = sld [smem:[#allocation3 + $0xc]] }
  0x1a   : > { %v87_v44 = vadd.f32 %v85_v23, %v77_v31  ;;  %v88_v45 = vadd.f32 %v86_v24, %v78_v32  ;;  %v115_v46 = vmul.f32 %v3539_v37, %v3549_v41  ;;  %v116_v47 = vmul.f32 %v3546_v40, %v3549_v41  ;;  %s3729_s18 = sld [smem:[#allocation3 + $0xd]] }
  0x1b   : > { %v125_v51 = vmul.f32 %v3552_v42, %v3555_v43  ;;  %v126_v52 = vmul.f32 %v3562_v48, %v3555_v43  ;;  %v3581_v55 = vstv %s3494_s12  ;;  %v144_v56 = vadd.f32 %v142_v29, %v140_v14  ;;  %v3600_v14 = vld [vmem:[%s3454_s6 + $0x4d0] sm:$0xff]  ;;  %s3735_s19 = sld [smem:[#allocation3 + $0xe]] }
  0x1c   : > { %v97_v57 = vadd.f32 %v95_v33, %v87_v44  ;;  %v98_v58 = vadd.f32 %v96_v34, %v88_v45  ;;  %v135_v59 = vmul.f32 %v3575_v53, %v3581_v55  ;;  %v136_v60 = vmul.f32 %v3578_v54, %v3581_v55  ;;  %s3741_s20 = sld [smem:[#allocation3 + $0xf]] }
  0x1d   : > { %v149_v61 = vmul.f32 %v3565_v49, %v3492_v13  ;;  %v150_v62 = vmul.f32 %v3568_v50, %v3492_v13  ;;  %v153_v63 = vmul.f32 %v3517_v25, %v3508_v19  ;;  %v154_v6 = vmul.f32 %v3520_v26, %v3508_v19  ;;  %s3747_s21 = sld [smem:[#allocation3 + $0x10]] }
  0x1e   : > { %v107_v7 = vadd.f32 %v105_v38, %v97_v57  ;;  %v108_v9 = vadd.f32 %v106_v39, %v98_v58  ;;  %v157_v10 = vmul.f32 %v3533_v35, %v3522_v27  ;;  %v158_v11 = vmul.f32 %v3536_v36, %v3522_v27  ;;  %v3618_v38 = vld [vmem:[%s3454_s6 + $0x790] sm:$0xff]  ;;  %v3621_v39 = vld [vmem:[%s3454_s6 + $0x798] sm:$0xff]  ;;  %s3753_s22 = sld [smem:[#allocation3 + $0x11]] }
  0x1f   : > { %v151_v16 = vadd.f32 %v149_v61, %v143_v30  ;;  %v152_v20 = vadd.f32 %v150_v62, %v144_v56  ;;  %v165_v21 = vmul.f32 %v3600_v14, %v3524_v28  ;;  %v166_v22 = vmul.f32 %v3603_v15, %v3524_v28  ;;  %s3905_s24 = sld [smem:[#allocation5 + $0x1]] }
  0x20   : > { %v117_v23 = vadd.f32 %v115_v46, %v107_v7  ;;  %v118_v24 = vadd.f32 %v116_v47, %v108_v9  ;;  %v169_v29 = vmul.f32 %v3552_v42, %v3549_v41  ;;  %v170_v31 = vmul.f32 %v3562_v48, %v3549_v41  ;;  %s3911_s25 = sld [smem:[#allocation3 + $0x12]] }
  0x21   : > { %v155_v32 = vadd.f32 %v153_v63, %v151_v16  ;;  %v156_v33 = vadd.f32 %v154_v6, %v152_v20  ;;  %v173_v30 = vmul.f32 %v3575_v53, %v3555_v43  ;;  %v174_v34 = vmul.f32 %v3578_v54, %v3555_v43  ;;  %v3648_v20 = vld [vmem:[%s3454_s6 + $0x840] sm:$0xff]  ;;  %s3921_s1 = sld [smem:[#allocation3 + $0x13]] }
  0x22   : > { %v127_v44 = vadd.f32 %v125_v51, %v117_v23  ;;  %v128_v45 = vadd.f32 %v126_v52, %v118_v24  ;;  %v181_v46 = vmul.f32 %v3618_v38, %v3581_v55  ;;  %v182_v47 = vmul.f32 %v3621_v39, %v3581_v55  ;;  %s3927_s2 = sld [smem:[#allocation3 + $0x14]] }
  0x23   : > { %v159_v56 = vadd.f32 %v157_v10, %v155_v32  ;;  %v160_v57 = vadd.f32 %v158_v11, %v156_v33  ;;  %v185_v58 = vmul.f32 %v3503_v17, %v3468_v4  ;;  %v186_v61 = vmul.f32 %v3506_v18, %v3468_v4  ;;  %s3933_s27 = sld [smem:[#allocation3 + $0x15]] }
  0x24   : > { %v3631_v62 = vadd.f32 %v135_v59, %v127_v44  ;;  %v3633_v51 = vadd.f32 %v136_v60, %v128_v45  ;;  %v187_v52 = vmul.f32 %v3517_v25, %v3479_v8  ;;  %v188_v63 = vmul.f32 %v3520_v26, %v3479_v8  ;;  %s3939_s28 = sld [smem:[#allocation3 + $0x16]] }
  0x25   : > { %v167_v6 = vadd.f32 %v165_v21, %v159_v56  ;;  %v168_v7 = vadd.f32 %v166_v22, %v160_v57  ;;  %v191_v9 = vmul.f32 %v3533_v35, %v3492_v13  ;;  %v192_v10 = vmul.f32 %v3536_v36, %v3492_v13  ;;  %v3651_v21 = vld [vmem:[%s3454_s6 + $0x848] sm:$0xff]  ;;  %s3945_s29 = sld [smem:[#allocation3 + $0x17]] }
  0x26   : > { %v189_v11 = vadd.f32 %v187_v52, %v185_v58  ;;  %v190_v16 = vadd.f32 %v188_v63, %v186_v61  ;;  %v195_v59 = vmul.f32 %v3539_v37, %v3508_v19  ;;  %v196_v60 = vmul.f32 %v3546_v40, %v3508_v19  ;;  %v3666_v61 = vld [vmem:[%s3454_s6 + $0x8f0] sm:$0xff]  ;;  %v3669_v52 = vld [vmem:[%s3454_s6 + $0x8f8] sm:$0xff]  ;;  %s3951_s30 = sld [smem:[#allocation3 + $0x18]] }
  0x27   : > { %v171_v22 = vadd.f32 %v169_v29, %v167_v6  ;;  %v172_v23 = vadd.f32 %v170_v31, %v168_v7  ;;  %v199_v24 = vmul.f32 %v3552_v42, %v3522_v27  ;;  %v200_v32 = vmul.f32 %v3562_v48, %v3522_v27  ;;  %s3957_s7 = sld [smem:[#allocation3 + $0x19]] }
  0x28   : > { %v193_v33 = vadd.f32 %v191_v9, %v189_v11  ;;  %v194_v44 = vadd.f32 %v192_v10, %v190_v16  ;;  %v203_v45 = vmul.f32 %v3575_v53, %v3524_v28  ;;  %v204_v56 = vmul.f32 %v3578_v54, %v3524_v28  ;;  %s3963_s8 = sld [smem:[#allocation3 + $0x1a]] }
  0x29   : > { %v175_v57 = vadd.f32 %v173_v30, %v171_v22  ;;  %v176_v58 = vadd.f32 %v174_v34, %v172_v23  ;;  %v211_v29 = vmul.f32 %v3648_v20, %v3549_v41  ;;  %v212_v31 = vmul.f32 %v3651_v21, %v3549_v41  ;;  %v3676_v30 = vld [vmem:[%s3454_s6 + $0x9a0] sm:$0xff]  ;;  %v3679_v34 = vld [vmem:[%s3454_s6 + $0x9a8] sm:$0xff]  ;;  %s4111_s9 = sld [smem:[#allocation5 + $0x2]] }
  0x2a   : > { %v197_v63 = vadd.f32 %v195_v59, %v193_v33  ;;  %v198_v6 = vadd.f32 %v196_v60, %v194_v44  ;;  %v219_v7 = vmul.f32 %v3666_v61, %v3555_v43  ;;  %v220_v9 = vmul.f32 %v3669_v52, %v3555_v43  ;;  %6295 = vst [vmem:[#allocation12_spill] sm:$0xff] %v3679_v34  ;;  %s4117_s10 = sld [smem:[#allocation3 + $0x1b]] }
  0x2b   : > { %v3681_v10 = vadd.f32 %v181_v46, %v175_v57  ;;  %v3683_v11 = vadd.f32 %v182_v47, %v176_v58  ;;  %v227_v16 = vmul.f32 %v3676_v30, %v3581_v55  ;;  %v228_v59 = vmul.f32 %v3679_v34, %v3581_v55  ;;  %s4127_s11 = sld [smem:[#allocation3 + $0x1c]] }
  0x2c   : > { %v201_v60 = vadd.f32 %v199_v24, %v197_v63  ;;  %v202_v22 = vadd.f32 %v200_v32, %v198_v6  ;;  %v231_v23 = vmul.f32 %v3517_v25, %v3468_v4  ;;  %v232_v33 = vmul.f32 %v3520_v26, %v3468_v4  ;;  %s4133_s12 = sld [smem:[#allocation3 + $0x1d]] }
  0x2d   : > { %v233_v46 = vmul.f32 %v3533_v35, %v3479_v8  ;;  %v234_v47 = vmul.f32 %v3536_v36, %v3479_v8  ;;  %v237_v44 = vmul.f32 %v3600_v14, %v3492_v13  ;;  %v238_v24 = vmul.f32 %v3603_v15, %v3492_v13 }
  0x2e   : > { %v205_v32 = vadd.f32 %v203_v45, %v201_v60  ;;  %v206_v4 = vadd.f32 %v204_v56, %v202_v22  ;;  %v241_v57 = vmul.f32 %v3552_v42, %v3508_v19  ;;  %v242_v58 = vmul.f32 %v3562_v48, %v3508_v19  ;;  %v3724_v22 = vld [vmem:[%s3454_s6 + $0xa50] sm:$0xff] }
  0x2f   : > { %v235_v8 = vadd.f32 %v233_v46, %v231_v23  ;;  %v236_v63 = vadd.f32 %v234_v47, %v232_v33  ;;  %v245_v6 = vmul.f32 %v3575_v53, %v3522_v27  ;;  %v246_v13 = vmul.f32 %v3578_v54, %v3522_v27  ;;  %6296 = vst [vmem:[#allocation13_spill] sm:$0xff] %v3724_v22  ;;  %v3727_v23 = vld [vmem:[%s3454_s6 + $0xa58] sm:$0xff] }
  0x30   : > { %v213_v45 = vadd.f32 %v211_v29, %v205_v32  ;;  %v214_v56 = vadd.f32 %v212_v31, %v206_v4  ;;  %v249_v60 = vmul.f32 %v3618_v38, %v3524_v28  ;;  %v250_v19 = vmul.f32 %v3621_v39, %v3524_v28  ;;  %6297 = vst [vmem:[#allocation14_spill] sm:$0xff] %v3727_v23 }
  0x31   : > { %v239_v33 = vadd.f32 %v237_v44, %v235_v8  ;;  %v240_v46 = vadd.f32 %v238_v24, %v236_v63  ;;  %v253_v27 = vmul.f32 %v3666_v61, %v3549_v41  ;;  %v254_v29 = vmul.f32 %v3669_v52, %v3549_v41 }
  0x32   : > { %v221_v31 = vadd.f32 %v219_v7, %v213_v45  ;;  %v222_v47 = vadd.f32 %v220_v9, %v214_v56  ;;  %v257_v28 = vmul.f32 %v3676_v30, %v3555_v43  ;;  %v258_v32 = vmul.f32 %v3679_v34, %v3555_v43 }
  0x33   : > { %v243_v44 = vadd.f32 %v241_v57, %v239_v33  ;;  %v244_v24 = vadd.f32 %v242_v58, %v240_v46  ;;  %v265_v41 = vmul.f32 %v3724_v22, %v3581_v55  ;;  %v266_v7 = vmul.f32 %v3727_v23, %v3581_v55 }
  0x34   : > { %v229_v9 = vadd.f32 %v227_v16, %v221_v31  ;;  %v230_v4 = vadd.f32 %v228_v59, %v222_v47  ;;  %v269_v8 = vmax.f32 %v3631_v62, %v3681_v10  ;;  %v270_v43 = vmax.f32 %v3633_v51, %v3683_v11 }
  0x35   : > { %v247_v57 = vadd.f32 %v245_v6, %v243_v44  ;;  %v248_v58 = vadd.f32 %v246_v13, %v244_v24  ;;  %v276_v63 = vstv %s3689_s13  ;;  %v3757_v45 = vstv %s3695_s14  ;;  %s4139_s13 = sld [smem:[#allocation3 + $0x1e]] }
  0x36   : > { %v288_v55 = vmul.f32 %v3757_v45, %v3457_v0  ;;  %v289_v16 = vmul.f32 %v3757_v45, %v3460_v1  ;;  %v3764_v59 = vstv %s3705_s15  ;;  %v3767_v62 = vstv %s3711_s16  ;;  %s4145_s14 = sld [smem:[#allocation3 + $0x1f]] }
  0x37   : > { %v251_v51 = vadd.f32 %v249_v60, %v247_v57  ;;  %v252_v10 = vadd.f32 %v250_v19, %v248_v58  ;;  %v294_v11 = vmul.f32 %v3463_v2, %v3764_v59  ;;  %v295_v6 = vmul.f32 %v3466_v3, %v3764_v59  ;;  %s4151_s15 = sld [smem:[#allocation3 + $0x20]] }
  0x38   : > { %v302_v13 = vmul.f32 %v3471_v5, %v3767_v62  ;;  %v303_v56 = vmul.f32 %v3490_v12, %v3767_v62  ;;  %v3778_v33 = vstv %s3717_s17  ;;  %v3781_v46 = vstv %s3729_s18  ;;  %s4157_s16 = sld [smem:[#allocation3 + $0x21]] }
  0x39   : > { %v255_v60 = vadd.f32 %v253_v27, %v251_v51  ;;  %v256_v19 = vadd.f32 %v254_v29, %v252_v10  ;;  %v296_v31 = vadd.f32 %v294_v11, %v288_v55  ;;  %v297_v47 = vadd.f32 %v295_v6, %v289_v16  ;;  %s4169_s17 = sld [smem:[#allocation3 + $0x22]] }
  0x3a   : > { %v310_v44 = vmul.f32 %v3503_v17, %v3778_v33  ;;  %v311_v24 = vmul.f32 %v3506_v18, %v3778_v33  ;;  %v318_v57 = vmul.f32 %v3517_v25, %v3781_v46  ;;  %v319_v58 = vmul.f32 %v3520_v26, %v3781_v46  ;;  %s4185_s18 = sld [smem:[#allocation3 + $0x23]] }
  0x3b   : > { %v259_v1 = vadd.f32 %v257_v28, %v255_v60  ;;  %v260_v0 = vadd.f32 %v258_v32, %v256_v19  ;;  %v304_v23 = vadd.f32 %v302_v13, %v296_v31  ;;  %v305_v22 = vadd.f32 %v303_v56, %v297_v47 }
  0x3c   : > { %v3792_v27 = vstv %s3735_s19  ;;  %v3795_v29 = vstv %s3741_s20  ;;  %v3798_v55 = vstv %s3747_s21  ;;  %v3801_v16 = vstv %s3753_s22  ;;  %s4423_s19 = sld [smem:[#allocation5 + $0x3]] }
  0x3d   : > { %v267_v51 = vadd.f32 %v265_v41, %v259_v1  ;;  %v268_v10 = vadd.f32 %v266_v7, %v260_v0  ;;  %v312_v11 = vadd.f32 %v310_v44, %v304_v23  ;;  %v313_v6 = vadd.f32 %v311_v24, %v305_v22  ;;  %s4429_s20 = sld [smem:[#allocation3 + $0x24]] }
  0x3e   : > { %v326_v34 = vmul.f32 %v3533_v35, %v3792_v27  ;;  %v327_v28 = vmul.f32 %v3536_v36, %v3792_v27  ;;  %v334_v32 = vmul.f32 %v3539_v37, %v3795_v29  ;;  %v335_v13 = vmul.f32 %v3546_v40, %v3795_v29  ;;  %s4439_s21 = sld [smem:[#allocation3 + $0x25]] }
  0x3f   : > { %v271_v56 = vmax.f32 %v229_v9, %v267_v51  ;;  %v272_v60 = vmax.f32 %v230_v4, %v268_v10  ;;  %v320_v19 = vadd.f32 %v318_v57, %v312_v11  ;;  %v321_v31 = vadd.f32 %v319_v58, %v313_v6  ;;  %s4445_s22 = sld [smem:[#allocation3 + $0x26]] }
  0x40   : > { %v342_v0 = vmul.f32 %v3552_v42, %v3798_v55  ;;  %v343_v1 = vmul.f32 %v3562_v48, %v3798_v55  ;;  %v350_v22 = vmul.f32 %v3575_v53, %v3801_v16  ;;  %v351_v23 = vmul.f32 %v3578_v54, %v3801_v16 }
  0x41   : > { %v273_v41 = vmax.f32 %v269_v8, %v271_v56  ;;  %v274_v7 = vmax.f32 %v270_v43, %v272_v60  ;;  %v328_v47 = vadd.f32 %v326_v34, %v320_v19  ;;  %v329_v44 = vadd.f32 %v327_v28, %v321_v31 }
  0x42   : > { %v354_v9 = vmul.f32 %v3463_v2, %v3757_v45  ;;  %v355_v4 = vmul.f32 %v3466_v3, %v3757_v45  ;;  %v356_v24 = vmul.f32 %v3471_v5, %v3764_v59  ;;  %v357_v57 = vmul.f32 %v3490_v12, %v3764_v59 }
  0x43   : > { %v277_v58 = vadd.f32 %v276_v63, %v273_v41  ;;  %v278_v51 = vadd.f32 %v276_v63, %v274_v7  ;;  %v336_v10 = vadd.f32 %v334_v32, %v328_v47  ;;  %v337_v8 = vadd.f32 %v335_v13, %v329_v44 }
  0x44   : > { %v358_v43 = vadd.f32 %v356_v24, %v354_v9  ;;  %v359_v34 = vadd.f32 %v357_v57, %v355_v4  ;;  %v362_v11 = vmul.f32 %v3565_v49, %v3767_v62  ;;  %v363_v6 = vmul.f32 %v3568_v50, %v3767_v62 }
  0x45   : > { %v279_v28 = vmax.f32 %v277_v58, 0.0  ;;  %v280_v56 = vmax.f32 %v278_v51, 0.0  ;;  %v344_v60 = vadd.f32 %v342_v0, %v336_v10  ;;  %v345_v19 = vadd.f32 %v343_v1, %v337_v8 }
  0x46   : > { %v364_v31 = vadd.f32 %v362_v11, %v358_v43  ;;  %v365_v5 = vadd.f32 %v363_v6, %v359_v34  ;;  %v366_v41 = vmul.f32 %v3517_v25, %v3778_v33  ;;  %v367_v63 = vmul.f32 %v3520_v26, %v3778_v33 }
  0x47   : > { %282 = vst [vmem:[%s3837_s23] sm:$0xff] %v279_v28  ;;  %v3840_v32 = vadd.f32 %v350_v22, %v344_v60  ;;  %v3842_v13 = vadd.f32 %v351_v23, %v345_v19  ;;  %v370_v0 = vmul.f32 %v3533_v35, %v3781_v46  ;;  %v371_v1 = vmul.f32 %v3536_v36, %v3781_v46 }
  0x48   : > { %283 = vst [vmem:[%s3837_s23 + $0x8] sm:$0xff] %v280_v56  ;;  %v368_v7 = vadd.f32 %v366_v41, %v364_v31  ;;  %v369_v47 = vadd.f32 %v367_v63, %v365_v5  ;;  %v376_v44 = vmul.f32 %v3600_v14, %v3792_v27  ;;  %v377_v9 = vmul.f32 %v3603_v15, %v3792_v27 }
  0x49   : > { %v380_v22 = vmul.f32 %v3552_v42, %v3795_v29  ;;  %v381_v23 = vmul.f32 %v3562_v48, %v3795_v29  ;;  %v384_v4 = vmul.f32 %v3575_v53, %v3798_v55  ;;  %v385_v24 = vmul.f32 %v3578_v54, %v3798_v55 }
  0x4a   : > { %v372_v57 = vadd.f32 %v370_v0, %v368_v7  ;;  %v373_v5 = vadd.f32 %v371_v1, %v369_v47  ;;  %v390_v58 = vmul.f32 %v3618_v38, %v3801_v16  ;;  %v391_v51 = vmul.f32 %v3621_v39, %v3801_v16 }
  0x4b   : > { %v394_v10 = vmul.f32 %v3503_v17, %v3757_v45  ;;  %v395_v8 = vmul.f32 %v3506_v18, %v3757_v45  ;;  %v396_v43 = vmul.f32 %v3517_v25, %v3764_v59  ;;  %v397_v34 = vmul.f32 %v3520_v26, %v3764_v59 }
  0x4c   : > { %v378_v11 = vadd.f32 %v376_v44, %v372_v57  ;;  %v379_v6 = vadd.f32 %v377_v9, %v373_v5  ;;  %v400_v28 = vmul.f32 %v3533_v35, %v3767_v62  ;;  %v401_v56 = vmul.f32 %v3536_v36, %v3767_v62 }
  0x4d   : > { %v398_v60 = vadd.f32 %v396_v43, %v394_v10  ;;  %v399_v19 = vadd.f32 %v397_v34, %v395_v8  ;;  %v404_v31 = vmul.f32 %v3539_v37, %v3778_v33  ;;  %v405_v41 = vmul.f32 %v3546_v40, %v3778_v33 }
  0x4e   : > { %v382_v63 = vadd.f32 %v380_v22, %v378_v11  ;;  %v383_v0 = vadd.f32 %v381_v23, %v379_v6  ;;  %v408_v1 = vmul.f32 %v3552_v42, %v3781_v46  ;;  %v409_v7 = vmul.f32 %v3562_v48, %v3781_v46 }
  0x4f   : > { %v402_v47 = vadd.f32 %v400_v28, %v398_v60  ;;  %v403_v44 = vadd.f32 %v401_v56, %v399_v19  ;;  %v412_v9 = vmul.f32 %v3575_v53, %v3792_v27  ;;  %v413_v57 = vmul.f32 %v3578_v54, %v3792_v27 }
  0x50   : > { %v386_v5 = vadd.f32 %v384_v4, %v382_v63  ;;  %v387_v10 = vadd.f32 %v385_v24, %v383_v0  ;;  %v418_v22 = vmul.f32 %v3648_v20, %v3795_v29  ;;  %v419_v23 = vmul.f32 %v3651_v21, %v3795_v29  ;;  %v6298_v24 = vld [vmem:[#allocation12_spill] sm:$0xff] }
  0x51   : > { %v406_v8 = vadd.f32 %v404_v31, %v402_v47  ;;  %v407_v43 = vadd.f32 %v405_v41, %v403_v44  ;;  %v424_v34 = vmul.f32 %v3666_v61, %v3798_v55  ;;  %v425_v11 = vmul.f32 %v3669_v52, %v3798_v55 }
  0x52   : > { %v3897_v6 = vadd.f32 %v390_v58, %v386_v5  ;;  %v3899_v28 = vadd.f32 %v391_v51, %v387_v10  ;;  %v430_v4 = vmul.f32 %v3676_v30, %v3801_v16  ;;  %v431_v56 = vmul.f32 %v6298_v24, %v3801_v16 }
  0x53   : > { %v410_v60 = vadd.f32 %v408_v1, %v406_v8  ;;  %v411_v19 = vadd.f32 %v409_v7, %v407_v43  ;;  %v434_v31 = vmul.f32 %v3517_v25, %v3757_v45  ;;  %v435_v41 = vmul.f32 %v3520_v26, %v3757_v45 }
  0x54   : > { %v436_v58 = vmul.f32 %v3533_v35, %v3764_v59  ;;  %v437_v51 = vmul.f32 %v3536_v36, %v3764_v59  ;;  %v440_v63 = vmul.f32 %v3600_v14, %v3767_v62  ;;  %v441_v0 = vmul.f32 %v3603_v15, %v3767_v62 }
  0x55   : > { %v414_v1 = vadd.f32 %v412_v9, %v410_v60  ;;  %v415_v7 = vadd.f32 %v413_v57, %v411_v19  ;;  %v444_v45 = vmul.f32 %v3552_v42, %v3778_v33  ;;  %v445_v47 = vmul.f32 %v3562_v48, %v3778_v33 }
  0x56   : > { %v438_v44 = vadd.f32 %v436_v58, %v434_v31  ;;  %v439_v59 = vadd.f32 %v437_v51, %v435_v41  ;;  %v448_v5 = vmul.f32 %v3575_v53, %v3781_v46  ;;  %v449_v62 = vmul.f32 %v3578_v54, %v3781_v46  ;;  %v6299_v58 = vld [vmem:[#allocation13_spill] sm:$0xff] }
  0x57   : > { %v420_v9 = vadd.f32 %v418_v22, %v414_v1  ;;  %v421_v57 = vadd.f32 %v419_v23, %v415_v7  ;;  %v452_v10 = vmul.f32 %v3618_v38, %v3792_v27  ;;  %v453_v33 = vmul.f32 %v3621_v39, %v3792_v27 }
  0x58   : > { %v442_v8 = vadd.f32 %v440_v63, %v438_v44  ;;  %v443_v43 = vadd.f32 %v441_v0, %v439_v59  ;;  %v456_v60 = vmul.f32 %v3666_v61, %v3795_v29  ;;  %v457_v46 = vmul.f32 %v3669_v52, %v3795_v29 }
  0x59   : > { %v426_v22 = vadd.f32 %v424_v34, %v420_v9  ;;  %v427_v23 = vadd.f32 %v425_v11, %v421_v57  ;;  %v460_v19 = vmul.f32 %v3676_v30, %v3798_v55  ;;  %v461_v27 = vmul.f32 %v6298_v24, %v3798_v55  ;;  %v6300_v34 = vld [vmem:[#allocation14_spill] sm:$0xff] }
  0x5a   : > { %v446_v31 = vadd.f32 %v444_v45, %v442_v8  ;;  %v447_v41 = vadd.f32 %v445_v47, %v443_v43  ;;  %v466_v29 = vmul.f32 %v6299_v58, %v3801_v16  ;;  %v467_v11 = vmul.f32 %v6300_v34, %v3801_v16  ;;  %v6301_v16 = vld [vmem:[#allocation9_spill] sm:$0xff] }
  0x5b   : > { %v432_v51 = vadd.f32 %v430_v4, %v426_v22  ;;  %v433_v63 = vadd.f32 %v431_v56, %v427_v23  ;;  %v470_v0 = vmax.f32 %v3840_v32, %v3897_v6  ;;  %v471_v55 = vmax.f32 %v3842_v13, %v3899_v28  ;;  %v6302_v4 = vld [vmem:[#allocation10_spill] sm:$0xff] }
  0x5c   : > { %v450_v1 = vadd.f32 %v448_v5, %v446_v31  ;;  %v451_v7 = vadd.f32 %v449_v62, %v447_v41  ;;  %v477_v45 = vstv %s3905_s24  ;;  %v3967_v47 = vstv %s3911_s25  ;;  %v6303_v62 = vld [vmem:[#allocation11_spill] sm:$0xff]  ;;  %s4451_s24 = sld [smem:[#allocation3 + $0x27]] }
  0x5d   : > { %v489_v44 = vmul.f32 %v3967_v47, %v6301_v16  ;;  %v490_v56 = vmul.f32 %v3967_v47, %v6302_v4  ;;  %v3974_v59 = vstv %s3921_s1  ;;  %v3977_v32 = vstv %s3927_s2  ;;  %s4463_s25 = sld [smem:[#allocation3 + $0x28]] }
  0x5e   : > { %v454_v13 = vadd.f32 %v452_v10, %v450_v1  ;;  %v455_v6 = vadd.f32 %v453_v33, %v451_v7  ;;  %v495_v28 = vmul.f32 %v3463_v2, %v3974_v59  ;;  %v496_v5 = vmul.f32 %v3466_v3, %v3974_v59  ;;  %s4469_s1 = sld [smem:[#allocation3 + $0x29]] }
  0x5f   : > { %v503_v9 = vmul.f32 %v6303_v62, %v3977_v32  ;;  %v504_v57 = vmul.f32 %v3490_v12, %v3977_v32  ;;  %v3988_v8 = vstv %s3933_s27  ;;  %v3991_v43 = vstv %s3939_s28  ;;  %s4475_s2 = sld [smem:[#allocation3 + $0x2a]] }
  0x60   : > { %v458_v10 = vadd.f32 %v456_v60, %v454_v13  ;;  %v459_v33 = vadd.f32 %v457_v46, %v455_v6  ;;  %v497_v22 = vadd.f32 %v495_v28, %v489_v44  ;;  %v498_v23 = vadd.f32 %v496_v5, %v490_v56  ;;  %s4481_s27 = sld [smem:[#allocation3 + $0x2b]] }
  0x61   : > { %v511_v31 = vmul.f32 %v3503_v17, %v3988_v8  ;;  %v512_v41 = vmul.f32 %v3506_v18, %v3988_v8  ;;  %v519_v1 = vmul.f32 %v3517_v25, %v3991_v43  ;;  %v520_v7 = vmul.f32 %v3520_v26, %v3991_v43  ;;  %s4487_s28 = sld [smem:[#allocation3 + $0x2c]] }
  0x62   : > { %v462_v16 = vadd.f32 %v460_v19, %v458_v10  ;;  %v463_v4 = vadd.f32 %v461_v27, %v459_v33  ;;  %v505_v34 = vadd.f32 %v503_v9, %v497_v22  ;;  %v506_v58 = vadd.f32 %v504_v57, %v498_v23 }
  0x63   : > { %v4002_v60 = vstv %s3945_s29  ;;  %v4005_v46 = vstv %s3951_s30  ;;  %v4008_v44 = vstv %s3957_s7  ;;  %v4011_v56 = vstv %s3963_s8  ;;  %s4635_s29 = sld [smem:[#allocation3 + $0x2d]] }
  0x64   : > { %v468_v13 = vadd.f32 %v466_v29, %v462_v16  ;;  %v469_v6 = vadd.f32 %v467_v11, %v463_v4  ;;  %v513_v28 = vadd.f32 %v511_v31, %v505_v34  ;;  %v514_v5 = vadd.f32 %v512_v41, %v506_v58  ;;  %s4645_s30 = sld [smem:[#allocation3 + $0x2e]] }
  0x65   : > { %v527_v24 = vmul.f32 %v3533_v35, %v4002_v60  ;;  %v528_v19 = vmul.f32 %v3536_v36, %v4002_v60  ;;  %v535_v27 = vmul.f32 %v3539_v37, %v4005_v46  ;;  %v536_v9 = vmul.f32 %v3546_v40, %v4005_v46  ;;  %s4651_s7 = sld [smem:[#allocation3 + $0x2f]] }
  0x66   : > { %v472_v57 = vmax.f32 %v432_v51, %v468_v13  ;;  %v473_v10 = vmax.f32 %v433_v63, %v469_v6  ;;  %v521_v33 = vadd.f32 %v519_v1, %v513_v28  ;;  %v522_v22 = vadd.f32 %v520_v7, %v514_v5  ;;  %s4657_s8 = sld [smem:[#allocation3 + $0x30]] }
  0x67   : > { %v543_v29 = vmul.f32 %v3552_v42, %v4008_v44  ;;  %v544_v58 = vmul.f32 %v3562_v48, %v4008_v44  ;;  %v551_v34 = vmul.f32 %v3575_v53, %v4011_v56  ;;  %v552_v11 = vmul.f32 %v3578_v54, %v4011_v56 }
  0x68   : > { %v474_v23 = vmax.f32 %v470_v0, %v472_v57  ;;  %v475_v31 = vmax.f32 %v471_v55, %v473_v10  ;;  %v529_v41 = vadd.f32 %v527_v24, %v521_v33  ;;  %v530_v16 = vadd.f32 %v528_v19, %v522_v22 }
  0x69   : > { %v555_v51 = vmul.f32 %v3463_v2, %v3967_v47  ;;  %v556_v63 = vmul.f32 %v3466_v3, %v3967_v47  ;;  %v557_v1 = vmul.f32 %v6303_v62, %v3974_v59  ;;  %v558_v7 = vmul.f32 %v3490_v12, %v3974_v59 }
  0x6a   : > { %v478_v4 = vadd.f32 %v477_v45, %v474_v23  ;;  %v479_v13 = vadd.f32 %v477_v45, %v475_v31  ;;  %v537_v6 = vadd.f32 %v535_v27, %v529_v41  ;;  %v538_v0 = vadd.f32 %v536_v9, %v530_v16 }
  0x6b   : > { %v559_v55 = vadd.f32 %v557_v1, %v555_v51  ;;  %v560_v24 = vadd.f32 %v558_v7, %v556_v63  ;;  %v563_v2 = vmul.f32 %v3565_v49, %v3977_v32  ;;  %v564_v3 = vmul.f32 %v3568_v50, %v3977_v32 }
  0x6c   : > { %v480_v28 = vmax.f32 %v478_v4, 0.0  ;;  %v481_v5 = vmax.f32 %v479_v13, 0.0  ;;  %v545_v62 = vadd.f32 %v543_v29, %v537_v6  ;;  %v546_v19 = vadd.f32 %v544_v58, %v538_v0 }
  0x6d   : > { %v565_v57 = vadd.f32 %v563_v2, %v559_v55  ;;  %v566_v12 = vadd.f32 %v564_v3, %v560_v24  ;;  %v567_v45 = vmul.f32 %v3517_v25, %v3988_v8  ;;  %v568_v27 = vmul.f32 %v3520_v26, %v3988_v8 }
  0x6e   : > { %3046 = vst [vmem:[%s3837_s23 + $0xb0] sm:$0xff] %v480_v28  ;;  %v4046_v9 = vadd.f32 %v551_v34, %v545_v62  ;;  %v4048_v10 = vadd.f32 %v552_v11, %v546_v19  ;;  %v571_v49 = vmul.f32 %v3533_v35, %v3991_v43  ;;  %v572_v50 = vmul.f32 %v3536_v36, %v3991_v43 }
  0x6f   : > { %3047 = vst [vmem:[%s3837_s23 + $0xb8] sm:$0xff] %v481_v5  ;;  %v569_v33 = vadd.f32 %v567_v45, %v565_v57  ;;  %v570_v22 = vadd.f32 %v568_v27, %v566_v12  ;;  %v577_v29 = vmul.f32 %v3600_v14, %v4002_v60  ;;  %v578_v58 = vmul.f32 %v3603_v15, %v4002_v60 }
  0x70   : > { %v581_v34 = vmul.f32 %v3552_v42, %v4005_v46  ;;  %v582_v11 = vmul.f32 %v3562_v48, %v4005_v46  ;;  %v585_v23 = vmul.f32 %v3575_v53, %v4008_v44  ;;  %v586_v31 = vmul.f32 %v3578_v54, %v4008_v44 }
  0x71   : > { %v573_v41 = vadd.f32 %v571_v49, %v569_v33  ;;  %v574_v16 = vadd.f32 %v572_v50, %v570_v22  ;;  %v591_v51 = vmul.f32 %v3618_v38, %v4011_v56  ;;  %v592_v63 = vmul.f32 %v3621_v39, %v4011_v56 }
  0x72   : > { %v595_v1 = vmul.f32 %v3503_v17, %v3967_v47  ;;  %v596_v7 = vmul.f32 %v3506_v18, %v3967_v47  ;;  %v597_v4 = vmul.f32 %v3517_v25, %v3974_v59  ;;  %v598_v13 = vmul.f32 %v3520_v26, %v3974_v59 }
  0x73   : > { %v579_v6 = vadd.f32 %v577_v29, %v573_v41  ;;  %v580_v0 = vadd.f32 %v578_v58, %v574_v16  ;;  %v601_v55 = vmul.f32 %v3533_v35, %v3977_v32  ;;  %v602_v24 = vmul.f32 %v3536_v36, %v3977_v32 }
  0x74   : > { %v599_v2 = vadd.f32 %v597_v4, %v595_v1  ;;  %v600_v3 = vadd.f32 %v598_v13, %v596_v7  ;;  %v605_v17 = vmul.f32 %v3539_v37, %v3988_v8  ;;  %v606_v18 = vmul.f32 %v3546_v40, %v3988_v8 }
  0x75   : > { %v583_v28 = vadd.f32 %v581_v34, %v579_v6  ;;  %v584_v5 = vadd.f32 %v582_v11, %v580_v0  ;;  %v609_v62 = vmul.f32 %v3552_v42, %v3991_v43  ;;  %v610_v19 = vmul.f32 %v3562_v48, %v3991_v43 }
  0x76   : > { %v603_v57 = vadd.f32 %v601_v55, %v599_v2  ;;  %v604_v12 = vadd.f32 %v602_v24, %v600_v3  ;;  %v613_v45 = vmul.f32 %v3575_v53, %v4002_v60  ;;  %v614_v27 = vmul.f32 %v3578_v54, %v4002_v60  ;;  %v6305_v55 = vld [vmem:[#allocation13_spill] sm:$0xff]  ;;  %v4167_v3 = vld [vmem:[%s3454_s6 + $0x8] sm:$0xff] }
  0x77   : > { %v587_v37 = vadd.f32 %v585_v23, %v583_v28  ;;  %v588_v49 = vadd.f32 %v586_v31, %v584_v5  ;;  %v619_v40 = vmul.f32 %v3648_v20, %v4005_v46  ;;  %v620_v50 = vmul.f32 %v3651_v21, %v4005_v46  ;;  %v6304_v20 = vld [vmem:[#allocation12_spill] sm:$0xff]  ;;  %v4164_v2 = vld [vmem:[%s3454_s6] sm:$0xff]  ;;  %6308 = vst [vmem:[#allocation10_spill] sm:$0xff] %v4167_v3 }
  0x78   : > { %v607_v33 = vadd.f32 %v605_v17, %v603_v57  ;;  %v608_v22 = vadd.f32 %v606_v18, %v604_v12  ;;  %v625_v29 = vmul.f32 %v3666_v61, %v4008_v44  ;;  %v626_v58 = vmul.f32 %v3669_v52, %v4008_v44  ;;  %6307 = vst [vmem:[#allocation9_spill] sm:$0xff] %v4164_v2  ;;  %v4183_v28 = vld [vmem:[%s3454_s6 + $0xb8] sm:$0xff] }
  0x79   : > { %v4103_v34 = vadd.f32 %v591_v51, %v587_v37  ;;  %v4105_v11 = vadd.f32 %v592_v63, %v588_v49  ;;  %v631_v23 = vmul.f32 %v3676_v30, %v4011_v56  ;;  %v632_v31 = vmul.f32 %v6304_v20, %v4011_v56 }
  0x7a   : > { %v611_v21 = vadd.f32 %v609_v62, %v607_v33  ;;  %v612_v41 = vadd.f32 %v610_v19, %v608_v22  ;;  %v635_v16 = vmul.f32 %v3517_v25, %v3967_v47  ;;  %v636_v1 = vmul.f32 %v3520_v26, %v3967_v47  ;;  %v4206_v22 = vld [vmem:[%s3454_s6 + $0x160] sm:$0xff] }
  0x7b   : > { %v637_v51 = vmul.f32 %v3533_v35, %v3974_v59  ;;  %v638_v63 = vmul.f32 %v3536_v36, %v3974_v59  ;;  %v641_v7 = vmul.f32 %v3600_v14, %v3977_v32  ;;  %v642_v4 = vmul.f32 %v3603_v15, %v3977_v32 }
  0x7c   : > { %v615_v25 = vadd.f32 %v613_v45, %v611_v21  ;;  %v616_v13 = vadd.f32 %v614_v27, %v612_v41  ;;  %v645_v26 = vmul.f32 %v3552_v42, %v3988_v8  ;;  %v646_v47 = vmul.f32 %v3562_v48, %v3988_v8 }
  0x7d   : > { %v639_v35 = vadd.f32 %v637_v51, %v635_v16  ;;  %v640_v36 = vadd.f32 %v638_v63, %v636_v1  ;;  %v649_v14 = vmul.f32 %v3575_v53, %v3991_v43  ;;  %v650_v15 = vmul.f32 %v3578_v54, %v3991_v43  ;;  %v4225_v63 = vld [vmem:[%s3454_s6 + $0x2c8] sm:$0xff] }
  0x7e   : > { %v621_v59 = vadd.f32 %v619_v40, %v615_v25  ;;  %v622_v32 = vadd.f32 %v620_v50, %v616_v13  ;;  %v653_v42 = vmul.f32 %v3618_v38, %v4002_v60  ;;  %v654_v48 = vmul.f32 %v3621_v39, %v4002_v60 }
  0x7f   : > { %v643_v8 = vadd.f32 %v641_v7, %v639_v35  ;;  %v644_v6 = vadd.f32 %v642_v4, %v640_v36  ;;  %v657_v53 = vmul.f32 %v3666_v61, %v4005_v46  ;;  %v658_v54 = vmul.f32 %v3669_v52, %v4005_v46  ;;  %v6306_v46 = vld [vmem:[#allocation14_spill] sm:$0xff]  ;;  %v4228_v7 = vld [vmem:[%s3454_s6 + $0x370] sm:$0xff]  ;;  %v4231_v4 = vld [vmem:[%s3454_s6 + $0x378] sm:$0xff] }
  0x80   : > { %v627_v43 = vadd.f32 %v625_v29, %v621_v59  ;;  %v628_v38 = vadd.f32 %v626_v58, %v622_v32  ;;  %v661_v39 = vmul.f32 %v3676_v30, %v4008_v44  ;;  %v662_v60 = vmul.f32 %v6304_v20, %v4008_v44  ;;  %v4209_v29 = vld [vmem:[%s3454_s6 + $0x168] sm:$0xff]  ;;  %v4216_v20 = vld [vmem:[%s3454_s6 + $0x2c0] sm:$0xff] }
  0x81   : > { %v647_v0 = vadd.f32 %v645_v26, %v643_v8  ;;  %v648_v61 = vadd.f32 %v646_v47, %v644_v6  ;;  %v667_v52 = vmul.f32 %v6305_v55, %v4011_v56  ;;  %v668_v24 = vmul.f32 %v6306_v46, %v4011_v56  ;;  %v4180_v56 = vld [vmem:[%s3454_s6 + $0xb0] sm:$0xff]  ;;  %6309 = vst [vmem:[#allocation11_spill] sm:$0xff] %v4209_v29  ;;  %v4242_v59 = vld [vmem:[%s3454_s6 + $0x420] sm:$0xff] }
  0x82   : > { %v4171_v30 = vadd.f32 %v631_v23, %v627_v43  ;;  %v4173_v44 = vadd.f32 %v632_v31, %v628_v38  ;;  %v671_v17 = vmax.f32 %v4046_v9, %v4103_v34  ;;  %v672_v18 = vmax.f32 %v4048_v10, %v4105_v11  ;;  %v4257_v38 = vld [vmem:[%s3454_s6 + $0x428] sm:$0xff]  ;;  %v4274_v46 = vld [vmem:[%s3454_s6 + $0x630] sm:$0xff] }
  0x83   : > { %v651_v5 = vadd.f32 %v649_v14, %v647_v0  ;;  %v652_v62 = vadd.f32 %v650_v15, %v648_v61  ;;  %v678_v19 = vstv %s4111_s9  ;;  %v4189_v57 = vstv %s4117_s10  ;;  %s4663_s9 = sld [smem:[#allocation3 + $0x31]] }
  0x84   : > { %v690_v12 = vmul.f32 %v4189_v57, %v4164_v2  ;;  %v691_v45 = vmul.f32 %v4189_v57, %v4167_v3  ;;  %v4196_v27 = vstv %s4127_s11  ;;  %v4199_v37 = vstv %s4133_s12  ;;  %s4673_s10 = sld [smem:[#allocation3 + $0x32]] }
  0x85   : > { %v655_v49 = vadd.f32 %v653_v42, %v651_v5  ;;  %v656_v40 = vadd.f32 %v654_v48, %v652_v62  ;;  %v696_v50 = vmul.f32 %v4180_v56, %v4196_v27  ;;  %v697_v33 = vmul.f32 %v4183_v28, %v4196_v27  ;;  %s4679_s11 = sld [smem:[#allocation3 + $0x33]] }
  0x86   : > { %v704_v58 = vmul.f32 %v4206_v22, %v4199_v37  ;;  %v705_v23 = vmul.f32 %v4209_v29, %v4199_v37  ;;  %v4219_v31 = vstv %s4139_s13  ;;  %v4222_v21 = vstv %s4145_s14  ;;  %s4685_s12 = sld [smem:[#allocation3 + $0x34]] }
  0x87   : > { %v659_v41 = vadd.f32 %v657_v53, %v655_v49  ;;  %v660_v16 = vadd.f32 %v658_v54, %v656_v40  ;;  %v698_v1 = vadd.f32 %v696_v50, %v690_v12  ;;  %v699_v51 = vadd.f32 %v697_v33, %v691_v45  ;;  %v4279_v45 = vld [vmem:[%s3454_s6 + $0x638] sm:$0xff]  ;;  %v4282_v49 = vld [vmem:[%s3454_s6 + $0x6e0] sm:$0xff]  ;;  %v4285_v40 = vld [vmem:[%s3454_s6 + $0x6e8] sm:$0xff]  ;;  %s4692_s13 = sld [smem:[#allocation5 + $0x4]] }
  0x88   : > { %v712_v25 = vmul.f32 %v4216_v20, %v4219_v31  ;;  %v713_v13 = vmul.f32 %v4225_v63, %v4219_v31  ;;  %v720_v26 = vmul.f32 %v4228_v7, %v4222_v21  ;;  %v721_v47 = vmul.f32 %v4231_v4, %v4222_v21  ;;  %s4718_s14 = sld [smem:[#allocation3 + $0x35]] }
  0x89   : > { %v663_v35 = vadd.f32 %v661_v39, %v659_v41  ;;  %v664_v36 = vadd.f32 %v662_v60, %v660_v16  ;;  %v706_v14 = vadd.f32 %v704_v58, %v698_v1  ;;  %v707_v15 = vadd.f32 %v705_v23, %v699_v51  ;;  %v4260_v39 = vld [vmem:[%s3454_s6 + $0x580] sm:$0xff]  ;;  %v4263_v60 = vld [vmem:[%s3454_s6 + $0x588] sm:$0xff]  ;;  %v4302_v1 = vld [vmem:[%s3454_s6 + $0x210] sm:$0xff] }
  0x8a   : > { %v4245_v32 = vstv %s4151_s15  ;;  %v4248_v42 = vstv %s4157_s16  ;;  %v4251_v48 = vstv %s4169_s17  ;;  %v4254_v8 = vstv %s4185_s18  ;;  %s4839_s15 = sld [smem:[#allocation3 + $0x36]] }
  0x8b   : > { %v669_v6 = vadd.f32 %v667_v52, %v663_v35  ;;  %v670_v53 = vadd.f32 %v668_v24, %v664_v36  ;;  %v714_v54 = vadd.f32 %v712_v25, %v706_v14  ;;  %v715_v43 = vadd.f32 %v713_v13, %v707_v15  ;;  %v4305_v51 = vld [vmem:[%s3454_s6 + $0x218] sm:$0xff]  ;;  %s4849_s16 = sld [smem:[#allocation3 + $0x37]] }
  0x8c   : > { %v728_v0 = vmul.f32 %v4242_v59, %v4245_v32  ;;  %v729_v61 = vmul.f32 %v4257_v38, %v4245_v32  ;;  %v736_v55 = vmul.f32 %v4260_v39, %v4248_v42  ;;  %v737_v52 = vmul.f32 %v4263_v60, %v4248_v42  ;;  %s4855_s17 = sld [smem:[#allocation3 + $0x38]] }
  0x8d   : > { %v673_v24 = vmax.f32 %v4171_v30, %v669_v6  ;;  %v674_v5 = vmax.f32 %v4173_v44, %v670_v53  ;;  %v722_v62 = vadd.f32 %v720_v26, %v714_v54  ;;  %v723_v12 = vadd.f32 %v721_v47, %v715_v43  ;;  %s4861_s18 = sld [smem:[#allocation3 + $0x39]] }
  0x8e   : > { %v744_v50 = vmul.f32 %v4274_v46, %v4251_v48  ;;  %v745_v33 = vmul.f32 %v4279_v45, %v4251_v48  ;;  %v752_v30 = vmul.f32 %v4282_v49, %v4254_v8  ;;  %v753_v44 = vmul.f32 %v4285_v40, %v4254_v8 }
  0x8f   : > { %v675_v58 = vmax.f32 %v671_v17, %v673_v24  ;;  %v676_v23 = vmax.f32 %v672_v18, %v674_v5  ;;  %v730_v41 = vadd.f32 %v728_v0, %v722_v62  ;;  %v731_v16 = vadd.f32 %v729_v61, %v723_v12  ;;  %v4337_v5 = vld [vmem:[%s3454_s6 + $0x4d0] sm:$0xff]  ;;  %v4340_v62 = vld [vmem:[%s3454_s6 + $0x4d8] sm:$0xff] }
  0x90   : > { %v756_v25 = vmul.f32 %v4180_v56, %v4189_v57  ;;  %v757_v13 = vmul.f32 %v4183_v28, %v4189_v57  ;;  %v758_v9 = vmul.f32 %v4206_v22, %v4196_v27  ;;  %v759_v34 = vmul.f32 %v4209_v29, %v4196_v27 }
  0x91   : > { %v679_v10 = vadd.f32 %v678_v19, %v675_v58  ;;  %v680_v11 = vadd.f32 %v678_v19, %v676_v23  ;;  %v738_v17 = vadd.f32 %v736_v55, %v730_v41  ;;  %v739_v18 = vadd.f32 %v737_v52, %v731_v16  ;;  %v4356_v16 = vld [vmem:[%s3454_s6 + $0x790] sm:$0xff] }
  0x92   : > { %v760_v26 = vadd.f32 %v758_v9, %v756_v25  ;;  %v761_v47 = vadd.f32 %v759_v34, %v757_v13  ;;  %v764_v35 = vmul.f32 %v4302_v1, %v4199_v37  ;;  %v765_v36 = vmul.f32 %v4305_v51, %v4199_v37  ;;  %v4359_v25 = vld [vmem:[%s3454_s6 + $0x798] sm:$0xff] }
  0x93   : > { %v681_v14 = vmax.f32 %v679_v10, 0.0  ;;  %v682_v15 = vmax.f32 %v680_v11, 0.0  ;;  %v746_v6 = vadd.f32 %v744_v50, %v738_v17  ;;  %v747_v53 = vadd.f32 %v745_v33, %v739_v18 }
  0x94   : > { %v766_v54 = vadd.f32 %v764_v35, %v760_v26  ;;  %v767_v43 = vadd.f32 %v765_v36, %v761_v47  ;;  %v768_v19 = vmul.f32 %v4228_v7, %v4219_v31  ;;  %v769_v0 = vmul.f32 %v4231_v4, %v4219_v31 }
  0x95   : > { %3089 = vst [vmem:[%s3837_s23 + $0x160] sm:$0xff] %v681_v14  ;;  %v4328_v61 = vadd.f32 %v752_v30, %v746_v6  ;;  %v4330_v55 = vadd.f32 %v753_v44, %v747_v53  ;;  %v772_v52 = vmul.f32 %v4242_v59, %v4222_v21  ;;  %v773_v24 = vmul.f32 %v4257_v38, %v4222_v21 }
  0x96   : > { %3090 = vst [vmem:[%s3837_s23 + $0x168] sm:$0xff] %v682_v15  ;;  %v770_v12 = vadd.f32 %v768_v19, %v766_v54  ;;  %v771_v50 = vadd.f32 %v769_v0, %v767_v43  ;;  %v778_v33 = vmul.f32 %v4337_v5, %v4245_v32  ;;  %v779_v30 = vmul.f32 %v4340_v62, %v4245_v32  ;;  %v4382_v43 = vld [vmem:[%s3454_s6 + $0x840] sm:$0xff]  ;;  %v4385_v19 = vld [vmem:[%s3454_s6 + $0x848] sm:$0xff] }
  0x97   : > { %v782_v44 = vmul.f32 %v4274_v46, %v4248_v42  ;;  %v783_v58 = vmul.f32 %v4279_v45, %v4248_v42  ;;  %v786_v23 = vmul.f32 %v4282_v49, %v4251_v48  ;;  %v787_v41 = vmul.f32 %v4285_v40, %v4251_v48 }
  0x98   : > { %v774_v13 = vadd.f32 %v772_v52, %v770_v12  ;;  %v775_v9 = vadd.f32 %v773_v24, %v771_v50  ;;  %v792_v34 = vmul.f32 %v4356_v16, %v4254_v8  ;;  %v793_v10 = vmul.f32 %v4359_v25, %v4254_v8 }
  0x99   : > { %v796_v11 = vmul.f32 %v4216_v20, %v4189_v57  ;;  %v797_v17 = vmul.f32 %v4225_v63, %v4189_v57  ;;  %v798_v18 = vmul.f32 %v4228_v7, %v4196_v27  ;;  %v799_v26 = vmul.f32 %v4231_v4, %v4196_v27 }
  0x9a   : > { %v780_v47 = vadd.f32 %v778_v33, %v774_v13  ;;  %v781_v35 = vadd.f32 %v779_v30, %v775_v9  ;;  %v802_v36 = vmul.f32 %v4242_v59, %v4199_v37  ;;  %v803_v14 = vmul.f32 %v4257_v38, %v4199_v37 }
  0x9b   : > { %v800_v15 = vadd.f32 %v798_v18, %v796_v11  ;;  %v801_v6 = vadd.f32 %v799_v26, %v797_v17  ;;  %v806_v53 = vmul.f32 %v4260_v39, %v4219_v31  ;;  %v807_v54 = vmul.f32 %v4263_v60, %v4219_v31  ;;  %v4400_v17 = vld [vmem:[%s3454_s6 + $0x8f0] sm:$0xff]  ;;  %v4403_v18 = vld [vmem:[%s3454_s6 + $0x8f8] sm:$0xff] }
  0x9c   : > { %v784_v0 = vadd.f32 %v782_v44, %v780_v47  ;;  %v785_v52 = vadd.f32 %v783_v58, %v781_v35  ;;  %v810_v24 = vmul.f32 %v4274_v46, %v4222_v21  ;;  %v811_v12 = vmul.f32 %v4279_v45, %v4222_v21 }
  0x9d   : > { %v804_v50 = vadd.f32 %v802_v36, %v800_v15  ;;  %v805_v33 = vadd.f32 %v803_v14, %v801_v6  ;;  %v814_v30 = vmul.f32 %v4282_v49, %v4245_v32  ;;  %v815_v13 = vmul.f32 %v4285_v40, %v4245_v32 }
  0x9e   : > { %v788_v9 = vadd.f32 %v786_v23, %v784_v0  ;;  %v789_v11 = vadd.f32 %v787_v41, %v785_v52  ;;  %v820_v44 = vmul.f32 %v4382_v43, %v4248_v42  ;;  %v821_v58 = vmul.f32 %v4385_v19, %v4248_v42  ;;  %v4410_v23 = vld [vmem:[%s3454_s6 + $0x9a0] sm:$0xff]  ;;  %v4413_v41 = vld [vmem:[%s3454_s6 + $0x9a8] sm:$0xff] }
  0x9f   : > { %v808_v26 = vadd.f32 %v806_v53, %v804_v50  ;;  %v809_v47 = vadd.f32 %v807_v54, %v805_v33  ;;  %v826_v35 = vmul.f32 %v4400_v17, %v4251_v48  ;;  %v827_v36 = vmul.f32 %v4403_v18, %v4251_v48  ;;  %6310 = vst [vmem:[#allocation12_spill] sm:$0xff] %v4413_v41 }
  0xa0   : > { %v4415_v14 = vadd.f32 %v792_v34, %v788_v9  ;;  %v4417_v15 = vadd.f32 %v793_v10, %v789_v11  ;;  %v832_v6 = vmul.f32 %v4410_v23, %v4254_v8  ;;  %v833_v53 = vmul.f32 %v4413_v41, %v4254_v8 }
  0xa1   : > { %v812_v54 = vadd.f32 %v810_v24, %v808_v26  ;;  %v813_v0 = vadd.f32 %v811_v12, %v809_v47  ;;  %v836_v52 = vmul.f32 %v4228_v7, %v4189_v57  ;;  %v837_v50 = vmul.f32 %v4231_v4, %v4189_v57 }
  0xa2   : > { %v838_v34 = vmul.f32 %v4242_v59, %v4196_v27  ;;  %v839_v10 = vmul.f32 %v4257_v38, %v4196_v27  ;;  %v842_v33 = vmul.f32 %v4337_v5, %v4199_v37  ;;  %v843_v24 = vmul.f32 %v4340_v62, %v4199_v37 }
  0xa3   : > { %v816_v12 = vadd.f32 %v814_v30, %v812_v54  ;;  %v817_v57 = vadd.f32 %v815_v13, %v813_v0  ;;  %v846_v9 = vmul.f32 %v4274_v46, %v4219_v31  ;;  %v847_v11 = vmul.f32 %v4279_v45, %v4219_v31  ;;  %v4458_v0 = vld [vmem:[%s3454_s6 + $0xa50] sm:$0xff] }
  0xa4   : > { %v840_v27 = vadd.f32 %v838_v34, %v836_v52  ;;  %v841_v26 = vadd.f32 %v839_v10, %v837_v50  ;;  %v850_v47 = vmul.f32 %v4282_v49, %v4222_v21  ;;  %v851_v37 = vmul.f32 %v4285_v40, %v4222_v21  ;;  %6311 = vst [vmem:[#allocation13_spill] sm:$0xff] %v4458_v0  ;;  %v4461_v52 = vld [vmem:[%s3454_s6 + $0xa58] sm:$0xff] }
  0xa5   : > { %v822_v30 = vadd.f32 %v820_v44, %v816_v12  ;;  %v823_v13 = vadd.f32 %v821_v58, %v817_v57  ;;  %v854_v54 = vmul.f32 %v4356_v16, %v4245_v32  ;;  %v855_v31 = vmul.f32 %v4359_v25, %v4245_v32  ;;  %6312 = vst [vmem:[#allocation14_spill] sm:$0xff] %v4461_v52 }
  0xa6   : > { %v844_v50 = vadd.f32 %v842_v33, %v840_v27  ;;  %v845_v34 = vadd.f32 %v843_v24, %v841_v26  ;;  %v858_v21 = vmul.f32 %v4400_v17, %v4248_v42  ;;  %v859_v44 = vmul.f32 %v4403_v18, %v4248_v42 }
  0xa7   : > { %v828_v58 = vadd.f32 %v826_v35, %v822_v30  ;;  %v829_v10 = vadd.f32 %v827_v36, %v823_v13  ;;  %v862_v32 = vmul.f32 %v4410_v23, %v4251_v48  ;;  %v863_v12 = vmul.f32 %v4413_v41, %v4251_v48 }
  0xa8   : > { %v848_v33 = vadd.f32 %v846_v9, %v844_v50  ;;  %v849_v24 = vadd.f32 %v847_v11, %v845_v34  ;;  %v868_v42 = vmul.f32 %v4458_v0, %v4254_v8  ;;  %v869_v35 = vmul.f32 %v4461_v52, %v4254_v8 }
  0xa9   : > { %v834_v36 = vadd.f32 %v832_v6, %v828_v58  ;;  %v835_v57 = vadd.f32 %v833_v53, %v829_v10  ;;  %v872_v27 = vmax.f32 %v4328_v61, %v4415_v14  ;;  %v873_v48 = vmax.f32 %v4330_v55, %v4417_v15 }
  0xaa   : > { %v852_v9 = vadd.f32 %v850_v47, %v848_v33  ;;  %v853_v11 = vadd.f32 %v851_v37, %v849_v24  ;;  %v879_v26 = vstv %s4423_s19  ;;  %v4491_v30 = vstv %s4429_s20  ;;  %s4867_s19 = sld [smem:[#allocation3 + $0x3a]] }
  0xab   : > { %v891_v8 = vmul.f32 %v4491_v30, %v4164_v2  ;;  %v892_v6 = vmul.f32 %v4491_v30, %v4167_v3  ;;  %v4498_v53 = vstv %s4439_s21  ;;  %v4501_v61 = vstv %s4445_s22  ;;  %s4887_s20 = sld [smem:[#allocation3 + $0x3b]] }
  0xac   : > { %v856_v55 = vadd.f32 %v854_v54, %v852_v9  ;;  %v857_v14 = vadd.f32 %v855_v31, %v853_v11  ;;  %v897_v15 = vmul.f32 %v4180_v56, %v4498_v53  ;;  %v898_v47 = vmul.f32 %v4183_v28, %v4498_v53  ;;  %s4903_s21 = sld [smem:[#allocation3 + $0x3c]] }
  0xad   : > { %v905_v37 = vmul.f32 %v4206_v22, %v4501_v61  ;;  %v906_v13 = vmul.f32 %v4209_v29, %v4501_v61  ;;  %v4512_v50 = vstv %s4451_s24  ;;  %v4515_v34 = vstv %s4463_s25  ;;  %s4908_s22 = sld [smem:[#allocation5 + $0x5]] }
  0xae   : > { %v860_v54 = vadd.f32 %v858_v21, %v856_v55  ;;  %v861_v31 = vadd.f32 %v859_v44, %v857_v14  ;;  %v899_v58 = vadd.f32 %v897_v15, %v891_v8  ;;  %v900_v10 = vadd.f32 %v898_v47, %v892_v6  ;;  %s4930_s24 = sld [smem:[#allocation3 + $0x3d]] }
  0xaf   : > { %v913_v33 = vmul.f32 %v4216_v20, %v4512_v50  ;;  %v914_v24 = vmul.f32 %v4225_v63, %v4512_v50  ;;  %v921_v9 = vmul.f32 %v4228_v7, %v4515_v34  ;;  %v922_v11 = vmul.f32 %v4231_v4, %v4515_v34  ;;  %s4945_s25 = sld [smem:[#allocation3 + $0x3e]] }
  0xb0   : > { %v864_v3 = vadd.f32 %v862_v32, %v860_v54  ;;  %v865_v2 = vadd.f32 %v863_v12, %v861_v31  ;;  %v907_v52 = vadd.f32 %v905_v37, %v899_v58  ;;  %v908_v0 = vadd.f32 %v906_v13, %v900_v10 }
  0xb1   : > { %v4526_v21 = vstv %s4469_s1  ;;  %v4529_v44 = vstv %s4475_s2  ;;  %v4532_v8 = vstv %s4481_s27  ;;  %v4535_v6 = vstv %s4487_s28  ;;  %s5125_s1 = sld [smem:[#allocation3 + $0x3f]] }
  0xb2   : > { %v870_v55 = vadd.f32 %v868_v42, %v864_v3  ;;  %v871_v14 = vadd.f32 %v869_v35, %v865_v2  ;;  %v915_v15 = vadd.f32 %v913_v33, %v907_v52  ;;  %v916_v47 = vadd.f32 %v914_v24, %v908_v0  ;;  %s5138_s2 = sld [smem:[#allocation3 + $0x40]] }
  0xb3   : > { %v929_v41 = vmul.f32 %v4242_v59, %v4526_v21  ;;  %v930_v32 = vmul.f32 %v4257_v38, %v4526_v21  ;;  %v937_v12 = vmul.f32 %v4260_v39, %v4529_v44  ;;  %v938_v37 = vmul.f32 %v4263_v60, %v4529_v44  ;;  %s5144_s27 = sld [smem:[#allocation3 + $0x41]] }
  0xb4   : > { %v874_v13 = vmax.f32 %v834_v36, %v870_v55  ;;  %v875_v54 = vmax.f32 %v835_v57, %v871_v14  ;;  %v923_v31 = vadd.f32 %v921_v9, %v915_v15  ;;  %v924_v58 = vadd.f32 %v922_v11, %v916_v47  ;;  %s5157_s28 = sld [smem:[#allocation3 + $0x42]] }
  0xb5   : > { %v945_v2 = vmul.f32 %v4274_v46, %v4532_v8  ;;  %v946_v3 = vmul.f32 %v4279_v45, %v4532_v8  ;;  %v953_v0 = vmul.f32 %v4282_v49, %v4535_v6  ;;  %v954_v52 = vmul.f32 %v4285_v40, %v4535_v6 }
  0xb6   : > { %v876_v42 = vmax.f32 %v872_v27, %v874_v13  ;;  %v877_v35 = vmax.f32 %v873_v48, %v875_v54  ;;  %v931_v10 = vadd.f32 %v929_v41, %v923_v31  ;;  %v932_v33 = vadd.f32 %v930_v32, %v924_v58 }
  0xb7   : > { %v957_v36 = vmul.f32 %v4180_v56, %v4491_v30  ;;  %v958_v57 = vmul.f32 %v4183_v28, %v4491_v30  ;;  %v959_v24 = vmul.f32 %v4206_v22, %v4498_v53  ;;  %v960_v9 = vmul.f32 %v4209_v29, %v4498_v53 }
  0xb8   : > { %v880_v11 = vadd.f32 %v879_v26, %v876_v42  ;;  %v881_v55 = vadd.f32 %v879_v26, %v877_v35  ;;  %v939_v14 = vadd.f32 %v937_v12, %v931_v10  ;;  %v940_v27 = vadd.f32 %v938_v37, %v932_v33 }
  0xb9   : > { %v961_v41 = vadd.f32 %v959_v24, %v957_v36  ;;  %v962_v48 = vadd.f32 %v960_v9, %v958_v57  ;;  %v965_v15 = vmul.f32 %v4302_v1, %v4501_v61  ;;  %v966_v47 = vmul.f32 %v4305_v51, %v4501_v61 }
  0xba   : > { %v882_v32 = vmax.f32 %v880_v11, 0.0  ;;  %v883_v13 = vmax.f32 %v881_v55, 0.0  ;;  %v947_v54 = vadd.f32 %v945_v2, %v939_v14  ;;  %v948_v31 = vadd.f32 %v946_v3, %v940_v27 }
  0xbb   : > { %v967_v58 = vadd.f32 %v965_v15, %v961_v41  ;;  %v968_v29 = vadd.f32 %v966_v47, %v962_v48  ;;  %v969_v26 = vmul.f32 %v4228_v7, %v4512_v50  ;;  %v970_v12 = vmul.f32 %v4231_v4, %v4512_v50 }
  0xbc   : > { %3132 = vst [vmem:[%s3837_s23 + $0x210] sm:$0xff] %v882_v32  ;;  %v973_v37 = vmul.f32 %v4242_v59, %v4515_v34  ;;  %v974_v42 = vmul.f32 %v4257_v38, %v4515_v34  ;;  %v979_v2 = vmul.f32 %v4337_v5, %v4526_v21  ;;  %v980_v3 = vmul.f32 %v4340_v62, %v4526_v21 }
  0xbd   : > { %3133 = vst [vmem:[%s3837_s23 + $0x218] sm:$0xff] %v883_v13  ;;  %v971_v35 = vadd.f32 %v969_v26, %v967_v58  ;;  %v972_v10 = vadd.f32 %v970_v12, %v968_v29  ;;  %v4579_v33 = vadd.f32 %v953_v0, %v947_v54  ;;  %v4581_v36 = vadd.f32 %v954_v52, %v948_v31 }
  0xbe   : > { %v983_v57 = vmul.f32 %v4274_v46, %v4529_v44  ;;  %v984_v24 = vmul.f32 %v4279_v45, %v4529_v44  ;;  %v987_v29 = vmul.f32 %v4282_v49, %v4532_v8  ;;  %v988_v55 = vmul.f32 %v4285_v40, %v4532_v8 }
  0xbf   : > { %v975_v9 = vadd.f32 %v973_v37, %v971_v35  ;;  %v976_v11 = vadd.f32 %v974_v42, %v972_v10  ;;  %v997_v0 = vmul.f32 %v4216_v20, %v4491_v30  ;;  %v998_v52 = vmul.f32 %v4225_v63, %v4491_v30 }
  0xc0   : > { %v999_v14 = vmul.f32 %v4228_v7, %v4498_v53  ;;  %v1000_v27 = vmul.f32 %v4231_v4, %v4498_v53  ;;  %v1003_v15 = vmul.f32 %v4242_v59, %v4501_v61  ;;  %v1004_v47 = vmul.f32 %v4257_v38, %v4501_v61 }
  0xc1   : > { %v981_v41 = vadd.f32 %v979_v2, %v975_v9  ;;  %v982_v48 = vadd.f32 %v980_v3, %v976_v11  ;;  %v1007_v54 = vmul.f32 %v4260_v39, %v4512_v50  ;;  %v1008_v31 = vmul.f32 %v4263_v60, %v4512_v50 }
  0xc2   : > { %v1001_v32 = vadd.f32 %v999_v14, %v997_v0  ;;  %v1002_v13 = vadd.f32 %v1000_v27, %v998_v52  ;;  %v993_v12 = vmul.f32 %v4356_v16, %v4535_v6  ;;  %v994_v37 = vmul.f32 %v4359_v25, %v4535_v6 }
  0xc3   : > { %v985_v58 = vadd.f32 %v983_v57, %v981_v41  ;;  %v986_v26 = vadd.f32 %v984_v24, %v982_v48  ;;  %v1011_v10 = vmul.f32 %v4274_v46, %v4515_v34  ;;  %v1012_v2 = vmul.f32 %v4279_v45, %v4515_v34 }
  0xc4   : > { %v1005_v42 = vadd.f32 %v1003_v15, %v1001_v32  ;;  %v1006_v35 = vadd.f32 %v1004_v47, %v1002_v13  ;;  %v1015_v57 = vmul.f32 %v4282_v49, %v4526_v21  ;;  %v1016_v24 = vmul.f32 %v4285_v40, %v4526_v21 }
  0xc5   : > { %v989_v3 = vadd.f32 %v987_v29, %v985_v58  ;;  %v990_v9 = vadd.f32 %v988_v55, %v986_v26  ;;  %v1021_v52 = vmul.f32 %v4382_v43, %v4529_v44  ;;  %v1022_v14 = vmul.f32 %v4385_v19, %v4529_v44 }
  0xc6   : > { %v1009_v11 = vadd.f32 %v1007_v54, %v1005_v42  ;;  %v1010_v0 = vadd.f32 %v1008_v31, %v1006_v35  ;;  %v1027_v29 = vmul.f32 %v4400_v17, %v4532_v8  ;;  %v1028_v55 = vmul.f32 %v4403_v18, %v4532_v8 }
  0xc7   : > { %v4623_v27 = vadd.f32 %v993_v12, %v989_v3  ;;  %v4625_v41 = vadd.f32 %v994_v37, %v990_v9  ;;  %v1037_v47 = vmul.f32 %v4228_v7, %v4491_v30  ;;  %v1038_v32 = vmul.f32 %v4231_v4, %v4491_v30  ;;  %v6313_v37 = vld [vmem:[#allocation12_spill] sm:$0xff] }
  0xc8   : > { %v1013_v48 = vadd.f32 %v1011_v10, %v1009_v11  ;;  %v1014_v15 = vadd.f32 %v1012_v2, %v1010_v0  ;;  %v1039_v13 = vmul.f32 %v4242_v59, %v4498_v53  ;;  %v1040_v54 = vmul.f32 %v4257_v38, %v4498_v53 }
  0xc9   : > { %v1043_v31 = vmul.f32 %v4337_v5, %v4501_v61  ;;  %v1044_v58 = vmul.f32 %v4340_v62, %v4501_v61  ;;  %v1033_v30 = vmul.f32 %v4410_v23, %v4535_v6  ;;  %v1034_v42 = vmul.f32 %v6313_v37, %v4535_v6 }
  0xca   : > { %v1017_v26 = vadd.f32 %v1015_v57, %v1013_v48  ;;  %v1018_v12 = vadd.f32 %v1016_v24, %v1014_v15  ;;  %v1041_v35 = vadd.f32 %v1039_v13, %v1037_v47  ;;  %v1042_v53 = vadd.f32 %v1040_v54, %v1038_v32  ;;  %v6314_v13 = vld [vmem:[#allocation13_spill] sm:$0xff] }
  0xcb   : > { %v1047_v10 = vmul.f32 %v4274_v46, %v4512_v50  ;;  %v1048_v61 = vmul.f32 %v4279_v45, %v4512_v50  ;;  %v1051_v9 = vmul.f32 %v4282_v49, %v4515_v34  ;;  %v1052_v57 = vmul.f32 %v4285_v40, %v4515_v34 }
  0xcc   : > { %v1023_v2 = vadd.f32 %v1021_v52, %v1017_v26  ;;  %v1024_v3 = vadd.f32 %v1022_v14, %v1018_v12  ;;  %v1045_v24 = vadd.f32 %v1043_v31, %v1041_v35  ;;  %v1046_v11 = vadd.f32 %v1044_v58, %v1042_v53  ;;  %v6317_v35 = vld [vmem:[#allocation10_spill] sm:$0xff] }
  0xcd   : > { %v1055_v0 = vmul.f32 %v4356_v16, %v4526_v21  ;;  %v1056_v50 = vmul.f32 %v4359_v25, %v4526_v21  ;;  %v1059_v52 = vmul.f32 %v4400_v17, %v4529_v44  ;;  %v1060_v14 = vmul.f32 %v4403_v18, %v4529_v44  ;;  %v6315_v44 = vld [vmem:[#allocation14_spill] sm:$0xff] }
  0xce   : > { %v1029_v48 = vadd.f32 %v1027_v29, %v1023_v2  ;;  %v1030_v15 = vadd.f32 %v1028_v55, %v1024_v3  ;;  %v1049_v34 = vadd.f32 %v1047_v10, %v1045_v24  ;;  %v1050_v47 = vadd.f32 %v1048_v61, %v1046_v11 }
  0xcf   : > { %v1063_v32 = vmul.f32 %v4410_v23, %v4532_v8  ;;  %v1064_v21 = vmul.f32 %v6313_v37, %v4532_v8  ;;  %v1069_v54 = vmul.f32 %v6314_v13, %v4535_v6  ;;  %v1070_v31 = vmul.f32 %v6315_v44, %v4535_v6 }
  0xd0   : > { %v1035_v29 = vadd.f32 %v1033_v30, %v1029_v48  ;;  %v1036_v55 = vadd.f32 %v1034_v42, %v1030_v15  ;;  %v1053_v58 = vadd.f32 %v1051_v9, %v1049_v34  ;;  %v1054_v26 = vadd.f32 %v1052_v57, %v1050_v47  ;;  %v6316_v30 = vld [vmem:[#allocation9_spill] sm:$0xff]  ;;  %v6318_v9 = vld [vmem:[#allocation11_spill] sm:$0xff] }
  0xd1   : > { %v1073_v12 = vmax.f32 %v4579_v33, %v4623_v27  ;;  %v4690_v8 = vstv %s4635_s29  ;;  %v4699_v6 = vstv %s4645_s30  ;;  %v4702_v10 = vstv %s4651_s7  ;;  %s5180_s29 = sld [smem:[#allocation3 + $0x43]] }
  0xd2   : > { %v1092_v42 = vmul.f32 %v4690_v8, %v6316_v30  ;;  %v1093_v53 = vmul.f32 %v4690_v8, %v6317_v35  ;;  %v1057_v61 = vadd.f32 %v1055_v0, %v1053_v58  ;;  %v1058_v2 = vadd.f32 %v1056_v50, %v1054_v26  ;;  %s5209_s30 = sld [smem:[#allocation5 + $0x6]] }
  0xd3   : > { %v1098_v3 = vmul.f32 %v4180_v56, %v4699_v6  ;;  %v1099_v33 = vmul.f32 %v4183_v28, %v4699_v6  ;;  %v1106_v27 = vmul.f32 %v4206_v22, %v4702_v10  ;;  %v1107_v57 = vmul.f32 %v6318_v9, %v4702_v10  ;;  %s5225_s7 = sld [smem:[#allocation3 + $0x45]] }
  0xd4   : > { %v4713_v24 = vstv %s4657_s8  ;;  %v4716_v11 = vstv %s4663_s9  ;;  %v1061_v0 = vadd.f32 %v1059_v52, %v1057_v61  ;;  %v1062_v50 = vadd.f32 %v1060_v14, %v1058_v2  ;;  %s3284_s8 = sld [smem:[#allocation3 + $0x46]] }
  0xd5   : > { %v1100_v48 = vadd.f32 %v1098_v3, %v1092_v42  ;;  %v1101_v15 = vadd.f32 %v1099_v33, %v1093_v53  ;;  %v1114_v34 = vmul.f32 %v4216_v20, %v4713_v24  ;;  %v1115_v47 = vmul.f32 %v4225_v63, %v4713_v24  ;;  %s3287_s9 = sld [smem:[#allocation3 + $0x47]] }
  0xd6   : > { %v1122_v58 = vmul.f32 %v4228_v7, %v4716_v11  ;;  %v1123_v26 = vmul.f32 %v4231_v4, %v4716_v11  ;;  %v1065_v30 = vadd.f32 %v1063_v32, %v1061_v0  ;;  %v1066_v35 = vadd.f32 %v1064_v21, %v1062_v50 }
  0xd7   : > { %v1108_v44 = vadd.f32 %v1106_v27, %v1100_v48  ;;  %v1109_v52 = vadd.f32 %v1107_v57, %v1101_v15  ;;  %v1074_v14 = vmax.f32 %v4581_v36, %v4625_v41  ;;  %v4731_v42 = vstv %s4673_s10  ;;  %s3302_s10 = sld [smem:[#allocation5 + $0x7]] }
  0xd8   : > { %v4734_v53 = vstv %s4679_s11  ;;  %v4737_v61 = vstv %s4685_s12  ;;  %v1071_v2 = vadd.f32 %v1069_v54, %v1065_v30  ;;  %v1072_v3 = vadd.f32 %v1070_v31, %v1066_v35 }
  0xd9   : > { %v1116_v33 = vadd.f32 %v1114_v34, %v1108_v44  ;;  %v1117_v13 = vadd.f32 %v1115_v47, %v1109_v52  ;;  %v1080_v37 = vstv %s4692_s13  ;;  %v1130_v32 = vmul.f32 %v4242_v59, %v4731_v42 }
  0xda   : > { %v1131_v21 = vmul.f32 %v4257_v38, %v4731_v42  ;;  %v1138_v36 = vmul.f32 %v4260_v39, %v4734_v53  ;;  %v1075_v41 = vmax.f32 %v1035_v29, %v1071_v2  ;;  %v1076_v27 = vmax.f32 %v1036_v55, %v1072_v3 }
  0xdb   : > { %v1124_v57 = vadd.f32 %v1122_v58, %v1116_v33  ;;  %v1125_v0 = vadd.f32 %v1123_v26, %v1117_v13  ;;  %v1139_v54 = vmul.f32 %v4263_v60, %v4734_v53  ;;  %v1146_v44 = vmul.f32 %v4274_v46, %v4737_v61 }
  0xdc   : > { %v1147_v31 = vmul.f32 %v4279_v45, %v4737_v61  ;;  %v4753_v50 = vstv %s4718_s14  ;;  %v1077_v48 = vmax.f32 %v1073_v12, %v1075_v41  ;;  %v1078_v15 = vmax.f32 %v1074_v14, %v1076_v27 }
  0xdd   : > { %v1132_v34 = vadd.f32 %v1130_v32, %v1124_v57  ;;  %v1133_v47 = vadd.f32 %v1131_v21, %v1125_v0  ;;  %v1158_v29 = vmul.f32 %v4180_v56, %v4690_v8  ;;  %v1159_v55 = vmul.f32 %v4183_v28, %v4690_v8 }
  0xde   : > { %v1160_v13 = vmul.f32 %v4206_v22, %v4699_v6  ;;  %v1161_v58 = vmul.f32 %v6318_v9, %v4699_v6  ;;  %v1081_v26 = vadd.f32 %v1080_v37, %v1077_v48  ;;  %v1082_v30 = vadd.f32 %v1080_v37, %v1078_v15 }
  0xdf   : > { %v1140_v35 = vadd.f32 %v1138_v36, %v1132_v34  ;;  %v1154_v12 = vmul.f32 %v4282_v49, %v4753_v50  ;;  %v1166_v56 = vmul.f32 %v4302_v1, %v4702_v10  ;;  %v1167_v28 = vmul.f32 %v4305_v51, %v4702_v10 }
  0xe0   : > { %v1162_v52 = vadd.f32 %v1160_v13, %v1158_v29  ;;  %v1163_v14 = vadd.f32 %v1161_v58, %v1159_v55  ;;  %v1083_v22 = vmax.f32 %v1081_v26, 0.0  ;;  %v1084_v2 = vmax.f32 %v1082_v30, 0.0 }
  0xe1   : > { %v1141_v3 = vadd.f32 %v1139_v54, %v1133_v47  ;;  %v1148_v9 = vadd.f32 %v1146_v44, %v1140_v35  ;;  %v1170_v37 = vmul.f32 %v4228_v7, %v4713_v24  ;;  %v1171_v21 = vmul.f32 %v4231_v4, %v4713_v24 }
  0xe2   : > { %v1168_v33 = vadd.f32 %v1166_v56, %v1162_v52  ;;  %v1169_v32 = vadd.f32 %v1167_v28, %v1163_v14  ;;  %3175 = vst [vmem:[%s3837_s23 + $0x2c0] sm:$0xff] %v1083_v22  ;;  %v1155_v36 = vmul.f32 %v4285_v40, %v4753_v50  ;;  %v1174_v1 = vmul.f32 %v4242_v59, %v4716_v11 }
  0xe3   : > { %v1175_v51 = vmul.f32 %v4257_v38, %v4716_v11  ;;  %3176 = vst [vmem:[%s3837_s23 + $0x2c8] sm:$0xff] %v1084_v2  ;;  %v1180_v57 = vmul.f32 %v4337_v5, %v4731_v42  ;;  %v1181_v0 = vmul.f32 %v4340_v62, %v4731_v42  ;;  %v1149_v54 = vadd.f32 %v1147_v31, %v1141_v3 }
  0xe4   : > { %v1172_v41 = vadd.f32 %v1170_v37, %v1168_v33  ;;  %v1173_v27 = vadd.f32 %v1171_v21, %v1169_v32  ;;  %v4785_v44 = vadd.f32 %v1154_v12, %v1148_v9  ;;  %v1184_v48 = vmul.f32 %v4274_v46, %v4734_v53 }
  0xe5   : > { %v1185_v15 = vmul.f32 %v4279_v45, %v4734_v53  ;;  %v1188_v29 = vmul.f32 %v4282_v49, %v4737_v61  ;;  %v1189_v55 = vmul.f32 %v4285_v40, %v4737_v61  ;;  %v1198_v13 = vmul.f32 %v4216_v20, %v4690_v8 }
  0xe6   : > { %v1176_v34 = vadd.f32 %v1174_v1, %v1172_v41  ;;  %v1177_v47 = vadd.f32 %v1175_v51, %v1173_v27  ;;  %v1199_v31 = vmul.f32 %v4225_v63, %v4690_v8  ;;  %v1200_v58 = vmul.f32 %v4228_v7, %v4699_v6 }
  0xe7   : > { %v1201_v26 = vmul.f32 %v4231_v4, %v4699_v6  ;;  %v1204_v12 = vmul.f32 %v4242_v59, %v4702_v10  ;;  %v1205_v52 = vmul.f32 %v4257_v38, %v4702_v10  ;;  %v1208_v20 = vmul.f32 %v4260_v39, %v4713_v24 }
  0xe8   : > { %v1182_v30 = vadd.f32 %v1180_v57, %v1176_v34  ;;  %v1183_v35 = vadd.f32 %v1181_v0, %v1177_v47  ;;  %v1202_v14 = vadd.f32 %v1200_v58, %v1198_v13  ;;  %v1209_v63 = vmul.f32 %v4263_v60, %v4713_v24 }
  0xe9   : > { %v1203_v56 = vadd.f32 %v1201_v26, %v1199_v31  ;;  %v4811_v28 = vadd.f32 %v1155_v36, %v1149_v54  ;;  %v1194_v3 = vmul.f32 %v4356_v16, %v4753_v50  ;;  %v1212_v32 = vmul.f32 %v4274_v46, %v4716_v11 }
  0xea   : > { %v1186_v22 = vadd.f32 %v1184_v48, %v1182_v30  ;;  %v1187_v2 = vadd.f32 %v1185_v15, %v1183_v35  ;;  %v1206_v9 = vadd.f32 %v1204_v12, %v1202_v14  ;;  %v1213_v37 = vmul.f32 %v4279_v45, %v4716_v11 }
  0xeb   : > { %v1207_v33 = vadd.f32 %v1205_v52, %v1203_v56  ;;  %v1195_v39 = vmul.f32 %v4359_v25, %v4753_v50  ;;  %v1216_v60 = vmul.f32 %v4282_v49, %v4731_v42  ;;  %v1217_v36 = vmul.f32 %v4285_v40, %v4731_v42 }
  0xec   : > { %v1190_v21 = vadd.f32 %v1188_v29, %v1186_v22  ;;  %v1191_v1 = vadd.f32 %v1189_v55, %v1187_v2  ;;  %v1210_v51 = vadd.f32 %v1208_v20, %v1206_v9  ;;  %v1222_v27 = vmul.f32 %v4382_v43, %v4734_v53  ;;  %v4901_v2 = vld [vmem:[%s3454_s6 + $0xb8] sm:$0xff] }
  0xed   : > { %v1211_v41 = vadd.f32 %v1209_v63, %v1207_v33  ;;  %v1223_v0 = vmul.f32 %v4385_v19, %v4734_v53  ;;  %v1228_v54 = vmul.f32 %v4400_v17, %v4737_v61  ;;  %v1229_v48 = vmul.f32 %v4403_v18, %v4737_v61 }
  0xee   : > { %v4827_v57 = vadd.f32 %v1194_v3, %v1190_v21  ;;  %v1214_v15 = vadd.f32 %v1212_v32, %v1210_v51  ;;  %v1238_v47 = vmul.f32 %v4228_v7, %v4690_v8  ;;  %v1239_v29 = vmul.f32 %v4231_v4, %v4690_v8  ;;  %v4925_v51 = vld [vmem:[%s3454_s6 + $0x160] sm:$0xff] }
  0xef   : > { %v1215_v34 = vadd.f32 %v1213_v37, %v1211_v41  ;;  %v1240_v43 = vmul.f32 %v4242_v59, %v4699_v6  ;;  %v1241_v19 = vmul.f32 %v4257_v38, %v4699_v6  ;;  %v1244_v55 = vmul.f32 %v4337_v5, %v4702_v10  ;;  %v4928_v41 = vld [vmem:[%s3454_s6 + $0x168] sm:$0xff] }
  0xf0   : > { %v1245_v13 = vmul.f32 %v4340_v62, %v4702_v10  ;;  %v4851_v7 = vadd.f32 %v1195_v39, %v1191_v1  ;;  %v1218_v31 = vadd.f32 %v1216_v60, %v1214_v15  ;;  %v1234_v8 = vmul.f32 %v4410_v23, %v4753_v50  ;;  %v6319_v10 = vld [vmem:[#allocation12_spill] sm:$0xff] }
  0xf1   : > { %v1219_v4 = vadd.f32 %v1217_v36, %v1215_v34  ;;  %v1242_v59 = vadd.f32 %v1240_v43, %v1238_v47  ;;  %v1243_v58 = vadd.f32 %v1241_v19, %v1239_v29  ;;  %v1248_v38 = vmul.f32 %v4274_v46, %v4713_v24  ;;  %v4948_v19 = vld [vmem:[%s3454_s6 + $0x2c8] sm:$0xff] }
  0xf2   : > { %v1249_v5 = vmul.f32 %v4279_v45, %v4713_v24  ;;  %v1224_v62 = vadd.f32 %v1222_v27, %v1218_v31  ;;  %v1235_v26 = vmul.f32 %v6319_v10, %v4753_v50  ;;  %v1252_v30 = vmul.f32 %v4282_v49, %v4716_v11 }
  0xf3   : > { %v1225_v6 = vadd.f32 %v1223_v0, %v1219_v4  ;;  %v1246_v35 = vadd.f32 %v1244_v55, %v1242_v59  ;;  %v1247_v12 = vadd.f32 %v1245_v13, %v1243_v58  ;;  %v1253_v46 = vmul.f32 %v4285_v40, %v4716_v11  ;;  %v4885_v11 = vld [vmem:[%s3454_s6 + $0x8] sm:$0xff]  ;;  %v4951_v55 = vld [vmem:[%s3454_s6 + $0x370] sm:$0xff]  ;;  %v4954_v13 = vld [vmem:[%s3454_s6 + $0x378] sm:$0xff] }
  0xf4   : > { %v1256_v45 = vmul.f32 %v4356_v16, %v4731_v42  ;;  %v1230_v24 = vadd.f32 %v1228_v54, %v1224_v62  ;;  %v1257_v14 = vmul.f32 %v4359_v25, %v4731_v42  ;;  %v1260_v49 = vmul.f32 %v4400_v17, %v4734_v53  ;;  %v4882_v16 = vld [vmem:[%s3454_s6] sm:$0xff] }
  0xf5   : > { %v1231_v52 = vadd.f32 %v1229_v48, %v1225_v6  ;;  %v1250_v56 = vadd.f32 %v1248_v38, %v1246_v35  ;;  %v1251_v20 = vadd.f32 %v1249_v5, %v1247_v12  ;;  %v1261_v63 = vmul.f32 %v4403_v18, %v4734_v53  ;;  %v6320_v42 = vld [vmem:[#allocation13_spill] sm:$0xff]  ;;  %v6321_v18 = vld [vmem:[#allocation14_spill] sm:$0xff] }
  0xf6   : > { %v1264_v40 = vmul.f32 %v4410_v23, %v4737_v61  ;;  %v4889_v25 = vadd.f32 %v1234_v8, %v1230_v24  ;;  %v1265_v17 = vmul.f32 %v6319_v10, %v4737_v61  ;;  %v1270_v22 = vmul.f32 %v6320_v42, %v4753_v50  ;;  %v4898_v23 = vld [vmem:[%s3454_s6 + $0xb0] sm:$0xff]  ;;  %v4937_v54 = vld [vmem:[%s3454_s6 + $0x2c0] sm:$0xff] }
  0xf7   : > { %v1271_v53 = vmul.f32 %v6321_v18, %v4753_v50  ;;  %v1237_v3 = vadd.f32 %v1235_v26, %v1231_v52  ;;  %v1254_v9 = vadd.f32 %v1252_v30, %v1250_v56  ;;  %v1255_v33 = vadd.f32 %v1253_v46, %v1251_v20  ;;  %v4975_v24 = vld [vmem:[%s3454_s6 + $0x420] sm:$0xff]  ;;  %v4978_v52 = vld [vmem:[%s3454_s6 + $0x428] sm:$0xff] }
  0xf8   : > { %v4906_v32 = vstv %s4839_s15  ;;  %v4915_v37 = vstv %s4849_s16  ;;  %v4918_v21 = vstv %s4855_s17  ;;  %v4940_v48 = vstv %s4861_s18 }
  0xf9   : > { %v1293_v61 = vmul.f32 %v4906_v32, %v4882_v16  ;;  %v1294_v50 = vmul.f32 %v4906_v32, %v4885_v11  ;;  %v1258_v39 = vadd.f32 %v1256_v45, %v1254_v9  ;;  %v1259_v60 = vadd.f32 %v1257_v14, %v1255_v33  ;;  %v4987_v20 = vld [vmem:[%s3454_s6 + $0x580] sm:$0xff]  ;;  %v5003_v9 = vld [vmem:[%s3454_s6 + $0x210] sm:$0xff]  ;;  %v5006_v33 = vld [vmem:[%s3454_s6 + $0x218] sm:$0xff] }
  0xfa   : > { %v1299_v36 = vmul.f32 %v4898_v23, %v4915_v37  ;;  %v1300_v1 = vmul.f32 %v4901_v2, %v4915_v37  ;;  %v1307_v27 = vmul.f32 %v4925_v51, %v4918_v21  ;;  %v1308_v0 = vmul.f32 %v4928_v41, %v4918_v21 }
  0xfb   : > { %v4943_v15 = vstv %s4867_s19  ;;  %v1262_v34 = vadd.f32 %v1260_v49, %v1258_v39  ;;  %v1263_v47 = vadd.f32 %v1261_v63, %v1259_v60  ;;  %v1315_v31 = vmul.f32 %v4937_v54, %v4940_v48  ;;  %v4990_v63 = vld [vmem:[%s3454_s6 + $0x588] sm:$0xff] }
  0xfc   : > { %v1301_v29 = vadd.f32 %v1299_v36, %v1293_v61  ;;  %v1302_v43 = vadd.f32 %v1300_v1, %v1294_v50  ;;  %v1316_v4 = vmul.f32 %v4948_v19, %v4940_v48  ;;  %v1323_v8 = vmul.f32 %v4951_v55, %v4943_v15  ;;  %v5009_v61 = vld [vmem:[%s3454_s6 + $0x630] sm:$0xff]  ;;  %v5012_v50 = vld [vmem:[%s3454_s6 + $0x638] sm:$0xff] }
  0xfd   : > { %v1324_v59 = vmul.f32 %v4954_v13, %v4943_v15  ;;  %v1266_v58 = vadd.f32 %v1264_v40, %v1262_v34  ;;  %v1267_v38 = vadd.f32 %v1265_v17, %v1263_v47  ;;  %v1274_v6 = vmax.f32 %v4785_v44, %v4827_v57 }
  0xfe   : > { %v1309_v5 = vadd.f32 %v1307_v27, %v1301_v29  ;;  %v1310_v62 = vadd.f32 %v1308_v0, %v1302_v43  ;;  %v1275_v10 = vmax.f32 %v4811_v28, %v4851_v7  ;;  %v4969_v26 = vstv %s4887_s20 }
  0xff   : > { %v4972_v30 = vstv %s4903_s21  ;;  %v1272_v35 = vadd.f32 %v1270_v22, %v1266_v58  ;;  %v1273_v12 = vadd.f32 %v1271_v53, %v1267_v38  ;;  %v1281_v44 = vstv %s4908_s22 }
 0x100   : > { %v1317_v46 = vadd.f32 %v1315_v31, %v1309_v5  ;;  %v1318_v45 = vadd.f32 %v1316_v4, %v1310_v62  ;;  %v1331_v28 = vmul.f32 %v4975_v24, %v4969_v26  ;;  %v1332_v57 = vmul.f32 %v4978_v52, %v4969_v26  ;;  %v5031_v5 = vld [vmem:[%s3454_s6 + $0x6e0] sm:$0xff] }
 0x101   : > { %v1276_v7 = vmax.f32 %v4889_v25, %v1272_v35  ;;  %v1277_v14 = vmax.f32 %v1237_v3, %v1273_v12  ;;  %v1339_v40 = vmul.f32 %v4987_v20, %v4972_v30  ;;  %v1340_v17 = vmul.f32 %v4990_v63, %v4972_v30 }
 0x102   : > { %v1325_v49 = vadd.f32 %v1323_v8, %v1317_v46  ;;  %v1326_v56 = vadd.f32 %v1324_v59, %v1318_v45  ;;  %v4997_v42 = vstv %s4930_s24  ;;  %v5000_v22 = vstv %s4945_s25 }
 0x103   : > { %v1278_v25 = vmax.f32 %v1274_v6, %v1276_v7  ;;  %v1279_v18 = vmax.f32 %v1275_v10, %v1277_v14  ;;  %v1359_v39 = vmul.f32 %v4898_v23, %v4906_v32  ;;  %v1360_v60 = vmul.f32 %v4901_v2, %v4906_v32 }
 0x104   : > { %v1333_v53 = vadd.f32 %v1331_v28, %v1325_v49  ;;  %v1334_v3 = vadd.f32 %v1332_v57, %v1326_v56  ;;  %v1361_v36 = vmul.f32 %v4925_v51, %v4915_v37  ;;  %v1362_v1 = vmul.f32 %v4928_v41, %v4915_v37  ;;  %v5048_v28 = vld [vmem:[%s3454_s6 + $0x4d8] sm:$0xff]  ;;  %v5052_v57 = vld [vmem:[%s3454_s6 + $0x6e8] sm:$0xff] }
 0x105   : > { %v1282_v27 = vadd.f32 %v1281_v44, %v1278_v25  ;;  %v1283_v0 = vadd.f32 %v1281_v44, %v1279_v18  ;;  %v1347_v34 = vmul.f32 %v5009_v61, %v4997_v42  ;;  %v1348_v47 = vmul.f32 %v5012_v50, %v4997_v42  ;;  %v5045_v44 = vld [vmem:[%s3454_s6 + $0x4d0] sm:$0xff] }
 0x106   : > { %v1363_v29 = vadd.f32 %v1361_v36, %v1359_v39  ;;  %v1364_v43 = vadd.f32 %v1362_v1, %v1360_v60  ;;  %v1367_v31 = vmul.f32 %v5003_v9, %v4918_v21  ;;  %v1368_v4 = vmul.f32 %v5006_v33, %v4918_v21 }
 0x107   : > { %v1284_v8 = vmax.f32 %v1282_v27, 0.0  ;;  %v1285_v59 = vmax.f32 %v1283_v0, 0.0  ;;  %v1341_v58 = vadd.f32 %v1339_v40, %v1333_v53  ;;  %v1342_v38 = vadd.f32 %v1340_v17, %v1334_v3 }
 0x108   : > { %v1369_v62 = vadd.f32 %v1367_v31, %v1363_v29  ;;  %v1370_v6 = vadd.f32 %v1368_v4, %v1364_v43  ;;  %v1371_v10 = vmul.f32 %v4951_v55, %v4940_v48  ;;  %v1372_v35 = vmul.f32 %v4954_v13, %v4940_v48 }
 0x109   : > { %3218 = vst [vmem:[%s3837_s23 + $0x370] sm:$0xff] %v1284_v8  ;;  %v1355_v12 = vmul.f32 %v5031_v5, %v5000_v22  ;;  %v1375_v46 = vmul.f32 %v4975_v24, %v4943_v15  ;;  %v1376_v45 = vmul.f32 %v4978_v52, %v4943_v15  ;;  %v1381_v49 = vmul.f32 %v5045_v44, %v4969_v26 }
 0x10a   : > { %3219 = vst [vmem:[%s3837_s23 + $0x378] sm:$0xff] %v1285_v59  ;;  %v1373_v7 = vadd.f32 %v1371_v10, %v1369_v62  ;;  %v1374_v14 = vadd.f32 %v1372_v35, %v1370_v6  ;;  %v1382_v56 = vmul.f32 %v5048_v28, %v4969_v26  ;;  %v1349_v40 = vadd.f32 %v1347_v34, %v1341_v58  ;;  %v5087_v10 = vld [vmem:[%s3454_s6 + $0x790] sm:$0xff]  ;;  %v5090_v35 = vld [vmem:[%s3454_s6 + $0x798] sm:$0xff] }
 0x10b   : > { %v1350_v17 = vadd.f32 %v1348_v47, %v1342_v38  ;;  %v1356_v25 = vmul.f32 %v5052_v57, %v5000_v22  ;;  %v1385_v18 = vmul.f32 %v5009_v61, %v4972_v30  ;;  %v1386_v39 = vmul.f32 %v5012_v50, %v4972_v30 }
 0x10c   : > { %v1377_v53 = vadd.f32 %v1375_v46, %v1373_v7  ;;  %v1378_v3 = vadd.f32 %v1376_v45, %v1374_v14  ;;  %v1389_v60 = vmul.f32 %v5031_v5, %v4997_v42  ;;  %v1399_v36 = vmul.f32 %v4937_v54, %v4906_v32 }
 0x10d   : > { %v1400_v1 = vmul.f32 %v4948_v19, %v4906_v32  ;;  %v1401_v27 = vmul.f32 %v4951_v55, %v4915_v37  ;;  %v1402_v0 = vmul.f32 %v4954_v13, %v4915_v37  ;;  %v1405_v29 = vmul.f32 %v4975_v24, %v4918_v21 }
 0x10e   : > { %v1383_v34 = vadd.f32 %v1381_v49, %v1377_v53  ;;  %v1384_v47 = vadd.f32 %v1382_v56, %v1378_v3  ;;  %v1406_v43 = vmul.f32 %v4978_v52, %v4918_v21  ;;  %v1409_v8 = vmul.f32 %v4987_v20, %v4940_v48  ;;  %v5100_v49 = vld [vmem:[%s3454_s6 + $0x848] sm:$0xff] }
 0x10f   : > { %v1403_v31 = vadd.f32 %v1401_v27, %v1399_v36  ;;  %v1404_v4 = vadd.f32 %v1402_v0, %v1400_v1  ;;  %v1410_v59 = vmul.f32 %v4990_v63, %v4940_v48  ;;  %v5082_v58 = vadd.f32 %v1355_v12, %v1349_v40  ;;  %v5097_v12 = vld [vmem:[%s3454_s6 + $0x840] sm:$0xff]  ;;  %v5113_v27 = vld [vmem:[%s3454_s6 + $0x8f0] sm:$0xff] }
 0x110   : > { %v1387_v38 = vadd.f32 %v1385_v18, %v1383_v34  ;;  %v1388_v62 = vadd.f32 %v1386_v39, %v1384_v47  ;;  %v1390_v6 = vmul.f32 %v5052_v57, %v4997_v42  ;;  %v1413_v7 = vmul.f32 %v5009_v61, %v4943_v15 }
 0x111   : > { %v1407_v46 = vadd.f32 %v1405_v29, %v1403_v31  ;;  %v1408_v45 = vadd.f32 %v1406_v43, %v1404_v4  ;;  %v1414_v14 = vmul.f32 %v5012_v50, %v4943_v15  ;;  %v5102_v56 = vadd.f32 %v1356_v25, %v1350_v17  ;;  %v5128_v31 = vld [vmem:[%s3454_s6 + $0x8f8] sm:$0xff] }
 0x112   : > { %v1395_v40 = vmul.f32 %v5087_v10, %v5000_v22  ;;  %v1396_v18 = vmul.f32 %v5090_v35, %v5000_v22  ;;  %v1417_v53 = vmul.f32 %v5031_v5, %v4969_v26  ;;  %v1391_v3 = vadd.f32 %v1389_v60, %v1387_v38 }
 0x113   : > { %v1411_v39 = vadd.f32 %v1409_v8, %v1407_v46  ;;  %v1412_v36 = vadd.f32 %v1410_v59, %v1408_v45  ;;  %v1418_v1 = vmul.f32 %v5052_v57, %v4969_v26  ;;  %v1392_v17 = vadd.f32 %v1390_v6, %v1388_v62 }
 0x114   : > { %v1423_v25 = vmul.f32 %v5097_v12, %v4972_v30  ;;  %v1424_v0 = vmul.f32 %v5100_v49, %v4972_v30  ;;  %v1429_v34 = vmul.f32 %v5113_v27, %v4997_v42  ;;  %v1439_v29 = vmul.f32 %v4951_v55, %v4906_v32 }
 0x115   : > { %v1415_v47 = vadd.f32 %v1413_v7, %v1411_v39  ;;  %v1416_v60 = vadd.f32 %v1414_v14, %v1412_v36  ;;  %v1440_v43 = vmul.f32 %v4954_v13, %v4906_v32  ;;  %v1441_v4 = vmul.f32 %v4975_v24, %v4915_v37  ;;  %v5160_v36 = vld [vmem:[%s3454_s6 + $0x9a8] sm:$0xff] }
 0x116   : > { %v1442_v8 = vmul.f32 %v4978_v52, %v4915_v37  ;;  %v1445_v59 = vmul.f32 %v5045_v44, %v4918_v21  ;;  %v1446_v38 = vmul.f32 %v5048_v28, %v4918_v21  ;;  %v5140_v32 = vadd.f32 %v1395_v40, %v1391_v3  ;;  %v5147_v37 = vld [vmem:[%s3454_s6 + $0x9a0] sm:$0xff]  ;;  %6322 = vst [vmem:[#allocation9_spill] sm:$0xff] %v5160_v36 }
 0x117   : > { %v1419_v62 = vadd.f32 %v1417_v53, %v1415_v47  ;;  %v1420_v6 = vadd.f32 %v1418_v1, %v1416_v60  ;;  %v1430_v46 = vmul.f32 %v5128_v31, %v4997_v42  ;;  %v1443_v45 = vadd.f32 %v1441_v4, %v1439_v29  ;;  %v5167_v29 = vld [vmem:[%s3454_s6 + $0xa50] sm:$0xff] }
 0x118   : > { %v1444_v7 = vadd.f32 %v1442_v8, %v1440_v43  ;;  %v1449_v21 = vmul.f32 %v5009_v61, %v4940_v48  ;;  %v1450_v14 = vmul.f32 %v5012_v50, %v4940_v48  ;;  %v5153_v40 = vadd.f32 %v1396_v18, %v1392_v17  ;;  %6323 = vst [vmem:[#allocation10_spill] sm:$0xff] %v5167_v29  ;;  %v5178_v43 = vld [vmem:[%s3454_s6 + $0xa58] sm:$0xff]  ;;  %s3278_s6 = sld [smem:[#allocation3 + $0x44]] }
 0x119   : > { %v1425_v53 = vadd.f32 %v1423_v25, %v1419_v62  ;;  %v1426_v3 = vadd.f32 %v1424_v0, %v1420_v6  ;;  %v1435_v39 = vmul.f32 %v5147_v37, %v5000_v22  ;;  %v1447_v1 = vadd.f32 %v1445_v59, %v1443_v45  ;;  %6324 = vst [vmem:[#allocation11_spill] sm:$0xff] %v5178_v43 }
 0x11a   : > { %v1448_v47 = vadd.f32 %v1446_v38, %v1444_v7  ;;  %v1453_v60 = vmul.f32 %v5031_v5, %v4943_v15  ;;  %v1454_v48 = vmul.f32 %v5052_v57, %v4943_v15  ;;  %v1436_v18 = vmul.f32 %v5160_v36, %v5000_v22 }
 0x11b   : > { %v1457_v17 = vmul.f32 %v5087_v10, %v4969_v26  ;;  %v1458_v25 = vmul.f32 %v5090_v35, %v4969_v26  ;;  %v1461_v0 = vmul.f32 %v5113_v27, %v4972_v30  ;;  %v1431_v15 = vadd.f32 %v1429_v34, %v1425_v53 }
 0x11c   : > { %v1451_v4 = vadd.f32 %v1449_v21, %v1447_v1  ;;  %v1452_v8 = vadd.f32 %v1450_v14, %v1448_v47  ;;  %v1462_v59 = vmul.f32 %v5128_v31, %v4972_v30  ;;  %v1432_v38 = vadd.f32 %v1430_v46, %v1426_v3 }
 0x11d   : > { %v1465_v62 = vmul.f32 %v5147_v37, %v4997_v42  ;;  %v1466_v26 = vmul.f32 %v5160_v36, %v4997_v42  ;;  %v1471_v6 = vmul.f32 %v5167_v29, %v5000_v22  ;;  %v1472_v34 = vmul.f32 %v5178_v43, %v5000_v22 }
 0x11e   : > { %v1455_v45 = vadd.f32 %v1453_v60, %v1451_v4  ;;  %v1456_v7 = vadd.f32 %v1454_v48, %v1452_v8  ;;  %v5193_v21 = vstv %s5125_s1  ;;  %v5200_v14 = vstv %s5138_s2 }
 0x11f   : > { %v1494_v30 = vmul.f32 %v5193_v21, %v4882_v16  ;;  %v1495_v46 = vmul.f32 %v5193_v21, %v4885_v11  ;;  %v5203_v42 = vstv %s5144_s27  ;;  %v1500_v1 = vmul.f32 %v4898_v23, %v5200_v14 }
 0x120   : > { %v1459_v53 = vadd.f32 %v1457_v17, %v1455_v45  ;;  %v1460_v3 = vadd.f32 %v1458_v25, %v1456_v7  ;;  %v1501_v22 = vmul.f32 %v4901_v2, %v5200_v14  ;;  %v1437_v47 = vadd.f32 %v1435_v39, %v1431_v15 }
 0x121   : > { %v1508_v16 = vmul.f32 %v4925_v51, %v5203_v42  ;;  %v1509_v11 = vmul.f32 %v4928_v41, %v5203_v42  ;;  %v5216_v60 = vstv %s5157_s28  ;;  %v1502_v25 = vadd.f32 %v1500_v1, %v1494_v30 }
 0x122   : > { %v1463_v48 = vadd.f32 %v1461_v0, %v1459_v53  ;;  %v1464_v17 = vadd.f32 %v1462_v59, %v1460_v3  ;;  %v1503_v4 = vadd.f32 %v1501_v22, %v1495_v46  ;;  %v1438_v8 = vadd.f32 %v1436_v18, %v1432_v38 }
 0x123   : > { %v1516_v45 = vmul.f32 %v4937_v54, %v5216_v60  ;;  %v1517_v39 = vmul.f32 %v4948_v19, %v5216_v60  ;;  %v5223_v15 = vstv %s5180_s29  ;;  %v1510_v29 = vadd.f32 %v1508_v16, %v1502_v25 }
 0x124   : > { %v1467_v7 = vadd.f32 %v1465_v62, %v1463_v48  ;;  %v1468_v43 = vadd.f32 %v1466_v26, %v1464_v17  ;;  %v1511_v36 = vadd.f32 %v1509_v11, %v1503_v4  ;;  %v1475_v18 = vmax.f32 %v5082_v58, %v5140_v32 }
 0x125   : > { %v1476_v38 = vmax.f32 %v5102_v56, %v5153_v40  ;;  %v1524_v30 = vmul.f32 %v4951_v55, %v5223_v15  ;;  %v1525_v62 = vmul.f32 %v4954_v13, %v5223_v15  ;;  %v5235_v26 = vstv %s3278_s6 }
 0x126   : > { %v1473_v0 = vadd.f32 %v1471_v6, %v1467_v7  ;;  %v1474_v59 = vadd.f32 %v1472_v34, %v1468_v43  ;;  %v1518_v3 = vadd.f32 %v1516_v45, %v1510_v29  ;;  %v1519_v6 = vadd.f32 %v1517_v39, %v1511_v36 }
 0x127   : > { %v1482_v43 = vstv %s5209_s30  ;;  %v1532_v58 = vmul.f32 %v4975_v24, %v5235_v26  ;;  %v1533_v56 = vmul.f32 %v4978_v52, %v5235_v26  ;;  %v1560_v32 = vmul.f32 %v4898_v23, %v5193_v21 }
 0x128   : > { %v1477_v46 = vmax.f32 %v1437_v47, %v1473_v0  ;;  %v1478_v53 = vmax.f32 %v1438_v8, %v1474_v59  ;;  %v1561_v40 = vmul.f32 %v4901_v2, %v5193_v21  ;;  %v1562_v36 = vmul.f32 %v4925_v51, %v5200_v14 }
 0x129   : > { %v1563_v29 = vmul.f32 %v4928_v41, %v5200_v14  ;;  %v1526_v16 = vadd.f32 %v1524_v30, %v1518_v3  ;;  %v1527_v11 = vadd.f32 %v1525_v62, %v1519_v6  ;;  %v1568_v23 = vmul.f32 %v5003_v9, %v5203_v42 }
 0x12a   : > { %v1479_v34 = vmax.f32 %v1475_v18, %v1477_v46  ;;  %v1480_v1 = vmax.f32 %v1476_v38, %v1478_v53  ;;  %v1564_v48 = vadd.f32 %v1562_v36, %v1560_v32  ;;  %v1569_v2 = vmul.f32 %v5006_v33, %v5203_v42 }
 0x12b   : > { %v1565_v17 = vadd.f32 %v1563_v29, %v1561_v40  ;;  %v5255_v51 = vstv %s5225_s7  ;;  %v5257_v8 = vstv %s3284_s8  ;;  %v1572_v39 = vmul.f32 %v4951_v55, %v5216_v60 }
 0x12c   : > { %v1483_v22 = vadd.f32 %v1482_v43, %v1479_v34  ;;  %v1484_v47 = vadd.f32 %v1482_v43, %v1480_v1  ;;  %v1570_v41 = vadd.f32 %v1568_v23, %v1564_v48  ;;  %v1573_v7 = vmul.f32 %v4954_v13, %v5216_v60 }
 0x12d   : > { %v1571_v45 = vadd.f32 %v1569_v2, %v1565_v17  ;;  %v1534_v9 = vadd.f32 %v1532_v58, %v1526_v16  ;;  %v1535_v0 = vadd.f32 %v1533_v56, %v1527_v11  ;;  %v1540_v33 = vmul.f32 %v4987_v20, %v5255_v51 }
 0x12e   : > { %v1485_v25 = vmax.f32 %v1483_v22, 0.0  ;;  %v1486_v4 = vmax.f32 %v1484_v47, 0.0  ;;  %v1541_v59 = vmul.f32 %v4990_v63, %v5255_v51  ;;  %v1548_v18 = vmul.f32 %v5009_v61, %v5257_v8 }
 0x12f   : > { %v1549_v38 = vmul.f32 %v5012_v50, %v5257_v8  ;;  %v5273_v30 = vstv %s3287_s9  ;;  %v1574_v62 = vadd.f32 %v1572_v39, %v1570_v41  ;;  %v1575_v46 = vadd.f32 %v1573_v7, %v1571_v45 }
 0x130   : > { %3261 = vst [vmem:[%s3837_s23 + $0x420] sm:$0xff] %v1485_v25  ;;  %v1576_v53 = vmul.f32 %v4975_v24, %v5223_v15  ;;  %v1577_v3 = vmul.f32 %v4978_v52, %v5223_v15  ;;  %v1600_v6 = vmul.f32 %v4937_v54, %v5193_v21  ;;  %v1601_v43 = vmul.f32 %v4948_v19, %v5193_v21 }
 0x131   : > { %3262 = vst [vmem:[%s3837_s23 + $0x428] sm:$0xff] %v1486_v4  ;;  %v1602_v34 = vmul.f32 %v4951_v55, %v5200_v14  ;;  %v1603_v1 = vmul.f32 %v4954_v13, %v5200_v14  ;;  %v1542_v58 = vadd.f32 %v1540_v33, %v1534_v9  ;;  %v1543_v56 = vadd.f32 %v1541_v59, %v1535_v0 }
 0x132   : > { %v1606_v32 = vmul.f32 %v4975_v24, %v5203_v42  ;;  %v1607_v40 = vmul.f32 %v4978_v52, %v5203_v42  ;;  %v1610_v54 = vmul.f32 %v4987_v20, %v5216_v60  ;;  %v1611_v19 = vmul.f32 %v4990_v63, %v5216_v60 }
 0x133   : > { %v1604_v36 = vadd.f32 %v1602_v34, %v1600_v6  ;;  %v1605_v29 = vadd.f32 %v1603_v1, %v1601_v43  ;;  %v1578_v22 = vadd.f32 %v1576_v53, %v1574_v62  ;;  %v1579_v47 = vadd.f32 %v1577_v3, %v1575_v46 }
 0x134   : > { %v1582_v16 = vmul.f32 %v5045_v44, %v5235_v26  ;;  %v1583_v11 = vmul.f32 %v5048_v28, %v5235_v26  ;;  %v1614_v23 = vmul.f32 %v5009_v61, %v5223_v15  ;;  %v1615_v2 = vmul.f32 %v5012_v50, %v5223_v15 }
 0x135   : > { %v1608_v48 = vadd.f32 %v1606_v32, %v1604_v36  ;;  %v1609_v17 = vadd.f32 %v1607_v40, %v1605_v29  ;;  %v1550_v20 = vadd.f32 %v1548_v18, %v1542_v58  ;;  %v1551_v25 = vadd.f32 %v1549_v38, %v1543_v56 }
 0x136   : > { %v1556_v63 = vmul.f32 %v5031_v5, %v5273_v30  ;;  %v1557_v4 = vmul.f32 %v5052_v57, %v5273_v30  ;;  %v1618_v39 = vmul.f32 %v5031_v5, %v5235_v26  ;;  %v1619_v7 = vmul.f32 %v5052_v57, %v5235_v26 }
 0x137   : > { %v1612_v41 = vadd.f32 %v1610_v54, %v1608_v48  ;;  %v1613_v45 = vadd.f32 %v1611_v19, %v1609_v17  ;;  %v1584_v9 = vadd.f32 %v1582_v16, %v1578_v22  ;;  %v1585_v0 = vadd.f32 %v1583_v11, %v1579_v47 }
 0x138   : > { %v1586_v33 = vmul.f32 %v5009_v61, %v5255_v51  ;;  %v1587_v59 = vmul.f32 %v5012_v50, %v5255_v51  ;;  %v1640_v62 = vmul.f32 %v4951_v55, %v5193_v21  ;;  %v1641_v46 = vmul.f32 %v4954_v13, %v5193_v21 }
 0x139   : > { %v1616_v18 = vadd.f32 %v1614_v23, %v1612_v41  ;;  %v1617_v38 = vadd.f32 %v1615_v2, %v1613_v45  ;;  %v1642_v53 = vmul.f32 %v4975_v24, %v5200_v14  ;;  %v1643_v3 = vmul.f32 %v4978_v52, %v5200_v14  ;;  %v6325_v2 = vld [vmem:[#allocation9_spill] sm:$0xff] }
 0x13a   : > { %v1646_v6 = vmul.f32 %v5045_v44, %v5203_v42  ;;  %v1647_v43 = vmul.f32 %v5048_v28, %v5203_v42  ;;  %v1624_v55 = vmul.f32 %v5097_v12, %v5255_v51  ;;  %v1625_v13 = vmul.f32 %v5100_v49, %v5255_v51 }
 0x13b   : > { %v1620_v34 = vadd.f32 %v1618_v39, %v1616_v18  ;;  %v1621_v1 = vadd.f32 %v1619_v7, %v1617_v38  ;;  %v1644_v21 = vadd.f32 %v1642_v53, %v1640_v62  ;;  %v1645_v58 = vadd.f32 %v1643_v3, %v1641_v46  ;;  %v6327_v18 = vld [vmem:[#allocation11_spill] sm:$0xff] }
 0x13c   : > { %v1650_v24 = vmul.f32 %v5009_v61, %v5216_v60  ;;  %v1651_v52 = vmul.f32 %v5012_v50, %v5216_v60  ;;  %v1588_v44 = vadd.f32 %v1586_v33, %v1584_v9  ;;  %v1589_v14 = vadd.f32 %v1587_v59, %v1585_v0  ;;  %v6326_v33 = vld [vmem:[#allocation10_spill] sm:$0xff] }
 0x13d   : > { %v1590_v28 = vmul.f32 %v5031_v5, %v5257_v8  ;;  %v1591_v42 = vmul.f32 %v5052_v57, %v5257_v8  ;;  %v1648_v12 = vadd.f32 %v1646_v6, %v1644_v21  ;;  %v1649_v56 = vadd.f32 %v1647_v43, %v1645_v58 }
 0x13e   : > { %v1654_v49 = vmul.f32 %v5031_v5, %v5223_v15  ;;  %v1655_v32 = vmul.f32 %v5052_v57, %v5223_v15  ;;  %v1626_v61 = vadd.f32 %v1624_v55, %v1620_v34  ;;  %v1627_v40 = vadd.f32 %v1625_v13, %v1621_v1 }
 0x13f   : > { %v1630_v50 = vmul.f32 %v5113_v27, %v5257_v8  ;;  %v1631_v60 = vmul.f32 %v5128_v31, %v5257_v8  ;;  %v1652_v36 = vadd.f32 %v1650_v24, %v1648_v12  ;;  %v1653_v29 = vadd.f32 %v1651_v52, %v1649_v56 }
 0x140   : > { %v1658_v54 = vmul.f32 %v5087_v10, %v5235_v26  ;;  %v1659_v19 = vmul.f32 %v5090_v35, %v5235_v26  ;;  %v1592_v5 = vadd.f32 %v1590_v28, %v1588_v44  ;;  %v1593_v22 = vadd.f32 %v1591_v42, %v1589_v14 }
 0x141   : > { %v1596_v57 = vmul.f32 %v5087_v10, %v5273_v30  ;;  %v1597_v15 = vmul.f32 %v5090_v35, %v5273_v30  ;;  %v1656_v47 = vadd.f32 %v1654_v49, %v1652_v36  ;;  %v1657_v16 = vadd.f32 %v1655_v32, %v1653_v29 }
 0x142   : > { %v1662_v11 = vmul.f32 %v5113_v27, %v5255_v51  ;;  %v1663_v48 = vmul.f32 %v5128_v31, %v5255_v51  ;;  %v1632_v17 = vadd.f32 %v1630_v50, %v1626_v61  ;;  %v1633_v23 = vadd.f32 %v1631_v60, %v1627_v40 }
 0x143   : > { %v1636_v26 = vmul.f32 %v5147_v37, %v5273_v30  ;;  %v1637_v41 = vmul.f32 %v6325_v2, %v5273_v30  ;;  %v1660_v10 = vadd.f32 %v1658_v54, %v1656_v47  ;;  %v1661_v45 = vadd.f32 %v1659_v19, %v1657_v16 }
 0x144   : > { %v1666_v35 = vmul.f32 %v5147_v37, %v5257_v8  ;;  %v1667_v39 = vmul.f32 %v6325_v2, %v5257_v8  ;;  %v1558_v27 = vadd.f32 %v1556_v63, %v1550_v20  ;;  %v1559_v7 = vadd.f32 %v1557_v4, %v1551_v25 }
 0x145   : > { %v1598_v9 = vadd.f32 %v1596_v57, %v1592_v5  ;;  %v1599_v31 = vadd.f32 %v1597_v15, %v1593_v22  ;;  %v1664_v51 = vadd.f32 %v1662_v11, %v1660_v10  ;;  %v1665_v0 = vadd.f32 %v1663_v48, %v1661_v45 }
 0x146   : > { %v1672_v59 = vmul.f32 %v6326_v33, %v5273_v30  ;;  %v1673_v38 = vmul.f32 %v6327_v18, %v5273_v30  ;;  %v1638_v62 = vadd.f32 %v1636_v26, %v1632_v17  ;;  %v1639_v46 = vadd.f32 %v1637_v41, %v1633_v23  ;;  %v1691_v18 = vld [vmem:[%s6263_s3] sm:$0xff] (%p47_p0) }
 0x147   : > { %v1668_v37 = vadd.f32 %v1666_v35, %v1664_v51  ;;  %v1669_v53 = vadd.f32 %v1667_v39, %v1665_v0  ;;  %v1676_v25 = vmax.f32 %v1558_v27, %v1598_v9  ;;  %v1677_v63 = vmax.f32 %v1559_v7, %v1599_v31 }
 0x148   : > { %v1683_v6 = vstv %s3302_s10 }
 0x149   : > { %v1674_v8 = vadd.f32 %v1672_v59, %v1668_v37  ;;  %v1675_v20 = vadd.f32 %v1673_v38, %v1669_v53  ;;  %v1735_v38 = vld [vmem:[%s6263_s3 + $0x160] sm:$0xff] (%p47_p0)  ;;  %v1737_v53 = vld [vmem:[%s6263_s3 + $0x170] sm:$0xff] (%p47_p0) }
 0x14b   : > { %v1678_v4 = vmax.f32 %v1638_v62, %v1674_v8  ;;  %v1679_v3 = vmax.f32 %v1639_v46, %v1675_v20 }
 0x14d   : > { %v1680_v43 = vmax.f32 %v1676_v25, %v1678_v4  ;;  %v1681_v34 = vmax.f32 %v1677_v63, %v1679_v3  ;;  %v1736_v63 = vld [vmem:[%s6263_s3 + $0x168] sm:$0xff] (%p47_p0) }
 0x14f   : > { %v1684_v1 = vadd.f32 %v1683_v6, %v1680_v43  ;;  %v1685_v55 = vadd.f32 %v1683_v6, %v1681_v34  ;;  %v1702_v6 = vld [vmem:[%s6263_s3 + $0x58] sm:$0xff] (%p47_p0) }
 0x150   :  { %49 = sbr.rel (!%p47_p0) target bundleno = 12 (0xc), region = 79  ;;  %v1746_v43 = vld [vmem:[%s6263_s3 + $0x1b8] sm:$0xff] (%p47_p0) }
 0x151   : > { %v1686_v13 = vmax.f32 %v1684_v1, 0.0  ;;  %v1687_v21 = vmax.f32 %v1685_v55, 0.0  ;;  %v1748_v55 = vld [vmem:[%s6263_s3 + $0x1c8] sm:$0xff] (%p47_p0) }
 0x153   : > { %3304 = vst [vmem:[%s3837_s23 + $0x4d0] sm:$0xff] %v1686_v13  ;;  %v2043_v13 = vld [vmem:[%s6264_s4] sm:$0xff] (%p47_p0) }
 0x154   : > { %3305 = vst [vmem:[%s3837_s23 + $0x4d8] sm:$0xff] %v1687_v21 }
 0x15b   :  { %v1882_v30 = vld [vmem:[#allocation2 + $0x78] sm:$0xff]  ;;  %v1881_v58 = vld [vmem:[#allocation2 + $0x70] sm:$0xff]  ;;  %v1880_v44 = vld [vmem:[#allocation2 + $0x68] sm:$0xff] }
 0x15c   :  { %2139 = vmatpush.msra.mxu0 %v1882_v30  ;;  %3306 = vmatpush.msra.mxu3 %v1882_v30  ;;  %v5376_v24 = vld [vmem:[#allocation2 + $0x178] sm:$0xff]  ;;  %v5378_v52 = vld [vmem:[#allocation2 + $0x170] sm:$0xff]  ;;  %v5383_v28 = vld [vmem:[#allocation2 + $0x168] sm:$0xff]  ;;  %v3406_v30 = vmov 0  }
 0x15d   :  { %3338 = vmatpush.msra.mxu2 %v5376_v24  ;;  %v5381_v14 = vld [vmem:[#allocation2 + $0xf8] sm:$0xff]  ;;  %v5385_v42 = vld [vmem:[#allocation2 + $0xf0] sm:$0xff]  ;;  %v1879_v12 = vld [vmem:[#allocation2 + $0x60] sm:$0xff]  ;;  %3365 = vset.pattern.permute.xlu0 %v3406_v30 }
 0x15e   :  { %2140 = vmatpush.msra.mxu0 %v1881_v58  ;;  %3307 = vmatpush.msra.mxu3 %v1881_v58  ;;  %v5389_v56 = vld [vmem:[#allocation2 + $0x160] sm:$0xff]  ;;  %v5391_v49 = vld [vmem:[#allocation2 + $0xe8] sm:$0xff]  ;;  %v1878_v32 = vld [vmem:[#allocation2 + $0x58] sm:$0xff] }
 0x15f   :  { %3339 = vmatpush.msra.mxu2 %v5378_v52  ;;  %3322 = vmatpush.msra.mxu1 %v5381_v14  ;;  %v5395_v61 = vld [vmem:[#allocation2 + $0x158] sm:$0xff]  ;;  %v5397_v40 = vld [vmem:[#allocation2 + $0xe0] sm:$0xff]  ;;  %v1877_v50 = vld [vmem:[#allocation2 + $0x50] sm:$0xff] }
 0x160   :  { %2141 = vmatpush.msra.mxu0 %v1880_v44  ;;  %3308 = vmatpush.msra.mxu3 %v1880_v44  ;;  %v5401_v60 = vld [vmem:[#allocation2 + $0x150] sm:$0xff]  ;;  %v5403_v36 = vld [vmem:[#allocation2 + $0xd8] sm:$0xff]  ;;  %v1876_v29 = vld [vmem:[#allocation2 + $0x48] sm:$0xff] }
 0x161   :  { %3340 = vmatpush.msra.mxu2 %v5383_v28  ;;  %3323 = vmatpush.msra.mxu1 %v5385_v42  ;;  %v5407_v54 = vld [vmem:[#allocation2 + $0x148] sm:$0xff]  ;;  %v5409_v19 = vld [vmem:[#allocation2 + $0xd0] sm:$0xff]  ;;  %v1875_v5 = vld [vmem:[#allocation2 + $0x40] sm:$0xff] }
 0x162   :  { %2142 = vmatpush.msra.mxu0 %v1879_v12  ;;  %3309 = vmatpush.msra.mxu3 %v1879_v12  ;;  %v5413_v22 = vld [vmem:[#allocation2 + $0x140] sm:$0xff]  ;;  %v5415_v57 = vld [vmem:[#allocation2 + $0xc8] sm:$0xff]  ;;  %v1874_v15 = vld [vmem:[#allocation2 + $0x38] sm:$0xff] }
 0x163   :  { %3341 = vmatpush.msra.mxu2 %v5389_v56  ;;  %3324 = vmatpush.msra.mxu1 %v5391_v49  ;;  %v5419_v47 = vld [vmem:[#allocation2 + $0x138] sm:$0xff]  ;;  %v5421_v16 = vld [vmem:[#allocation2 + $0xc0] sm:$0xff]  ;;  %v1873_v11 = vld [vmem:[#allocation2 + $0x30] sm:$0xff] }
 0x164   :  { %2143 = vmatpush.msra.mxu0 %v1878_v32  ;;  %3310 = vmatpush.msra.mxu3 %v1878_v32  ;;  %v5425_v48 = vld [vmem:[#allocation2 + $0x130] sm:$0xff]  ;;  %v5427_v17 = vld [vmem:[#allocation2 + $0xb8] sm:$0xff]  ;;  %v1872_v23 = vld [vmem:[#allocation2 + $0x28] sm:$0xff] }
 0x165   :  { %3342 = vmatpush.msra.mxu2 %v5395_v61  ;;  %3325 = vmatpush.msra.mxu1 %v5397_v40  ;;  %v5431_v26 = vld [vmem:[#allocation2 + $0x128] sm:$0xff]  ;;  %v5433_v2 = vld [vmem:[#allocation2 + $0xb0] sm:$0xff]  ;;  %v1871_v41 = vld [vmem:[#allocation2 + $0x20] sm:$0xff] }
 0x166   :  { %2144 = vmatpush.msra.mxu0 %v1877_v50  ;;  %3311 = vmatpush.msra.mxu3 %v1877_v50  ;;  %v5437_v10 = vld [vmem:[#allocation2 + $0x120] sm:$0xff]  ;;  %v5439_v45 = vld [vmem:[#allocation2 + $0xa8] sm:$0xff]  ;;  %v1870_v35 = vld [vmem:[#allocation2 + $0x18] sm:$0xff] }
 0x167   :  { %3343 = vmatpush.msra.mxu2 %v5401_v60  ;;  %3326 = vmatpush.msra.mxu1 %v5403_v36  ;;  %v5443_v39 = vld [vmem:[#allocation2 + $0x118] sm:$0xff]  ;;  %v5445_v27 = vld [vmem:[#allocation2 + $0xa0] sm:$0xff]  ;;  %v1869_v7 = vld [vmem:[#allocation2 + $0x10] sm:$0xff] }
 0x168   :  { %2145 = vmatpush.msra.mxu0 %v1876_v29  ;;  %3312 = vmatpush.msra.mxu3 %v1876_v29  ;;  %v5449_v9 = vld [vmem:[#allocation2 + $0x110] sm:$0xff]  ;;  %v5451_v31 = vld [vmem:[#allocation2 + $0x98] sm:$0xff]  ;;  %v1868_v51 = vld [vmem:[#allocation2 + $0x8] sm:$0xff] }
 0x169   :  { %3344 = vmatpush.msra.mxu2 %v5407_v54  ;;  %3327 = vmatpush.msra.mxu1 %v5409_v19  ;;  %v5455_v0 = vld [vmem:[#allocation2 + $0x108] sm:$0xff]  ;;  %v5457_v33 = vld [vmem:[#allocation2 + $0x90] sm:$0xff]  ;;  %v1867_v59 = vld [vmem:[#allocation2] sm:$0xff] }
 0x16a   :  { %2146 = vmatpush.msra.mxu0 %v1875_v5  ;;  %3313 = vmatpush.msra.mxu3 %v1875_v5  ;;  %v1930_v62 = vld [vmem:[#allocation2 + $0x1f8] sm:$0xff]  ;;  %v5469_v46 = vld [vmem:[#allocation2 + $0x100] sm:$0xff]  ;;  %v5471_v37 = vld [vmem:[#allocation2 + $0x88] sm:$0xff] }
 0x16b   :  { %3345 = vmatpush.msra.mxu2 %v5413_v22  ;;  %3328 = vmatpush.msra.mxu1 %v5415_v57  ;;  %v1929_v8 = vld [vmem:[#allocation2 + $0x1f0] sm:$0xff]  ;;  %v1978_v20 = vld [vmem:[#allocation2 + $0x378] sm:$0xff]  ;;  %v5479_v25 = vld [vmem:[#allocation2 + $0x80] sm:$0xff] }
 0x16c   :  { %2147 = vmatpush.msra.mxu0 %v1874_v15  ;;  %3314 = vmatpush.msra.mxu3 %v1874_v15  ;;  %v1928_v4 = vld [vmem:[#allocation2 + $0x1e8] sm:$0xff]  ;;  %v1962_v3 = vld [vmem:[#allocation2 + $0x2f8] sm:$0xff]  ;;  %v1977_v34 = vld [vmem:[#allocation2 + $0x370] sm:$0xff] }
 0x16d   :  { %3346 = vmatpush.msra.mxu2 %v5419_v47  ;;  %3329 = vmatpush.msra.mxu1 %v5421_v16  ;;  %v1961_v1 = vld [vmem:[#allocation2 + $0x2f0] sm:$0xff]  ;;  %v1927_v21 = vld [vmem:[#allocation2 + $0x1e0] sm:$0xff]  ;;  %v1976_v58 = vld [vmem:[#allocation2 + $0x368] sm:$0xff] }
 0x16e   :  { %2148 = vmatpush.msra.mxu0 %v1873_v11  ;;  %3315 = vmatpush.msra.mxu3 %v1873_v11  ;;  %v1747_v44 = vld [vmem:[%s6263_s3 + $0x1c0] sm:$0xff]  ;;  %v1757_v12 = vld [vmem:[%s6263_s3 + $0x210] sm:$0xff]  ;;  %v1758_v5 = vld [vmem:[%s6263_s3 + $0x218] sm:$0xff] }
 0x16f   :  { %3347 = vmatpush.msra.mxu2 %v5425_v48  ;;  %3330 = vmatpush.msra.mxu1 %v5427_v17  ;;  %v1975_v32 = vld [vmem:[#allocation2 + $0x360] sm:$0xff]  ;;  %v1958_v15 = vld [vmem:[#allocation2 + $0x2d8] sm:$0xff]  ;;  %v1768_v11 = vld [vmem:[%s6263_s3 + $0x268] sm:$0xff] }
 0x170   :  { %2149 = vmatpush.msra.mxu0 %v1872_v23  ;;  %3316 = vmatpush.msra.mxu3 %v1872_v23  ;;  %v1759_v50 = vld [vmem:[%s6263_s3 + $0x220] sm:$0xff]  ;;  %v2046_v23 = vld [vmem:[%s6264_s4 + $0x18] sm:$0xff] }
 0x171   :  { %3348 = vmatpush.msra.mxu2 %v5431_v26  ;;  %3331 = vmatpush.msra.mxu1 %v5433_v2  ;;  %v1959_v29 = vld [vmem:[#allocation2 + $0x2e0] sm:$0xff] }
 0x172   :  { %2150 = vmatpush.msra.mxu0 %v1871_v41  ;;  %3317 = vmatpush.msra.mxu3 %v1871_v41  ;;  %v1770_v41 = vld [vmem:[%s6263_s3 + $0x278] sm:$0xff] }
 0x173   :  { %3349 = vmatpush.msra.mxu2 %v5437_v10  ;;  %3332 = vmatpush.msra.mxu1 %v5439_v45 }
 0x174   :  { %2151 = vmatpush.msra.mxu0 %v1870_v35  ;;  %3318 = vmatpush.msra.mxu3 %v1870_v35  ;;  %v1957_v35 = vld [vmem:[#allocation2 + $0x2d0] sm:$0xff] }
 0x175   :  { %3350 = vmatpush.msra.mxu2 %v5443_v39  ;;  %3333 = vmatpush.msra.mxu1 %v5445_v27 }
 0x176   :  { %2152 = vmatpush.msra.mxu0 %v1869_v7  ;;  %3319 = vmatpush.msra.mxu3 %v1869_v7  ;;  %v2047_v7 = vld [vmem:[%s6264_s4 + $0x20] sm:$0xff] }
 0x177   :  { %3351 = vmatpush.msra.mxu2 %v5449_v9  ;;  %3334 = vmatpush.msra.mxu1 %v5451_v31 }
 0x178   :  { %2153 = vmatpush.msra.mxu0 %v1868_v51  ;;  %3320 = vmatpush.msra.mxu3 %v1868_v51  ;;  %v1779_v51 = vld [vmem:[%s6263_s3 + $0x2c0] sm:$0xff] }
 0x179   :  { %3352 = vmatpush.msra.mxu2 %v5455_v0  ;;  %3335 = vmatpush.msra.mxu1 %v5457_v33 }
 0x17a   :  { %2154 = vmatpush.msra.mxu0 %v1867_v59  ;;  %3321 = vmatpush.msra.mxu3 %v1867_v59  ;;  %v1972_v59 = vld [vmem:[#allocation2 + $0x348] sm:$0xff] }
 0x17b   :  { %2155 = vmatmul.f32.vlgmr.msra.gmra.mxu0 %v1691_v18  ;;  %2167 = vmatmul.f32.vlgmr.msra.gmra.mxu3 %v1735_v38  ;;  %v2050_v18 = vld [vmem:[%s6264_s4 + $0x38] sm:$0xff]  ;;  %v1956_v38 = vld [vmem:[#allocation2 + $0x2c8] sm:$0xff] }
 0x17c   :  { %2334 = vmatpush.msrb.mxu3 %v1930_v62  ;;  %2204 = vmatpush.msrb.mxu0 %v5381_v14  ;;  %v1960_v14 = vld [vmem:[#allocation2 + $0x2e8] sm:$0xff]  ;;  %v1781_v62 = vld [vmem:[%s6263_s3 + $0x2d0] sm:$0xff] }
 0x17d   :  { %3353 = vmatpush.msra.mxu2 %v5469_v46  ;;  %3336 = vmatpush.msra.mxu1 %v5471_v37 }
 0x17e   :  { %2205 = vmatpush.msrb.mxu0 %v5385_v42  ;;  %2297 = vmatmul.f32.vlgmr.msra.gmra.mxu2 %v1737_v53  ;;  %v1713_v42 = vld [vmem:[%s6263_s3 + $0xb0] sm:$0xff]  ;;  %v1971_v53 = vld [vmem:[#allocation2 + $0x340] sm:$0xff] }
 0x17f   :  { %2335 = vmatpush.msrb.mxu3 %v1929_v8  ;;  %2529 = vmatpush.msrb.mxu2 %v1978_v20  ;;  %v1955_v8 = vld [vmem:[#allocation2 + $0x2c0] sm:$0xff]  ;;  %v1780_v20 = vld [vmem:[%s6263_s3 + $0x2c8] sm:$0xff] }
 0x180   :  { %2206 = vmatpush.msrb.mxu0 %v5391_v49  ;;  %3337 = vmatpush.msra.mxu1 %v5479_v25  ;;  %v1926_v49 = vld [vmem:[#allocation2 + $0x1d8] sm:$0xff] }
 0x181   :  { %2232 = vmatmul.f32.vlgmr.msra.gmra.mxu1 %v1736_v63  ;;  %2336 = vmatpush.msrb.mxu3 %v1928_v4  ;;  %v1790_v63 = vld [vmem:[%s6263_s3 + $0x318] sm:$0xff] }
 0x182   :  { %2207 = vmatpush.msrb.mxu0 %v5397_v40  ;;  %2464 = vmatpush.msrb.mxu1 %v1962_v3  ;;  %v2045_v40 = vld [vmem:[%s6264_s4 + $0x10] sm:$0xff]  ;;  %v1970_v4 = vld [vmem:[#allocation2 + $0x338] sm:$0xff]  ;;  %v2052_v3 = vld [vmem:[%s6264_s4 + $0x48] sm:$0xff] }
 0x183   :  { %2158 = vmatmul.f32.gmra.mxu0 %v1702_v6  ;;  %2170 = vmatmul.f32.gmra.mxu3 %v1746_v43  ;;  %v1792_v6 = vld [vmem:[%s6263_s3 + $0x328] sm:$0xff] }
 0x184   :  { %2208 = vmatpush.msrb.mxu0 %v5403_v36  ;;  %2530 = vmatpush.msrb.mxu2 %v1977_v34  ;;  %v2044_v36 = vld [vmem:[%s6264_s4 + $0x8] sm:$0xff]  ;;  %v1969_v34 = vld [vmem:[#allocation2 + $0x330] sm:$0xff] }
 0x185   :  { %2465 = vmatpush.msrb.mxu1 %v1961_v1  ;;  %2061 = vperm.xlu0 %3365, %v2043_v13   ;;  %v1920_v43 = vld [vmem:[#allocation2 + $0x1a8] sm:$0xff]  ;;  %v1791_v1 = vld [vmem:[%s6263_s3 + $0x320] sm:$0xff]  ;;  %v1801_v13 = vld [vmem:[%s6263_s3 + $0x370] sm:$0xff] }
 0x186   :  { %2209 = vmatpush.msrb.mxu0 %v5409_v19  ;;  %2300 = vmatmul.f32.gmra.mxu2 %v1748_v55  ;;  %v1925_v19 = vld [vmem:[#allocation2 + $0x1d0] sm:$0xff] }
 0x187   :  { %2337 = vmatpush.msrb.mxu3 %v1927_v21  ;;  %2531 = vmatpush.msrb.mxu2 %v1976_v58  ;;  %v2053_v55 = vld [vmem:[%s6264_s4 + $0x50] sm:$0xff]  ;;  %v1968_v21 = vld [vmem:[#allocation2 + $0x328] sm:$0xff]  ;;  %v1918_v58 = vld [vmem:[#allocation2 + $0x198] sm:$0xff] }
 0x188   :  { %2210 = vmatpush.msrb.mxu0 %v5415_v57  ;;  %3366 = vset.pattern.permute.xlu1 %v3406_v30  ;;  %v1974_v57 = vld [vmem:[#allocation2 + $0x358] sm:$0xff] }
 0x189   :  { %2235 = vmatmul.f32.gmra.mxu1 %v1747_v44  ;;  %2338 = vmatpush.msrb.mxu3 %v1926_v49  ;;  %v1967_v44 = vld [vmem:[#allocation2 + $0x320] sm:$0xff]  ;;  %v1812_v49 = vld [vmem:[%s6263_s3 + $0x3c8] sm:$0xff] }
 0x18a   :  { %2211 = vmatpush.msrb.mxu0 %v5421_v16  ;;  %2466 = vmatpush.msrb.mxu1 %v1960_v14  ;;  %v1724_v16 = vld [vmem:[%s6263_s3 + $0x108] sm:$0xff]  ;;  %v2051_v14 = vld [vmem:[%s6264_s4 + $0x40] sm:$0xff] }
 0x18b   :  { %2161 = vmatmul.f32.gmra.mxu0 %v1713_v42  ;;  %2173 = vmatmul.f32.gmra.mxu3 %v1757_v12  ;;  %v1802_v42 = vld [vmem:[%s6263_s3 + $0x378] sm:$0xff]  ;;  %v1917_v12 = vld [vmem:[#allocation2 + $0x190] sm:$0xff] }
 0x18c   :  { %2212 = vmatpush.msrb.mxu0 %v5427_v17  ;;  %2532 = vmatpush.msrb.mxu2 %v1975_v32  ;;  %v1924_v17 = vld [vmem:[#allocation2 + $0x1c8] sm:$0xff]  ;;  %v1725_v32 = vld [vmem:[%s6263_s3 + $0x110] sm:$0xff] }
 0x18d   :  { %2071 = vperm.xlu1 %3366, %v2045_v40   ;;  %2066 = vperm.xlu0 %3365, %v2044_v36   ;;  %v1950_v40 = vld [vmem:[#allocation2 + $0x298] sm:$0xff]  ;;  %v1965_v36 = vld [vmem:[#allocation2 + $0x310] sm:$0xff] }
 0x18e   :  { %2213 = vmatpush.msrb.mxu0 %v5433_v2  ;;  %2303 = vmatmul.f32.gmra.mxu2 %v1759_v50  ;;  %v1973_v2 = vld [vmem:[#allocation2 + $0x350] sm:$0xff]  ;;  %v1814_v50 = vld [vmem:[%s6263_s3 + $0x3d8] sm:$0xff] }
 0x18f   :  { %2467 = vmatpush.msrb.mxu1 %v1959_v29  ;;  %2339 = vmatpush.msrb.mxu3 %v1925_v19  ;;  %v1949_v29 = vld [vmem:[#allocation2 + $0x290] sm:$0xff] }
 0x190   :  { %2214 = vmatpush.msrb.mxu0 %v5439_v45  ;;  %2533 = vmatpush.msrb.mxu2 %v1974_v57  ;;  %v2049_v45 = vld [vmem:[%s6264_s4 + $0x30] sm:$0xff]  ;;  %v1823_v57 = vld [vmem:[%s6263_s3 + $0x420] sm:$0xff] }
 0x191   :  { %2238 = vmatmul.f32.gmra.mxu1 %v1758_v5  ;;  %2340 = vmatpush.msrb.mxu3 %v1924_v17  ;;  %v1813_v19 = vld [vmem:[%s6263_s3 + $0x3d0] sm:$0xff]  ;;  %v1915_v5 = vld [vmem:[#allocation2 + $0x180] sm:$0xff] }
 0x192   :  { %2215 = vmatpush.msrb.mxu0 %v5445_v27  ;;  %2468 = vmatpush.msrb.mxu1 %v1958_v15  ;;  %v1769_v27 = vld [vmem:[%s6263_s3 + $0x270] sm:$0xff]  ;;  %v1963_v17 = vld [vmem:[#allocation2 + $0x300] sm:$0xff] }
 0x193   :  { %2164 = vmatmul.f32.gmra.mxu0 %v1724_v16  ;;  %2176 = vmatmul.f32.gmra.mxu3 %v1768_v11  ;;  %v1693_v15 = vld [vmem:[%s6263_s3 + $0x10] sm:$0xff]  ;;  %v1948_v16 = vld [vmem:[#allocation2 + $0x288] sm:$0xff] }
 0x194   :  { %2216 = vmatpush.msrb.mxu0 %v5451_v31  ;;  %2534 = vmatpush.msrb.mxu2 %v1973_v2  ;;  %v1923_v31 = vld [vmem:[#allocation2 + $0x1c0] sm:$0xff]  ;;  %v1825_v11 = vld [vmem:[%s6263_s3 + $0x430] sm:$0xff]  ;;  %v2054_v2 = vld [vmem:[%s6264_s4 + $0x58] sm:$0xff] }
 0x195   :  { %2076 = vperm.xlu1 %3366, %v2046_v23   ;;  %2091 = vperm.xlu0 %3365, %v2049_v45   ;;  %v1994_v23 = vld [vmem:[#allocation2 + $0x3f8] sm:$0xff]  ;;  %v1824_v45 = vld [vmem:[%s6263_s3 + $0x428] sm:$0xff] }
 0x196   :  { %2217 = vmatpush.msrb.mxu0 %v5457_v33  ;;  %2306 = vmatmul.f32.gmra.mxu2 %v1770_v41  ;;  %v1692_v33 = vld [vmem:[%s6263_s3 + $0x8] sm:$0xff] }
 0x197   :  { %3367 = vset.pattern.permute.xlu2 %v3406_v30  ;;  %2469 = vmatpush.msrb.mxu1 %v1957_v35  ;;  %v1952_v30 = vld [vmem:[#allocation2 + $0x2a8] sm:$0xff]  ;;  %v2042_v35 = vld [vmem:[#allocation2 + $0x578] sm:$0xff] }
 0x198   :  { %2218 = vmatpush.msrb.mxu0 %v5471_v37  ;;  %2081 = vperm.xlu2 %3367, %v2047_v7   ;;  %v1922_v37 = vld [vmem:[#allocation2 + $0x1b8] sm:$0xff]  ;;  %v1944_v41 = vld [vmem:[#allocation2 + $0x268] sm:$0xff] }
 0x199   :  { %2241 = vmatmul.f32.gmra.mxu1 %v1769_v27  ;;  %2341 = vmatpush.msrb.mxu3 %v1923_v31  ;;  %v1943_v27 = vld [vmem:[#allocation2 + $0x260] sm:$0xff]  ;;  %v1834_v7 = vld [vmem:[%s6263_s3 + $0x478] sm:$0xff]  ;;  %v1704_v31 = vld [vmem:[%s6263_s3 + $0x68] sm:$0xff] }
 0x19a   :  { %2219 = vmatpush.msrb.mxu0 %v5479_v25  ;;  %2535 = vmatpush.msrb.mxu2 %v1972_v59  ;;  %v2048_v25 = vld [vmem:[%s6264_s4 + $0x28] sm:$0xff]  ;;  %v1941_v59 = vld [vmem:[#allocation2 + $0x250] sm:$0xff] }
 0x19b   :  { %2179 = vmatmul.f32.gmra.mxu3 %v1779_v51  ;;  %2220 = vmatmul.f32.vlgmr.msrb.gmra.mxu0 %v1692_v33  ;;  %v1942_v51 = vld [vmem:[#allocation2 + $0x258] sm:$0xff]  ;;  %v1836_v33 = vld [vmem:[%s6263_s3 + $0x488] sm:$0xff] }
 0x19c   :  { %2269 = vmatpush.msra.mxu0 %v5376_v24  ;;  %2470 = vmatpush.msrb.mxu1 %v1956_v38  ;;  %v1921_v24 = vld [vmem:[#allocation2 + $0x1b0] sm:$0xff]  ;;  %v2058_v38 = vld [vmem:[%s6264_s4 + $0x78] sm:$0xff] }
 0x19d   :  { %2096 = vperm.xlu1 %3366, %v2050_v18   ;;  %2342 = vmatpush.msrb.mxu3 %v1922_v37  ;;  %v1993_v18 = vld [vmem:[#allocation2 + $0x3f0] sm:$0xff]  ;;  %v1940_v37 = vld [vmem:[#allocation2 + $0x248] sm:$0xff] }
 0x19e   :  { %2270 = vmatpush.msra.mxu0 %v5378_v52  ;;  %2309 = vmatmul.f32.gmra.mxu2 %v1781_v62  ;;  %v1703_v52 = vld [vmem:[%s6263_s3 + $0x60] sm:$0xff]  ;;  %v2026_v62 = vld [vmem:[#allocation2 + $0x4f8] sm:$0xff] }
 0x19f   :  { %2536 = vmatpush.msrb.mxu2 %v1971_v53  ;;  %2471 = vmatpush.msrb.mxu1 %v1955_v8  ;;  %v1835_v53 = vld [vmem:[%s6263_s3 + $0x480] sm:$0xff]  ;;  %v2041_v8 = vld [vmem:[#allocation2 + $0x570] sm:$0xff] }
 0x1a0   :  { %2271 = vmatpush.msra.mxu0 %v5383_v28  ;;  %2086 = vperm.xlu2 %3367, %v2048_v25   ;;  %v1954_v28 = vld [vmem:[#allocation2 + $0x2b8] sm:$0xff]  ;;  %v1845_v25 = vld [vmem:[%s6263_s3 + $0x4d0] sm:$0xff] }
 0x1a1   :  { %2244 = vmatmul.f32.gmra.mxu1 %v1780_v20  ;;  %2343 = vmatpush.msrb.mxu3 %v1921_v24  ;;  %v1939_v20 = vld [vmem:[#allocation2 + $0x240] sm:$0xff] }
 0x1a2   :  { %2272 = vmatpush.msra.mxu0 %v5389_v56  ;;  %2537 = vmatpush.msrb.mxu2 %v1970_v4  ;;  %v1953_v56 = vld [vmem:[#allocation2 + $0x2b0] sm:$0xff]  ;;  %v1715_v24 = vld [vmem:[%s6263_s3 + $0xc0] sm:$0xff] }
 0x1a3   :  { %2182 = vmatmul.f32.gmra.mxu3 %v1790_v63  ;;  %2223 = vmatmul.f32.gmra.mxu0 %v1703_v52  ;;  %v1938_v63 = vld [vmem:[#allocation2 + $0x238] sm:$0xff]  ;;  %v1847_v52 = vld [vmem:[%s6263_s3 + $0x4e0] sm:$0xff]  ;;  %v1937_v4 = vld [vmem:[#allocation2 + $0x230] sm:$0xff] }
 0x1a4   :  { %2273 = vmatpush.msra.mxu0 %v5395_v61  ;;  %2106 = vperm.xlu0 %3365, %v2052_v3   ;;  %v1919_v61 = vld [vmem:[#allocation2 + $0x1a0] sm:$0xff]  ;;  %v1992_v3 = vld [vmem:[#allocation2 + $0x3e8] sm:$0xff] }
 0x1a5   :  { %2472 = vmatpush.msrb.mxu1 %v1954_v28  ;;  %2344 = vmatpush.msrb.mxu3 %v1920_v43  ;;  %v2025_v28 = vld [vmem:[#allocation2 + $0x4f0] sm:$0xff]  ;;  %v1846_v43 = vld [vmem:[%s6263_s3 + $0x4d8] sm:$0xff] }
 0x1a6   :  { %2274 = vmatpush.msra.mxu0 %v5401_v60  ;;  %2312 = vmatmul.f32.gmra.mxu2 %v1792_v6  ;;  %v1714_v60 = vld [vmem:[%s6263_s3 + $0xb8] sm:$0xff]  ;;  %v1936_v6 = vld [vmem:[#allocation2 + $0x228] sm:$0xff] }
 0x1a7   :  { %2538 = vmatpush.msrb.mxu2 %v1969_v34  ;;  %2473 = vmatpush.msrb.mxu1 %v1953_v56  ;;  %v2040_v34 = vld [vmem:[#allocation2 + $0x568] sm:$0xff]  ;;  %v1935_v56 = vld [vmem:[#allocation2 + $0x220] sm:$0xff] }
 0x1a8   :  { %2275 = vmatpush.msra.mxu0 %v5407_v54  ;;  %2111 = vperm.xlu1 %3366, %v2053_v55   ;;  %v1803_v54 = vld [vmem:[%s6263_s3 + $0x380] sm:$0xff]  ;;  %v1726_v55 = vld [vmem:[%s6263_s3 + $0x118] sm:$0xff] }
 0x1a9   :  { %2247 = vmatmul.f32.gmra.mxu1 %v1791_v1  ;;  %2345 = vmatpush.msrb.mxu3 %v1919_v61  ;;  %v1856_v1 = vld [vmem:[%s6263_s3 + $0x528] sm:$0xff]  ;;  %v1934_v61 = vld [vmem:[#allocation2 + $0x218] sm:$0xff] }
 0x1aa   :  { %2276 = vmatpush.msra.mxu0 %v5413_v22  ;;  %2539 = vmatpush.msrb.mxu2 %v1968_v21  ;;  %v1951_v22 = vld [vmem:[#allocation2 + $0x2a0] sm:$0xff] }
 0x1ab   :  { %2185 = vmatmul.f32.gmra.mxu3 %v1801_v13  ;;  %2226 = vmatmul.f32.gmra.mxu0 %v1714_v60  ;;  %v1858_v13 = vld [vmem:[%s6263_s3 + $0x538] sm:$0xff]  ;;  %v1933_v60 = vld [vmem:[#allocation2 + $0x210] sm:$0xff]  ;;  %v1991_v21 = vld [vmem:[#allocation2 + $0x3e0] sm:$0xff] }
 0x1ac   :  { %2277 = vmatpush.msra.mxu0 %v5419_v47  ;;  %2474 = vmatpush.msrb.mxu1 %v1952_v30  ;;  %v1966_v47 = vld [vmem:[#allocation2 + $0x318] sm:$0xff]  ;;  %v2057_v30 = vld [vmem:[%s6264_s4 + $0x70] sm:$0xff] }
 0x1ad   :  { %2346 = vmatpush.msrb.mxu3 %v1918_v58  ;;  %2540 = vmatpush.msrb.mxu2 %v1967_v44  ;;  %v2024_v58 = vld [vmem:[#allocation2 + $0x4e8] sm:$0xff]  ;;  %v1857_v44 = vld [vmem:[%s6263_s3 + $0x530] sm:$0xff] }
 0x1ae   :  { %2278 = vmatpush.msra.mxu0 %v5425_v48  ;;  %2315 = vmatmul.f32.gmra.mxu2 %v1803_v54  ;;  %v2055_v48 = vld [vmem:[%s6264_s4 + $0x60] sm:$0xff]  ;;  %v1932_v54 = vld [vmem:[#allocation2 + $0x208] sm:$0xff] }
 0x1af   :  { %2101 = vperm.xlu2 %3367, %v2051_v14   ;;  %2475 = vmatpush.msrb.mxu1 %v1951_v22  ;;  %v1931_v14 = vld [vmem:[#allocation2 + $0x200] sm:$0xff]  ;;  %v1694_v22 = vld [vmem:[%s6263_s3 + $0x18] sm:$0xff] }
 0x1b0   :  { %2279 = vmatpush.msra.mxu0 %v5431_v26  ;;  %2347 = vmatpush.msrb.mxu3 %v1917_v12  ;;  %v1916_v26 = vld [vmem:[#allocation2 + $0x188] sm:$0xff]  ;;  %v2039_v12 = vld [vmem:[#allocation2 + $0x560] sm:$0xff] }
 0x1b1   :  { %2250 = vmatmul.f32.gmra.mxu1 %v1802_v42  ;;  %2541 = vmatpush.msrb.mxu2 %v1966_v47  ;;  %v1695_v42 = vld [vmem:[%s6263_s3 + $0x20] sm:$0xff]  ;;  %v2010_v47 = vld [vmem:[#allocation2 + $0x478] sm:$0xff] }
 0x1b2   :  { %2280 = vmatpush.msra.mxu0 %v5437_v10  ;;  %2121 = vperm.xlu0 %3365, %v2055_v48   ;;  %v2056_v10 = vld [vmem:[%s6264_s4 + $0x68] sm:$0xff]  ;;  %v1990_v48 = vld [vmem:[#allocation2 + $0x3d8] sm:$0xff] }
 0x1b3   :  { %2188 = vmatmul.f32.gmra.mxu3 %v1812_v49  ;;  %2229 = vmatmul.f32.gmra.mxu0 %v1725_v32  ;;  %v1697_v49 = vld [vmem:[%s6263_s3 + $0x30] sm:$0xff] }
 0x1b4   :  { %2281 = vmatpush.msra.mxu0 %v5443_v39  ;;  %2476 = vmatpush.msrb.mxu1 %v1950_v40  ;;  %v1964_v39 = vld [vmem:[#allocation2 + $0x308] sm:$0xff]  ;;  %v2009_v32 = vld [vmem:[#allocation2 + $0x470] sm:$0xff]  ;;  %v2023_v40 = vld [vmem:[#allocation2 + $0x4e0] sm:$0xff] }
 0x1b5   :  { %2348 = vmatpush.msrb.mxu3 %v1916_v26  ;;  %2542 = vmatpush.msrb.mxu2 %v1965_v36  ;;  %v2008_v26 = vld [vmem:[#allocation2 + $0x468] sm:$0xff]  ;;  %v2007_v36 = vld [vmem:[#allocation2 + $0x460] sm:$0xff] }
 0x1b6   :  { %2282 = vmatpush.msra.mxu0 %v5449_v9  ;;  %2318 = vmatmul.f32.gmra.mxu2 %v1814_v50  ;;  %v1946_v9 = vld [vmem:[#allocation2 + $0x278] sm:$0xff]  ;;  %v1696_v50 = vld [vmem:[%s6263_s3 + $0x28] sm:$0xff] }
 0x1b7   :  { %2477 = vmatpush.msrb.mxu1 %v1949_v29  ;;  %2126 = vperm.xlu1 %3366, %v2056_v10   ;;  %v1705_v29 = vld [vmem:[%s6263_s3 + $0x70] sm:$0xff]  ;;  %v1706_v10 = vld [vmem:[%s6263_s3 + $0x78] sm:$0xff] }
 0x1b8   :  { %2283 = vmatpush.msra.mxu0 %v5455_v0  ;;  %2349 = vmatpush.msrb.mxu3 %v1915_v5  ;;  %v1945_v0 = vld [vmem:[#allocation2 + $0x270] sm:$0xff]  ;;  %v1708_v5 = vld [vmem:[%s6263_s3 + $0x88] sm:$0xff] }
 0x1b9   :  { %2253 = vmatmul.f32.gmra.mxu1 %v1813_v19  ;;  %2543 = vmatpush.msrb.mxu2 %v1964_v39  ;;  %v2038_v19 = vld [vmem:[#allocation2 + $0x558] sm:$0xff]  ;;  %v1989_v39 = vld [vmem:[#allocation2 + $0x3d0] sm:$0xff] }
 0x1ba   :  { %2284 = vmatpush.msra.mxu0 %v5469_v46  ;;  %2478 = vmatpush.msrb.mxu1 %v1948_v16  ;;  %v1947_v46 = vld [vmem:[#allocation2 + $0x280] sm:$0xff]  ;;  %v1716_v16 = vld [vmem:[%s6263_s3 + $0xc8] sm:$0xff] }
 0x1bb   :  { %2191 = vmatmul.f32.gmra.mxu3 %v1823_v57  ;;  %2285 = vmatmul.f32.vlgmr.msra.gmra.mxu0 %v1693_v15  ;;  %v2006_v57 = vld [vmem:[#allocation2 + $0x458] sm:$0xff] }
 0x1bc   :  { %2399 = vmatpush.msrb.mxu0 %v1946_v9  ;;  %2544 = vmatpush.msrb.mxu2 %v1963_v17  ;;  %v2022_v15 = vld [vmem:[#allocation2 + $0x4d8] sm:$0xff]  ;;  %v1707_v9 = vld [vmem:[%s6263_s3 + $0x80] sm:$0xff] }
 0x1bd   :  { %2594 = vmatpush.msra.mxu3 %v1994_v23  ;;  %2116 = vperm.xlu2 %3367, %v2054_v2   ;;  %v1719_v17 = vld [vmem:[%s6263_s3 + $0xe0] sm:$0xff]  ;;  %v1988_v23 = vld [vmem:[#allocation2 + $0x3c8] sm:$0xff]  ;;  %v2005_v2 = vld [vmem:[#allocation2 + $0x450] sm:$0xff] }
 0x1be   :  { %2321 = vmatmul.f32.gmra.mxu2 %v1825_v11  ;;  %2400 = vmatpush.msrb.mxu0 %v1945_v0  ;;  %v1717_v11 = vld [vmem:[%s6263_s3 + $0xd0] sm:$0xff] }
 0x1bf   :  { %2479 = vmatpush.msrb.mxu1 %v1947_v46  ;;  %2789 = vmatpush.msra.mxu2 %v2042_v35  ;;  %v2037_v0 = vld [vmem:[#allocation2 + $0x550] sm:$0xff]  ;;  %v1718_v46 = vld [vmem:[%s6263_s3 + $0xd8] sm:$0xff]  ;;  %v1728_v35 = vld [vmem:[%s6263_s3 + $0x128] sm:$0xff] }
 0x1c0   :  { %2401 = vmatpush.msrb.mxu0 %v1944_v41  ;;  %2595 = vmatpush.msra.mxu3 %v1993_v18  ;;  %v2021_v41 = vld [vmem:[#allocation2 + $0x4d0] sm:$0xff] }
 0x1c1   :  { %2256 = vmatmul.f32.gmra.mxu1 %v1824_v45  ;;  %2136 = vperm.xlu0 %3365, %v2058_v38   ;;  %v1727_v45 = vld [vmem:[%s6263_s3 + $0x120] sm:$0xff]  ;;  %v1738_v38 = vld [vmem:[%s6263_s3 + $0x178] sm:$0xff] }
 0x1c2   :  { %2402 = vmatpush.msrb.mxu0 %v1943_v27  ;;  %2724 = vmatpush.msra.mxu1 %v2026_v62  ;;  %v2036_v27 = vld [vmem:[#allocation2 + $0x548] sm:$0xff]  ;;  %v1739_v62 = vld [vmem:[%s6263_s3 + $0x180] sm:$0xff] }
 0x1c3   :  { %2194 = vmatmul.f32.gmra.mxu3 %v1834_v7  ;;  %2288 = vmatmul.f32.gmra.mxu0 %v1704_v31  ;;  %v1730_v7 = vld [vmem:[%s6263_s3 + $0x138] sm:$0xff]  ;;  %v1987_v31 = vld [vmem:[#allocation2 + $0x3c0] sm:$0xff] }
 0x1c4   :  { %2403 = vmatpush.msrb.mxu0 %v1942_v51  ;;  %2790 = vmatpush.msra.mxu2 %v2041_v8  ;;  %v2004_v51 = vld [vmem:[#allocation2 + $0x448] sm:$0xff] }
 0x1c5   :  { %2596 = vmatpush.msra.mxu3 %v1992_v3  ;;  %2725 = vmatpush.msra.mxu1 %v2025_v28  ;;  %v1740_v3 = vld [vmem:[%s6263_s3 + $0x188] sm:$0xff] }
 0x1c6   :  { %2324 = vmatmul.f32.gmra.mxu2 %v1836_v33  ;;  %2404 = vmatpush.msrb.mxu0 %v1941_v59  ;;  %v2020_v33 = vld [vmem:[#allocation2 + $0x4c8] sm:$0xff]  ;;  %v1729_v59 = vld [vmem:[%s6263_s3 + $0x130] sm:$0xff] }
 0x1c7   :  { %2791 = vmatpush.msra.mxu2 %v2040_v34  ;;  %2597 = vmatpush.msra.mxu3 %v1991_v21  ;;  %v1752_v21 = vld [vmem:[%s6263_s3 + $0x1e8] sm:$0xff] }
 0x1c8   :  { %2405 = vmatpush.msrb.mxu0 %v1940_v37  ;;  %2131 = vperm.xlu2 %3367, %v2057_v30   ;;  %v1985_v30 = vld [vmem:[#allocation2 + $0x3b0] sm:$0xff] }
 0x1c9   :  { %2259 = vmatmul.f32.gmra.mxu1 %v1835_v53  ;;  %2792 = vmatpush.msra.mxu2 %v2039_v12  ;;  %v2035_v53 = vld [vmem:[#allocation2 + $0x540] sm:$0xff] }
 0x1ca   :  { %2406 = vmatpush.msrb.mxu0 %v1939_v20  ;;  %2726 = vmatpush.msra.mxu1 %v2024_v58  ;;  %v1741_v20 = vld [vmem:[%s6263_s3 + $0x190] sm:$0xff]  ;;  %v2002_v58 = vld [vmem:[#allocation2 + $0x438] sm:$0xff] }
 0x1cb   :  { %2197 = vmatmul.f32.gmra.mxu3 %v1845_v25  ;;  %2291 = vmatmul.f32.gmra.mxu0 %v1715_v24  ;;  %v1986_v25 = vld [vmem:[#allocation2 + $0x3b8] sm:$0xff]  ;;  %v2003_v24 = vld [vmem:[#allocation2 + $0x440] sm:$0xff] }
 0x1cc   :  { %2407 = vmatpush.msrb.mxu0 %v1938_v63  ;;  %2598 = vmatpush.msra.mxu3 %v1990_v48  ;;  %v2019_v63 = vld [vmem:[#allocation2 + $0x4c0] sm:$0xff] }
 0x1cd   :  { %2727 = vmatpush.msra.mxu1 %v2023_v40  ;;  %2793 = vmatpush.msra.mxu2 %v2038_v19  ;;  %v2001_v19 = vld [vmem:[#allocation2 + $0x430] sm:$0xff] }
 0x1ce   :  { %2327 = vmatmul.f32.gmra.mxu2 %v1847_v52  ;;  %2408 = vmatpush.msrb.mxu0 %v1937_v4 }
 0x1cf   :  { %2599 = vmatpush.msra.mxu3 %v1989_v39  ;;  %2728 = vmatpush.msra.mxu1 %v2022_v15  ;;  %v2017_v39 = vld [vmem:[#allocation2 + $0x4b0] sm:$0xff] }
 0x1d0   :  { %2409 = vmatpush.msrb.mxu0 %v1936_v6  ;;  %2794 = vmatpush.msra.mxu2 %v2037_v0  ;;  %v1771_v0 = vld [vmem:[%s6263_s3 + $0x280] sm:$0xff] }
 0x1d1   :  { %2262 = vmatmul.f32.gmra.mxu1 %v1846_v43  ;;  %2600 = vmatpush.msra.mxu3 %v1988_v23  ;;  %v1749_v43 = vld [vmem:[%s6263_s3 + $0x1d0] sm:$0xff] }
 0x1d2   :  { %2410 = vmatpush.msrb.mxu0 %v1935_v56  ;;  %2729 = vmatpush.msra.mxu1 %v2021_v41  ;;  %v1750_v56 = vld [vmem:[%s6263_s3 + $0x1d8] sm:$0xff]  ;;  %v2032_v41 = vld [vmem:[#allocation2 + $0x528] sm:$0xff] }
 0x1d3   :  { %2200 = vmatmul.f32.gmra.mxu3 %v1856_v1  ;;  %2294 = vmatmul.f32.gmra.mxu0 %v1726_v55 }
 0x1d4   :  { %2411 = vmatpush.msrb.mxu0 %v1934_v61  ;;  %2795 = vmatpush.msra.mxu2 %v2036_v27  ;;  %v2034_v61 = vld [vmem:[#allocation2 + $0x538] sm:$0xff]  ;;  %v2000_v27 = vld [vmem:[#allocation2 + $0x428] sm:$0xff] }
 0x1d5   :  { %2601 = vmatpush.msra.mxu3 %v1987_v31  ;;  %2730 = vmatpush.msra.mxu1 %v2020_v33  ;;  %v2016_v31 = vld [vmem:[#allocation2 + $0x4a8] sm:$0xff] }
 0x1d6   :  { %2330 = vmatmul.f32.gmra.mxu2 %v1858_v13  ;;  %2412 = vmatpush.msrb.mxu0 %v1933_v60 }
 0x1d7   :  { %2796 = vmatpush.msra.mxu2 %v2035_v53  ;;  %2602 = vmatpush.msra.mxu3 %v1986_v25  ;;  %v1782_v53 = vld [vmem:[%s6263_s3 + $0x2d8] sm:$0xff] }
 0x1d8   :  { %2413 = vmatpush.msrb.mxu0 %v1932_v54  ;;  %2731 = vmatpush.msra.mxu1 %v2019_v63 }
 0x1d9   :  { %2265 = vmatmul.f32.gmra.mxu1 %v1857_v44  ;;  %2797 = vmatpush.msra.mxu2 %v2034_v61  ;;  %v2018_v44 = vld [vmem:[#allocation2 + $0x4b8] sm:$0xff] }
 0x1da   :  { %2414 = vmatpush.msrb.mxu0 %v1931_v14  ;;  %2603 = vmatpush.msra.mxu3 %v1985_v30  ;;  %v1793_v30 = vld [vmem:[%s6263_s3 + $0x330] sm:$0xff] }
 0x1db   :  { %2350 = vmatmul.f32.vlgmr.msrb.gmra.mxu3 %v1694_v22  ;;  %2415 = vmatmul.f32.vlgmr.msrb.gmra.mxu0 %v1695_v42  ;;  %v1751_v42 = vld [vmem:[%s6263_s3 + $0x1e0] sm:$0xff] }
 0x1dc   :  { %2659 = vmatpush.msra.mxu0 %v2010_v47  ;;  %2732 = vmatpush.msra.mxu1 %v2018_v44 }
 0x1de   :  { %2545 = vmatmul.f32.vlgmr.msrb.gmra.mxu2 %v1697_v49  ;;  %2660 = vmatpush.msra.mxu0 %v2009_v32  ;;  %v1760_v49 = vld [vmem:[%s6263_s3 + $0x228] sm:$0xff]  ;;  %v1761_v32 = vld [vmem:[%s6263_s3 + $0x230] sm:$0xff] }
 0x1df   :  { %2733 = vmatpush.msra.mxu1 %v2017_v39  ;;  %v1805_v39 = vld [vmem:[%s6263_s3 + $0x390] sm:$0xff] }
 0x1e0   :  { %2661 = vmatpush.msra.mxu0 %v2008_v26  ;;  %v2033_v26 = vld [vmem:[#allocation2 + $0x530] sm:$0xff] }
 0x1e1   :  { %2480 = vmatmul.f32.vlgmr.msrb.gmra.mxu1 %v1696_v50  ;;  %2798 = vmatpush.msra.mxu2 %v2033_v26 }
 0x1e2   :  { %2662 = vmatpush.msra.mxu0 %v2007_v36  ;;  %2734 = vmatpush.msra.mxu1 %v2016_v31 }
 0x1e3   :  { %2353 = vmatmul.f32.gmra.mxu3 %v1705_v29  ;;  %2418 = vmatmul.f32.gmra.mxu0 %v1706_v10  ;;  %v1763_v29 = vld [vmem:[%s6263_s3 + $0x240] sm:$0xff]  ;;  %v1984_v10 = vld [vmem:[#allocation2 + $0x3a8] sm:$0xff] }
 0x1e4   :  { %2663 = vmatpush.msra.mxu0 %v2006_v57  ;;  %2604 = vmatpush.msra.mxu3 %v1984_v10 }
 0x1e5   :  { %2799 = vmatpush.msra.mxu2 %v2032_v41  ;;  %v2013_v41 = vld [vmem:[#allocation2 + $0x490] sm:$0xff] }
 0x1e6   :  { %2548 = vmatmul.f32.gmra.mxu2 %v1708_v5  ;;  %2664 = vmatpush.msra.mxu0 %v2005_v2 }
 0x1e8   :  { %2665 = vmatpush.msra.mxu0 %v2004_v51 }
 0x1e9   :  { %2483 = vmatmul.f32.gmra.mxu1 %v1707_v9  ;;  %v1762_v9 = vld [vmem:[%s6263_s3 + $0x238] sm:$0xff] }
 0x1ea   :  { %2666 = vmatpush.msra.mxu0 %v2003_v24  ;;  %v2031_v24 = vld [vmem:[#allocation2 + $0x520] sm:$0xff] }
 0x1eb   :  { %2356 = vmatmul.f32.gmra.mxu3 %v1716_v16  ;;  %2421 = vmatmul.f32.gmra.mxu0 %v1717_v11 }
 0x1ec   :  { %2667 = vmatpush.msra.mxu0 %v2002_v58  ;;  %2800 = vmatpush.msra.mxu2 %v2031_v24  ;;  %v1794_v58 = vld [vmem:[%s6263_s3 + $0x338] sm:$0xff]  ;;  %v1996_v24 = vld [vmem:[#allocation2 + $0x408] sm:$0xff] }
 0x1ee   :  { %2551 = vmatmul.f32.gmra.mxu2 %v1719_v17  ;;  %2668 = vmatpush.msra.mxu0 %v2001_v19  ;;  %v1772_v17 = vld [vmem:[%s6263_s3 + $0x288] sm:$0xff] }
 0x1f0   :  { %2669 = vmatpush.msra.mxu0 %v2000_v27  ;;  %v1806_v27 = vld [vmem:[%s6263_s3 + $0x398] sm:$0xff] }
 0x1f1   :  { %2486 = vmatmul.f32.gmra.mxu1 %v1718_v46 }
 0x1f2   :  { %v2082_v8 = vpop.permute.xlu2 %2081 }
 0x1f3   :  { %2359 = vmatmul.f32.gmra.mxu3 %v1727_v45  ;;  %2424 = vmatmul.f32.gmra.mxu0 %v1728_v35  ;;  %v1774_v45 = vld [vmem:[%s6263_s3 + $0x298] sm:$0xff]  ;;  %v1983_v35 = vld [vmem:[#allocation2 + $0x3a0] sm:$0xff] }
 0x1f4   :  { %2605 = vmatpush.msra.mxu3 %v1983_v35 }
 0x1f6   :  { %2554 = vmatmul.f32.gmra.mxu2 %v1730_v7 }
 0x1f7   :  { %v5752_v37 = vpop.permute.xlu0 %2061 }
 0x1f8   :  { %v5744_v18 = vpop.f32.mrf.mxu0 }
 0x1f9   :  { %2489 = vmatmul.f32.gmra.mxu1 %v1729_v59  ;;  %v1773_v59 = vld [vmem:[%s6263_s3 + $0x290] sm:$0xff] }
 0x1fa   :  { %v2087_v54 = vpop.permute.xlu2 %2086 }
 0x1fb   :  { %2362 = vmatmul.f32.gmra.mxu3 %v1738_v38  ;;  %2427 = vmatmul.f32.gmra.mxu0 %v1739_v62 }
 0x1fe   :  { %v2168_v52 = vpop.f32.mrf.mxu3  ;;  %v2233_v4 = vpop.f32.mrf.mxu1  ;;  %2557 = vmatmul.f32.gmra.mxu2 %v1741_v20 }
 0x1ff   :  { %v2169_v28 = vadd.f32 %v2168_v52, %v2082_v8  ;;  %v5765_v34 = vpop.permute.xlu1 %2071  ;;  %v5770_v13 = vpop.permute.xlu0 %2066  ;;  %v1783_v8 = vld [vmem:[%s6263_s3 + $0x2e0] sm:$0xff]  ;;  %v1785_v52 = vld [vmem:[%s6263_s3 + $0x2f0] sm:$0xff] }
 0x200   :  { %v5760_v6 = vpop.f32.mrf.mxu0 }
 0x201   :  { %v2234_v1 = vadd.f32 %v2233_v4, %v2169_v28  ;;  %v2298_v55 = vpop.f32.mrf.mxu2  ;;  %2492 = vmatmul.f32.gmra.mxu1 %v1740_v3  ;;  %v1982_v4 = vld [vmem:[#allocation2 + $0x398] sm:$0xff]  ;;  %v1999_v3 = vld [vmem:[#allocation2 + $0x420] sm:$0xff] }
 0x202   :  { %2606 = vmatpush.msra.mxu3 %v1982_v4  ;;  %2670 = vmatpush.msra.mxu0 %v1999_v3  ;;  %v2012_v4 = vld [vmem:[#allocation2 + $0x488] sm:$0xff] }
 0x203   :  { %v5772_v60 = vadd.f32 %v2298_v55, %v2234_v1  ;;  %2365 = vmatmul.f32.gmra.mxu3 %v1749_v43  ;;  %2430 = vmatmul.f32.gmra.mxu0 %v1750_v56  ;;  %v2015_v43 = vld [vmem:[#allocation2 + $0x4a0] sm:$0xff]  ;;  %v1784_v55 = vld [vmem:[%s6263_s3 + $0x2e8] sm:$0xff] }
 0x204   :  { %2735 = vmatpush.msra.mxu1 %v2015_v43  ;;  %v1817_v43 = vld [vmem:[%s6263_s3 + $0x3f0] sm:$0xff] }
 0x206   :  { %v2171_v14 = vpop.f32.mrf.mxu3  ;;  %v2236_v22 = vpop.f32.mrf.mxu1  ;;  %2560 = vmatmul.f32.gmra.mxu2 %v1752_v21 }
 0x207   :  { %v2172_v12 = vadd.f32 %v2171_v14, %v2087_v54  ;;  %v5788_v50 = vpop.permute.xlu1 %2076  ;;  %v2092_v5 = vpop.permute.xlu0 %2091  ;;  %v2030_v14 = vld [vmem:[#allocation2 + $0x518] sm:$0xff] }
 0x208   :  { %v5780_v47 = vpop.f32.mrf.mxu0  ;;  %2801 = vmatpush.msra.mxu2 %v2030_v14  ;;  %v1829_v14 = vld [vmem:[%s6263_s3 + $0x450] sm:$0xff] }
 0x209   :  { %v2237_v48 = vadd.f32 %v2236_v22, %v2172_v12  ;;  %v2301_v40 = vpop.f32.mrf.mxu2  ;;  %2495 = vmatmul.f32.gmra.mxu1 %v1751_v42  ;;  %v2102_v28 = vpop.permute.xlu2 %2101  ;;  %v1796_v42 = vld [vmem:[%s6263_s3 + $0x348] sm:$0xff]  ;;  %v1981_v12 = vld [vmem:[#allocation2 + $0x390] sm:$0xff] }
 0x20a   :  { %2607 = vmatpush.msra.mxu3 %v1981_v12  ;;  %v2011_v12 = vld [vmem:[#allocation2 + $0x480] sm:$0xff] }
 0x20b   :  { %v5790_v36 = vadd.f32 %v2301_v40, %v2237_v48  ;;  %2368 = vmatmul.f32.gmra.mxu3 %v1760_v49  ;;  %2433 = vmatmul.f32.gmra.mxu0 %v1761_v32  ;;  %v1998_v49 = vld [vmem:[#allocation2 + $0x418] sm:$0xff] }
 0x20c   :  { %2671 = vmatpush.msra.mxu0 %v1998_v49  ;;  %v2014_v48 = vld [vmem:[#allocation2 + $0x498] sm:$0xff] }
 0x20d   :  { %2736 = vmatpush.msra.mxu1 %v2014_v48 }
 0x20e   :  { %v2174_v57 = vpop.f32.mrf.mxu3  ;;  %v2239_v15 = vpop.f32.mrf.mxu1  ;;  %2563 = vmatmul.f32.gmra.mxu2 %v1763_v29  ;;  %v1795_v29 = vld [vmem:[%s6263_s3 + $0x340] sm:$0xff] }
 0x20f   :  { %v2175_v16 = vadd.f32 %v2174_v57, %v2092_v5  ;;  %v2097_v7 = vpop.permute.xlu1 %2096  ;;  %v1804_v5 = vld [vmem:[%s6263_s3 + $0x388] sm:$0xff]  ;;  %2737 = vmatpush.msra.mxu1 %v2013_v41 }
 0x210   :  { %v5798_v11 = vpop.f32.mrf.mxu0 }
 0x211   :  { %v2240_v23 = vadd.f32 %v2239_v15, %v2175_v16  ;;  %v2304_v2 = vpop.f32.mrf.mxu2  ;;  %2498 = vmatmul.f32.gmra.mxu1 %v1762_v9  ;;  %v2029_v9 = vld [vmem:[#allocation2 + $0x510] sm:$0xff] }
 0x212   :  { %2802 = vmatpush.msra.mxu2 %v2029_v9  ;;  %2738 = vmatpush.msra.mxu1 %v2012_v4  ;;  %v1840_v9 = vld [vmem:[%s6263_s3 + $0x4a8] sm:$0xff]  ;;  %v1859_v4 = vld [vmem:[%s6263_s3 + $0x540] sm:$0xff] }
 0x213   :  { %v5806_v46 = vadd.f32 %v2304_v2, %v2240_v23  ;;  %2371 = vmatmul.f32.gmra.mxu3 %v1771_v0  ;;  %2436 = vmatmul.f32.gmra.mxu0 %v1772_v17  ;;  %v1807_v0 = vld [vmem:[%s6263_s3 + $0x3a0] sm:$0xff]  ;;  %v1980_v17 = vld [vmem:[#allocation2 + $0x388] sm:$0xff]  ;;  %v1997_v23 = vld [vmem:[#allocation2 + $0x410] sm:$0xff] }
 0x214   :  { %2608 = vmatpush.msra.mxu3 %v1980_v17  ;;  %2672 = vmatpush.msra.mxu0 %v1997_v23 }
 0x215   :  { %2739 = vmatpush.msra.mxu1 %v2011_v12 }
 0x216   :  { %v2177_v51 = vpop.f32.mrf.mxu3  ;;  %v2242_v33 = vpop.f32.mrf.mxu1  ;;  %2566 = vmatmul.f32.gmra.mxu2 %v1774_v45  ;;  %2673 = vmatpush.msra.mxu0 %v1996_v24 }
 0x217   :  { %v2178_v38 = vadd.f32 %v2177_v51, %v2097_v7  ;;  %v2107_v32 = vpop.permute.xlu0 %2106  ;;  %v1815_v51 = vld [vmem:[%s6263_s3 + $0x3e0] sm:$0xff] }
 0x218   :  { %v5814_v62 = vpop.f32.mrf.mxu0 }
 0x219   :  { %v2243_v20 = vadd.f32 %v2242_v33, %v2178_v38  ;;  %v2307_v25 = vpop.f32.mrf.mxu2  ;;  %2501 = vmatmul.f32.gmra.mxu1 %v1773_v59  ;;  %v1816_v33 = vld [vmem:[%s6263_s3 + $0x3e8] sm:$0xff] }
 0x21a   :  { %v2112_v2 = vpop.permute.xlu1 %2111 }
 0x21b   :  { %v5822_v63 = vadd.f32 %v2307_v25, %v2243_v20  ;;  %2374 = vmatmul.f32.gmra.mxu3 %v1782_v53  ;;  %2439 = vmatmul.f32.gmra.mxu0 %v1783_v8  ;;  %v2028_v53 = vld [vmem:[#allocation2 + $0x508] sm:$0xff]  ;;  %v1818_v20 = vld [vmem:[%s6263_s3 + $0x3f8] sm:$0xff]  ;;  %v1979_v25 = vld [vmem:[#allocation2 + $0x380] sm:$0xff] }
 0x21c   :  { %2803 = vmatpush.msra.mxu2 %v2028_v53  ;;  %2609 = vmatpush.msra.mxu3 %v1979_v25  ;;  %v1850_v25 = vld [vmem:[%s6263_s3 + $0x4f8] sm:$0xff] }
 0x21e   :  { %v2180_v56 = vpop.f32.mrf.mxu3  ;;  %v2245_v1 = vpop.f32.mrf.mxu1  ;;  %2569 = vmatmul.f32.gmra.mxu2 %v1785_v52 }
 0x21f   :  { %v2181_v61 = vadd.f32 %v2180_v56, %v2102_v28  ;;  %v2117_v52 = vpop.permute.xlu2 %2116 }
 0x220   :  { %v5830_v21 = vpop.f32.mrf.mxu0 }
 0x221   :  { %v2246_v54 = vadd.f32 %v2245_v1, %v2181_v61  ;;  %v2310_v44 = vpop.f32.mrf.mxu2  ;;  %2504 = vmatmul.f32.gmra.mxu1 %v1784_v55  ;;  %v1826_v55 = vld [vmem:[%s6263_s3 + $0x438] sm:$0xff]  ;;  %v1827_v61 = vld [vmem:[%s6263_s3 + $0x440] sm:$0xff] }
 0x223   :  { %v5838_v22 = vadd.f32 %v2310_v44, %v2246_v54  ;;  %2377 = vmatmul.f32.gmra.mxu3 %v1793_v30  ;;  %2442 = vmatmul.f32.gmra.mxu0 %v1794_v58  ;;  %v2027_v54 = vld [vmem:[#allocation2 + $0x500] sm:$0xff] }
 0x224   :  { %2804 = vmatpush.msra.mxu2 %v2027_v54  ;;  %v2122_v49 = vpop.permute.xlu0 %2121  ;;  %v1861_v54 = vld [vmem:[%s6263_s3 + $0x550] sm:$0xff] }
 0x226   :  { %v2183_v40 = vpop.f32.mrf.mxu3  ;;  %v2248_v26 = vpop.f32.mrf.mxu1  ;;  %2572 = vmatmul.f32.gmra.mxu2 %v1796_v42  ;;  %v1995_v42 = vld [vmem:[#allocation2 + $0x400] sm:$0xff] }
 0x227   :  { %v2184_v10 = vadd.f32 %v2183_v40, %v2107_v32  ;;  %2674 = vmatpush.msra.mxu0 %v1995_v42  ;;  %v1828_v40 = vld [vmem:[%s6263_s3 + $0x448] sm:$0xff]  ;;  %v1698_v42 = vld [vmem:[%s6263_s3 + $0x38] sm:$0xff] }
 0x228   :  { %v5846_v19 = vpop.f32.mrf.mxu0 }
 0x229   :  { %v2249_v57 = vadd.f32 %v2248_v26, %v2184_v10  ;;  %v2313_v15 = vpop.f32.mrf.mxu2  ;;  %2507 = vmatmul.f32.gmra.mxu1 %v1795_v29  ;;  %v1837_v10 = vld [vmem:[%s6263_s3 + $0x490] sm:$0xff] }
 0x22b   :  { %v5854_v16 = vadd.f32 %v2313_v15, %v2249_v57  ;;  %2380 = vmatmul.f32.gmra.mxu3 %v1804_v5  ;;  %2445 = vmatmul.f32.gmra.mxu0 %v1805_v39  ;;  %v1838_v5 = vld [vmem:[%s6263_s3 + $0x498] sm:$0xff] }
 0x22e   :  { %v2186_v45 = vpop.f32.mrf.mxu3  ;;  %v2251_v35 = vpop.f32.mrf.mxu1  ;;  %2575 = vmatmul.f32.gmra.mxu2 %v1807_v0 }
 0x22f   :  { %v2187_v7 = vadd.f32 %v2186_v45, %v2112_v2  ;;  %v2127_v0 = vpop.permute.xlu1 %2126  ;;  %v1839_v2 = vld [vmem:[%s6263_s3 + $0x4a0] sm:$0xff] }
 0x230   :  { %v5862_v31 = vpop.f32.mrf.mxu0 }
 0x231   :  { %v2252_v59 = vadd.f32 %v2251_v35, %v2187_v7  ;;  %v2316_v38 = vpop.f32.mrf.mxu2  ;;  %2510 = vmatmul.f32.gmra.mxu1 %v1806_v27  ;;  %v1848_v35 = vld [vmem:[%s6263_s3 + $0x4e8] sm:$0xff]  ;;  %v1849_v27 = vld [vmem:[%s6263_s3 + $0x4f0] sm:$0xff] }
 0x233   :  { %v5870_v8 = vadd.f32 %v2316_v38, %v2252_v59  ;;  %2383 = vmatmul.f32.gmra.mxu3 %v1815_v51  ;;  %2448 = vmatmul.f32.gmra.mxu0 %v1816_v33  ;;  %v1851_v59 = vld [vmem:[%s6263_s3 + $0x500] sm:$0xff]  ;;  %v2132_v38 = vpop.permute.xlu2 %2131 }
 0x236   :  { %v2189_v3 = vpop.f32.mrf.mxu3  ;;  %v2254_v28 = vpop.f32.mrf.mxu1  ;;  %2578 = vmatmul.f32.gmra.mxu2 %v1818_v20 }
 0x237   :  { %v2190_v56 = vadd.f32 %v2189_v3, %v2117_v52  ;;  %v1860_v3 = vld [vmem:[%s6263_s3 + $0x548] sm:$0xff] }
 0x238   :  { %v5878_v1 = vpop.f32.mrf.mxu0 }
 0x239   :  { %v2255_v30 = vadd.f32 %v2254_v28, %v2190_v56  ;;  %v2319_v58 = vpop.f32.mrf.mxu2  ;;  %2513 = vmatmul.f32.gmra.mxu1 %v1817_v43 }
 0x23b   :  { %v5886_v44 = vadd.f32 %v2319_v58, %v2255_v30  ;;  %2386 = vmatmul.f32.gmra.mxu3 %v1826_v55  ;;  %2451 = vmatmul.f32.gmra.mxu0 %v1827_v61  ;;  %v1862_v55 = vld [vmem:[%s6263_s3 + $0x558] sm:$0xff]  ;;  %v2137_v61 = vpop.permute.xlu0 %2136 }
 0x23e   :  { %v2192_v32 = vpop.f32.mrf.mxu3  ;;  %v2257_v48 = vpop.f32.mrf.mxu1  ;;  %2581 = vmatmul.f32.gmra.mxu2 %v1829_v14 }
 0x23f   :  { %v2193_v26 = vadd.f32 %v2192_v32, %v2122_v49  ;;  %v1699_v49 = vld [vmem:[%s6263_s3 + $0x40] sm:$0xff]  ;;  %v2157_v32 = vadd.f32 %v5744_v18, %v5752_v37  ;;  %v1700_v18 = vld [vmem:[%s6263_s3 + $0x48] sm:$0xff] }
 0x240   :  { %v5894_v29 = vpop.f32.mrf.mxu0 }
 0x241   :  { %v2258_v39 = vadd.f32 %v2257_v48, %v2193_v26  ;;  %v2322_v57 = vpop.f32.mrf.mxu2  ;;  %2516 = vmatmul.f32.gmra.mxu1 %v1828_v40  ;;  %v2222_v26 = vadd.f32 %v5814_v62, %v2157_v32  ;;  %v1709_v62 = vld [vmem:[%s6263_s3 + $0x90] sm:$0xff]  ;;  %v1734_v32 = vld [vmem:[%s6263_s3 + $0x158] sm:$0xff] }
 0x243   :  { %v5902_v15 = vadd.f32 %v2322_v57, %v2258_v39  ;;  %2389 = vmatmul.f32.gmra.mxu3 %v1837_v10  ;;  %2454 = vmatmul.f32.gmra.mxu0 %v1838_v5  ;;  %v1701_v5 = vld [vmem:[%s6263_s3 + $0x50] sm:$0xff]  ;;  %v2287_v39 = vadd.f32 %v5878_v1, %v2222_v26  ;;  %v2160_v1 = vadd.f32 %v5760_v6, %v5770_v13  ;;  %v1711_v6 = vld [vmem:[%s6263_s3 + $0xa0] sm:$0xff] }
 0x246   :  { %v2195_v17 = vpop.f32.mrf.mxu3  ;;  %v2260_v23 = vpop.f32.mrf.mxu1  ;;  %2584 = vmatmul.f32.gmra.mxu2 %v1840_v9 }
 0x247   :  { %v2196_v41 = vadd.f32 %v2195_v17, %v2127_v0  ;;  %v1710_v17 = vld [vmem:[%s6263_s3 + $0x98] sm:$0xff] }
 0x248   :  { %v5910_v45 = vpop.f32.mrf.mxu0 }
 0x249   :  { %v2261_v7 = vadd.f32 %v2260_v23, %v2196_v41  ;;  %v2325_v51 = vpop.f32.mrf.mxu2  ;;  %2519 = vmatmul.f32.gmra.mxu1 %v1839_v2  ;;  %v2225_v41 = vadd.f32 %v5830_v21, %v2160_v1  ;;  %v1720_v21 = vld [vmem:[%s6263_s3 + $0xe8] sm:$0xff] }
 0x24a   :  { %v1744_v1 = vld [vmem:[%s6263_s3 + $0x1a8] sm:$0xff] }
 0x24b   :  { %v5918_v33 = vadd.f32 %v2325_v51, %v2261_v7  ;;  %2392 = vmatmul.f32.gmra.mxu3 %v1848_v35  ;;  %2457 = vmatmul.f32.gmra.mxu0 %v1849_v27  ;;  %v1712_v27 = vld [vmem:[%s6263_s3 + $0xa8] sm:$0xff]  ;;  %v2290_v7 = vadd.f32 %v5894_v29, %v2225_v41  ;;  %v2163_v29 = vadd.f32 %v5780_v47, %v5765_v34  ;;  %v1722_v34 = vld [vmem:[%s6263_s3 + $0xf8] sm:$0xff] }
 0x24e   :  { %v2198_v53 = vpop.f32.mrf.mxu3  ;;  %v2263_v20 = vpop.f32.mrf.mxu1  ;;  %2587 = vmatmul.f32.gmra.mxu2 %v1851_v59 }
 0x24f   :  { %v2199_v24 = vadd.f32 %v2198_v53, %v2132_v38 }
 0x250   :  { %v5926_v52 = vpop.f32.mrf.mxu0 }
 0x251   :  { %v2264_v28 = vadd.f32 %v2263_v20, %v2199_v24  ;;  %v2328_v43 = vpop.f32.mrf.mxu2  ;;  %2522 = vmatmul.f32.gmra.mxu1 %v1850_v25  ;;  %v1721_v20 = vld [vmem:[%s6263_s3 + $0xf0] sm:$0xff] }
 0x253   :  { %v5934_v56 = vadd.f32 %v2328_v43, %v2264_v28  ;;  %2395 = vmatmul.f32.gmra.mxu3 %v1859_v4  ;;  %2460 = vmatmul.f32.gmra.mxu0 %v1860_v3  ;;  %v2228_v4 = vadd.f32 %v5846_v19, %v2163_v29  ;;  %v1723_v28 = vld [vmem:[%s6263_s3 + $0x100] sm:$0xff] }
 0x254   :  { %v1731_v19 = vld [vmem:[%s6263_s3 + $0x140] sm:$0xff] }
 0x255   :  { %v2293_v43 = vadd.f32 %v5910_v45, %v2228_v4  ;;  %v2166_v45 = vadd.f32 %v5798_v11, %v5788_v50  ;;  %v1733_v50 = vld [vmem:[%s6263_s3 + $0x150] sm:$0xff] }
 0x256   :  { %v2201_v30 = vpop.f32.mrf.mxu3  ;;  %v2266_v58 = vpop.f32.mrf.mxu1  ;;  %2590 = vmatmul.f32.gmra.mxu2 %v1862_v55 }
 0x257   :  { %v2202_v14 = vadd.f32 %v2201_v30, %v2137_v61 }
 0x258   :  { %v2416_v12 = vpop.f32.mrf.mxu0 }
 0x259   :  { %v2267_v48 = vadd.f32 %v2266_v58, %v2202_v14  ;;  %v2331_v40 = vpop.f32.mrf.mxu2  ;;  %2525 = vmatmul.f32.gmra.mxu1 %v1861_v54  ;;  %v1732_v54 = vld [vmem:[%s6263_s3 + $0x148] sm:$0xff] }
 0x25b   :  { %v5951_v10 = vadd.f32 %v2331_v40, %v2267_v48  ;;  %2610 = vmatmul.f32.vlgmr.msra.gmra.mxu3 %v1698_v42  ;;  %2675 = vmatmul.f32.vlgmr.msra.gmra.mxu0 %v1699_v49 }
 0x25e   :  { %v2351_v57 = vpop.f32.mrf.mxu3  ;;  %2805 = vmatmul.f32.vlgmr.msra.gmra.mxu2 %v1701_v5  ;;  %v2481_v9 = vpop.f32.mrf.mxu1 }
 0x25f   :  { %v2352_v37 = vadd.f32 %v2351_v57, %v2287_v39  ;;  %v1743_v57 = vld [vmem:[%s6263_s3 + $0x1a0] sm:$0xff] }
 0x260   :  { %v2419_v0 = vpop.f32.mrf.mxu0 }
 0x261   :  { %v2417_v23 = vadd.f32 %v2416_v12, %v2352_v37  ;;  %v2546_v2 = vpop.f32.mrf.mxu2  ;;  %2740 = vmatmul.f32.vlgmr.msra.gmra.mxu1 %v1700_v18  ;;  %v2231_v12 = vadd.f32 %v5862_v31, %v2166_v45  ;;  %v1742_v31 = vld [vmem:[%s6263_s3 + $0x198] sm:$0xff]  ;;  %v1745_v37 = vld [vmem:[%s6263_s3 + $0x1b0] sm:$0xff] }
 0x263   :  { %v2482_v35 = vadd.f32 %v2481_v9, %v2417_v23  ;;  %2613 = vmatmul.f32.gmra.mxu3 %v1709_v62  ;;  %2678 = vmatmul.f32.gmra.mxu0 %v1710_v17  ;;  %v2296_v48 = vadd.f32 %v5926_v52, %v2231_v12 }
 0x265   :  { %v5973_v51 = vadd.f32 %v2546_v2, %v2482_v35  ;;  %v1753_v2 = vld [vmem:[%s6263_s3 + $0x1f0] sm:$0xff]  ;;  %v1754_v35 = vld [vmem:[%s6263_s3 + $0x1f8] sm:$0xff] }
 0x266   :  { %v2354_v59 = vpop.f32.mrf.mxu3  ;;  %2808 = vmatmul.f32.gmra.mxu2 %v1712_v27  ;;  %v2484_v38 = vpop.f32.mrf.mxu1 }
 0x267   :  { %v2355_v13 = vadd.f32 %v2354_v59, %v2290_v7 }
 0x268   :  { %v2422_v53 = vpop.f32.mrf.mxu0 }
 0x269   :  { %v2420_v25 = vadd.f32 %v2419_v0, %v2355_v13  ;;  %v2549_v24 = vpop.f32.mrf.mxu2  ;;  %2743 = vmatmul.f32.gmra.mxu1 %v1711_v6 }
 0x26b   :  { %v2485_v3 = vadd.f32 %v2484_v38, %v2420_v25  ;;  %2616 = vmatmul.f32.gmra.mxu3 %v1720_v21  ;;  %2681 = vmatmul.f32.gmra.mxu0 %v1721_v20  ;;  %v1756_v38 = vld [vmem:[%s6263_s3 + $0x208] sm:$0xff]  ;;  %v1755_v21 = vld [vmem:[%s6263_s3 + $0x200] sm:$0xff]  ;;  %v1765_v25 = vld [vmem:[%s6263_s3 + $0x250] sm:$0xff] }
 0x26c   :  { %v1764_v20 = vld [vmem:[%s6263_s3 + $0x248] sm:$0xff] }
 0x26d   :  { %v5991_v55 = vadd.f32 %v2549_v24, %v2485_v3 }
 0x26e   :  { %v2357_v61 = vpop.f32.mrf.mxu3  ;;  %2811 = vmatmul.f32.gmra.mxu2 %v1723_v28  ;;  %v2487_v30 = vpop.f32.mrf.mxu1  ;;  %v1767_v28 = vld [vmem:[%s6263_s3 + $0x260] sm:$0xff] }
 0x26f   :  { %v2358_v47 = vadd.f32 %v2357_v61, %v2293_v43 }
 0x270   :  { %v2425_v58 = vpop.f32.mrf.mxu0 }
 0x271   :  { %v2423_v14 = vadd.f32 %v2422_v53, %v2358_v47  ;;  %v2552_v42 = vpop.f32.mrf.mxu2  ;;  %2746 = vmatmul.f32.gmra.mxu1 %v1722_v34  ;;  %v1775_v47 = vld [vmem:[%s6263_s3 + $0x2a0] sm:$0xff] }
 0x273   :  { %v2488_v49 = vadd.f32 %v2487_v30, %v2423_v14  ;;  %2619 = vmatmul.f32.gmra.mxu3 %v1731_v19  ;;  %2684 = vmatmul.f32.gmra.mxu0 %v1732_v54  ;;  %v1766_v30 = vld [vmem:[%s6263_s3 + $0x258] sm:$0xff] }
 0x275   :  { %v6009_v40 = vadd.f32 %v2552_v42, %v2488_v49  ;;  %v1778_v42 = vld [vmem:[%s6263_s3 + $0x2b8] sm:$0xff] }
 0x276   :  { %v2360_v26 = vpop.f32.mrf.mxu3  ;;  %2814 = vmatmul.f32.gmra.mxu2 %v1734_v32  ;;  %v2490_v5 = vpop.f32.mrf.mxu1  ;;  %v1777_v32 = vld [vmem:[%s6263_s3 + $0x2b0] sm:$0xff] }
 0x277   :  { %v2361_v11 = vadd.f32 %v2360_v26, %v2296_v48  ;;  %v1786_v26 = vld [vmem:[%s6263_s3 + $0x2f8] sm:$0xff] }
 0x278   :  { %v2428_v39 = vpop.f32.mrf.mxu0 }
 0x279   :  { %v2426_v52 = vadd.f32 %v2425_v58, %v2361_v11  ;;  %v2555_v9 = vpop.f32.mrf.mxu2  ;;  %2749 = vmatmul.f32.gmra.mxu1 %v1733_v50  ;;  %v1776_v58 = vld [vmem:[%s6263_s3 + $0x2a8] sm:$0xff]  ;;  %v1787_v50 = vld [vmem:[%s6263_s3 + $0x300] sm:$0xff] }
 0x27b   :  { %v2491_v18 = vadd.f32 %v2490_v5, %v2426_v52  ;;  %2622 = vmatmul.f32.gmra.mxu3 %v1742_v31  ;;  %2687 = vmatmul.f32.gmra.mxu0 %v1743_v57  ;;  %v1789_v57 = vld [vmem:[%s6263_s3 + $0x310] sm:$0xff] }
 0x27d   :  { %v6023_v62 = vadd.f32 %v2555_v9, %v2491_v18  ;;  %v1788_v18 = vld [vmem:[%s6263_s3 + $0x308] sm:$0xff] }
 0x27e   :  { %v2363_v0 = vpop.f32.mrf.mxu3  ;;  %2817 = vmatmul.f32.gmra.mxu2 %v1745_v37  ;;  %v2493_v17 = vpop.f32.mrf.mxu1 }
 0x27f   :  { %v2364_v23 = vadd.f32 %v2363_v0, %v5772_v60  ;;  %v1797_v0 = vld [vmem:[%s6263_s3 + $0x350] sm:$0xff] }
 0x280   :  { %v2431_v41 = vpop.f32.mrf.mxu0 }
 0x281   :  { %v2429_v27 = vadd.f32 %v2428_v39, %v2364_v23  ;;  %v2558_v7 = vpop.f32.mrf.mxu2  ;;  %2752 = vmatmul.f32.gmra.mxu1 %v1744_v1  ;;  %v1798_v1 = vld [vmem:[%s6263_s3 + $0x358] sm:$0xff] }
 0x283   :  { %v2494_v59 = vadd.f32 %v2493_v17, %v2429_v27  ;;  %2625 = vmatmul.f32.gmra.mxu3 %v1753_v2  ;;  %2690 = vmatmul.f32.gmra.mxu0 %v1754_v35  ;;  %v1800_v35 = vld [vmem:[%s6263_s3 + $0x368] sm:$0xff] }
 0x285   :  { %v6038_v60 = vadd.f32 %v2558_v7, %v2494_v59  ;;  %v1799_v59 = vld [vmem:[%s6263_s3 + $0x360] sm:$0xff] }
 0x286   :  { %v2366_v6 = vpop.f32.mrf.mxu3  ;;  %2820 = vmatmul.f32.gmra.mxu2 %v1756_v38  ;;  %v2496_v13 = vpop.f32.mrf.mxu1 }
 0x287   :  { %v2367_v53 = vadd.f32 %v2366_v6, %v5790_v36  ;;  %v1808_v6 = vld [vmem:[%s6263_s3 + $0x3a8] sm:$0xff] }
 0x288   :  { %v2434_v29 = vpop.f32.mrf.mxu0 }
 0x289   :  { %v2432_v24 = vadd.f32 %v2431_v41, %v2367_v53  ;;  %v2561_v4 = vpop.f32.mrf.mxu2  ;;  %2755 = vmatmul.f32.gmra.mxu1 %v1755_v21  ;;  %v1809_v21 = vld [vmem:[%s6263_s3 + $0x3b0] sm:$0xff] }
 0x28b   :  { %v2497_v3 = vadd.f32 %v2496_v13, %v2432_v24  ;;  %2628 = vmatmul.f32.gmra.mxu3 %v1764_v20  ;;  %2693 = vmatmul.f32.gmra.mxu0 %v1765_v25  ;;  %v1811_v25 = vld [vmem:[%s6263_s3 + $0x3c0] sm:$0xff] }
 0x28d   :  { %v6053_v36 = vadd.f32 %v2561_v4, %v2497_v3  ;;  %v1810_v3 = vld [vmem:[%s6263_s3 + $0x3b8] sm:$0xff] }
 0x28e   :  { %v2369_v43 = vpop.f32.mrf.mxu3  ;;  %2823 = vmatmul.f32.gmra.mxu2 %v1767_v28  ;;  %v2499_v61 = vpop.f32.mrf.mxu1 }
 0x28f   :  { %v2370_v34 = vadd.f32 %v2369_v43, %v5806_v46  ;;  %v1819_v43 = vld [vmem:[%s6263_s3 + $0x400] sm:$0xff] }
 0x290   :  { %v2437_v19 = vpop.f32.mrf.mxu0 }
 0x291   :  { %v2435_v54 = vadd.f32 %v2434_v29, %v2370_v34  ;;  %v2564_v45 = vpop.f32.mrf.mxu2  ;;  %2758 = vmatmul.f32.gmra.mxu1 %v1766_v30  ;;  %v1820_v30 = vld [vmem:[%s6263_s3 + $0x408] sm:$0xff] }
 0x293   :  { %v2500_v14 = vadd.f32 %v2499_v61, %v2435_v54  ;;  %2631 = vmatmul.f32.gmra.mxu3 %v1775_v47  ;;  %2696 = vmatmul.f32.gmra.mxu0 %v1776_v58  ;;  %v1822_v58 = vld [vmem:[%s6263_s3 + $0x418] sm:$0xff] }
 0x295   :  { %v6068_v46 = vadd.f32 %v2564_v45, %v2500_v14  ;;  %v1821_v14 = vld [vmem:[%s6263_s3 + $0x410] sm:$0xff] }
 0x296   :  { %v2372_v12 = vpop.f32.mrf.mxu3  ;;  %2826 = vmatmul.f32.gmra.mxu2 %v1778_v42  ;;  %v2502_v49 = vpop.f32.mrf.mxu1 }
 0x297   :  { %v2373_v48 = vadd.f32 %v2372_v12, %v5822_v63  ;;  %v1830_v12 = vld [vmem:[%s6263_s3 + $0x458] sm:$0xff] }
 0x298   :  { %v2440_v5 = vpop.f32.mrf.mxu0 }
 0x299   :  { %v2438_v11 = vadd.f32 %v2437_v19, %v2373_v48  ;;  %v2567_v31 = vpop.f32.mrf.mxu2  ;;  %2761 = vmatmul.f32.gmra.mxu1 %v1777_v32  ;;  %v1831_v32 = vld [vmem:[%s6263_s3 + $0x460] sm:$0xff] }
 0x29b   :  { %v2503_v39 = vadd.f32 %v2502_v49, %v2438_v11  ;;  %2634 = vmatmul.f32.gmra.mxu3 %v1786_v26  ;;  %2699 = vmatmul.f32.gmra.mxu0 %v1787_v50  ;;  %v1833_v50 = vld [vmem:[%s6263_s3 + $0x470] sm:$0xff] }
 0x29d   :  { %v6083_v63 = vadd.f32 %v2567_v31, %v2503_v39  ;;  %v1832_v39 = vld [vmem:[%s6263_s3 + $0x468] sm:$0xff] }
 0x29e   :  { %v2375_v52 = vpop.f32.mrf.mxu3  ;;  %2829 = vmatmul.f32.gmra.mxu2 %v1789_v57  ;;  %v2505_v9 = vpop.f32.mrf.mxu1 }
 0x29f   :  { %v2376_v37 = vadd.f32 %v2375_v52, %v5838_v22  ;;  %v1841_v52 = vld [vmem:[%s6263_s3 + $0x4b0] sm:$0xff] }
 0x2a0   :  { %v2443_v17 = vpop.f32.mrf.mxu0 }
 0x2a1   :  { %v2441_v23 = vadd.f32 %v2440_v5, %v2376_v37  ;;  %v2570_v2 = vpop.f32.mrf.mxu2  ;;  %2764 = vmatmul.f32.gmra.mxu1 %v1788_v18  ;;  %v1842_v18 = vld [vmem:[%s6263_s3 + $0x4b8] sm:$0xff] }
 0x2a3   :  { %v2506_v41 = vadd.f32 %v2505_v9, %v2441_v23  ;;  %2637 = vmatmul.f32.gmra.mxu3 %v1797_v0  ;;  %2702 = vmatmul.f32.gmra.mxu0 %v1798_v1  ;;  %v1844_v1 = vld [vmem:[%s6263_s3 + $0x4c8] sm:$0xff] }
 0x2a5   :  { %v6098_v22 = vadd.f32 %v2570_v2, %v2506_v41  ;;  %v1843_v41 = vld [vmem:[%s6263_s3 + $0x4c0] sm:$0xff] }
 0x2a6   :  { %v2378_v27 = vpop.f32.mrf.mxu3  ;;  %2832 = vmatmul.f32.gmra.mxu2 %v1800_v35  ;;  %v2508_v7 = vpop.f32.mrf.mxu1 }
 0x2a7   :  { %v2379_v38 = vadd.f32 %v2378_v27, %v5854_v16  ;;  %v1852_v27 = vld [vmem:[%s6263_s3 + $0x508] sm:$0xff] }
 0x2a8   :  { %v2446_v13 = vpop.f32.mrf.mxu0 }
 0x2a9   :  { %v2444_v53 = vadd.f32 %v2443_v17, %v2379_v38  ;;  %v2573_v20 = vpop.f32.mrf.mxu2  ;;  %2767 = vmatmul.f32.gmra.mxu1 %v1799_v59  ;;  %v1853_v59 = vld [vmem:[%s6263_s3 + $0x510] sm:$0xff] }
 0x2ab   :  { %v2509_v29 = vadd.f32 %v2508_v7, %v2444_v53  ;;  %2640 = vmatmul.f32.gmra.mxu3 %v1808_v6  ;;  %2705 = vmatmul.f32.gmra.mxu0 %v1809_v21  ;;  %v1855_v21 = vld [vmem:[%s6263_s3 + $0x520] sm:$0xff] }
 0x2ad   :  { %v6113_v16 = vadd.f32 %v2573_v20, %v2509_v29  ;;  %v1854_v29 = vld [vmem:[%s6263_s3 + $0x518] sm:$0xff] }
 0x2ae   :  { %v2381_v24 = vpop.f32.mrf.mxu3  ;;  %2835 = vmatmul.f32.gmra.mxu2 %v1811_v25  ;;  %v2511_v4 = vpop.f32.mrf.mxu1 }
 0x2af   :  { %v2382_v28 = vadd.f32 %v2381_v24, %v5870_v8  ;;  %v1863_v24 = vld [vmem:[%s6263_s3 + $0x560] sm:$0xff] }
 0x2b0   :  { %v2449_v61 = vpop.f32.mrf.mxu0 }
 0x2b1   :  { %v2447_v34 = vadd.f32 %v2446_v13, %v2382_v28  ;;  %v2576_v47 = vpop.f32.mrf.mxu2  ;;  %2770 = vmatmul.f32.gmra.mxu1 %v1810_v3  ;;  %v1864_v3 = vld [vmem:[%s6263_s3 + $0x568] sm:$0xff] }
 0x2b3   :  { %v2512_v19 = vadd.f32 %v2511_v4, %v2447_v34  ;;  %2643 = vmatmul.f32.gmra.mxu3 %v1819_v43  ;;  %2708 = vmatmul.f32.gmra.mxu0 %v1820_v30  ;;  %v1866_v30 = vld [vmem:[%s6263_s3 + $0x578] sm:$0xff] }
 0x2b5   :  { %v6128_v8 = vadd.f32 %v2576_v47, %v2512_v19  ;;  %v1865_v19 = vld [vmem:[%s6263_s3 + $0x570] sm:$0xff] }
 0x2b6   :  { %v2384_v54 = vpop.f32.mrf.mxu3  ;;  %2838 = vmatmul.f32.gmra.mxu2 %v1822_v58  ;;  %v2514_v45 = vpop.f32.mrf.mxu1 }
 0x2b7   :  { %v2385_v42 = vadd.f32 %v2384_v54, %v5886_v44 }
 0x2b8   :  { %v2452_v49 = vpop.f32.mrf.mxu0 }
 0x2b9   :  { %v2450_v48 = vadd.f32 %v2449_v61, %v2385_v42  ;;  %v2579_v26 = vpop.f32.mrf.mxu2  ;;  %2773 = vmatmul.f32.gmra.mxu1 %v1821_v14 }
 0x2bb   :  { %v2515_v5 = vadd.f32 %v2514_v45, %v2450_v48  ;;  %2646 = vmatmul.f32.gmra.mxu3 %v1830_v12  ;;  %2711 = vmatmul.f32.gmra.mxu0 %v1831_v32 }
 0x2bd   :  { %v6143_v44 = vadd.f32 %v2579_v26, %v2515_v5 }
 0x2be   :  { %v2387_v11 = vpop.f32.mrf.mxu3  ;;  %2841 = vmatmul.f32.gmra.mxu2 %v1833_v50  ;;  %v2517_v31 = vpop.f32.mrf.mxu1 }
 0x2bf   :  { %v2388_v57 = vadd.f32 %v2387_v11, %v5902_v15 }
 0x2c0   :  { %v2455_v9 = vpop.f32.mrf.mxu0 }
 0x2c1   :  { %v2453_v37 = vadd.f32 %v2452_v49, %v2388_v57  ;;  %v2582_v0 = vpop.f32.mrf.mxu2  ;;  %2776 = vmatmul.f32.gmra.mxu1 %v1832_v39 }
 0x2c3   :  { %v2518_v17 = vadd.f32 %v2517_v31, %v2453_v37  ;;  %2649 = vmatmul.f32.gmra.mxu3 %v1841_v52  ;;  %2714 = vmatmul.f32.gmra.mxu0 %v1842_v18 }
 0x2c5   :  { %v6158_v15 = vadd.f32 %v2582_v0, %v2518_v17 }
 0x2c6   :  { %v2390_v23 = vpop.f32.mrf.mxu3  ;;  %2844 = vmatmul.f32.gmra.mxu2 %v1844_v1  ;;  %v2520_v2 = vpop.f32.mrf.mxu1 }
 0x2c7   :  { %v2391_v35 = vadd.f32 %v2390_v23, %v5918_v33 }
 0x2c8   :  { %v2458_v7 = vpop.f32.mrf.mxu0 }
 0x2c9   :  { %v2456_v38 = vadd.f32 %v2455_v9, %v2391_v35  ;;  %v2585_v6 = vpop.f32.mrf.mxu2  ;;  %2779 = vmatmul.f32.gmra.mxu1 %v1843_v41 }
 0x2cb   :  { %v2521_v13 = vadd.f32 %v2520_v2, %v2456_v38  ;;  %2652 = vmatmul.f32.gmra.mxu3 %v1852_v27  ;;  %2717 = vmatmul.f32.gmra.mxu0 %v1853_v59 }
 0x2cd   :  { %v6173_v33 = vadd.f32 %v2585_v6, %v2521_v13 }
 0x2ce   :  { %v2393_v53 = vpop.f32.mrf.mxu3  ;;  %2847 = vmatmul.f32.gmra.mxu2 %v1855_v21  ;;  %v2523_v20 = vpop.f32.mrf.mxu1 }
 0x2cf   :  { %v2394_v25 = vadd.f32 %v2393_v53, %v5934_v56 }
 0x2d0   :  { %v2461_v4 = vpop.f32.mrf.mxu0 }
 0x2d1   :  { %v2459_v28 = vadd.f32 %v2458_v7, %v2394_v25  ;;  %v2588_v43 = vpop.f32.mrf.mxu2  ;;  %2782 = vmatmul.f32.gmra.mxu1 %v1854_v29 }
 0x2d3   :  { %v2524_v61 = vadd.f32 %v2523_v20, %v2459_v28  ;;  %2655 = vmatmul.f32.gmra.mxu3 %v1863_v24  ;;  %2720 = vmatmul.f32.gmra.mxu0 %v1864_v3 }
 0x2d5   :  { %v6188_v56 = vadd.f32 %v2588_v43, %v2524_v61 }
 0x2d6   :  { %v2396_v34 = vpop.f32.mrf.mxu3  ;;  %2850 = vmatmul.f32.gmra.mxu2 %v1866_v30  ;;  %v2526_v47 = vpop.f32.mrf.mxu1 }
 0x2d7   :  { %v2397_v58 = vadd.f32 %v2396_v34, %v5951_v10 }
 0x2d8   :  { %v2676_v54 = vpop.f32.mrf.mxu0 }
 0x2d9   :  { %v2462_v45 = vadd.f32 %v2461_v4, %v2397_v58  ;;  %v2591_v14 = vpop.f32.mrf.mxu2  ;;  %2785 = vmatmul.f32.gmra.mxu1 %v1865_v19 }
 0x2db   :  { %v2527_v42 = vadd.f32 %v2526_v47, %v2462_v45 }
 0x2dd   :  { %v6194_v12 = vadd.f32 %v2591_v14, %v2527_v42 }
 0x2de   :  { %v2611_v49 = vpop.f32.mrf.mxu3  ;;  %v2741_v32 = vpop.f32.mrf.mxu1 }
 0x2df   :  { %v2612_v48 = vadd.f32 %v2611_v49, %v5973_v51 }
 0x2e0   :  { %v2679_v26 = vpop.f32.mrf.mxu0 }
 0x2e1   :  { %v2677_v5 = vadd.f32 %v2676_v54, %v2612_v48  ;;  %v2806_v50 = vpop.f32.mrf.mxu2 }
 0x2e3   :  { %v2742_v11 = vadd.f32 %v2741_v32, %v2677_v5 }
 0x2e5   :  { %v2807_v31 = vadd.f32 %v2806_v50, %v2742_v11 }
 0x2e6   :  { %v2614_v39 = vpop.f32.mrf.mxu3  ;;  %v2744_v57 = vpop.f32.mrf.mxu1 }
 0x2e7   :  { %2854 = vst [vmem:[%s6265_s5] sm:$0xff] %v2807_v31  ;;  %v2615_v10 = vadd.f32 %v2614_v39, %v5991_v55 }
 0x2e8   :  { %v2682_v52 = vpop.f32.mrf.mxu0 }
 0x2e9   :  { %v2680_v9 = vadd.f32 %v2679_v26, %v2615_v10  ;;  %v2809_v18 = vpop.f32.mrf.mxu2 }
 0x2eb   :  { %v2745_v37 = vadd.f32 %v2744_v57, %v2680_v9 }
 0x2ed   :  { %v2810_v0 = vadd.f32 %v2809_v18, %v2745_v37 }
 0x2ee   :  { %v2617_v17 = vpop.f32.mrf.mxu3  ;;  %v2747_v51 = vpop.f32.mrf.mxu1 }
 0x2ef   :  { %2855 = vst [vmem:[%s6265_s5 + $0x8] sm:$0xff] %v2810_v0  ;;  %v2618_v1 = vadd.f32 %v2617_v17, %v6009_v40 }
 0x2f0   :  { %v2685_v23 = vpop.f32.mrf.mxu0 }
 0x2f1   :  { %v2683_v2 = vadd.f32 %v2682_v52, %v2618_v1  ;;  %v2812_v41 = vpop.f32.mrf.mxu2 }
 0x2f3   :  { %v2748_v35 = vadd.f32 %v2747_v51, %v2683_v2 }
 0x2f5   :  { %v2813_v27 = vadd.f32 %v2812_v41, %v2748_v35 }
 0x2f6   :  { %v2620_v7 = vpop.f32.mrf.mxu3  ;;  %v2750_v55 = vpop.f32.mrf.mxu1 }
 0x2f7   :  { %2856 = vst [vmem:[%s6265_s5 + $0x10] sm:$0xff] %v2813_v27  ;;  %v2621_v59 = vadd.f32 %v2620_v7, %v6023_v62 }
 0x2f8   :  { %v2688_v38 = vpop.f32.mrf.mxu0 }
 0x2f9   :  { %v2686_v6 = vadd.f32 %v2685_v23, %v2621_v59  ;;  %v2815_v13 = vpop.f32.mrf.mxu2 }
 0x2fb   :  { %v2751_v21 = vadd.f32 %v2750_v55, %v2686_v6 }
 0x2fd   :  { %v2816_v53 = vadd.f32 %v2815_v13, %v2751_v21 }
 0x2fe   :  { %v2623_v20 = vpop.f32.mrf.mxu3  ;;  %v2753_v40 = vpop.f32.mrf.mxu1 }
 0x2ff   :  { %2857 = vst [vmem:[%s6265_s5 + $0x18] sm:$0xff] %v2816_v53  ;;  %v2624_v29 = vadd.f32 %v2623_v20, %v6038_v60 }
 0x300   :  { %v2691_v25 = vpop.f32.mrf.mxu0 }
 0x301   :  { %v2689_v24 = vadd.f32 %v2688_v38, %v2624_v29  ;;  %v2818_v4 = vpop.f32.mrf.mxu2 }
 0x303   :  { %v2754_v3 = vadd.f32 %v2753_v40, %v2689_v24 }
 0x305   :  { %v2819_v28 = vadd.f32 %v2818_v4, %v2754_v3 }
 0x306   :  { %v2626_v43 = vpop.f32.mrf.mxu3  ;;  %v2756_v62 = vpop.f32.mrf.mxu1 }
 0x307   :  { %2858 = vst [vmem:[%s6265_s5 + $0x20] sm:$0xff] %v2819_v28  ;;  %v2627_v61 = vadd.f32 %v2626_v43, %v6053_v36 }
 0x308   :  { %v2694_v30 = vpop.f32.mrf.mxu0 }
 0x309   :  { %v2692_v34 = vadd.f32 %v2691_v25, %v2627_v61  ;;  %v2821_v47 = vpop.f32.mrf.mxu2 }
 0x30b   :  { %v2757_v19 = vadd.f32 %v2756_v62, %v2692_v34 }
 0x30d   :  { %v2822_v58 = vadd.f32 %v2821_v47, %v2757_v19 }
 0x30e   :  { %v2629_v54 = vpop.f32.mrf.mxu3  ;;  %v2759_v60 = vpop.f32.mrf.mxu1 }
 0x30f   :  { %2859 = vst [vmem:[%s6265_s5 + $0x28] sm:$0xff] %v2822_v58  ;;  %v2630_v45 = vadd.f32 %v2629_v54, %v6068_v46 }
 0x310   :  { %v2697_v14 = vpop.f32.mrf.mxu0 }
 0x311   :  { %v2695_v42 = vadd.f32 %v2694_v30, %v2630_v45  ;;  %v2824_v49 = vpop.f32.mrf.mxu2 }
 0x313   :  { %v2760_v32 = vadd.f32 %v2759_v60, %v2695_v42 }
 0x315   :  { %v2825_v48 = vadd.f32 %v2824_v49, %v2760_v32 }
 0x316   :  { %v2632_v26 = vpop.f32.mrf.mxu3  ;;  %v2762_v36 = vpop.f32.mrf.mxu1 }
 0x317   :  { %2860 = vst [vmem:[%s6265_s5 + $0x30] sm:$0xff] %v2825_v48  ;;  %v2633_v5 = vadd.f32 %v2632_v26, %v6083_v63 }
 0x318   :  { %v2700_v50 = vpop.f32.mrf.mxu0 }
 0x319   :  { %v2698_v11 = vadd.f32 %v2697_v14, %v2633_v5  ;;  %v2827_v31 = vpop.f32.mrf.mxu2 }
 0x31b   :  { %v2763_v39 = vadd.f32 %v2762_v36, %v2698_v11 }
 0x31d   :  { %v2828_v57 = vadd.f32 %v2827_v31, %v2763_v39 }
 0x31e   :  { %v2635_v10 = vpop.f32.mrf.mxu3  ;;  %v2765_v46 = vpop.f32.mrf.mxu1 }
 0x31f   :  { %2861 = vst [vmem:[%s6265_s5 + $0x38] sm:$0xff] %v2828_v57  ;;  %v2636_v52 = vadd.f32 %v2635_v10, %v6098_v22 }
 0x320   :  { %v2703_v9 = vpop.f32.mrf.mxu0 }
 0x321   :  { %v2701_v18 = vadd.f32 %v2700_v50, %v2636_v52  ;;  %v2830_v37 = vpop.f32.mrf.mxu2 }
 0x323   :  { %v2766_v0 = vadd.f32 %v2765_v46, %v2701_v18 }
 0x325   :  { %v2831_v17 = vadd.f32 %v2830_v37, %v2766_v0 }
 0x326   :  { %v2638_v51 = vpop.f32.mrf.mxu3  ;;  %v2768_v63 = vpop.f32.mrf.mxu1 }
 0x327   :  { %2862 = vst [vmem:[%s6265_s5 + $0x40] sm:$0xff] %v2831_v17  ;;  %v2639_v1 = vadd.f32 %v2638_v51, %v6113_v16 }
 0x328   :  { %v2706_v23 = vpop.f32.mrf.mxu0 }
 0x329   :  { %v2704_v2 = vadd.f32 %v2703_v9, %v2639_v1  ;;  %v2833_v41 = vpop.f32.mrf.mxu2 }
 0x32b   :  { %v2769_v35 = vadd.f32 %v2768_v63, %v2704_v2 }
 0x32d   :  { %v2834_v27 = vadd.f32 %v2833_v41, %v2769_v35 }
 0x32e   :  { %v2641_v7 = vpop.f32.mrf.mxu3  ;;  %v2771_v22 = vpop.f32.mrf.mxu1 }
 0x32f   :  { %2863 = vst [vmem:[%s6265_s5 + $0x48] sm:$0xff] %v2834_v27  ;;  %v2642_v55 = vadd.f32 %v2641_v7, %v6128_v8 }
 0x330   :  { %v2709_v59 = vpop.f32.mrf.mxu0 }
 0x331   :  { %v2707_v38 = vadd.f32 %v2706_v23, %v2642_v55  ;;  %v2836_v6 = vpop.f32.mrf.mxu2 }
 0x333   :  { %v2772_v13 = vadd.f32 %v2771_v22, %v2707_v38 }
 0x335   :  { %v2837_v21 = vadd.f32 %v2836_v6, %v2772_v13 }
 0x336   :  { %v2644_v53 = vpop.f32.mrf.mxu3  ;;  %v2774_v16 = vpop.f32.mrf.mxu1 }
 0x337   :  { %2864 = vst [vmem:[%s6265_s5 + $0x50] sm:$0xff] %v2837_v21  ;;  %v2645_v20 = vadd.f32 %v2644_v53, %v6143_v44 }
 0x338   :  { %v2712_v40 = vpop.f32.mrf.mxu0 }
 0x339   :  { %v2710_v29 = vadd.f32 %v2709_v59, %v2645_v20  ;;  %v2839_v25 = vpop.f32.mrf.mxu2 }
 0x33b   :  { %v2775_v24 = vadd.f32 %v2774_v16, %v2710_v29 }
 0x33d   :  { %v2840_v4 = vadd.f32 %v2839_v25, %v2775_v24 }
 0x33e   :  { %v2647_v3 = vpop.f32.mrf.mxu3  ;;  %v2777_v8 = vpop.f32.mrf.mxu1 }
 0x33f   :  { %2865 = vst [vmem:[%s6265_s5 + $0x58] sm:$0xff] %v2840_v4  ;;  %v2648_v28 = vadd.f32 %v2647_v3, %v6158_v15 }
 0x340   :  { %v2715_v61 = vpop.f32.mrf.mxu0 }
 0x341   :  { %v2713_v43 = vadd.f32 %v2712_v40, %v2648_v28  ;;  %v2842_v62 = vpop.f32.mrf.mxu2 }
 0x343   :  { %v2778_v30 = vadd.f32 %v2777_v8, %v2713_v43 }
 0x345   :  { %v2843_v34 = vadd.f32 %v2842_v62, %v2778_v30 }
 0x346   :  { %v2650_v47 = vpop.f32.mrf.mxu3  ;;  %v2780_v44 = vpop.f32.mrf.mxu1 }
 0x347   :  { %2866 = vst [vmem:[%s6265_s5 + $0x60] sm:$0xff] %v2843_v34  ;;  %v2651_v19 = vadd.f32 %v2650_v47, %v6173_v33 }
 0x348   :  { %v2718_v45 = vpop.f32.mrf.mxu0 }
 0x349   :  { %v2716_v58 = vadd.f32 %v2715_v61, %v2651_v19  ;;  %v2845_v54 = vpop.f32.mrf.mxu2 }
 0x34b   :  { %v2781_v60 = vadd.f32 %v2780_v44, %v2716_v58 }
 0x34d   :  { %v2846_v14 = vadd.f32 %v2845_v54, %v2781_v60 }
 0x34e   :  { %v2653_v42 = vpop.f32.mrf.mxu3  ;;  %v2783_v15 = vpop.f32.mrf.mxu1 }
 0x34f   :  { %2867 = vst [vmem:[%s6265_s5 + $0x68] sm:$0xff] %v2846_v14  ;;  %v2654_v49 = vadd.f32 %v2653_v42, %v6188_v56 }
 0x350   :  { %v2721_v50 = vpop.f32.mrf.mxu0 }
 0x351   :  { %v2719_v32 = vadd.f32 %v2718_v45, %v2654_v49  ;;  %v2848_v48 = vpop.f32.mrf.mxu2 }
 0x353   :  { %v2784_v26 = vadd.f32 %v2783_v15, %v2719_v32 }
 0x355   :  { %v2849_v36 = vadd.f32 %v2848_v48, %v2784_v26 }
 0x356   :  { %v2656_v5 = vpop.f32.mrf.mxu3  ;;  %v2786_v11 = vpop.f32.mrf.mxu1 }
 0x357   :  { %2868 = vst [vmem:[%s6265_s5 + $0x70] sm:$0xff] %v2849_v36  ;;  %v2657_v33 = vadd.f32 %v2656_v5, %v6194_v12 }
 0x359   :  { %v2722_v31 = vadd.f32 %v2721_v50, %v2657_v33  ;;  %v2851_v39 = vpop.f32.mrf.mxu2 }
 0x35b   :  { %v2787_v57 = vadd.f32 %v2786_v11, %v2722_v31 }
 0x35d   :  { %v2852_v10 = vadd.f32 %v2851_v39, %v2787_v57 }
 0x35f   :  { %2869 = vst [vmem:[%s6265_s5 + $0x78] sm:$0xff] %v2852_v10 }
 0x360   :  { %2874 = vsyncpa [#allocation4], 1 }
 0x361   :  { %2875 = vsyncpa [#allocation6], 1 }

</bundles_post_ra>
